<compile_context>
chip_gen: v7x
topology: tpu7x:2x2x1
jax: 0.10.0
libtpu: 0.0.40
codegen_flags: <defaults>
</compile_context>

<pallas_src>
import jax
import jax.numpy as jnp
import numpy as np
from jax import lax
from jax.experimental import pallas as pl
from jax.experimental.pallas import tpu as pltpu

_LEAK = 0.01
_EPS = 1e-5


def _full_spec(shape):
  """Whole-array block for a single-step grid=(1,)."""
  n = len(shape)
  return pl.BlockSpec(shape, lambda i, _n=n: (0,) * _n)


def _leaky(x):
  return jnp.where(x > 0, x, _LEAK * x)


def _sigmoid(x):
  return 1.0 / (1.0 + jnp.exp(-x))


# ---------------------------------------------------------------------------
# Kernel 1: fused CNN feature extractor.
#   8 x [conv1d(k=3, pad=1) + bias -> LeakyReLU -> BatchNorm1d (batch stats)]
#   with max_pool1d(2) after every second block, then mean over the remaining
#   spatial axis.  Layout (L, M, C): L outer, M sublanes, C lanes.
# ---------------------------------------------------------------------------
def _cnn_kernel(*refs):
  x_ref = refs[0]
  out_ref = refs[-1]
  prm = refs[1:-1]                               # [W, b, gamma, beta] per layer
  n_layers = len(prm) // 4

  h = x_ref[...]                                 # (L, M, Cin) f32
  for li in range(n_layers):
    w = prm[4 * li][...]                         # (3*Cin, Cout)
    b = prm[4 * li + 1][...]                     # (1, 1, Cout)
    gamma = prm[4 * li + 2][...]                 # (1, 1, Cout)
    beta = prm[4 * li + 3][...]                  # (1, 1, Cout)

    # conv1d(k=3, pad=1) as one im2col matmul: halo shifts are outer-dim
    # concatenations with zero fill, taps concatenated on the lane axis.
    sl = h.shape[0]
    zero = jnp.zeros_like(h[:1])
    h_prev = jnp.concatenate([zero, h[:sl - 1]], axis=0)      # x[l-1]
    h_next = jnp.concatenate([h[1:], zero], axis=0)           # x[l+1]
    patches = jnp.concatenate([h_prev, h, h_next], axis=-1)   # (L, M, 3*Cin)
    h = jnp.einsum("lmk,ko->lmo", patches, w,
                   preferred_element_type=jnp.float32) + b

    # LeakyReLU then BatchNorm1d (training-mode batch stats, two-pass var).
    h = _leaky(h)
    cnt = h.shape[0] * h.shape[1]
    mean = jnp.sum(jnp.sum(h, axis=0, keepdims=True),
                   axis=1, keepdims=True) * (1.0 / cnt)
    ctr = h - mean
    var = jnp.sum(jnp.sum(ctr * ctr, axis=0, keepdims=True),
                  axis=1, keepdims=True) * (1.0 / cnt)
    h = ctr * (gamma / jnp.sqrt(var + _EPS)) + beta

    # max_pool1d(2) after every second conv block: outer-dim split + max.
    if li % 2 == 1:
      lh, mh, ch = h.shape
      h = jnp.max(h.reshape(lh // 2, 2, mh, ch), axis=1)

    # Dropout layers are identity.  # TODO(synk): stochastic dropout not replicated.

  out_ref[...] = jnp.mean(h, axis=0)             # (M, 40)


# ---------------------------------------------------------------------------
# Kernel 2: 2-layer bidirectional LSTM (hidden 20) + final Linear(40, 2).
#   Layout (T, B, D): time on the outer dim (static indexing per step).
# ---------------------------------------------------------------------------
def _lstm_fc_kernel(*refs):
  x_ref = refs[0]
  out_ref = refs[-1]
  prm = refs[1:-1]                     # 4 x [Wih^T, Whh^T, bias] then [fcW^T, fcb]
  seq = x_ref[...]                     # (T, B, 40)
  t_len, bsz, _ = seq.shape
  hdim = prm[1].shape[0]               # 20

  for layer in range(2):
    dir_outs = []
    for d in range(2):                 # 0 = forward, 1 = reverse
      base = (layer * 2 + d) * 3
      w_ih = prm[base][...]            # (Din, 4H)
      w_hh = prm[base + 1][...]        # (H, 4H)
      bias = prm[base + 2][...]        # (1, 4H)

      # All timestep input projections in one MXU matmul.
      xproj = jnp.einsum("tbd,dg->tbg", seq, w_ih,
                         preferred_element_type=jnp.float32) + bias
      h = jnp.zeros((bsz, hdim), jnp.float32)
      c = jnp.zeros((bsz, hdim), jnp.float32)
      hs = [None] * t_len
      for s in range(t_len):           # static unroll (T is small)
        t = t_len - 1 - s if d == 1 else s
        gates = xproj[t] + jnp.dot(h, w_hh, preferred_element_type=jnp.float32)
        i_g = _sigmoid(gates[:, 0 * hdim:1 * hdim])
        f_g = _sigmoid(gates[:, 1 * hdim:2 * hdim])
        g_g = jnp.tanh(gates[:, 2 * hdim:3 * hdim])
        o_g = _sigmoid(gates[:, 3 * hdim:4 * hdim])
        c = f_g * c + i_g * g_g
        h = o_g * jnp.tanh(c)
        hs[t] = h
      dir_outs.append(jnp.stack(hs, axis=0))       # (T, B, H)
    seq = jnp.concatenate(dir_outs, axis=-1)        # (T, B, 2H)

  fc_w = prm[-2][...]                  # (2H, 2)
  fc_b = prm[-1][...]                  # (1, 2)
  out_ref[...] = jnp.einsum("tbd,do->tbo", seq, fc_w,
                            preferred_element_type=jnp.float32) + fc_b


# ---------------------------------------------------------------------------
# Wrapper (takes PyTorch-layout parameters).
# ---------------------------------------------------------------------------
def cnn_blstm_forward(x, conv_bn_params, lstm_params, fc_w, fc_b):
  """Pallas forward of CNN_BLSTM.

  Args:
    x: (b, Nsz, T, C, L) f32, C == nchns, L divisible by 16 (four 2x pools).
    conv_bn_params: 8 tuples (conv_w (Cout,Cin,3), conv_b (Cout,),
                    bn_gamma (Cout,), bn_beta (Cout,)) in order 5a..40b.
    lstm_params: 4 tuples (w_ih (4H,Din), w_hh (4H,H), b_ih (4H,), b_hh (4H,))
                 in order l0-fwd, l0-rev, l1-fwd, l1-rev.
    fc_w: (2, 2H); fc_b: (2,).
  Returns:
    (rout (b, Nsz, T, 2), None, None) matching the PyTorch module.
  """
  b, nsz, t_len, chn, ln = x.shape
  m = b * nsz * t_len
  assert ln % 16 == 0, "spatial length must survive four max_pool1d(2) stages"
  assert len(lstm_params) == 4

  # ---- CNN stage: (L, M, C) layout, one fused single-step kernel ----
  x_lmc = jnp.transpose(x.reshape(m, chn, ln), (2, 0, 1))    # (L, M, C)
  k1_in = [x_lmc]
  for w_c, b_c, g_c, bt_c in conv_bn_params:
    cout, cin, _ = w_c.shape
    k1_in.append(jnp.transpose(w_c, (2, 1, 0)).reshape(3 * cin, cout))
    k1_in.append(b_c.reshape(1, 1, cout))
    k1_in.append(g_c.reshape(1, 1, cout))
    k1_in.append(bt_c.reshape(1, 1, cout))
  feat_dim = conv_bn_params[-1][0].shape[0]                  # 40

  feat = pl.pallas_call(
      _cnn_kernel,
      out_shape=jax.ShapeDtypeStruct((m, feat_dim), jnp.float32),
      grid_spec=pltpu.PrefetchScalarGridSpec(
          num_scalar_prefetch=0,
          grid=(1,),
          in_specs=[_full_spec(a.shape) for a in k1_in],
          out_specs=_full_spec((m, feat_dim)),
      ),
      compiler_params=pltpu.CompilerParams(dimension_semantics=("arbitrary",)),
  )(*k1_in)

  # ---- BiLSTM + FC stage: time-major (T, B, D), single-step kernel ----
  seq_tb = jnp.transpose(feat.reshape(b * nsz, t_len, feat_dim), (1, 0, 2))
  k2_in = [seq_tb]
  for w_ih, w_hh, b_ih, b_hh in lstm_params:
    k2_in.append(jnp.transpose(w_ih, (1, 0)))                # (Din, 4H)
    k2_in.append(jnp.transpose(w_hh, (1, 0)))                # (H, 4H)
    k2_in.append((b_ih + b_hh).reshape(1, -1))               # (1, 4H)
  k2_in.append(jnp.transpose(fc_w, (1, 0)))                  # (2H, 2)
  k2_in.append(fc_b.reshape(1, -1))                          # (1, 2)
  n_out = fc_w.shape[0]

  out_tb = pl.pallas_call(
      _lstm_fc_kernel,
      out_shape=jax.ShapeDtypeStruct((t_len, b * nsz, n_out), jnp.float32),
      grid_spec=pltpu.PrefetchScalarGridSpec(
          num_scalar_prefetch=0,
          grid=(1,),
          in_specs=[_full_spec(a.shape) for a in k2_in],
          out_specs=_full_spec((t_len, b * nsz, n_out)),
      ),
      compiler_params=pltpu.CompilerParams(dimension_semantics=("arbitrary",)),
  )(*k2_in)

  rout = jnp.transpose(out_tb, (1, 0, 2)).reshape(b, nsz, t_len, n_out)
  return rout, None, None


# ---------------------------------------------------------------------------
# Pure-JAX reference (independent path: XLA conv / reduce_window) for checking.
# ---------------------------------------------------------------------------
def cnn_blstm_ref(x, conv_bn_params, lstm_params, fc_w, fc_b):
  b, nsz, t_len, chn, ln = x.shape
  m = b * nsz * t_len
  h = x.reshape(m, chn, ln)
  for idx, (w_c, b_c, g_c, bt_c) in enumerate(conv_bn_params):
    h = lax.conv_general_dilated(h, w_c, window_strides=(1,), padding=((1, 1),),
                                 dimension_numbers=("NCH", "OIH", "NCH"))
    h = h + b_c[None, :, None]
    h = jnp.where(h > 0, h, _LEAK * h)
    mean = h.mean(axis=(0, 2), keepdims=True)
    var = ((h - mean) ** 2).mean(axis=(0, 2), keepdims=True)
    h = (h - mean) / jnp.sqrt(var + _EPS) * g_c[None, :, None] + bt_c[None, :, None]
    if idx % 2 == 1:
      h = lax.reduce_window(h, -jnp.inf, lax.max, (1, 1, 2), (1, 1, 2), "VALID")
  feat = h.mean(axis=2)                                      # (M, 40)

  hdim = lstm_params[0][1].shape[1]
  seq = feat.reshape(b * nsz, t_len, -1)
  for layer in range(2):
    outs = []
    for d in range(2):
      w_ih, w_hh, b_ih, b_hh = lstm_params[layer * 2 + d]
      x_in = seq if d == 0 else seq[:, ::-1, :]
      hprev = jnp.zeros((seq.shape[0], hdim), jnp.float32)
      cprev = jnp.zeros_like(hprev)
      hs = []
      for t in range(t_len):
        gates = x_in[:, t, :] @ w_ih.T + b_ih + hprev @ w_hh.T + b_hh
        i_g = jax.nn.sigmoid(gates[:, :hdim])
        f_g = jax.nn.sigmoid(gates[:, hdim:2 * hdim])
        g_g = jnp.tanh(gates[:, 2 * hdim:3 * hdim])
        o_g = jax.nn.sigmoid(gates[:, 3 * hdim:])
        cprev = f_g * cprev + i_g * g_g
        hprev = o_g * jnp.tanh(cprev)
        hs.append(hprev)
      hseq = jnp.stack(hs, axis=1)
      if d == 1:
        hseq = hseq[:, ::-1, :]
      outs.append(hseq)
    seq = jnp.concatenate(outs, axis=-1)
  rout = seq.reshape(-1, 2 * hdim) @ fc_w.T + fc_b
  return rout.reshape(b, nsz, t_len, -1)


if __name__ == "__main__":
  b, nsz, t_len, chn, ln = 2, 2, 4, 19, 16     # nchns=19, L=16 -> pools to 1
  hdim = 20

  key = jax.random.PRNGKey(0)
  keys = iter(jax.random.split(key, 64))

  x = jax.random.normal(next(keys), (b, nsz, t_len, chn, ln), jnp.float32)

  chan_plan = [(chn, 5), (5, 5), (5, 10), (10, 10),
               (10, 20), (20, 20), (20, 40), (40, 40)]
  conv_bn_params = []
  for cin, cout in chan_plan:
    w_c = 0.2 * jax.random.normal(next(keys), (cout, cin, 3), jnp.float32)
    b_c = 0.1 * jax.random.normal(next(keys), (cout,), jnp.float32)
    g_c = 1.0 + 0.1 * jax.random.normal(next(keys), (cout,), jnp.float32)
    bt_c = 0.1 * jax.random.normal(next(keys), (cout,), jnp.float32)
    conv_bn_params.append((w_c, b_c, g_c, bt_c))
  conv_bn_params = tuple(conv_bn_params)

  lstm_params = []
  for _ in range(4):      # l0-fwd, l0-rev, l1-fwd, l1-rev (input dim 40 = 2H)
    w_ih = 0.2 * jax.random.normal(next(keys), (4 * hdim, 2 * hdim), jnp.float32)
    w_hh = 0.2 * jax.random.normal(next(keys), (4 * hdim, hdim), jnp.float32)
    b_ih = 0.1 * jax.random.normal(next(keys), (4 * hdim,), jnp.float32)
    b_hh = 0.1 * jax.random.normal(next(keys), (4 * hdim,), jnp.float32)
    lstm_params.append((w_ih, w_hh, b_ih, b_hh))
  lstm_params = tuple(lstm_params)

  fc_w = 0.2 * jax.random.normal(next(keys), (2, 2 * hdim), jnp.float32)
  fc_b = 0.1 * jax.random.normal(next(keys), (2,), jnp.float32)

  fwd = jax.jit(cnn_blstm_forward)
  rout, hc, a = fwd(x, conv_bn_params, lstm_params, fc_w, fc_b)
  rout = jax.block_until_ready(rout)

  assert rout.shape == (b, nsz, t_len, 2), rout.shape
  assert hc is None and a is None

  ref = cnn_blstm_ref(x, conv_bn_params, lstm_params, fc_w, fc_b)
  np.testing.assert_allclose(np.asarray(rout), np.asarray(ref),
                             rtol=1e-2, atol=1e-2)

  print("KERNEL_OK")
</pallas_src>

<mosaic_0001>
module attributes {stable_mosaic.version = 11 : i64} {
  func.func @_lstm_fc_kernel(%arg0: i32, %arg1: memref<4x4x40xf32, #tpu.memory_space<vmem>>, %arg2: memref<40x80xf32, #tpu.memory_space<vmem>>, %arg3: memref<20x80xf32, #tpu.memory_space<vmem>>, %arg4: memref<1x80xf32, #tpu.memory_space<vmem>>, %arg5: memref<40x80xf32, #tpu.memory_space<vmem>>, %arg6: memref<20x80xf32, #tpu.memory_space<vmem>>, %arg7: memref<1x80xf32, #tpu.memory_space<vmem>>, %arg8: memref<40x80xf32, #tpu.memory_space<vmem>>, %arg9: memref<20x80xf32, #tpu.memory_space<vmem>>, %arg10: memref<1x80xf32, #tpu.memory_space<vmem>>, %arg11: memref<40x80xf32, #tpu.memory_space<vmem>>, %arg12: memref<20x80xf32, #tpu.memory_space<vmem>>, %arg13: memref<1x80xf32, #tpu.memory_space<vmem>>, %arg14: memref<40x2xf32, #tpu.memory_space<vmem>>, %arg15: memref<1x2xf32, #tpu.memory_space<vmem>>, %arg16: memref<4x4x2xf32, #tpu.memory_space<vmem>>) attributes {dimension_semantics = [#tpu.dimension_semantics<arbitrary>], iteration_bounds = array<i64: 1>, scalar_prefetch = 0 : i64, scratch_operands = 0 : i64, tpu.core_type = #tpu.core_type<tc>, window_params = [{pipeline_mode = #tpu.pipeline_mode<synchronous>, transform_indices = @transform_0, window_bounds = array<i64: 4, 4, 40>}, {pipeline_mode = #tpu.pipeline_mode<synchronous>, transform_indices = @transform_1, window_bounds = array<i64: 40, 80>}, {pipeline_mode = #tpu.pipeline_mode<synchronous>, transform_indices = @transform_2, window_bounds = array<i64: 20, 80>}, {pipeline_mode = #tpu.pipeline_mode<synchronous>, transform_indices = @transform_3, window_bounds = array<i64: 1, 80>}, {pipeline_mode = #tpu.pipeline_mode<synchronous>, transform_indices = @transform_4, window_bounds = array<i64: 40, 80>}, {pipeline_mode = #tpu.pipeline_mode<synchronous>, transform_indices = @transform_5, window_bounds = array<i64: 20, 80>}, {pipeline_mode = #tpu.pipeline_mode<synchronous>, transform_indices = @transform_6, window_bounds = array<i64: 1, 80>}, {pipeline_mode = #tpu.pipeline_mode<synchronous>, transform_indices = @transform_7, window_bounds = array<i64: 40, 80>}, {pipeline_mode = #tpu.pipeline_mode<synchronous>, transform_indices = @transform_8, window_bounds = array<i64: 20, 80>}, {pipeline_mode = #tpu.pipeline_mode<synchronous>, transform_indices = @transform_9, window_bounds = array<i64: 1, 80>}, {pipeline_mode = #tpu.pipeline_mode<synchronous>, transform_indices = @transform_10, window_bounds = array<i64: 40, 80>}, {pipeline_mode = #tpu.pipeline_mode<synchronous>, transform_indices = @transform_11, window_bounds = array<i64: 20, 80>}, {pipeline_mode = #tpu.pipeline_mode<synchronous>, transform_indices = @transform_12, window_bounds = array<i64: 1, 80>}, {pipeline_mode = #tpu.pipeline_mode<synchronous>, transform_indices = @transform_13, window_bounds = array<i64: 40, 2>}, {pipeline_mode = #tpu.pipeline_mode<synchronous>, transform_indices = @transform_14, window_bounds = array<i64: 1, 2>}, {pipeline_mode = #tpu.pipeline_mode<synchronous>, transform_indices = @transform_15, window_bounds = array<i64: 4, 4, 2>}]} {
    %c0 = arith.constant 0 : index
    %c0_0 = arith.constant 0 : index
    %c0_1 = arith.constant 0 : index
    %0 = vector.load %arg1[%c0, %c0_0, %c0_1] : memref<4x4x40xf32, #tpu.memory_space<vmem>>, vector<4x4x40xf32>
    %c0_2 = arith.constant 0 : index
    %c0_3 = arith.constant 0 : index
    %1 = vector.load %arg2[%c0_2, %c0_3] : memref<40x80xf32, #tpu.memory_space<vmem>>, vector<40x80xf32>
    %c0_4 = arith.constant 0 : index
    %c0_5 = arith.constant 0 : index
    %2 = vector.load %arg3[%c0_4, %c0_5] : memref<20x80xf32, #tpu.memory_space<vmem>>, vector<20x80xf32>
    %c0_6 = arith.constant 0 : index
    %c0_7 = arith.constant 0 : index
    %3 = vector.load %arg4[%c0_6, %c0_7] : memref<1x80xf32, #tpu.memory_space<vmem>>, vector<1x80xf32>
    "tpu.trace_start"() <{level = 10 : i32, message = "tbd,dg->tbg"}> : () -> ()
    %cst = arith.constant dense<0.000000e+00> : vector<4x4x80xf32>
    %4 = tpu.matmul %0, %1, %cst {dimension_numbers = #tpu.dot_dimension_numbers<[2], [0], [0, 1], [1], [0, 0, 0, 1, 1, 1], [], []>} : vector<4x4x40xf32>, vector<40x80xf32>, vector<4x4x80xf32> -> vector<4x4x80xf32>
    "tpu.trace_stop"() : () -> ()
    %5 = vector.shape_cast %3 : vector<1x80xf32> to vector<1x1x80xf32>
    %6 = vector.broadcast %5 : vector<1x1x80xf32> to vector<4x4x80xf32>
    %7 = arith.addf %4, %6 : vector<4x4x80xf32>
    %cst_8 = arith.constant 0.000000e+00 : f32
    %8 = vector.broadcast %cst_8 : f32 to vector<4x20xf32>
    %cst_9 = arith.constant 0.000000e+00 : f32
    %9 = vector.broadcast %cst_9 : f32 to vector<4x20xf32>
    %10 = vector.extract_strided_slice %7 {offsets = [0, 0, 0], sizes = [1, 4, 80], strides = [1, 1, 1]} : vector<4x4x80xf32> to vector<1x4x80xf32>
    %11 = vector.shape_cast %10 : vector<1x4x80xf32> to vector<4x80xf32>
    %cst_10 = arith.constant dense<0.000000e+00> : vector<4x80xf32>
    %12 = tpu.matmul %8, %2, %cst_10 {dimension_numbers = #tpu.dot_dimension_numbers<[1], [0], [0], [1], [0, 0, 1, 1], [], []>} : vector<4x20xf32>, vector<20x80xf32>, vector<4x80xf32> -> vector<4x80xf32>
    %13 = arith.addf %11, %12 : vector<4x80xf32>
    %14 = vector.extract_strided_slice %13 {offsets = [0, 0], sizes = [4, 20], strides = [1, 1]} : vector<4x80xf32> to vector<4x20xf32>
    %cst_11 = arith.constant 0.000000e+00 : f32
    %15 = vector.broadcast %cst_11 : f32 to vector<4x20xf32>
    %16 = arith.subf %15, %14 : vector<4x20xf32>
    %17 = math.exp %16 : vector<4x20xf32>
    %cst_12 = arith.constant 1.000000e+00 : f32
    %18 = vector.broadcast %cst_12 : f32 to vector<4x20xf32>
    %19 = arith.addf %18, %17 : vector<4x20xf32>
    %cst_13 = arith.constant 1.000000e+00 : f32
    %20 = vector.broadcast %cst_13 : f32 to vector<4x20xf32>
    %21 = arith.divf %20, %19 : vector<4x20xf32>
    %22 = vector.extract_strided_slice %13 {offsets = [0, 20], sizes = [4, 20], strides = [1, 1]} : vector<4x80xf32> to vector<4x20xf32>
    %cst_14 = arith.constant 0.000000e+00 : f32
    %23 = vector.broadcast %cst_14 : f32 to vector<4x20xf32>
    %24 = arith.subf %23, %22 : vector<4x20xf32>
    %25 = math.exp %24 : vector<4x20xf32>
    %cst_15 = arith.constant 1.000000e+00 : f32
    %26 = vector.broadcast %cst_15 : f32 to vector<4x20xf32>
    %27 = arith.addf %26, %25 : vector<4x20xf32>
    %cst_16 = arith.constant 1.000000e+00 : f32
    %28 = vector.broadcast %cst_16 : f32 to vector<4x20xf32>
    %29 = arith.divf %28, %27 : vector<4x20xf32>
    %30 = vector.extract_strided_slice %13 {offsets = [0, 40], sizes = [4, 20], strides = [1, 1]} : vector<4x80xf32> to vector<4x20xf32>
    %31 = math.tanh %30 : vector<4x20xf32>
    %32 = vector.extract_strided_slice %13 {offsets = [0, 60], sizes = [4, 20], strides = [1, 1]} : vector<4x80xf32> to vector<4x20xf32>
    %cst_17 = arith.constant 0.000000e+00 : f32
    %33 = vector.broadcast %cst_17 : f32 to vector<4x20xf32>
    %34 = arith.subf %33, %32 : vector<4x20xf32>
    %35 = math.exp %34 : vector<4x20xf32>
    %cst_18 = arith.constant 1.000000e+00 : f32
    %36 = vector.broadcast %cst_18 : f32 to vector<4x20xf32>
    %37 = arith.addf %36, %35 : vector<4x20xf32>
    %cst_19 = arith.constant 1.000000e+00 : f32
    %38 = vector.broadcast %cst_19 : f32 to vector<4x20xf32>
    %39 = arith.divf %38, %37 : vector<4x20xf32>
    %40 = arith.mulf %29, %9 : vector<4x20xf32>
    %41 = arith.mulf %21, %31 : vector<4x20xf32>
    %42 = arith.addf %40, %41 : vector<4x20xf32>
    %43 = math.tanh %42 : vector<4x20xf32>
    %44 = arith.mulf %39, %43 : vector<4x20xf32>
    %45 = vector.extract_strided_slice %7 {offsets = [1, 0, 0], sizes = [1, 4, 80], strides = [1, 1, 1]} : vector<4x4x80xf32> to vector<1x4x80xf32>
    %46 = vector.shape_cast %45 : vector<1x4x80xf32> to vector<4x80xf32>
    %cst_20 = arith.constant dense<0.000000e+00> : vector<4x80xf32>
    %47 = tpu.matmul %44, %2, %cst_20 {dimension_numbers = #tpu.dot_dimension_numbers<[1], [0], [0], [1], [0, 0, 1, 1], [], []>} : vector<4x20xf32>, vector<20x80xf32>, vector<4x80xf32> -> vector<4x80xf32>
    %48 = arith.addf %46, %47 : vector<4x80xf32>
    %49 = vector.extract_strided_slice %48 {offsets = [0, 0], sizes = [4, 20], strides = [1, 1]} : vector<4x80xf32> to vector<4x20xf32>
    %cst_21 = arith.constant 0.000000e+00 : f32
    %50 = vector.broadcast %cst_21 : f32 to vector<4x20xf32>
    %51 = arith.subf %50, %49 : vector<4x20xf32>
    %52 = math.exp %51 : vector<4x20xf32>
    %cst_22 = arith.constant 1.000000e+00 : f32
    %53 = vector.broadcast %cst_22 : f32 to vector<4x20xf32>
    %54 = arith.addf %53, %52 : vector<4x20xf32>
    %cst_23 = arith.constant 1.000000e+00 : f32
    %55 = vector.broadcast %cst_23 : f32 to vector<4x20xf32>
    %56 = arith.divf %55, %54 : vector<4x20xf32>
    %57 = vector.extract_strided_slice %48 {offsets = [0, 20], sizes = [4, 20], strides = [1, 1]} : vector<4x80xf32> to vector<4x20xf32>
    %cst_24 = arith.constant 0.000000e+00 : f32
    %58 = vector.broadcast %cst_24 : f32 to vector<4x20xf32>
    %59 = arith.subf %58, %57 : vector<4x20xf32>
    %60 = math.exp %59 : vector<4x20xf32>
    %cst_25 = arith.constant 1.000000e+00 : f32
    %61 = vector.broadcast %cst_25 : f32 to vector<4x20xf32>
    %62 = arith.addf %61, %60 : vector<4x20xf32>
    %cst_26 = arith.constant 1.000000e+00 : f32
    %63 = vector.broadcast %cst_26 : f32 to vector<4x20xf32>
    %64 = arith.divf %63, %62 : vector<4x20xf32>
    %65 = vector.extract_strided_slice %48 {offsets = [0, 40], sizes = [4, 20], strides = [1, 1]} : vector<4x80xf32> to vector<4x20xf32>
    %66 = math.tanh %65 : vector<4x20xf32>
    %67 = vector.extract_strided_slice %48 {offsets = [0, 60], sizes = [4, 20], strides = [1, 1]} : vector<4x80xf32> to vector<4x20xf32>
    %cst_27 = arith.constant 0.000000e+00 : f32
    %68 = vector.broadcast %cst_27 : f32 to vector<4x20xf32>
    %69 = arith.subf %68, %67 : vector<4x20xf32>
    %70 = math.exp %69 : vector<4x20xf32>
    %cst_28 = arith.constant 1.000000e+00 : f32
    %71 = vector.broadcast %cst_28 : f32 to vector<4x20xf32>
    %72 = arith.addf %71, %70 : vector<4x20xf32>
    %cst_29 = arith.constant 1.000000e+00 : f32
    %73 = vector.broadcast %cst_29 : f32 to vector<4x20xf32>
    %74 = arith.divf %73, %72 : vector<4x20xf32>
    %75 = arith.mulf %64, %42 : vector<4x20xf32>
    %76 = arith.mulf %56, %66 : vector<4x20xf32>
    %77 = arith.addf %75, %76 : vector<4x20xf32>
    %78 = math.tanh %77 : vector<4x20xf32>
    %79 = arith.mulf %74, %78 : vector<4x20xf32>
    %80 = vector.extract_strided_slice %7 {offsets = [2, 0, 0], sizes = [1, 4, 80], strides = [1, 1, 1]} : vector<4x4x80xf32> to vector<1x4x80xf32>
    %81 = vector.shape_cast %80 : vector<1x4x80xf32> to vector<4x80xf32>
    %cst_30 = arith.constant dense<0.000000e+00> : vector<4x80xf32>
    %82 = tpu.matmul %79, %2, %cst_30 {dimension_numbers = #tpu.dot_dimension_numbers<[1], [0], [0], [1], [0, 0, 1, 1], [], []>} : vector<4x20xf32>, vector<20x80xf32>, vector<4x80xf32> -> vector<4x80xf32>
    %83 = arith.addf %81, %82 : vector<4x80xf32>
    %84 = vector.extract_strided_slice %83 {offsets = [0, 0], sizes = [4, 20], strides = [1, 1]} : vector<4x80xf32> to vector<4x20xf32>
    %cst_31 = arith.constant 0.000000e+00 : f32
    %85 = vector.broadcast %cst_31 : f32 to vector<4x20xf32>
    %86 = arith.subf %85, %84 : vector<4x20xf32>
    %87 = math.exp %86 : vector<4x20xf32>
    %cst_32 = arith.constant 1.000000e+00 : f32
    %88 = vector.broadcast %cst_32 : f32 to vector<4x20xf32>
    %89 = arith.addf %88, %87 : vector<4x20xf32>
    %cst_33 = arith.constant 1.000000e+00 : f32
    %90 = vector.broadcast %cst_33 : f32 to vector<4x20xf32>
    %91 = arith.divf %90, %89 : vector<4x20xf32>
    %92 = vector.extract_strided_slice %83 {offsets = [0, 20], sizes = [4, 20], strides = [1, 1]} : vector<4x80xf32> to vector<4x20xf32>
    %cst_34 = arith.constant 0.000000e+00 : f32
    %93 = vector.broadcast %cst_34 : f32 to vector<4x20xf32>
    %94 = arith.subf %93, %92 : vector<4x20xf32>
    %95 = math.exp %94 : vector<4x20xf32>
    %cst_35 = arith.constant 1.000000e+00 : f32
    %96 = vector.broadcast %cst_35 : f32 to vector<4x20xf32>
    %97 = arith.addf %96, %95 : vector<4x20xf32>
    %cst_36 = arith.constant 1.000000e+00 : f32
    %98 = vector.broadcast %cst_36 : f32 to vector<4x20xf32>
    %99 = arith.divf %98, %97 : vector<4x20xf32>
    %100 = vector.extract_strided_slice %83 {offsets = [0, 40], sizes = [4, 20], strides = [1, 1]} : vector<4x80xf32> to vector<4x20xf32>
    %101 = math.tanh %100 : vector<4x20xf32>
    %102 = vector.extract_strided_slice %83 {offsets = [0, 60], sizes = [4, 20], strides = [1, 1]} : vector<4x80xf32> to vector<4x20xf32>
    %cst_37 = arith.constant 0.000000e+00 : f32
    %103 = vector.broadcast %cst_37 : f32 to vector<4x20xf32>
    %104 = arith.subf %103, %102 : vector<4x20xf32>
    %105 = math.exp %104 : vector<4x20xf32>
    %cst_38 = arith.constant 1.000000e+00 : f32
    %106 = vector.broadcast %cst_38 : f32 to vector<4x20xf32>
    %107 = arith.addf %106, %105 : vector<4x20xf32>
    %cst_39 = arith.constant 1.000000e+00 : f32
    %108 = vector.broadcast %cst_39 : f32 to vector<4x20xf32>
    %109 = arith.divf %108, %107 : vector<4x20xf32>
    %110 = arith.mulf %99, %77 : vector<4x20xf32>
    %111 = arith.mulf %91, %101 : vector<4x20xf32>
    %112 = arith.addf %110, %111 : vector<4x20xf32>
    %113 = math.tanh %112 : vector<4x20xf32>
    %114 = arith.mulf %109, %113 : vector<4x20xf32>
    %115 = vector.extract_strided_slice %7 {offsets = [3, 0, 0], sizes = [1, 4, 80], strides = [1, 1, 1]} : vector<4x4x80xf32> to vector<1x4x80xf32>
    %116 = vector.shape_cast %115 : vector<1x4x80xf32> to vector<4x80xf32>
    %cst_40 = arith.constant dense<0.000000e+00> : vector<4x80xf32>
    %117 = tpu.matmul %114, %2, %cst_40 {dimension_numbers = #tpu.dot_dimension_numbers<[1], [0], [0], [1], [0, 0, 1, 1], [], []>} : vector<4x20xf32>, vector<20x80xf32>, vector<4x80xf32> -> vector<4x80xf32>
    %118 = arith.addf %116, %117 : vector<4x80xf32>
    %119 = vector.extract_strided_slice %118 {offsets = [0, 0], sizes = [4, 20], strides = [1, 1]} : vector<4x80xf32> to vector<4x20xf32>
    %cst_41 = arith.constant 0.000000e+00 : f32
    %120 = vector.broadcast %cst_41 : f32 to vector<4x20xf32>
    %121 = arith.subf %120, %119 : vector<4x20xf32>
    %122 = math.exp %121 : vector<4x20xf32>
    %cst_42 = arith.constant 1.000000e+00 : f32
    %123 = vector.broadcast %cst_42 : f32 to vector<4x20xf32>
    %124 = arith.addf %123, %122 : vector<4x20xf32>
    %cst_43 = arith.constant 1.000000e+00 : f32
    %125 = vector.broadcast %cst_43 : f32 to vector<4x20xf32>
    %126 = arith.divf %125, %124 : vector<4x20xf32>
    %127 = vector.extract_strided_slice %118 {offsets = [0, 20], sizes = [4, 20], strides = [1, 1]} : vector<4x80xf32> to vector<4x20xf32>
    %cst_44 = arith.constant 0.000000e+00 : f32
    %128 = vector.broadcast %cst_44 : f32 to vector<4x20xf32>
    %129 = arith.subf %128, %127 : vector<4x20xf32>
    %130 = math.exp %129 : vector<4x20xf32>
    %cst_45 = arith.constant 1.000000e+00 : f32
    %131 = vector.broadcast %cst_45 : f32 to vector<4x20xf32>
    %132 = arith.addf %131, %130 : vector<4x20xf32>
    %cst_46 = arith.constant 1.000000e+00 : f32
    %133 = vector.broadcast %cst_46 : f32 to vector<4x20xf32>
    %134 = arith.divf %133, %132 : vector<4x20xf32>
    %135 = vector.extract_strided_slice %118 {offsets = [0, 40], sizes = [4, 20], strides = [1, 1]} : vector<4x80xf32> to vector<4x20xf32>
    %136 = math.tanh %135 : vector<4x20xf32>
    %137 = vector.extract_strided_slice %118 {offsets = [0, 60], sizes = [4, 20], strides = [1, 1]} : vector<4x80xf32> to vector<4x20xf32>
    %cst_47 = arith.constant 0.000000e+00 : f32
    %138 = vector.broadcast %cst_47 : f32 to vector<4x20xf32>
    %139 = arith.subf %138, %137 : vector<4x20xf32>
    %140 = math.exp %139 : vector<4x20xf32>
    %cst_48 = arith.constant 1.000000e+00 : f32
    %141 = vector.broadcast %cst_48 : f32 to vector<4x20xf32>
    %142 = arith.addf %141, %140 : vector<4x20xf32>
    %cst_49 = arith.constant 1.000000e+00 : f32
    %143 = vector.broadcast %cst_49 : f32 to vector<4x20xf32>
    %144 = arith.divf %143, %142 : vector<4x20xf32>
    %145 = arith.mulf %134, %112 : vector<4x20xf32>
    %146 = arith.mulf %126, %136 : vector<4x20xf32>
    %147 = arith.addf %145, %146 : vector<4x20xf32>
    %148 = math.tanh %147 : vector<4x20xf32>
    %149 = arith.mulf %144, %148 : vector<4x20xf32>
    %150 = vector.shape_cast %44 : vector<4x20xf32> to vector<1x4x20xf32>
    %151 = vector.shape_cast %79 : vector<4x20xf32> to vector<1x4x20xf32>
    %152 = vector.shape_cast %114 : vector<4x20xf32> to vector<1x4x20xf32>
    %153 = vector.shape_cast %149 : vector<4x20xf32> to vector<1x4x20xf32>
    %154 = tpu.concatenate %150, %151, %152, %153 in 0 : vector<1x4x20xf32>, vector<1x4x20xf32>, vector<1x4x20xf32>, vector<1x4x20xf32> -> vector<4x4x20xf32>
    %c0_50 = arith.constant 0 : index
    %c0_51 = arith.constant 0 : index
    %155 = vector.load %arg5[%c0_50, %c0_51] : memref<40x80xf32, #tpu.memory_space<vmem>>, vector<40x80xf32>
    %c0_52 = arith.constant 0 : index
    %c0_53 = arith.constant 0 : index
    %156 = vector.load %arg6[%c0_52, %c0_53] : memref<20x80xf32, #tpu.memory_space<vmem>>, vector<20x80xf32>
    %c0_54 = arith.constant 0 : index
    %c0_55 = arith.constant 0 : index
    %157 = vector.load %arg7[%c0_54, %c0_55] : memref<1x80xf32, #tpu.memory_space<vmem>>, vector<1x80xf32>
    "tpu.trace_start"() <{level = 10 : i32, message = "tbd,dg->tbg"}> : () -> ()
    %cst_56 = arith.constant dense<0.000000e+00> : vector<4x4x80xf32>
    %158 = tpu.matmul %0, %155, %cst_56 {dimension_numbers = #tpu.dot_dimension_numbers<[2], [0], [0, 1], [1], [0, 0, 0, 1, 1, 1], [], []>} : vector<4x4x40xf32>, vector<40x80xf32>, vector<4x4x80xf32> -> vector<4x4x80xf32>
    "tpu.trace_stop"() : () -> ()
    %159 = vector.shape_cast %157 : vector<1x80xf32> to vector<1x1x80xf32>
    %160 = vector.broadcast %159 : vector<1x1x80xf32> to vector<4x4x80xf32>
    %161 = arith.addf %158, %160 : vector<4x4x80xf32>
    %cst_57 = arith.constant 0.000000e+00 : f32
    %162 = vector.broadcast %cst_57 : f32 to vector<4x20xf32>
    %cst_58 = arith.constant 0.000000e+00 : f32
    %163 = vector.broadcast %cst_58 : f32 to vector<4x20xf32>
    %164 = vector.extract_strided_slice %161 {offsets = [3, 0, 0], sizes = [1, 4, 80], strides = [1, 1, 1]} : vector<4x4x80xf32> to vector<1x4x80xf32>
    %165 = vector.shape_cast %164 : vector<1x4x80xf32> to vector<4x80xf32>
    %cst_59 = arith.constant dense<0.000000e+00> : vector<4x80xf32>
    %166 = tpu.matmul %162, %156, %cst_59 {dimension_numbers = #tpu.dot_dimension_numbers<[1], [0], [0], [1], [0, 0, 1, 1], [], []>} : vector<4x20xf32>, vector<20x80xf32>, vector<4x80xf32> -> vector<4x80xf32>
    %167 = arith.addf %165, %166 : vector<4x80xf32>
    %168 = vector.extract_strided_slice %167 {offsets = [0, 0], sizes = [4, 20], strides = [1, 1]} : vector<4x80xf32> to vector<4x20xf32>
    %cst_60 = arith.constant 0.000000e+00 : f32
    %169 = vector.broadcast %cst_60 : f32 to vector<4x20xf32>
    %170 = arith.subf %169, %168 : vector<4x20xf32>
    %171 = math.exp %170 : vector<4x20xf32>
    %cst_61 = arith.constant 1.000000e+00 : f32
    %172 = vector.broadcast %cst_61 : f32 to vector<4x20xf32>
    %173 = arith.addf %172, %171 : vector<4x20xf32>
    %cst_62 = arith.constant 1.000000e+00 : f32
    %174 = vector.broadcast %cst_62 : f32 to vector<4x20xf32>
    %175 = arith.divf %174, %173 : vector<4x20xf32>
    %176 = vector.extract_strided_slice %167 {offsets = [0, 20], sizes = [4, 20], strides = [1, 1]} : vector<4x80xf32> to vector<4x20xf32>
    %cst_63 = arith.constant 0.000000e+00 : f32
    %177 = vector.broadcast %cst_63 : f32 to vector<4x20xf32>
    %178 = arith.subf %177, %176 : vector<4x20xf32>
    %179 = math.exp %178 : vector<4x20xf32>
    %cst_64 = arith.constant 1.000000e+00 : f32
    %180 = vector.broadcast %cst_64 : f32 to vector<4x20xf32>
    %181 = arith.addf %180, %179 : vector<4x20xf32>
    %cst_65 = arith.constant 1.000000e+00 : f32
    %182 = vector.broadcast %cst_65 : f32 to vector<4x20xf32>
    %183 = arith.divf %182, %181 : vector<4x20xf32>
    %184 = vector.extract_strided_slice %167 {offsets = [0, 40], sizes = [4, 20], strides = [1, 1]} : vector<4x80xf32> to vector<4x20xf32>
    %185 = math.tanh %184 : vector<4x20xf32>
    %186 = vector.extract_strided_slice %167 {offsets = [0, 60], sizes = [4, 20], strides = [1, 1]} : vector<4x80xf32> to vector<4x20xf32>
    %cst_66 = arith.constant 0.000000e+00 : f32
    %187 = vector.broadcast %cst_66 : f32 to vector<4x20xf32>
    %188 = arith.subf %187, %186 : vector<4x20xf32>
    %189 = math.exp %188 : vector<4x20xf32>
    %cst_67 = arith.constant 1.000000e+00 : f32
    %190 = vector.broadcast %cst_67 : f32 to vector<4x20xf32>
    %191 = arith.addf %190, %189 : vector<4x20xf32>
    %cst_68 = arith.constant 1.000000e+00 : f32
    %192 = vector.broadcast %cst_68 : f32 to vector<4x20xf32>
    %193 = arith.divf %192, %191 : vector<4x20xf32>
    %194 = arith.mulf %183, %163 : vector<4x20xf32>
    %195 = arith.mulf %175, %185 : vector<4x20xf32>
    %196 = arith.addf %194, %195 : vector<4x20xf32>
    %197 = math.tanh %196 : vector<4x20xf32>
    %198 = arith.mulf %193, %197 : vector<4x20xf32>
    %199 = vector.extract_strided_slice %161 {offsets = [2, 0, 0], sizes = [1, 4, 80], strides = [1, 1, 1]} : vector<4x4x80xf32> to vector<1x4x80xf32>
    %200 = vector.shape_cast %199 : vector<1x4x80xf32> to vector<4x80xf32>
    %cst_69 = arith.constant dense<0.000000e+00> : vector<4x80xf32>
    %201 = tpu.matmul %198, %156, %cst_69 {dimension_numbers = #tpu.dot_dimension_numbers<[1], [0], [0], [1], [0, 0, 1, 1], [], []>} : vector<4x20xf32>, vector<20x80xf32>, vector<4x80xf32> -> vector<4x80xf32>
    %202 = arith.addf %200, %201 : vector<4x80xf32>
    %203 = vector.extract_strided_slice %202 {offsets = [0, 0], sizes = [4, 20], strides = [1, 1]} : vector<4x80xf32> to vector<4x20xf32>
    %cst_70 = arith.constant 0.000000e+00 : f32
    %204 = vector.broadcast %cst_70 : f32 to vector<4x20xf32>
    %205 = arith.subf %204, %203 : vector<4x20xf32>
    %206 = math.exp %205 : vector<4x20xf32>
    %cst_71 = arith.constant 1.000000e+00 : f32
    %207 = vector.broadcast %cst_71 : f32 to vector<4x20xf32>
    %208 = arith.addf %207, %206 : vector<4x20xf32>
    %cst_72 = arith.constant 1.000000e+00 : f32
    %209 = vector.broadcast %cst_72 : f32 to vector<4x20xf32>
    %210 = arith.divf %209, %208 : vector<4x20xf32>
    %211 = vector.extract_strided_slice %202 {offsets = [0, 20], sizes = [4, 20], strides = [1, 1]} : vector<4x80xf32> to vector<4x20xf32>
    %cst_73 = arith.constant 0.000000e+00 : f32
    %212 = vector.broadcast %cst_73 : f32 to vector<4x20xf32>
    %213 = arith.subf %212, %211 : vector<4x20xf32>
    %214 = math.exp %213 : vector<4x20xf32>
    %cst_74 = arith.constant 1.000000e+00 : f32
    %215 = vector.broadcast %cst_74 : f32 to vector<4x20xf32>
    %216 = arith.addf %215, %214 : vector<4x20xf32>
    %cst_75 = arith.constant 1.000000e+00 : f32
    %217 = vector.broadcast %cst_75 : f32 to vector<4x20xf32>
    %218 = arith.divf %217, %216 : vector<4x20xf32>
    %219 = vector.extract_strided_slice %202 {offsets = [0, 40], sizes = [4, 20], strides = [1, 1]} : vector<4x80xf32> to vector<4x20xf32>
    %220 = math.tanh %219 : vector<4x20xf32>
    %221 = vector.extract_strided_slice %202 {offsets = [0, 60], sizes = [4, 20], strides = [1, 1]} : vector<4x80xf32> to vector<4x20xf32>
    %cst_76 = arith.constant 0.000000e+00 : f32
    %222 = vector.broadcast %cst_76 : f32 to vector<4x20xf32>
    %223 = arith.subf %222, %221 : vector<4x20xf32>
    %224 = math.exp %223 : vector<4x20xf32>
    %cst_77 = arith.constant 1.000000e+00 : f32
    %225 = vector.broadcast %cst_77 : f32 to vector<4x20xf32>
    %226 = arith.addf %225, %224 : vector<4x20xf32>
    %cst_78 = arith.constant 1.000000e+00 : f32
    %227 = vector.broadcast %cst_78 : f32 to vector<4x20xf32>
    %228 = arith.divf %227, %226 : vector<4x20xf32>
    %229 = arith.mulf %218, %196 : vector<4x20xf32>
    %230 = arith.mulf %210, %220 : vector<4x20xf32>
    %231 = arith.addf %229, %230 : vector<4x20xf32>
    %232 = math.tanh %231 : vector<4x20xf32>
    %233 = arith.mulf %228, %232 : vector<4x20xf32>
    %234 = vector.extract_strided_slice %161 {offsets = [1, 0, 0], sizes = [1, 4, 80], strides = [1, 1, 1]} : vector<4x4x80xf32> to vector<1x4x80xf32>
    %235 = vector.shape_cast %234 : vector<1x4x80xf32> to vector<4x80xf32>
    %cst_79 = arith.constant dense<0.000000e+00> : vector<4x80xf32>
    %236 = tpu.matmul %233, %156, %cst_79 {dimension_numbers = #tpu.dot_dimension_numbers<[1], [0], [0], [1], [0, 0, 1, 1], [], []>} : vector<4x20xf32>, vector<20x80xf32>, vector<4x80xf32> -> vector<4x80xf32>
    %237 = arith.addf %235, %236 : vector<4x80xf32>
    %238 = vector.extract_strided_slice %237 {offsets = [0, 0], sizes = [4, 20], strides = [1, 1]} : vector<4x80xf32> to vector<4x20xf32>
    %cst_80 = arith.constant 0.000000e+00 : f32
    %239 = vector.broadcast %cst_80 : f32 to vector<4x20xf32>
    %240 = arith.subf %239, %238 : vector<4x20xf32>
    %241 = math.exp %240 : vector<4x20xf32>
    %cst_81 = arith.constant 1.000000e+00 : f32
    %242 = vector.broadcast %cst_81 : f32 to vector<4x20xf32>
    %243 = arith.addf %242, %241 : vector<4x20xf32>
    %cst_82 = arith.constant 1.000000e+00 : f32
    %244 = vector.broadcast %cst_82 : f32 to vector<4x20xf32>
    %245 = arith.divf %244, %243 : vector<4x20xf32>
    %246 = vector.extract_strided_slice %237 {offsets = [0, 20], sizes = [4, 20], strides = [1, 1]} : vector<4x80xf32> to vector<4x20xf32>
    %cst_83 = arith.constant 0.000000e+00 : f32
    %247 = vector.broadcast %cst_83 : f32 to vector<4x20xf32>
    %248 = arith.subf %247, %246 : vector<4x20xf32>
    %249 = math.exp %248 : vector<4x20xf32>
    %cst_84 = arith.constant 1.000000e+00 : f32
    %250 = vector.broadcast %cst_84 : f32 to vector<4x20xf32>
    %251 = arith.addf %250, %249 : vector<4x20xf32>
    %cst_85 = arith.constant 1.000000e+00 : f32
    %252 = vector.broadcast %cst_85 : f32 to vector<4x20xf32>
    %253 = arith.divf %252, %251 : vector<4x20xf32>
    %254 = vector.extract_strided_slice %237 {offsets = [0, 40], sizes = [4, 20], strides = [1, 1]} : vector<4x80xf32> to vector<4x20xf32>
    %255 = math.tanh %254 : vector<4x20xf32>
    %256 = vector.extract_strided_slice %237 {offsets = [0, 60], sizes = [4, 20], strides = [1, 1]} : vector<4x80xf32> to vector<4x20xf32>
    %cst_86 = arith.constant 0.000000e+00 : f32
    %257 = vector.broadcast %cst_86 : f32 to vector<4x20xf32>
    %258 = arith.subf %257, %256 : vector<4x20xf32>
    %259 = math.exp %258 : vector<4x20xf32>
    %cst_87 = arith.constant 1.000000e+00 : f32
    %260 = vector.broadcast %cst_87 : f32 to vector<4x20xf32>
    %261 = arith.addf %260, %259 : vector<4x20xf32>
    %cst_88 = arith.constant 1.000000e+00 : f32
    %262 = vector.broadcast %cst_88 : f32 to vector<4x20xf32>
    %263 = arith.divf %262, %261 : vector<4x20xf32>
    %264 = arith.mulf %253, %231 : vector<4x20xf32>
    %265 = arith.mulf %245, %255 : vector<4x20xf32>
    %266 = arith.addf %264, %265 : vector<4x20xf32>
    %267 = math.tanh %266 : vector<4x20xf32>
    %268 = arith.mulf %263, %267 : vector<4x20xf32>
    %269 = vector.extract_strided_slice %161 {offsets = [0, 0, 0], sizes = [1, 4, 80], strides = [1, 1, 1]} : vector<4x4x80xf32> to vector<1x4x80xf32>
    %270 = vector.shape_cast %269 : vector<1x4x80xf32> to vector<4x80xf32>
    %cst_89 = arith.constant dense<0.000000e+00> : vector<4x80xf32>
    %271 = tpu.matmul %268, %156, %cst_89 {dimension_numbers = #tpu.dot_dimension_numbers<[1], [0], [0], [1], [0, 0, 1, 1], [], []>} : vector<4x20xf32>, vector<20x80xf32>, vector<4x80xf32> -> vector<4x80xf32>
    %272 = arith.addf %270, %271 : vector<4x80xf32>
    %273 = vector.extract_strided_slice %272 {offsets = [0, 0], sizes = [4, 20], strides = [1, 1]} : vector<4x80xf32> to vector<4x20xf32>
    %cst_90 = arith.constant 0.000000e+00 : f32
    %274 = vector.broadcast %cst_90 : f32 to vector<4x20xf32>
    %275 = arith.subf %274, %273 : vector<4x20xf32>
    %276 = math.exp %275 : vector<4x20xf32>
    %cst_91 = arith.constant 1.000000e+00 : f32
    %277 = vector.broadcast %cst_91 : f32 to vector<4x20xf32>
    %278 = arith.addf %277, %276 : vector<4x20xf32>
    %cst_92 = arith.constant 1.000000e+00 : f32
    %279 = vector.broadcast %cst_92 : f32 to vector<4x20xf32>
    %280 = arith.divf %279, %278 : vector<4x20xf32>
    %281 = vector.extract_strided_slice %272 {offsets = [0, 20], sizes = [4, 20], strides = [1, 1]} : vector<4x80xf32> to vector<4x20xf32>
    %cst_93 = arith.constant 0.000000e+00 : f32
    %282 = vector.broadcast %cst_93 : f32 to vector<4x20xf32>
    %283 = arith.subf %282, %281 : vector<4x20xf32>
    %284 = math.exp %283 : vector<4x20xf32>
    %cst_94 = arith.constant 1.000000e+00 : f32
    %285 = vector.broadcast %cst_94 : f32 to vector<4x20xf32>
    %286 = arith.addf %285, %284 : vector<4x20xf32>
    %cst_95 = arith.constant 1.000000e+00 : f32
    %287 = vector.broadcast %cst_95 : f32 to vector<4x20xf32>
    %288 = arith.divf %287, %286 : vector<4x20xf32>
    %289 = vector.extract_strided_slice %272 {offsets = [0, 40], sizes = [4, 20], strides = [1, 1]} : vector<4x80xf32> to vector<4x20xf32>
    %290 = math.tanh %289 : vector<4x20xf32>
    %291 = vector.extract_strided_slice %272 {offsets = [0, 60], sizes = [4, 20], strides = [1, 1]} : vector<4x80xf32> to vector<4x20xf32>
    %cst_96 = arith.constant 0.000000e+00 : f32
    %292 = vector.broadcast %cst_96 : f32 to vector<4x20xf32>
    %293 = arith.subf %292, %291 : vector<4x20xf32>
    %294 = math.exp %293 : vector<4x20xf32>
    %cst_97 = arith.constant 1.000000e+00 : f32
    %295 = vector.broadcast %cst_97 : f32 to vector<4x20xf32>
    %296 = arith.addf %295, %294 : vector<4x20xf32>
    %cst_98 = arith.constant 1.000000e+00 : f32
    %297 = vector.broadcast %cst_98 : f32 to vector<4x20xf32>
    %298 = arith.divf %297, %296 : vector<4x20xf32>
    %299 = arith.mulf %288, %266 : vector<4x20xf32>
    %300 = arith.mulf %280, %290 : vector<4x20xf32>
    %301 = arith.addf %299, %300 : vector<4x20xf32>
    %302 = math.tanh %301 : vector<4x20xf32>
    %303 = arith.mulf %298, %302 : vector<4x20xf32>
    %304 = vector.shape_cast %303 : vector<4x20xf32> to vector<1x4x20xf32>
    %305 = vector.shape_cast %268 : vector<4x20xf32> to vector<1x4x20xf32>
    %306 = vector.shape_cast %233 : vector<4x20xf32> to vector<1x4x20xf32>
    %307 = vector.shape_cast %198 : vector<4x20xf32> to vector<1x4x20xf32>
    %308 = tpu.concatenate %304, %305, %306, %307 in 0 : vector<1x4x20xf32>, vector<1x4x20xf32>, vector<1x4x20xf32>, vector<1x4x20xf32> -> vector<4x4x20xf32>
    %309 = tpu.concatenate %154, %308 in 2 : vector<4x4x20xf32>, vector<4x4x20xf32> -> vector<4x4x40xf32>
    %c0_99 = arith.constant 0 : index
    %c0_100 = arith.constant 0 : index
    %310 = vector.load %arg8[%c0_99, %c0_100] : memref<40x80xf32, #tpu.memory_space<vmem>>, vector<40x80xf32>
    %c0_101 = arith.constant 0 : index
    %c0_102 = arith.constant 0 : index
    %311 = vector.load %arg9[%c0_101, %c0_102] : memref<20x80xf32, #tpu.memory_space<vmem>>, vector<20x80xf32>
    %c0_103 = arith.constant 0 : index
    %c0_104 = arith.constant 0 : index
    %312 = vector.load %arg10[%c0_103, %c0_104] : memref<1x80xf32, #tpu.memory_space<vmem>>, vector<1x80xf32>
    "tpu.trace_start"() <{level = 10 : i32, message = "tbd,dg->tbg"}> : () -> ()
    %cst_105 = arith.constant dense<0.000000e+00> : vector<4x4x80xf32>
    %313 = tpu.matmul %309, %310, %cst_105 {dimension_numbers = #tpu.dot_dimension_numbers<[2], [0], [0, 1], [1], [0, 0, 0, 1, 1, 1], [], []>} : vector<4x4x40xf32>, vector<40x80xf32>, vector<4x4x80xf32> -> vector<4x4x80xf32>
    "tpu.trace_stop"() : () -> ()
    %314 = vector.shape_cast %312 : vector<1x80xf32> to vector<1x1x80xf32>
    %315 = vector.broadcast %314 : vector<1x1x80xf32> to vector<4x4x80xf32>
    %316 = arith.addf %313, %315 : vector<4x4x80xf32>
    %cst_106 = arith.constant 0.000000e+00 : f32
    %317 = vector.broadcast %cst_106 : f32 to vector<4x20xf32>
    %cst_107 = arith.constant 0.000000e+00 : f32
    %318 = vector.broadcast %cst_107 : f32 to vector<4x20xf32>
    %319 = vector.extract_strided_slice %316 {offsets = [0, 0, 0], sizes = [1, 4, 80], strides = [1, 1, 1]} : vector<4x4x80xf32> to vector<1x4x80xf32>
    %320 = vector.shape_cast %319 : vector<1x4x80xf32> to vector<4x80xf32>
    %cst_108 = arith.constant dense<0.000000e+00> : vector<4x80xf32>
    %321 = tpu.matmul %317, %311, %cst_108 {dimension_numbers = #tpu.dot_dimension_numbers<[1], [0], [0], [1], [0, 0, 1, 1], [], []>} : vector<4x20xf32>, vector<20x80xf32>, vector<4x80xf32> -> vector<4x80xf32>
    %322 = arith.addf %320, %321 : vector<4x80xf32>
    %323 = vector.extract_strided_slice %322 {offsets = [0, 0], sizes = [4, 20], strides = [1, 1]} : vector<4x80xf32> to vector<4x20xf32>
    %cst_109 = arith.constant 0.000000e+00 : f32
    %324 = vector.broadcast %cst_109 : f32 to vector<4x20xf32>
    %325 = arith.subf %324, %323 : vector<4x20xf32>
    %326 = math.exp %325 : vector<4x20xf32>
    %cst_110 = arith.constant 1.000000e+00 : f32
    %327 = vector.broadcast %cst_110 : f32 to vector<4x20xf32>
    %328 = arith.addf %327, %326 : vector<4x20xf32>
    %cst_111 = arith.constant 1.000000e+00 : f32
    %329 = vector.broadcast %cst_111 : f32 to vector<4x20xf32>
    %330 = arith.divf %329, %328 : vector<4x20xf32>
    %331 = vector.extract_strided_slice %322 {offsets = [0, 20], sizes = [4, 20], strides = [1, 1]} : vector<4x80xf32> to vector<4x20xf32>
    %cst_112 = arith.constant 0.000000e+00 : f32
    %332 = vector.broadcast %cst_112 : f32 to vector<4x20xf32>
    %333 = arith.subf %332, %331 : vector<4x20xf32>
    %334 = math.exp %333 : vector<4x20xf32>
    %cst_113 = arith.constant 1.000000e+00 : f32
    %335 = vector.broadcast %cst_113 : f32 to vector<4x20xf32>
    %336 = arith.addf %335, %334 : vector<4x20xf32>
    %cst_114 = arith.constant 1.000000e+00 : f32
    %337 = vector.broadcast %cst_114 : f32 to vector<4x20xf32>
    %338 = arith.divf %337, %336 : vector<4x20xf32>
    %339 = vector.extract_strided_slice %322 {offsets = [0, 40], sizes = [4, 20], strides = [1, 1]} : vector<4x80xf32> to vector<4x20xf32>
    %340 = math.tanh %339 : vector<4x20xf32>
    %341 = vector.extract_strided_slice %322 {offsets = [0, 60], sizes = [4, 20], strides = [1, 1]} : vector<4x80xf32> to vector<4x20xf32>
    %cst_115 = arith.constant 0.000000e+00 : f32
    %342 = vector.broadcast %cst_115 : f32 to vector<4x20xf32>
    %343 = arith.subf %342, %341 : vector<4x20xf32>
    %344 = math.exp %343 : vector<4x20xf32>
    %cst_116 = arith.constant 1.000000e+00 : f32
    %345 = vector.broadcast %cst_116 : f32 to vector<4x20xf32>
    %346 = arith.addf %345, %344 : vector<4x20xf32>
    %cst_117 = arith.constant 1.000000e+00 : f32
    %347 = vector.broadcast %cst_117 : f32 to vector<4x20xf32>
    %348 = arith.divf %347, %346 : vector<4x20xf32>
    %349 = arith.mulf %338, %318 : vector<4x20xf32>
    %350 = arith.mulf %330, %340 : vector<4x20xf32>
    %351 = arith.addf %349, %350 : vector<4x20xf32>
    %352 = math.tanh %351 : vector<4x20xf32>
    %353 = arith.mulf %348, %352 : vector<4x20xf32>
    %354 = vector.extract_strided_slice %316 {offsets = [1, 0, 0], sizes = [1, 4, 80], strides = [1, 1, 1]} : vector<4x4x80xf32> to vector<1x4x80xf32>
    %355 = vector.shape_cast %354 : vector<1x4x80xf32> to vector<4x80xf32>
    %cst_118 = arith.constant dense<0.000000e+00> : vector<4x80xf32>
    %356 = tpu.matmul %353, %311, %cst_118 {dimension_numbers = #tpu.dot_dimension_numbers<[1], [0], [0], [1], [0, 0, 1, 1], [], []>} : vector<4x20xf32>, vector<20x80xf32>, vector<4x80xf32> -> vector<4x80xf32>
    %357 = arith.addf %355, %356 : vector<4x80xf32>
    %358 = vector.extract_strided_slice %357 {offsets = [0, 0], sizes = [4, 20], strides = [1, 1]} : vector<4x80xf32> to vector<4x20xf32>
    %cst_119 = arith.constant 0.000000e+00 : f32
    %359 = vector.broadcast %cst_119 : f32 to vector<4x20xf32>
    %360 = arith.subf %359, %358 : vector<4x20xf32>
    %361 = math.exp %360 : vector<4x20xf32>
    %cst_120 = arith.constant 1.000000e+00 : f32
    %362 = vector.broadcast %cst_120 : f32 to vector<4x20xf32>
    %363 = arith.addf %362, %361 : vector<4x20xf32>
    %cst_121 = arith.constant 1.000000e+00 : f32
    %364 = vector.broadcast %cst_121 : f32 to vector<4x20xf32>
    %365 = arith.divf %364, %363 : vector<4x20xf32>
    %366 = vector.extract_strided_slice %357 {offsets = [0, 20], sizes = [4, 20], strides = [1, 1]} : vector<4x80xf32> to vector<4x20xf32>
    %cst_122 = arith.constant 0.000000e+00 : f32
    %367 = vector.broadcast %cst_122 : f32 to vector<4x20xf32>
    %368 = arith.subf %367, %366 : vector<4x20xf32>
    %369 = math.exp %368 : vector<4x20xf32>
    %cst_123 = arith.constant 1.000000e+00 : f32
    %370 = vector.broadcast %cst_123 : f32 to vector<4x20xf32>
    %371 = arith.addf %370, %369 : vector<4x20xf32>
    %cst_124 = arith.constant 1.000000e+00 : f32
    %372 = vector.broadcast %cst_124 : f32 to vector<4x20xf32>
    %373 = arith.divf %372, %371 : vector<4x20xf32>
    %374 = vector.extract_strided_slice %357 {offsets = [0, 40], sizes = [4, 20], strides = [1, 1]} : vector<4x80xf32> to vector<4x20xf32>
    %375 = math.tanh %374 : vector<4x20xf32>
    %376 = vector.extract_strided_slice %357 {offsets = [0, 60], sizes = [4, 20], strides = [1, 1]} : vector<4x80xf32> to vector<4x20xf32>
    %cst_125 = arith.constant 0.000000e+00 : f32
    %377 = vector.broadcast %cst_125 : f32 to vector<4x20xf32>
    %378 = arith.subf %377, %376 : vector<4x20xf32>
    %379 = math.exp %378 : vector<4x20xf32>
    %cst_126 = arith.constant 1.000000e+00 : f32
    %380 = vector.broadcast %cst_126 : f32 to vector<4x20xf32>
    %381 = arith.addf %380, %379 : vector<4x20xf32>
    %cst_127 = arith.constant 1.000000e+00 : f32
    %382 = vector.broadcast %cst_127 : f32 to vector<4x20xf32>
    %383 = arith.divf %382, %381 : vector<4x20xf32>
    %384 = arith.mulf %373, %351 : vector<4x20xf32>
    %385 = arith.mulf %365, %375 : vector<4x20xf32>
    %386 = arith.addf %384, %385 : vector<4x20xf32>
    %387 = math.tanh %386 : vector<4x20xf32>
    %388 = arith.mulf %383, %387 : vector<4x20xf32>
    %389 = vector.extract_strided_slice %316 {offsets = [2, 0, 0], sizes = [1, 4, 80], strides = [1, 1, 1]} : vector<4x4x80xf32> to vector<1x4x80xf32>
    %390 = vector.shape_cast %389 : vector<1x4x80xf32> to vector<4x80xf32>
    %cst_128 = arith.constant dense<0.000000e+00> : vector<4x80xf32>
    %391 = tpu.matmul %388, %311, %cst_128 {dimension_numbers = #tpu.dot_dimension_numbers<[1], [0], [0], [1], [0, 0, 1, 1], [], []>} : vector<4x20xf32>, vector<20x80xf32>, vector<4x80xf32> -> vector<4x80xf32>
    %392 = arith.addf %390, %391 : vector<4x80xf32>
    %393 = vector.extract_strided_slice %392 {offsets = [0, 0], sizes = [4, 20], strides = [1, 1]} : vector<4x80xf32> to vector<4x20xf32>
    %cst_129 = arith.constant 0.000000e+00 : f32
    %394 = vector.broadcast %cst_129 : f32 to vector<4x20xf32>
    %395 = arith.subf %394, %393 : vector<4x20xf32>
    %396 = math.exp %395 : vector<4x20xf32>
    %cst_130 = arith.constant 1.000000e+00 : f32
    %397 = vector.broadcast %cst_130 : f32 to vector<4x20xf32>
    %398 = arith.addf %397, %396 : vector<4x20xf32>
    %cst_131 = arith.constant 1.000000e+00 : f32
    %399 = vector.broadcast %cst_131 : f32 to vector<4x20xf32>
    %400 = arith.divf %399, %398 : vector<4x20xf32>
    %401 = vector.extract_strided_slice %392 {offsets = [0, 20], sizes = [4, 20], strides = [1, 1]} : vector<4x80xf32> to vector<4x20xf32>
    %cst_132 = arith.constant 0.000000e+00 : f32
    %402 = vector.broadcast %cst_132 : f32 to vector<4x20xf32>
    %403 = arith.subf %402, %401 : vector<4x20xf32>
    %404 = math.exp %403 : vector<4x20xf32>
    %cst_133 = arith.constant 1.000000e+00 : f32
    %405 = vector.broadcast %cst_133 : f32 to vector<4x20xf32>
    %406 = arith.addf %405, %404 : vector<4x20xf32>
    %cst_134 = arith.constant 1.000000e+00 : f32
    %407 = vector.broadcast %cst_134 : f32 to vector<4x20xf32>
    %408 = arith.divf %407, %406 : vector<4x20xf32>
    %409 = vector.extract_strided_slice %392 {offsets = [0, 40], sizes = [4, 20], strides = [1, 1]} : vector<4x80xf32> to vector<4x20xf32>
    %410 = math.tanh %409 : vector<4x20xf32>
    %411 = vector.extract_strided_slice %392 {offsets = [0, 60], sizes = [4, 20], strides = [1, 1]} : vector<4x80xf32> to vector<4x20xf32>
    %cst_135 = arith.constant 0.000000e+00 : f32
    %412 = vector.broadcast %cst_135 : f32 to vector<4x20xf32>
    %413 = arith.subf %412, %411 : vector<4x20xf32>
    %414 = math.exp %413 : vector<4x20xf32>
    %cst_136 = arith.constant 1.000000e+00 : f32
    %415 = vector.broadcast %cst_136 : f32 to vector<4x20xf32>
    %416 = arith.addf %415, %414 : vector<4x20xf32>
    %cst_137 = arith.constant 1.000000e+00 : f32
    %417 = vector.broadcast %cst_137 : f32 to vector<4x20xf32>
    %418 = arith.divf %417, %416 : vector<4x20xf32>
    %419 = arith.mulf %408, %386 : vector<4x20xf32>
    %420 = arith.mulf %400, %410 : vector<4x20xf32>
    %421 = arith.addf %419, %420 : vector<4x20xf32>
    %422 = math.tanh %421 : vector<4x20xf32>
    %423 = arith.mulf %418, %422 : vector<4x20xf32>
    %424 = vector.extract_strided_slice %316 {offsets = [3, 0, 0], sizes = [1, 4, 80], strides = [1, 1, 1]} : vector<4x4x80xf32> to vector<1x4x80xf32>
    %425 = vector.shape_cast %424 : vector<1x4x80xf32> to vector<4x80xf32>
    %cst_138 = arith.constant dense<0.000000e+00> : vector<4x80xf32>
    %426 = tpu.matmul %423, %311, %cst_138 {dimension_numbers = #tpu.dot_dimension_numbers<[1], [0], [0], [1], [0, 0, 1, 1], [], []>} : vector<4x20xf32>, vector<20x80xf32>, vector<4x80xf32> -> vector<4x80xf32>
    %427 = arith.addf %425, %426 : vector<4x80xf32>
    %428 = vector.extract_strided_slice %427 {offsets = [0, 0], sizes = [4, 20], strides = [1, 1]} : vector<4x80xf32> to vector<4x20xf32>
    %cst_139 = arith.constant 0.000000e+00 : f32
    %429 = vector.broadcast %cst_139 : f32 to vector<4x20xf32>
    %430 = arith.subf %429, %428 : vector<4x20xf32>
    %431 = math.exp %430 : vector<4x20xf32>
    %cst_140 = arith.constant 1.000000e+00 : f32
    %432 = vector.broadcast %cst_140 : f32 to vector<4x20xf32>
    %433 = arith.addf %432, %431 : vector<4x20xf32>
    %cst_141 = arith.constant 1.000000e+00 : f32
    %434 = vector.broadcast %cst_141 : f32 to vector<4x20xf32>
    %435 = arith.divf %434, %433 : vector<4x20xf32>
    %436 = vector.extract_strided_slice %427 {offsets = [0, 20], sizes = [4, 20], strides = [1, 1]} : vector<4x80xf32> to vector<4x20xf32>
    %cst_142 = arith.constant 0.000000e+00 : f32
    %437 = vector.broadcast %cst_142 : f32 to vector<4x20xf32>
    %438 = arith.subf %437, %436 : vector<4x20xf32>
    %439 = math.exp %438 : vector<4x20xf32>
    %cst_143 = arith.constant 1.000000e+00 : f32
    %440 = vector.broadcast %cst_143 : f32 to vector<4x20xf32>
    %441 = arith.addf %440, %439 : vector<4x20xf32>
    %cst_144 = arith.constant 1.000000e+00 : f32
    %442 = vector.broadcast %cst_144 : f32 to vector<4x20xf32>
    %443 = arith.divf %442, %441 : vector<4x20xf32>
    %444 = vector.extract_strided_slice %427 {offsets = [0, 40], sizes = [4, 20], strides = [1, 1]} : vector<4x80xf32> to vector<4x20xf32>
    %445 = math.tanh %444 : vector<4x20xf32>
    %446 = vector.extract_strided_slice %427 {offsets = [0, 60], sizes = [4, 20], strides = [1, 1]} : vector<4x80xf32> to vector<4x20xf32>
    %cst_145 = arith.constant 0.000000e+00 : f32
    %447 = vector.broadcast %cst_145 : f32 to vector<4x20xf32>
    %448 = arith.subf %447, %446 : vector<4x20xf32>
    %449 = math.exp %448 : vector<4x20xf32>
    %cst_146 = arith.constant 1.000000e+00 : f32
    %450 = vector.broadcast %cst_146 : f32 to vector<4x20xf32>
    %451 = arith.addf %450, %449 : vector<4x20xf32>
    %cst_147 = arith.constant 1.000000e+00 : f32
    %452 = vector.broadcast %cst_147 : f32 to vector<4x20xf32>
    %453 = arith.divf %452, %451 : vector<4x20xf32>
    %454 = arith.mulf %443, %421 : vector<4x20xf32>
    %455 = arith.mulf %435, %445 : vector<4x20xf32>
    %456 = arith.addf %454, %455 : vector<4x20xf32>
    %457 = math.tanh %456 : vector<4x20xf32>
    %458 = arith.mulf %453, %457 : vector<4x20xf32>
    %459 = vector.shape_cast %353 : vector<4x20xf32> to vector<1x4x20xf32>
    %460 = vector.shape_cast %388 : vector<4x20xf32> to vector<1x4x20xf32>
    %461 = vector.shape_cast %423 : vector<4x20xf32> to vector<1x4x20xf32>
    %462 = vector.shape_cast %458 : vector<4x20xf32> to vector<1x4x20xf32>
    %463 = tpu.concatenate %459, %460, %461, %462 in 0 : vector<1x4x20xf32>, vector<1x4x20xf32>, vector<1x4x20xf32>, vector<1x4x20xf32> -> vector<4x4x20xf32>
    %c0_148 = arith.constant 0 : index
    %c0_149 = arith.constant 0 : index
    %464 = vector.load %arg11[%c0_148, %c0_149] : memref<40x80xf32, #tpu.memory_space<vmem>>, vector<40x80xf32>
    %c0_150 = arith.constant 0 : index
    %c0_151 = arith.constant 0 : index
    %465 = vector.load %arg12[%c0_150, %c0_151] : memref<20x80xf32, #tpu.memory_space<vmem>>, vector<20x80xf32>
    %c0_152 = arith.constant 0 : index
    %c0_153 = arith.constant 0 : index
    %466 = vector.load %arg13[%c0_152, %c0_153] : memref<1x80xf32, #tpu.memory_space<vmem>>, vector<1x80xf32>
    "tpu.trace_start"() <{level = 10 : i32, message = "tbd,dg->tbg"}> : () -> ()
    %cst_154 = arith.constant dense<0.000000e+00> : vector<4x4x80xf32>
    %467 = tpu.matmul %309, %464, %cst_154 {dimension_numbers = #tpu.dot_dimension_numbers<[2], [0], [0, 1], [1], [0, 0, 0, 1, 1, 1], [], []>} : vector<4x4x40xf32>, vector<40x80xf32>, vector<4x4x80xf32> -> vector<4x4x80xf32>
    "tpu.trace_stop"() : () -> ()
    %468 = vector.shape_cast %466 : vector<1x80xf32> to vector<1x1x80xf32>
    %469 = vector.broadcast %468 : vector<1x1x80xf32> to vector<4x4x80xf32>
    %470 = arith.addf %467, %469 : vector<4x4x80xf32>
    %cst_155 = arith.constant 0.000000e+00 : f32
    %471 = vector.broadcast %cst_155 : f32 to vector<4x20xf32>
    %cst_156 = arith.constant 0.000000e+00 : f32
    %472 = vector.broadcast %cst_156 : f32 to vector<4x20xf32>
    %473 = vector.extract_strided_slice %470 {offsets = [3, 0, 0], sizes = [1, 4, 80], strides = [1, 1, 1]} : vector<4x4x80xf32> to vector<1x4x80xf32>
    %474 = vector.shape_cast %473 : vector<1x4x80xf32> to vector<4x80xf32>
    %cst_157 = arith.constant dense<0.000000e+00> : vector<4x80xf32>
    %475 = tpu.matmul %471, %465, %cst_157 {dimension_numbers = #tpu.dot_dimension_numbers<[1], [0], [0], [1], [0, 0, 1, 1], [], []>} : vector<4x20xf32>, vector<20x80xf32>, vector<4x80xf32> -> vector<4x80xf32>
    %476 = arith.addf %474, %475 : vector<4x80xf32>
    %477 = vector.extract_strided_slice %476 {offsets = [0, 0], sizes = [4, 20], strides = [1, 1]} : vector<4x80xf32> to vector<4x20xf32>
    %cst_158 = arith.constant 0.000000e+00 : f32
    %478 = vector.broadcast %cst_158 : f32 to vector<4x20xf32>
    %479 = arith.subf %478, %477 : vector<4x20xf32>
    %480 = math.exp %479 : vector<4x20xf32>
    %cst_159 = arith.constant 1.000000e+00 : f32
    %481 = vector.broadcast %cst_159 : f32 to vector<4x20xf32>
    %482 = arith.addf %481, %480 : vector<4x20xf32>
    %cst_160 = arith.constant 1.000000e+00 : f32
    %483 = vector.broadcast %cst_160 : f32 to vector<4x20xf32>
    %484 = arith.divf %483, %482 : vector<4x20xf32>
    %485 = vector.extract_strided_slice %476 {offsets = [0, 20], sizes = [4, 20], strides = [1, 1]} : vector<4x80xf32> to vector<4x20xf32>
    %cst_161 = arith.constant 0.000000e+00 : f32
    %486 = vector.broadcast %cst_161 : f32 to vector<4x20xf32>
    %487 = arith.subf %486, %485 : vector<4x20xf32>
    %488 = math.exp %487 : vector<4x20xf32>
    %cst_162 = arith.constant 1.000000e+00 : f32
    %489 = vector.broadcast %cst_162 : f32 to vector<4x20xf32>
    %490 = arith.addf %489, %488 : vector<4x20xf32>
    %cst_163 = arith.constant 1.000000e+00 : f32
    %491 = vector.broadcast %cst_163 : f32 to vector<4x20xf32>
    %492 = arith.divf %491, %490 : vector<4x20xf32>
    %493 = vector.extract_strided_slice %476 {offsets = [0, 40], sizes = [4, 20], strides = [1, 1]} : vector<4x80xf32> to vector<4x20xf32>
    %494 = math.tanh %493 : vector<4x20xf32>
    %495 = vector.extract_strided_slice %476 {offsets = [0, 60], sizes = [4, 20], strides = [1, 1]} : vector<4x80xf32> to vector<4x20xf32>
    %cst_164 = arith.constant 0.000000e+00 : f32
    %496 = vector.broadcast %cst_164 : f32 to vector<4x20xf32>
    %497 = arith.subf %496, %495 : vector<4x20xf32>
    %498 = math.exp %497 : vector<4x20xf32>
    %cst_165 = arith.constant 1.000000e+00 : f32
    %499 = vector.broadcast %cst_165 : f32 to vector<4x20xf32>
    %500 = arith.addf %499, %498 : vector<4x20xf32>
    %cst_166 = arith.constant 1.000000e+00 : f32
    %501 = vector.broadcast %cst_166 : f32 to vector<4x20xf32>
    %502 = arith.divf %501, %500 : vector<4x20xf32>
    %503 = arith.mulf %492, %472 : vector<4x20xf32>
    %504 = arith.mulf %484, %494 : vector<4x20xf32>
    %505 = arith.addf %503, %504 : vector<4x20xf32>
    %506 = math.tanh %505 : vector<4x20xf32>
    %507 = arith.mulf %502, %506 : vector<4x20xf32>
    %508 = vector.extract_strided_slice %470 {offsets = [2, 0, 0], sizes = [1, 4, 80], strides = [1, 1, 1]} : vector<4x4x80xf32> to vector<1x4x80xf32>
    %509 = vector.shape_cast %508 : vector<1x4x80xf32> to vector<4x80xf32>
    %cst_167 = arith.constant dense<0.000000e+00> : vector<4x80xf32>
    %510 = tpu.matmul %507, %465, %cst_167 {dimension_numbers = #tpu.dot_dimension_numbers<[1], [0], [0], [1], [0, 0, 1, 1], [], []>} : vector<4x20xf32>, vector<20x80xf32>, vector<4x80xf32> -> vector<4x80xf32>
    %511 = arith.addf %509, %510 : vector<4x80xf32>
    %512 = vector.extract_strided_slice %511 {offsets = [0, 0], sizes = [4, 20], strides = [1, 1]} : vector<4x80xf32> to vector<4x20xf32>
    %cst_168 = arith.constant 0.000000e+00 : f32
    %513 = vector.broadcast %cst_168 : f32 to vector<4x20xf32>
    %514 = arith.subf %513, %512 : vector<4x20xf32>
    %515 = math.exp %514 : vector<4x20xf32>
    %cst_169 = arith.constant 1.000000e+00 : f32
    %516 = vector.broadcast %cst_169 : f32 to vector<4x20xf32>
    %517 = arith.addf %516, %515 : vector<4x20xf32>
    %cst_170 = arith.constant 1.000000e+00 : f32
    %518 = vector.broadcast %cst_170 : f32 to vector<4x20xf32>
    %519 = arith.divf %518, %517 : vector<4x20xf32>
    %520 = vector.extract_strided_slice %511 {offsets = [0, 20], sizes = [4, 20], strides = [1, 1]} : vector<4x80xf32> to vector<4x20xf32>
    %cst_171 = arith.constant 0.000000e+00 : f32
    %521 = vector.broadcast %cst_171 : f32 to vector<4x20xf32>
    %522 = arith.subf %521, %520 : vector<4x20xf32>
    %523 = math.exp %522 : vector<4x20xf32>
    %cst_172 = arith.constant 1.000000e+00 : f32
    %524 = vector.broadcast %cst_172 : f32 to vector<4x20xf32>
    %525 = arith.addf %524, %523 : vector<4x20xf32>
    %cst_173 = arith.constant 1.000000e+00 : f32
    %526 = vector.broadcast %cst_173 : f32 to vector<4x20xf32>
    %527 = arith.divf %526, %525 : vector<4x20xf32>
    %528 = vector.extract_strided_slice %511 {offsets = [0, 40], sizes = [4, 20], strides = [1, 1]} : vector<4x80xf32> to vector<4x20xf32>
    %529 = math.tanh %528 : vector<4x20xf32>
    %530 = vector.extract_strided_slice %511 {offsets = [0, 60], sizes = [4, 20], strides = [1, 1]} : vector<4x80xf32> to vector<4x20xf32>
    %cst_174 = arith.constant 0.000000e+00 : f32
    %531 = vector.broadcast %cst_174 : f32 to vector<4x20xf32>
    %532 = arith.subf %531, %530 : vector<4x20xf32>
    %533 = math.exp %532 : vector<4x20xf32>
    %cst_175 = arith.constant 1.000000e+00 : f32
    %534 = vector.broadcast %cst_175 : f32 to vector<4x20xf32>
    %535 = arith.addf %534, %533 : vector<4x20xf32>
    %cst_176 = arith.constant 1.000000e+00 : f32
    %536 = vector.broadcast %cst_176 : f32 to vector<4x20xf32>
    %537 = arith.divf %536, %535 : vector<4x20xf32>
    %538 = arith.mulf %527, %505 : vector<4x20xf32>
    %539 = arith.mulf %519, %529 : vector<4x20xf32>
    %540 = arith.addf %538, %539 : vector<4x20xf32>
    %541 = math.tanh %540 : vector<4x20xf32>
    %542 = arith.mulf %537, %541 : vector<4x20xf32>
    %543 = vector.extract_strided_slice %470 {offsets = [1, 0, 0], sizes = [1, 4, 80], strides = [1, 1, 1]} : vector<4x4x80xf32> to vector<1x4x80xf32>
    %544 = vector.shape_cast %543 : vector<1x4x80xf32> to vector<4x80xf32>
    %cst_177 = arith.constant dense<0.000000e+00> : vector<4x80xf32>
    %545 = tpu.matmul %542, %465, %cst_177 {dimension_numbers = #tpu.dot_dimension_numbers<[1], [0], [0], [1], [0, 0, 1, 1], [], []>} : vector<4x20xf32>, vector<20x80xf32>, vector<4x80xf32> -> vector<4x80xf32>
    %546 = arith.addf %544, %545 : vector<4x80xf32>
    %547 = vector.extract_strided_slice %546 {offsets = [0, 0], sizes = [4, 20], strides = [1, 1]} : vector<4x80xf32> to vector<4x20xf32>
    %cst_178 = arith.constant 0.000000e+00 : f32
    %548 = vector.broadcast %cst_178 : f32 to vector<4x20xf32>
    %549 = arith.subf %548, %547 : vector<4x20xf32>
    %550 = math.exp %549 : vector<4x20xf32>
    %cst_179 = arith.constant 1.000000e+00 : f32
    %551 = vector.broadcast %cst_179 : f32 to vector<4x20xf32>
    %552 = arith.addf %551, %550 : vector<4x20xf32>
    %cst_180 = arith.constant 1.000000e+00 : f32
    %553 = vector.broadcast %cst_180 : f32 to vector<4x20xf32>
    %554 = arith.divf %553, %552 : vector<4x20xf32>
    %555 = vector.extract_strided_slice %546 {offsets = [0, 20], sizes = [4, 20], strides = [1, 1]} : vector<4x80xf32> to vector<4x20xf32>
    %cst_181 = arith.constant 0.000000e+00 : f32
    %556 = vector.broadcast %cst_181 : f32 to vector<4x20xf32>
    %557 = arith.subf %556, %555 : vector<4x20xf32>
    %558 = math.exp %557 : vector<4x20xf32>
    %cst_182 = arith.constant 1.000000e+00 : f32
    %559 = vector.broadcast %cst_182 : f32 to vector<4x20xf32>
    %560 = arith.addf %559, %558 : vector<4x20xf32>
    %cst_183 = arith.constant 1.000000e+00 : f32
    %561 = vector.broadcast %cst_183 : f32 to vector<4x20xf32>
    %562 = arith.divf %561, %560 : vector<4x20xf32>
    %563 = vector.extract_strided_slice %546 {offsets = [0, 40], sizes = [4, 20], strides = [1, 1]} : vector<4x80xf32> to vector<4x20xf32>
    %564 = math.tanh %563 : vector<4x20xf32>
    %565 = vector.extract_strided_slice %546 {offsets = [0, 60], sizes = [4, 20], strides = [1, 1]} : vector<4x80xf32> to vector<4x20xf32>
    %cst_184 = arith.constant 0.000000e+00 : f32
    %566 = vector.broadcast %cst_184 : f32 to vector<4x20xf32>
    %567 = arith.subf %566, %565 : vector<4x20xf32>
    %568 = math.exp %567 : vector<4x20xf32>
    %cst_185 = arith.constant 1.000000e+00 : f32
    %569 = vector.broadcast %cst_185 : f32 to vector<4x20xf32>
    %570 = arith.addf %569, %568 : vector<4x20xf32>
    %cst_186 = arith.constant 1.000000e+00 : f32
    %571 = vector.broadcast %cst_186 : f32 to vector<4x20xf32>
    %572 = arith.divf %571, %570 : vector<4x20xf32>
    %573 = arith.mulf %562, %540 : vector<4x20xf32>
    %574 = arith.mulf %554, %564 : vector<4x20xf32>
    %575 = arith.addf %573, %574 : vector<4x20xf32>
    %576 = math.tanh %575 : vector<4x20xf32>
    %577 = arith.mulf %572, %576 : vector<4x20xf32>
    %578 = vector.extract_strided_slice %470 {offsets = [0, 0, 0], sizes = [1, 4, 80], strides = [1, 1, 1]} : vector<4x4x80xf32> to vector<1x4x80xf32>
    %579 = vector.shape_cast %578 : vector<1x4x80xf32> to vector<4x80xf32>
    %cst_187 = arith.constant dense<0.000000e+00> : vector<4x80xf32>
    %580 = tpu.matmul %577, %465, %cst_187 {dimension_numbers = #tpu.dot_dimension_numbers<[1], [0], [0], [1], [0, 0, 1, 1], [], []>} : vector<4x20xf32>, vector<20x80xf32>, vector<4x80xf32> -> vector<4x80xf32>
    %581 = arith.addf %579, %580 : vector<4x80xf32>
    %582 = vector.extract_strided_slice %581 {offsets = [0, 0], sizes = [4, 20], strides = [1, 1]} : vector<4x80xf32> to vector<4x20xf32>
    %cst_188 = arith.constant 0.000000e+00 : f32
    %583 = vector.broadcast %cst_188 : f32 to vector<4x20xf32>
    %584 = arith.subf %583, %582 : vector<4x20xf32>
    %585 = math.exp %584 : vector<4x20xf32>
    %cst_189 = arith.constant 1.000000e+00 : f32
    %586 = vector.broadcast %cst_189 : f32 to vector<4x20xf32>
    %587 = arith.addf %586, %585 : vector<4x20xf32>
    %cst_190 = arith.constant 1.000000e+00 : f32
    %588 = vector.broadcast %cst_190 : f32 to vector<4x20xf32>
    %589 = arith.divf %588, %587 : vector<4x20xf32>
    %590 = vector.extract_strided_slice %581 {offsets = [0, 20], sizes = [4, 20], strides = [1, 1]} : vector<4x80xf32> to vector<4x20xf32>
    %cst_191 = arith.constant 0.000000e+00 : f32
    %591 = vector.broadcast %cst_191 : f32 to vector<4x20xf32>
    %592 = arith.subf %591, %590 : vector<4x20xf32>
    %593 = math.exp %592 : vector<4x20xf32>
    %cst_192 = arith.constant 1.000000e+00 : f32
    %594 = vector.broadcast %cst_192 : f32 to vector<4x20xf32>
    %595 = arith.addf %594, %593 : vector<4x20xf32>
    %cst_193 = arith.constant 1.000000e+00 : f32
    %596 = vector.broadcast %cst_193 : f32 to vector<4x20xf32>
    %597 = arith.divf %596, %595 : vector<4x20xf32>
    %598 = vector.extract_strided_slice %581 {offsets = [0, 40], sizes = [4, 20], strides = [1, 1]} : vector<4x80xf32> to vector<4x20xf32>
    %599 = math.tanh %598 : vector<4x20xf32>
    %600 = vector.extract_strided_slice %581 {offsets = [0, 60], sizes = [4, 20], strides = [1, 1]} : vector<4x80xf32> to vector<4x20xf32>
    %cst_194 = arith.constant 0.000000e+00 : f32
    %601 = vector.broadcast %cst_194 : f32 to vector<4x20xf32>
    %602 = arith.subf %601, %600 : vector<4x20xf32>
    %603 = math.exp %602 : vector<4x20xf32>
    %cst_195 = arith.constant 1.000000e+00 : f32
    %604 = vector.broadcast %cst_195 : f32 to vector<4x20xf32>
    %605 = arith.addf %604, %603 : vector<4x20xf32>
    %cst_196 = arith.constant 1.000000e+00 : f32
    %606 = vector.broadcast %cst_196 : f32 to vector<4x20xf32>
    %607 = arith.divf %606, %605 : vector<4x20xf32>
    %608 = arith.mulf %597, %575 : vector<4x20xf32>
    %609 = arith.mulf %589, %599 : vector<4x20xf32>
    %610 = arith.addf %608, %609 : vector<4x20xf32>
    %611 = math.tanh %610 : vector<4x20xf32>
    %612 = arith.mulf %607, %611 : vector<4x20xf32>
    %613 = vector.shape_cast %612 : vector<4x20xf32> to vector<1x4x20xf32>
    %614 = vector.shape_cast %577 : vector<4x20xf32> to vector<1x4x20xf32>
    %615 = vector.shape_cast %542 : vector<4x20xf32> to vector<1x4x20xf32>
    %616 = vector.shape_cast %507 : vector<4x20xf32> to vector<1x4x20xf32>
    %617 = tpu.concatenate %613, %614, %615, %616 in 0 : vector<1x4x20xf32>, vector<1x4x20xf32>, vector<1x4x20xf32>, vector<1x4x20xf32> -> vector<4x4x20xf32>
    %618 = tpu.concatenate %463, %617 in 2 : vector<4x4x20xf32>, vector<4x4x20xf32> -> vector<4x4x40xf32>
    %c0_197 = arith.constant 0 : index
    %c0_198 = arith.constant 0 : index
    %619 = vector.load %arg14[%c0_197, %c0_198] : memref<40x2xf32, #tpu.memory_space<vmem>>, vector<40x2xf32>
    %c0_199 = arith.constant 0 : index
    %c0_200 = arith.constant 0 : index
    %620 = vector.load %arg15[%c0_199, %c0_200] : memref<1x2xf32, #tpu.memory_space<vmem>>, vector<1x2xf32>
    "tpu.trace_start"() <{level = 10 : i32, message = "tbd,do->tbo"}> : () -> ()
    %cst_201 = arith.constant dense<0.000000e+00> : vector<4x4x2xf32>
    %621 = tpu.matmul %618, %619, %cst_201 {dimension_numbers = #tpu.dot_dimension_numbers<[2], [0], [0, 1], [1], [0, 0, 0, 1, 1, 1], [], []>} : vector<4x4x40xf32>, vector<40x2xf32>, vector<4x4x2xf32> -> vector<4x4x2xf32>
    "tpu.trace_stop"() : () -> ()
    %622 = vector.shape_cast %620 : vector<1x2xf32> to vector<1x1x2xf32>
    %623 = vector.broadcast %622 : vector<1x1x2xf32> to vector<4x4x2xf32>
    %624 = arith.addf %621, %623 : vector<4x4x2xf32>
    %c0_202 = arith.constant 0 : index
    %c0_203 = arith.constant 0 : index
    %c0_204 = arith.constant 0 : index
    %625 = vector.load %arg16[%c0_202, %c0_203, %c0_204] : memref<4x4x2xf32, #tpu.memory_space<vmem>>, vector<4x4x2xf32>
    tpu.vector_store %arg16[%c0_202, %c0_203, %c0_204], %624 {strides = array<i32>} : memref<4x4x2xf32, #tpu.memory_space<vmem>>, vector<4x4x2xf32>,
    return
  }
  func.func @transform_0(%arg0: i32) -> (i32, i32, i32) {
    %c0_i32 = arith.constant 0 : i32
    %c0_i32_0 = arith.constant 0 : i32
    %c0_i32_1 = arith.constant 0 : i32
    %c0_i32_2 = arith.constant 0 : i32
    return %c0_i32, %c0_i32_0, %c0_i32_1 : i32, i32, i32
  }
  func.func @transform_1(%arg0: i32) -> (i32, i32) {
    %c0_i32 = arith.constant 0 : i32
    %c0_i32_0 = arith.constant 0 : i32
    %c0_i32_1 = arith.constant 0 : i32
    return %c0_i32, %c0_i32_0 : i32, i32
  }
  func.func @transform_2(%arg0: i32) -> (i32, i32) {
    %c0_i32 = arith.constant 0 : i32
    %c0_i32_0 = arith.constant 0 : i32
    %c0_i32_1 = arith.constant 0 : i32
    return %c0_i32, %c0_i32_0 : i32, i32
  }
  func.func @transform_3(%arg0: i32) -> (i32, i32) {
    %c0_i32 = arith.constant 0 : i32
    %c0_i32_0 = arith.constant 0 : i32
    %c0_i32_1 = arith.constant 0 : i32
    return %c0_i32, %c0_i32_0 : i32, i32
  }
  func.func @transform_4(%arg0: i32) -> (i32, i32) {
    %c0_i32 = arith.constant 0 : i32
    %c0_i32_0 = arith.constant 0 : i32
    %c0_i32_1 = arith.constant 0 : i32
    return %c0_i32, %c0_i32_0 : i32, i32
  }
  func.func @transform_5(%arg0: i32) -> (i32, i32) {
    %c0_i32 = arith.constant 0 : i32
    %c0_i32_0 = arith.constant 0 : i32
    %c0_i32_1 = arith.constant 0 : i32
    return %c0_i32, %c0_i32_0 : i32, i32
  }
  func.func @transform_6(%arg0: i32) -> (i32, i32) {
    %c0_i32 = arith.constant 0 : i32
    %c0_i32_0 = arith.constant 0 : i32
    %c0_i32_1 = arith.constant 0 : i32
    return %c0_i32, %c0_i32_0 : i32, i32
  }
  func.func @transform_7(%arg0: i32) -> (i32, i32) {
    %c0_i32 = arith.constant 0 : i32
    %c0_i32_0 = arith.constant 0 : i32
    %c0_i32_1 = arith.constant 0 : i32
    return %c0_i32, %c0_i32_0 : i32, i32
  }
  func.func @transform_8(%arg0: i32) -> (i32, i32) {
    %c0_i32 = arith.constant 0 : i32
    %c0_i32_0 = arith.constant 0 : i32
    %c0_i32_1 = arith.constant 0 : i32
    return %c0_i32, %c0_i32_0 : i32, i32
  }
  func.func @transform_9(%arg0: i32) -> (i32, i32) {
    %c0_i32 = arith.constant 0 : i32
    %c0_i32_0 = arith.constant 0 : i32
    %c0_i32_1 = arith.constant 0 : i32
    return %c0_i32, %c0_i32_0 : i32, i32
  }
  func.func @transform_10(%arg0: i32) -> (i32, i32) {
    %c0_i32 = arith.constant 0 : i32
    %c0_i32_0 = arith.constant 0 : i32
    %c0_i32_1 = arith.constant 0 : i32
    return %c0_i32, %c0_i32_0 : i32, i32
  }
  func.func @transform_11(%arg0: i32) -> (i32, i32) {
    %c0_i32 = arith.constant 0 : i32
    %c0_i32_0 = arith.constant 0 : i32
    %c0_i32_1 = arith.constant 0 : i32
    return %c0_i32, %c0_i32_0 : i32, i32
  }
  func.func @transform_12(%arg0: i32) -> (i32, i32) {
    %c0_i32 = arith.constant 0 : i32
    %c0_i32_0 = arith.constant 0 : i32
    %c0_i32_1 = arith.constant 0 : i32
    return %c0_i32, %c0_i32_0 : i32, i32
  }
  func.func @transform_13(%arg0: i32) -> (i32, i32) {
    %c0_i32 = arith.constant 0 : i32
    %c0_i32_0 = arith.constant 0 : i32
    %c0_i32_1 = arith.constant 0 : i32
    return %c0_i32, %c0_i32_0 : i32, i32
  }
  func.func @transform_14(%arg0: i32) -> (i32, i32) {
    %c0_i32 = arith.constant 0 : i32
    %c0_i32_0 = arith.constant 0 : i32
    %c0_i32_1 = arith.constant 0 : i32
    return %c0_i32, %c0_i32_0 : i32, i32
  }
  func.func @transform_15(%arg0: i32) -> (i32, i32, i32) {
    %c0_i32 = arith.constant 0 : i32
    %c0_i32_0 = arith.constant 0 : i32
    %c0_i32_1 = arith.constant 0 : i32
    %c0_i32_2 = arith.constant 0 : i32
    return %c0_i32, %c0_i32_0, %c0_i32_1 : i32, i32, i32
  }
}

module attributes {stable_mosaic.version = 11 : i64} {
  func.func @_cnn_kernel(%arg0: i32, %arg1: memref<16x16x19xf32, #tpu.memory_space<vmem>>, %arg2: memref<57x5xf32, #tpu.memory_space<vmem>>, %arg3: memref<1x1x5xf32, #tpu.memory_space<vmem>>, %arg4: memref<1x1x5xf32, #tpu.memory_space<vmem>>, %arg5: memref<1x1x5xf32, #tpu.memory_space<vmem>>, %arg6: memref<15x5xf32, #tpu.memory_space<vmem>>, %arg7: memref<1x1x5xf32, #tpu.memory_space<vmem>>, %arg8: memref<1x1x5xf32, #tpu.memory_space<vmem>>, %arg9: memref<1x1x5xf32, #tpu.memory_space<vmem>>, %arg10: memref<15x10xf32, #tpu.memory_space<vmem>>, %arg11: memref<1x1x10xf32, #tpu.memory_space<vmem>>, %arg12: memref<1x1x10xf32, #tpu.memory_space<vmem>>, %arg13: memref<1x1x10xf32, #tpu.memory_space<vmem>>, %arg14: memref<30x10xf32, #tpu.memory_space<vmem>>, %arg15: memref<1x1x10xf32, #tpu.memory_space<vmem>>, %arg16: memref<1x1x10xf32, #tpu.memory_space<vmem>>, %arg17: memref<1x1x10xf32, #tpu.memory_space<vmem>>, %arg18: memref<30x20xf32, #tpu.memory_space<vmem>>, %arg19: memref<1x1x20xf32, #tpu.memory_space<vmem>>, %arg20: memref<1x1x20xf32, #tpu.memory_space<vmem>>, %arg21: memref<1x1x20xf32, #tpu.memory_space<vmem>>, %arg22: memref<60x20xf32, #tpu.memory_space<vmem>>, %arg23: memref<1x1x20xf32, #tpu.memory_space<vmem>>, %arg24: memref<1x1x20xf32, #tpu.memory_space<vmem>>, %arg25: memref<1x1x20xf32, #tpu.memory_space<vmem>>, %arg26: memref<60x40xf32, #tpu.memory_space<vmem>>, %arg27: memref<1x1x40xf32, #tpu.memory_space<vmem>>, %arg28: memref<1x1x40xf32, #tpu.memory_space<vmem>>, %arg29: memref<1x1x40xf32, #tpu.memory_space<vmem>>, %arg30: memref<120x40xf32, #tpu.memory_space<vmem>>, %arg31: memref<1x1x40xf32, #tpu.memory_space<vmem>>, %arg32: memref<1x1x40xf32, #tpu.memory_space<vmem>>, %arg33: memref<1x1x40xf32, #tpu.memory_space<vmem>>, %arg34: memref<16x40xf32, #tpu.memory_space<vmem>>) attributes {dimension_semantics = [#tpu.dimension_semantics<arbitrary>], iteration_bounds = array<i64: 1>, scalar_prefetch = 0 : i64, scratch_operands = 0 : i64, tpu.core_type = #tpu.core_type<tc>, window_params = [{pipeline_mode = #tpu.pipeline_mode<synchronous>, transform_indices = @transform_0, window_bounds = array<i64: 16, 16, 19>}, {pipeline_mode = #tpu.pipeline_mode<synchronous>, transform_indices = @transform_1, window_bounds = array<i64: 57, 5>}, {pipeline_mode = #tpu.pipeline_mode<synchronous>, transform_indices = @transform_2, window_bounds = array<i64: 1, 1, 5>}, {pipeline_mode = #tpu.pipeline_mode<synchronous>, transform_indices = @transform_3, window_bounds = array<i64: 1, 1, 5>}, {pipeline_mode = #tpu.pipeline_mode<synchronous>, transform_indices = @transform_4, window_bounds = array<i64: 1, 1, 5>}, {pipeline_mode = #tpu.pipeline_mode<synchronous>, transform_indices = @transform_5, window_bounds = array<i64: 15, 5>}, {pipeline_mode = #tpu.pipeline_mode<synchronous>, transform_indices = @transform_6, window_bounds = array<i64: 1, 1, 5>}, {pipeline_mode = #tpu.pipeline_mode<synchronous>, transform_indices = @transform_7, window_bounds = array<i64: 1, 1, 5>}, {pipeline_mode = #tpu.pipeline_mode<synchronous>, transform_indices = @transform_8, window_bounds = array<i64: 1, 1, 5>}, {pipeline_mode = #tpu.pipeline_mode<synchronous>, transform_indices = @transform_9, window_bounds = array<i64: 15, 10>}, {pipeline_mode = #tpu.pipeline_mode<synchronous>, transform_indices = @transform_10, window_bounds = array<i64: 1, 1, 10>}, {pipeline_mode = #tpu.pipeline_mode<synchronous>, transform_indices = @transform_11, window_bounds = array<i64: 1, 1, 10>}, {pipeline_mode = #tpu.pipeline_mode<synchronous>, transform_indices = @transform_12, window_bounds = array<i64: 1, 1, 10>}, {pipeline_mode = #tpu.pipeline_mode<synchronous>, transform_indices = @transform_13, window_bounds = array<i64: 30, 10>}, {pipeline_mode = #tpu.pipeline_mode<synchronous>, transform_indices = @transform_14, window_bounds = array<i64: 1, 1, 10>}, {pipeline_mode = #tpu.pipeline_mode<synchronous>, transform_indices = @transform_15, window_bounds = array<i64: 1, 1, 10>}, {pipeline_mode = #tpu.pipeline_mode<synchronous>, transform_indices = @transform_16, window_bounds = array<i64: 1, 1, 10>}, {pipeline_mode = #tpu.pipeline_mode<synchronous>, transform_indices = @transform_17, window_bounds = array<i64: 30, 20>}, {pipeline_mode = #tpu.pipeline_mode<synchronous>, transform_indices = @transform_18, window_bounds = array<i64: 1, 1, 20>}, {pipeline_mode = #tpu.pipeline_mode<synchronous>, transform_indices = @transform_19, window_bounds = array<i64: 1, 1, 20>}, {pipeline_mode = #tpu.pipeline_mode<synchronous>, transform_indices = @transform_20, window_bounds = array<i64: 1, 1, 20>}, {pipeline_mode = #tpu.pipeline_mode<synchronous>, transform_indices = @transform_21, window_bounds = array<i64: 60, 20>}, {pipeline_mode = #tpu.pipeline_mode<synchronous>, transform_indices = @transform_22, window_bounds = array<i64: 1, 1, 20>}, {pipeline_mode = #tpu.pipeline_mode<synchronous>, transform_indices = @transform_23, window_bounds = array<i64: 1, 1, 20>}, {pipeline_mode = #tpu.pipeline_mode<synchronous>, transform_indices = @transform_24, window_bounds = array<i64: 1, 1, 20>}, {pipeline_mode = #tpu.pipeline_mode<synchronous>, transform_indices = @transform_25, window_bounds = array<i64: 60, 40>}, {pipeline_mode = #tpu.pipeline_mode<synchronous>, transform_indices = @transform_26, window_bounds = array<i64: 1, 1, 40>}, {pipeline_mode = #tpu.pipeline_mode<synchronous>, transform_indices = @transform_27, window_bounds = array<i64: 1, 1, 40>}, {pipeline_mode = #tpu.pipeline_mode<synchronous>, transform_indices = @transform_28, window_bounds = array<i64: 1, 1, 40>}, {pipeline_mode = #tpu.pipeline_mode<synchronous>, transform_indices = @transform_29, window_bounds = array<i64: 120, 40>}, {pipeline_mode = #tpu.pipeline_mode<synchronous>, transform_indices = @transform_30, window_bounds = array<i64: 1, 1, 40>}, {pipeline_mode = #tpu.pipeline_mode<synchronous>, transform_indices = @transform_31, window_bounds = array<i64: 1, 1, 40>}, {pipeline_mode = #tpu.pipeline_mode<synchronous>, transform_indices = @transform_32, window_bounds = array<i64: 1, 1, 40>}, {pipeline_mode = #tpu.pipeline_mode<synchronous>, transform_indices = @transform_33, window_bounds = array<i64: 16, 40>}]} {
    %c0 = arith.constant 0 : index
    %c0_0 = arith.constant 0 : index
    %c0_1 = arith.constant 0 : index
    %0 = vector.load %arg1[%c0, %c0_0, %c0_1] : memref<16x16x19xf32, #tpu.memory_space<vmem>>, vector<16x16x19xf32>
    %c0_2 = arith.constant 0 : index
    %c0_3 = arith.constant 0 : index
    %1 = vector.load %arg2[%c0_2, %c0_3] : memref<57x5xf32, #tpu.memory_space<vmem>>, vector<57x5xf32>
    %c0_4 = arith.constant 0 : index
    %c0_5 = arith.constant 0 : index
    %c0_6 = arith.constant 0 : index
    %2 = vector.load %arg3[%c0_4, %c0_5, %c0_6] : memref<1x1x5xf32, #tpu.memory_space<vmem>>, vector<1x1x5xf32>
    %c0_7 = arith.constant 0 : index
    %c0_8 = arith.constant 0 : index
    %c0_9 = arith.constant 0 : index
    %3 = vector.load %arg4[%c0_7, %c0_8, %c0_9] : memref<1x1x5xf32, #tpu.memory_space<vmem>>, vector<1x1x5xf32>
    %c0_10 = arith.constant 0 : index
    %c0_11 = arith.constant 0 : index
    %c0_12 = arith.constant 0 : index
    %4 = vector.load %arg5[%c0_10, %c0_11, %c0_12] : memref<1x1x5xf32, #tpu.memory_space<vmem>>, vector<1x1x5xf32>
    %cst = arith.constant 0.000000e+00 : f32
    %5 = vector.broadcast %cst : f32 to vector<1x16x19xf32>
    %6 = vector.extract_strided_slice %0 {offsets = [0, 0, 0], sizes = [15, 16, 19], strides = [1, 1, 1]} : vector<16x16x19xf32> to vector<15x16x19xf32>
    %7 = tpu.concatenate %5, %6 in 0 : vector<1x16x19xf32>, vector<15x16x19xf32> -> vector<16x16x19xf32>
    %8 = vector.extract_strided_slice %0 {offsets = [1, 0, 0], sizes = [15, 16, 19], strides = [1, 1, 1]} : vector<16x16x19xf32> to vector<15x16x19xf32>
    %9 = tpu.concatenate %8, %5 in 0 : vector<15x16x19xf32>, vector<1x16x19xf32> -> vector<16x16x19xf32>
    %10 = tpu.concatenate %7, %0, %9 in 2 : vector<16x16x19xf32>, vector<16x16x19xf32>, vector<16x16x19xf32> -> vector<16x16x57xf32>
    "tpu.trace_start"() <{level = 10 : i32, message = "lmk,ko->lmo"}> : () -> ()
    %cst_13 = arith.constant dense<0.000000e+00> : vector<16x16x5xf32>
    %11 = tpu.matmul %10, %1, %cst_13 {dimension_numbers = #tpu.dot_dimension_numbers<[2], [0], [0, 1], [1], [0, 0, 0, 1, 1, 1], [], []>} : vector<16x16x57xf32>, vector<57x5xf32>, vector<16x16x5xf32> -> vector<16x16x5xf32>
    "tpu.trace_stop"() : () -> ()
    %12 = vector.broadcast %2 : vector<1x1x5xf32> to vector<16x16x5xf32>
    %13 = arith.addf %11, %12 : vector<16x16x5xf32>
    %cst_14 = arith.constant 0.000000e+00 : f32
    %14 = vector.broadcast %cst_14 : f32 to vector<16x16x5xf32>
    %15 = arith.cmpf ogt, %13, %14 : vector<16x16x5xf32>
    %cst_15 = arith.constant 0.00999999977 : f32
    %16 = vector.broadcast %cst_15 : f32 to vector<16x16x5xf32>
    %17 = arith.mulf %16, %13 : vector<16x16x5xf32>
    %18 = arith.select %15, %13, %17 : vector<16x16x5xi1>, vector<16x16x5xf32>
    %cst_16 = arith.constant dense<0.000000e+00> : vector<16x5xf32>
    %19 = vector.multi_reduction <add>, %18, %cst_16 [0] : vector<16x16x5xf32> to vector<16x5xf32>
    %20 = vector.shape_cast %19 : vector<16x5xf32> to vector<1x16x5xf32>
    %cst_17 = arith.constant dense<0.000000e+00> : vector<1x5xf32>
    %21 = vector.multi_reduction <add>, %20, %cst_17 [1] : vector<1x16x5xf32> to vector<1x5xf32>
    %22 = vector.shape_cast %21 : vector<1x5xf32> to vector<1x1x5xf32>
    %cst_18 = arith.constant 3.906250e-03 : f32
    %23 = vector.broadcast %cst_18 : f32 to vector<1x1x5xf32>
    %24 = arith.mulf %22, %23 : vector<1x1x5xf32>
    %25 = vector.broadcast %24 : vector<1x1x5xf32> to vector<16x16x5xf32>
    %26 = arith.subf %18, %25 : vector<16x16x5xf32>
    %27 = arith.mulf %26, %26 : vector<16x16x5xf32>
    %cst_19 = arith.constant dense<0.000000e+00> : vector<16x5xf32>
    %28 = vector.multi_reduction <add>, %27, %cst_19 [0] : vector<16x16x5xf32> to vector<16x5xf32>
    %29 = vector.shape_cast %28 : vector<16x5xf32> to vector<1x16x5xf32>
    %cst_20 = arith.constant dense<0.000000e+00> : vector<1x5xf32>
    %30 = vector.multi_reduction <add>, %29, %cst_20 [1] : vector<1x16x5xf32> to vector<1x5xf32>
    %31 = vector.shape_cast %30 : vector<1x5xf32> to vector<1x1x5xf32>
    %cst_21 = arith.constant 3.906250e-03 : f32
    %32 = vector.broadcast %cst_21 : f32 to vector<1x1x5xf32>
    %33 = arith.mulf %31, %32 : vector<1x1x5xf32>
    %cst_22 = arith.constant 9.99999974E-6 : f32
    %34 = vector.broadcast %cst_22 : f32 to vector<1x1x5xf32>
    %35 = arith.addf %33, %34 : vector<1x1x5xf32>
    %36 = math.sqrt %35 : vector<1x1x5xf32>
    %37 = arith.divf %3, %36 : vector<1x1x5xf32>
    %38 = vector.broadcast %37 : vector<1x1x5xf32> to vector<16x16x5xf32>
    %39 = arith.mulf %26, %38 : vector<16x16x5xf32>
    %40 = vector.broadcast %4 : vector<1x1x5xf32> to vector<16x16x5xf32>
    %41 = arith.addf %39, %40 : vector<16x16x5xf32>
    %c0_23 = arith.constant 0 : index
    %c0_24 = arith.constant 0 : index
    %42 = vector.load %arg6[%c0_23, %c0_24] : memref<15x5xf32, #tpu.memory_space<vmem>>, vector<15x5xf32>
    %c0_25 = arith.constant 0 : index
    %c0_26 = arith.constant 0 : index
    %c0_27 = arith.constant 0 : index
    %43 = vector.load %arg7[%c0_25, %c0_26, %c0_27] : memref<1x1x5xf32, #tpu.memory_space<vmem>>, vector<1x1x5xf32>
    %c0_28 = arith.constant 0 : index
    %c0_29 = arith.constant 0 : index
    %c0_30 = arith.constant 0 : index
    %44 = vector.load %arg8[%c0_28, %c0_29, %c0_30] : memref<1x1x5xf32, #tpu.memory_space<vmem>>, vector<1x1x5xf32>
    %c0_31 = arith.constant 0 : index
    %c0_32 = arith.constant 0 : index
    %c0_33 = arith.constant 0 : index
    %45 = vector.load %arg9[%c0_31, %c0_32, %c0_33] : memref<1x1x5xf32, #tpu.memory_space<vmem>>, vector<1x1x5xf32>
    %cst_34 = arith.constant 0.000000e+00 : f32
    %46 = vector.broadcast %cst_34 : f32 to vector<1x16x5xf32>
    %47 = vector.extract_strided_slice %41 {offsets = [0, 0, 0], sizes = [15, 16, 5], strides = [1, 1, 1]} : vector<16x16x5xf32> to vector<15x16x5xf32>
    %48 = tpu.concatenate %46, %47 in 0 : vector<1x16x5xf32>, vector<15x16x5xf32> -> vector<16x16x5xf32>
    %49 = vector.extract_strided_slice %41 {offsets = [1, 0, 0], sizes = [15, 16, 5], strides = [1, 1, 1]} : vector<16x16x5xf32> to vector<15x16x5xf32>
    %50 = tpu.concatenate %49, %46 in 0 : vector<15x16x5xf32>, vector<1x16x5xf32> -> vector<16x16x5xf32>
    %51 = tpu.concatenate %48, %41, %50 in 2 : vector<16x16x5xf32>, vector<16x16x5xf32>, vector<16x16x5xf32> -> vector<16x16x15xf32>
    "tpu.trace_start"() <{level = 10 : i32, message = "lmk,ko->lmo"}> : () -> ()
    %cst_35 = arith.constant dense<0.000000e+00> : vector<16x16x5xf32>
    %52 = tpu.matmul %51, %42, %cst_35 {dimension_numbers = #tpu.dot_dimension_numbers<[2], [0], [0, 1], [1], [0, 0, 0, 1, 1, 1], [], []>} : vector<16x16x15xf32>, vector<15x5xf32>, vector<16x16x5xf32> -> vector<16x16x5xf32>
    "tpu.trace_stop"() : () -> ()
    %53 = vector.broadcast %43 : vector<1x1x5xf32> to vector<16x16x5xf32>
    %54 = arith.addf %52, %53 : vector<16x16x5xf32>
    %cst_36 = arith.constant 0.000000e+00 : f32
    %55 = vector.broadcast %cst_36 : f32 to vector<16x16x5xf32>
    %56 = arith.cmpf ogt, %54, %55 : vector<16x16x5xf32>
    %cst_37 = arith.constant 0.00999999977 : f32
    %57 = vector.broadcast %cst_37 : f32 to vector<16x16x5xf32>
    %58 = arith.mulf %57, %54 : vector<16x16x5xf32>
    %59 = arith.select %56, %54, %58 : vector<16x16x5xi1>, vector<16x16x5xf32>
    %cst_38 = arith.constant dense<0.000000e+00> : vector<16x5xf32>
    %60 = vector.multi_reduction <add>, %59, %cst_38 [0] : vector<16x16x5xf32> to vector<16x5xf32>
    %61 = vector.shape_cast %60 : vector<16x5xf32> to vector<1x16x5xf32>
    %cst_39 = arith.constant dense<0.000000e+00> : vector<1x5xf32>
    %62 = vector.multi_reduction <add>, %61, %cst_39 [1] : vector<1x16x5xf32> to vector<1x5xf32>
    %63 = vector.shape_cast %62 : vector<1x5xf32> to vector<1x1x5xf32>
    %cst_40 = arith.constant 3.906250e-03 : f32
    %64 = vector.broadcast %cst_40 : f32 to vector<1x1x5xf32>
    %65 = arith.mulf %63, %64 : vector<1x1x5xf32>
    %66 = vector.broadcast %65 : vector<1x1x5xf32> to vector<16x16x5xf32>
    %67 = arith.subf %59, %66 : vector<16x16x5xf32>
    %68 = arith.mulf %67, %67 : vector<16x16x5xf32>
    %cst_41 = arith.constant dense<0.000000e+00> : vector<16x5xf32>
    %69 = vector.multi_reduction <add>, %68, %cst_41 [0] : vector<16x16x5xf32> to vector<16x5xf32>
    %70 = vector.shape_cast %69 : vector<16x5xf32> to vector<1x16x5xf32>
    %cst_42 = arith.constant dense<0.000000e+00> : vector<1x5xf32>
    %71 = vector.multi_reduction <add>, %70, %cst_42 [1] : vector<1x16x5xf32> to vector<1x5xf32>
    %72 = vector.shape_cast %71 : vector<1x5xf32> to vector<1x1x5xf32>
    %cst_43 = arith.constant 3.906250e-03 : f32
    %73 = vector.broadcast %cst_43 : f32 to vector<1x1x5xf32>
    %74 = arith.mulf %72, %73 : vector<1x1x5xf32>
    %cst_44 = arith.constant 9.99999974E-6 : f32
    %75 = vector.broadcast %cst_44 : f32 to vector<1x1x5xf32>
    %76 = arith.addf %74, %75 : vector<1x1x5xf32>
    %77 = math.sqrt %76 : vector<1x1x5xf32>
    %78 = arith.divf %44, %77 : vector<1x1x5xf32>
    %79 = vector.broadcast %78 : vector<1x1x5xf32> to vector<16x16x5xf32>
    %80 = arith.mulf %67, %79 : vector<16x16x5xf32>
    %81 = vector.broadcast %45 : vector<1x1x5xf32> to vector<16x16x5xf32>
    %82 = arith.addf %80, %81 : vector<16x16x5xf32>
    %83 = vector.shape_cast %82 : vector<16x16x5xf32> to vector<8x2x16x5xf32>
    %cst_45 = arith.constant dense<0xFF800000> : vector<8x16x5xf32>
    %84 = vector.multi_reduction <maximumf>, %83, %cst_45 [1] : vector<8x2x16x5xf32> to vector<8x16x5xf32>
    %c0_46 = arith.constant 0 : index
    %c0_47 = arith.constant 0 : index
    %85 = vector.load %arg10[%c0_46, %c0_47] : memref<15x10xf32, #tpu.memory_space<vmem>>, vector<15x10xf32>
    %c0_48 = arith.constant 0 : index
    %c0_49 = arith.constant 0 : index
    %c0_50 = arith.constant 0 : index
    %86 = vector.load %arg11[%c0_48, %c0_49, %c0_50] : memref<1x1x10xf32, #tpu.memory_space<vmem>>, vector<1x1x10xf32>
    %c0_51 = arith.constant 0 : index
    %c0_52 = arith.constant 0 : index
    %c0_53 = arith.constant 0 : index
    %87 = vector.load %arg12[%c0_51, %c0_52, %c0_53] : memref<1x1x10xf32, #tpu.memory_space<vmem>>, vector<1x1x10xf32>
    %c0_54 = arith.constant 0 : index
    %c0_55 = arith.constant 0 : index
    %c0_56 = arith.constant 0 : index
    %88 = vector.load %arg13[%c0_54, %c0_55, %c0_56] : memref<1x1x10xf32, #tpu.memory_space<vmem>>, vector<1x1x10xf32>
    %cst_57 = arith.constant 0.000000e+00 : f32
    %89 = vector.broadcast %cst_57 : f32 to vector<1x16x5xf32>
    %90 = vector.extract_strided_slice %84 {offsets = [0, 0, 0], sizes = [7, 16, 5], strides = [1, 1, 1]} : vector<8x16x5xf32> to vector<7x16x5xf32>
    %91 = tpu.concatenate %89, %90 in 0 : vector<1x16x5xf32>, vector<7x16x5xf32> -> vector<8x16x5xf32>
    %92 = vector.extract_strided_slice %84 {offsets = [1, 0, 0], sizes = [7, 16, 5], strides = [1, 1, 1]} : vector<8x16x5xf32> to vector<7x16x5xf32>
    %93 = tpu.concatenate %92, %89 in 0 : vector<7x16x5xf32>, vector<1x16x5xf32> -> vector<8x16x5xf32>
    %94 = tpu.concatenate %91, %84, %93 in 2 : vector<8x16x5xf32>, vector<8x16x5xf32>, vector<8x16x5xf32> -> vector<8x16x15xf32>
    "tpu.trace_start"() <{level = 10 : i32, message = "lmk,ko->lmo"}> : () -> ()
    %cst_58 = arith.constant dense<0.000000e+00> : vector<8x16x10xf32>
    %95 = tpu.matmul %94, %85, %cst_58 {dimension_numbers = #tpu.dot_dimension_numbers<[2], [0], [0, 1], [1], [0, 0, 0, 1, 1, 1], [], []>} : vector<8x16x15xf32>, vector<15x10xf32>, vector<8x16x10xf32> -> vector<8x16x10xf32>
    "tpu.trace_stop"() : () -> ()
    %96 = vector.broadcast %86 : vector<1x1x10xf32> to vector<8x16x10xf32>
    %97 = arith.addf %95, %96 : vector<8x16x10xf32>
    %cst_59 = arith.constant 0.000000e+00 : f32
    %98 = vector.broadcast %cst_59 : f32 to vector<8x16x10xf32>
    %99 = arith.cmpf ogt, %97, %98 : vector<8x16x10xf32>
    %cst_60 = arith.constant 0.00999999977 : f32
    %100 = vector.broadcast %cst_60 : f32 to vector<8x16x10xf32>
    %101 = arith.mulf %100, %97 : vector<8x16x10xf32>
    %102 = arith.select %99, %97, %101 : vector<8x16x10xi1>, vector<8x16x10xf32>
    %cst_61 = arith.constant dense<0.000000e+00> : vector<16x10xf32>
    %103 = vector.multi_reduction <add>, %102, %cst_61 [0] : vector<8x16x10xf32> to vector<16x10xf32>
    %104 = vector.shape_cast %103 : vector<16x10xf32> to vector<1x16x10xf32>
    %cst_62 = arith.constant dense<0.000000e+00> : vector<1x10xf32>
    %105 = vector.multi_reduction <add>, %104, %cst_62 [1] : vector<1x16x10xf32> to vector<1x10xf32>
    %106 = vector.shape_cast %105 : vector<1x10xf32> to vector<1x1x10xf32>
    %cst_63 = arith.constant 7.812500e-03 : f32
    %107 = vector.broadcast %cst_63 : f32 to vector<1x1x10xf32>
    %108 = arith.mulf %106, %107 : vector<1x1x10xf32>
    %109 = vector.broadcast %108 : vector<1x1x10xf32> to vector<8x16x10xf32>
    %110 = arith.subf %102, %109 : vector<8x16x10xf32>
    %111 = arith.mulf %110, %110 : vector<8x16x10xf32>
    %cst_64 = arith.constant dense<0.000000e+00> : vector<16x10xf32>
    %112 = vector.multi_reduction <add>, %111, %cst_64 [0] : vector<8x16x10xf32> to vector<16x10xf32>
    %113 = vector.shape_cast %112 : vector<16x10xf32> to vector<1x16x10xf32>
    %cst_65 = arith.constant dense<0.000000e+00> : vector<1x10xf32>
    %114 = vector.multi_reduction <add>, %113, %cst_65 [1] : vector<1x16x10xf32> to vector<1x10xf32>
    %115 = vector.shape_cast %114 : vector<1x10xf32> to vector<1x1x10xf32>
    %cst_66 = arith.constant 7.812500e-03 : f32
    %116 = vector.broadcast %cst_66 : f32 to vector<1x1x10xf32>
    %117 = arith.mulf %115, %116 : vector<1x1x10xf32>
    %cst_67 = arith.constant 9.99999974E-6 : f32
    %118 = vector.broadcast %cst_67 : f32 to vector<1x1x10xf32>
    %119 = arith.addf %117, %118 : vector<1x1x10xf32>
    %120 = math.sqrt %119 : vector<1x1x10xf32>
    %121 = arith.divf %87, %120 : vector<1x1x10xf32>
    %122 = vector.broadcast %121 : vector<1x1x10xf32> to vector<8x16x10xf32>
    %123 = arith.mulf %110, %122 : vector<8x16x10xf32>
    %124 = vector.broadcast %88 : vector<1x1x10xf32> to vector<8x16x10xf32>
    %125 = arith.addf %123, %124 : vector<8x16x10xf32>
    %c0_68 = arith.constant 0 : index
    %c0_69 = arith.constant 0 : index
    %126 = vector.load %arg14[%c0_68, %c0_69] : memref<30x10xf32, #tpu.memory_space<vmem>>, vector<30x10xf32>
    %c0_70 = arith.constant 0 : index
    %c0_71 = arith.constant 0 : index
    %c0_72 = arith.constant 0 : index
    %127 = vector.load %arg15[%c0_70, %c0_71, %c0_72] : memref<1x1x10xf32, #tpu.memory_space<vmem>>, vector<1x1x10xf32>
    %c0_73 = arith.constant 0 : index
    %c0_74 = arith.constant 0 : index
    %c0_75 = arith.constant 0 : index
    %128 = vector.load %arg16[%c0_73, %c0_74, %c0_75] : memref<1x1x10xf32, #tpu.memory_space<vmem>>, vector<1x1x10xf32>
    %c0_76 = arith.constant 0 : index
    %c0_77 = arith.constant 0 : index
    %c0_78 = arith.constant 0 : index
    %129 = vector.load %arg17[%c0_76, %c0_77, %c0_78] : memref<1x1x10xf32, #tpu.memory_space<vmem>>, vector<1x1x10xf32>
    %cst_79 = arith.constant 0.000000e+00 : f32
    %130 = vector.broadcast %cst_79 : f32 to vector<1x16x10xf32>
    %131 = vector.extract_strided_slice %125 {offsets = [0, 0, 0], sizes = [7, 16, 10], strides = [1, 1, 1]} : vector<8x16x10xf32> to vector<7x16x10xf32>
    %132 = tpu.concatenate %130, %131 in 0 : vector<1x16x10xf32>, vector<7x16x10xf32> -> vector<8x16x10xf32>
    %133 = vector.extract_strided_slice %125 {offsets = [1, 0, 0], sizes = [7, 16, 10], strides = [1, 1, 1]} : vector<8x16x10xf32> to vector<7x16x10xf32>
    %134 = tpu.concatenate %133, %130 in 0 : vector<7x16x10xf32>, vector<1x16x10xf32> -> vector<8x16x10xf32>
    %135 = tpu.concatenate %132, %125, %134 in 2 : vector<8x16x10xf32>, vector<8x16x10xf32>, vector<8x16x10xf32> -> vector<8x16x30xf32>
    "tpu.trace_start"() <{level = 10 : i32, message = "lmk,ko->lmo"}> : () -> ()
    %cst_80 = arith.constant dense<0.000000e+00> : vector<8x16x10xf32>
    %136 = tpu.matmul %135, %126, %cst_80 {dimension_numbers = #tpu.dot_dimension_numbers<[2], [0], [0, 1], [1], [0, 0, 0, 1, 1, 1], [], []>} : vector<8x16x30xf32>, vector<30x10xf32>, vector<8x16x10xf32> -> vector<8x16x10xf32>
    "tpu.trace_stop"() : () -> ()
    %137 = vector.broadcast %127 : vector<1x1x10xf32> to vector<8x16x10xf32>
    %138 = arith.addf %136, %137 : vector<8x16x10xf32>
    %cst_81 = arith.constant 0.000000e+00 : f32
    %139 = vector.broadcast %cst_81 : f32 to vector<8x16x10xf32>
    %140 = arith.cmpf ogt, %138, %139 : vector<8x16x10xf32>
    %cst_82 = arith.constant 0.00999999977 : f32
    %141 = vector.broadcast %cst_82 : f32 to vector<8x16x10xf32>
    %142 = arith.mulf %141, %138 : vector<8x16x10xf32>
    %143 = arith.select %140, %138, %142 : vector<8x16x10xi1>, vector<8x16x10xf32>
    %cst_83 = arith.constant dense<0.000000e+00> : vector<16x10xf32>
    %144 = vector.multi_reduction <add>, %143, %cst_83 [0] : vector<8x16x10xf32> to vector<16x10xf32>
    %145 = vector.shape_cast %144 : vector<16x10xf32> to vector<1x16x10xf32>
    %cst_84 = arith.constant dense<0.000000e+00> : vector<1x10xf32>
    %146 = vector.multi_reduction <add>, %145, %cst_84 [1] : vector<1x16x10xf32> to vector<1x10xf32>
    %147 = vector.shape_cast %146 : vector<1x10xf32> to vector<1x1x10xf32>
    %cst_85 = arith.constant 7.812500e-03 : f32
    %148 = vector.broadcast %cst_85 : f32 to vector<1x1x10xf32>
    %149 = arith.mulf %147, %148 : vector<1x1x10xf32>
    %150 = vector.broadcast %149 : vector<1x1x10xf32> to vector<8x16x10xf32>
    %151 = arith.subf %143, %150 : vector<8x16x10xf32>
    %152 = arith.mulf %151, %151 : vector<8x16x10xf32>
    %cst_86 = arith.constant dense<0.000000e+00> : vector<16x10xf32>
    %153 = vector.multi_reduction <add>, %152, %cst_86 [0] : vector<8x16x10xf32> to vector<16x10xf32>
    %154 = vector.shape_cast %153 : vector<16x10xf32> to vector<1x16x10xf32>
    %cst_87 = arith.constant dense<0.000000e+00> : vector<1x10xf32>
    %155 = vector.multi_reduction <add>, %154, %cst_87 [1] : vector<1x16x10xf32> to vector<1x10xf32>
    %156 = vector.shape_cast %155 : vector<1x10xf32> to vector<1x1x10xf32>
    %cst_88 = arith.constant 7.812500e-03 : f32
    %157 = vector.broadcast %cst_88 : f32 to vector<1x1x10xf32>
    %158 = arith.mulf %156, %157 : vector<1x1x10xf32>
    %cst_89 = arith.constant 9.99999974E-6 : f32
    %159 = vector.broadcast %cst_89 : f32 to vector<1x1x10xf32>
    %160 = arith.addf %158, %159 : vector<1x1x10xf32>
    %161 = math.sqrt %160 : vector<1x1x10xf32>
    %162 = arith.divf %128, %161 : vector<1x1x10xf32>
    %163 = vector.broadcast %162 : vector<1x1x10xf32> to vector<8x16x10xf32>
    %164 = arith.mulf %151, %163 : vector<8x16x10xf32>
    %165 = vector.broadcast %129 : vector<1x1x10xf32> to vector<8x16x10xf32>
    %166 = arith.addf %164, %165 : vector<8x16x10xf32>
    %167 = vector.shape_cast %166 : vector<8x16x10xf32> to vector<4x2x16x10xf32>
    %cst_90 = arith.constant dense<0xFF800000> : vector<4x16x10xf32>
    %168 = vector.multi_reduction <maximumf>, %167, %cst_90 [1] : vector<4x2x16x10xf32> to vector<4x16x10xf32>
    %c0_91 = arith.constant 0 : index
    %c0_92 = arith.constant 0 : index
    %169 = vector.load %arg18[%c0_91, %c0_92] : memref<30x20xf32, #tpu.memory_space<vmem>>, vector<30x20xf32>
    %c0_93 = arith.constant 0 : index
    %c0_94 = arith.constant 0 : index
    %c0_95 = arith.constant 0 : index
    %170 = vector.load %arg19[%c0_93, %c0_94, %c0_95] : memref<1x1x20xf32, #tpu.memory_space<vmem>>, vector<1x1x20xf32>
    %c0_96 = arith.constant 0 : index
    %c0_97 = arith.constant 0 : index
    %c0_98 = arith.constant 0 : index
    %171 = vector.load %arg20[%c0_96, %c0_97, %c0_98] : memref<1x1x20xf32, #tpu.memory_space<vmem>>, vector<1x1x20xf32>
    %c0_99 = arith.constant 0 : index
    %c0_100 = arith.constant 0 : index
    %c0_101 = arith.constant 0 : index
    %172 = vector.load %arg21[%c0_99, %c0_100, %c0_101] : memref<1x1x20xf32, #tpu.memory_space<vmem>>, vector<1x1x20xf32>
    %cst_102 = arith.constant 0.000000e+00 : f32
    %173 = vector.broadcast %cst_102 : f32 to vector<1x16x10xf32>
    %174 = vector.extract_strided_slice %168 {offsets = [0, 0, 0], sizes = [3, 16, 10], strides = [1, 1, 1]} : vector<4x16x10xf32> to vector<3x16x10xf32>
    %175 = tpu.concatenate %173, %174 in 0 : vector<1x16x10xf32>, vector<3x16x10xf32> -> vector<4x16x10xf32>
    %176 = vector.extract_strided_slice %168 {offsets = [1, 0, 0], sizes = [3, 16, 10], strides = [1, 1, 1]} : vector<4x16x10xf32> to vector<3x16x10xf32>
    %177 = tpu.concatenate %176, %173 in 0 : vector<3x16x10xf32>, vector<1x16x10xf32> -> vector<4x16x10xf32>
    %178 = tpu.concatenate %175, %168, %177 in 2 : vector<4x16x10xf32>, vector<4x16x10xf32>, vector<4x16x10xf32> -> vector<4x16x30xf32>
    "tpu.trace_start"() <{level = 10 : i32, message = "lmk,ko->lmo"}> : () -> ()
    %cst_103 = arith.constant dense<0.000000e+00> : vector<4x16x20xf32>
    %179 = tpu.matmul %178, %169, %cst_103 {dimension_numbers = #tpu.dot_dimension_numbers<[2], [0], [0, 1], [1], [0, 0, 0, 1, 1, 1], [], []>} : vector<4x16x30xf32>, vector<30x20xf32>, vector<4x16x20xf32> -> vector<4x16x20xf32>
    "tpu.trace_stop"() : () -> ()
    %180 = vector.broadcast %170 : vector<1x1x20xf32> to vector<4x16x20xf32>
    %181 = arith.addf %179, %180 : vector<4x16x20xf32>
    %cst_104 = arith.constant 0.000000e+00 : f32
    %182 = vector.broadcast %cst_104 : f32 to vector<4x16x20xf32>
    %183 = arith.cmpf ogt, %181, %182 : vector<4x16x20xf32>
    %cst_105 = arith.constant 0.00999999977 : f32
    %184 = vector.broadcast %cst_105 : f32 to vector<4x16x20xf32>
    %185 = arith.mulf %184, %181 : vector<4x16x20xf32>
    %186 = arith.select %183, %181, %185 : vector<4x16x20xi1>, vector<4x16x20xf32>
    %cst_106 = arith.constant dense<0.000000e+00> : vector<16x20xf32>
    %187 = vector.multi_reduction <add>, %186, %cst_106 [0] : vector<4x16x20xf32> to vector<16x20xf32>
    %188 = vector.shape_cast %187 : vector<16x20xf32> to vector<1x16x20xf32>
    %cst_107 = arith.constant dense<0.000000e+00> : vector<1x20xf32>
    %189 = vector.multi_reduction <add>, %188, %cst_107 [1] : vector<1x16x20xf32> to vector<1x20xf32>
    %190 = vector.shape_cast %189 : vector<1x20xf32> to vector<1x1x20xf32>
    %cst_108 = arith.constant 1.562500e-02 : f32
    %191 = vector.broadcast %cst_108 : f32 to vector<1x1x20xf32>
    %192 = arith.mulf %190, %191 : vector<1x1x20xf32>
    %193 = vector.broadcast %192 : vector<1x1x20xf32> to vector<4x16x20xf32>
    %194 = arith.subf %186, %193 : vector<4x16x20xf32>
    %195 = arith.mulf %194, %194 : vector<4x16x20xf32>
    %cst_109 = arith.constant dense<0.000000e+00> : vector<16x20xf32>
    %196 = vector.multi_reduction <add>, %195, %cst_109 [0] : vector<4x16x20xf32> to vector<16x20xf32>
    %197 = vector.shape_cast %196 : vector<16x20xf32> to vector<1x16x20xf32>
    %cst_110 = arith.constant dense<0.000000e+00> : vector<1x20xf32>
    %198 = vector.multi_reduction <add>, %197, %cst_110 [1] : vector<1x16x20xf32> to vector<1x20xf32>
    %199 = vector.shape_cast %198 : vector<1x20xf32> to vector<1x1x20xf32>
    %cst_111 = arith.constant 1.562500e-02 : f32
    %200 = vector.broadcast %cst_111 : f32 to vector<1x1x20xf32>
    %201 = arith.mulf %199, %200 : vector<1x1x20xf32>
    %cst_112 = arith.constant 9.99999974E-6 : f32
    %202 = vector.broadcast %cst_112 : f32 to vector<1x1x20xf32>
    %203 = arith.addf %201, %202 : vector<1x1x20xf32>
    %204 = math.sqrt %203 : vector<1x1x20xf32>
    %205 = arith.divf %171, %204 : vector<1x1x20xf32>
    %206 = vector.broadcast %205 : vector<1x1x20xf32> to vector<4x16x20xf32>
    %207 = arith.mulf %194, %206 : vector<4x16x20xf32>
    %208 = vector.broadcast %172 : vector<1x1x20xf32> to vector<4x16x20xf32>
    %209 = arith.addf %207, %208 : vector<4x16x20xf32>
    %c0_113 = arith.constant 0 : index
    %c0_114 = arith.constant 0 : index
    %210 = vector.load %arg22[%c0_113, %c0_114] : memref<60x20xf32, #tpu.memory_space<vmem>>, vector<60x20xf32>
    %c0_115 = arith.constant 0 : index
    %c0_116 = arith.constant 0 : index
    %c0_117 = arith.constant 0 : index
    %211 = vector.load %arg23[%c0_115, %c0_116, %c0_117] : memref<1x1x20xf32, #tpu.memory_space<vmem>>, vector<1x1x20xf32>
    %c0_118 = arith.constant 0 : index
    %c0_119 = arith.constant 0 : index
    %c0_120 = arith.constant 0 : index
    %212 = vector.load %arg24[%c0_118, %c0_119, %c0_120] : memref<1x1x20xf32, #tpu.memory_space<vmem>>, vector<1x1x20xf32>
    %c0_121 = arith.constant 0 : index
    %c0_122 = arith.constant 0 : index
    %c0_123 = arith.constant 0 : index
    %213 = vector.load %arg25[%c0_121, %c0_122, %c0_123] : memref<1x1x20xf32, #tpu.memory_space<vmem>>, vector<1x1x20xf32>
    %cst_124 = arith.constant 0.000000e+00 : f32
    %214 = vector.broadcast %cst_124 : f32 to vector<1x16x20xf32>
    %215 = vector.extract_strided_slice %209 {offsets = [0, 0, 0], sizes = [3, 16, 20], strides = [1, 1, 1]} : vector<4x16x20xf32> to vector<3x16x20xf32>
    %216 = tpu.concatenate %214, %215 in 0 : vector<1x16x20xf32>, vector<3x16x20xf32> -> vector<4x16x20xf32>
    %217 = vector.extract_strided_slice %209 {offsets = [1, 0, 0], sizes = [3, 16, 20], strides = [1, 1, 1]} : vector<4x16x20xf32> to vector<3x16x20xf32>
    %218 = tpu.concatenate %217, %214 in 0 : vector<3x16x20xf32>, vector<1x16x20xf32> -> vector<4x16x20xf32>
    %219 = tpu.concatenate %216, %209, %218 in 2 : vector<4x16x20xf32>, vector<4x16x20xf32>, vector<4x16x20xf32> -> vector<4x16x60xf32>
    "tpu.trace_start"() <{level = 10 : i32, message = "lmk,ko->lmo"}> : () -> ()
    %cst_125 = arith.constant dense<0.000000e+00> : vector<4x16x20xf32>
    %220 = tpu.matmul %219, %210, %cst_125 {dimension_numbers = #tpu.dot_dimension_numbers<[2], [0], [0, 1], [1], [0, 0, 0, 1, 1, 1], [], []>} : vector<4x16x60xf32>, vector<60x20xf32>, vector<4x16x20xf32> -> vector<4x16x20xf32>
    "tpu.trace_stop"() : () -> ()
    %221 = vector.broadcast %211 : vector<1x1x20xf32> to vector<4x16x20xf32>
    %222 = arith.addf %220, %221 : vector<4x16x20xf32>
    %cst_126 = arith.constant 0.000000e+00 : f32
    %223 = vector.broadcast %cst_126 : f32 to vector<4x16x20xf32>
    %224 = arith.cmpf ogt, %222, %223 : vector<4x16x20xf32>
    %cst_127 = arith.constant 0.00999999977 : f32
    %225 = vector.broadcast %cst_127 : f32 to vector<4x16x20xf32>
    %226 = arith.mulf %225, %222 : vector<4x16x20xf32>
    %227 = arith.select %224, %222, %226 : vector<4x16x20xi1>, vector<4x16x20xf32>
    %cst_128 = arith.constant dense<0.000000e+00> : vector<16x20xf32>
    %228 = vector.multi_reduction <add>, %227, %cst_128 [0] : vector<4x16x20xf32> to vector<16x20xf32>
    %229 = vector.shape_cast %228 : vector<16x20xf32> to vector<1x16x20xf32>
    %cst_129 = arith.constant dense<0.000000e+00> : vector<1x20xf32>
    %230 = vector.multi_reduction <add>, %229, %cst_129 [1] : vector<1x16x20xf32> to vector<1x20xf32>
    %231 = vector.shape_cast %230 : vector<1x20xf32> to vector<1x1x20xf32>
    %cst_130 = arith.constant 1.562500e-02 : f32
    %232 = vector.broadcast %cst_130 : f32 to vector<1x1x20xf32>
    %233 = arith.mulf %231, %232 : vector<1x1x20xf32>
    %234 = vector.broadcast %233 : vector<1x1x20xf32> to vector<4x16x20xf32>
    %235 = arith.subf %227, %234 : vector<4x16x20xf32>
    %236 = arith.mulf %235, %235 : vector<4x16x20xf32>
    %cst_131 = arith.constant dense<0.000000e+00> : vector<16x20xf32>
    %237 = vector.multi_reduction <add>, %236, %cst_131 [0] : vector<4x16x20xf32> to vector<16x20xf32>
    %238 = vector.shape_cast %237 : vector<16x20xf32> to vector<1x16x20xf32>
    %cst_132 = arith.constant dense<0.000000e+00> : vector<1x20xf32>
    %239 = vector.multi_reduction <add>, %238, %cst_132 [1] : vector<1x16x20xf32> to vector<1x20xf32>
    %240 = vector.shape_cast %239 : vector<1x20xf32> to vector<1x1x20xf32>
    %cst_133 = arith.constant 1.562500e-02 : f32
    %241 = vector.broadcast %cst_133 : f32 to vector<1x1x20xf32>
    %242 = arith.mulf %240, %241 : vector<1x1x20xf32>
    %cst_134 = arith.constant 9.99999974E-6 : f32
    %243 = vector.broadcast %cst_134 : f32 to vector<1x1x20xf32>
    %244 = arith.addf %242, %243 : vector<1x1x20xf32>
    %245 = math.sqrt %244 : vector<1x1x20xf32>
    %246 = arith.divf %212, %245 : vector<1x1x20xf32>
    %247 = vector.broadcast %246 : vector<1x1x20xf32> to vector<4x16x20xf32>
    %248 = arith.mulf %235, %247 : vector<4x16x20xf32>
    %249 = vector.broadcast %213 : vector<1x1x20xf32> to vector<4x16x20xf32>
    %250 = arith.addf %248, %249 : vector<4x16x20xf32>
    %251 = vector.shape_cast %250 : vector<4x16x20xf32> to vector<2x2x16x20xf32>
    %cst_135 = arith.constant dense<0xFF800000> : vector<2x16x20xf32>
    %252 = vector.multi_reduction <maximumf>, %251, %cst_135 [1] : vector<2x2x16x20xf32> to vector<2x16x20xf32>
    %c0_136 = arith.constant 0 : index
    %c0_137 = arith.constant 0 : index
    %253 = vector.load %arg26[%c0_136, %c0_137] : memref<60x40xf32, #tpu.memory_space<vmem>>, vector<60x40xf32>
    %c0_138 = arith.constant 0 : index
    %c0_139 = arith.constant 0 : index
    %c0_140 = arith.constant 0 : index
    %254 = vector.load %arg27[%c0_138, %c0_139, %c0_140] : memref<1x1x40xf32, #tpu.memory_space<vmem>>, vector<1x1x40xf32>
    %c0_141 = arith.constant 0 : index
    %c0_142 = arith.constant 0 : index
    %c0_143 = arith.constant 0 : index
    %255 = vector.load %arg28[%c0_141, %c0_142, %c0_143] : memref<1x1x40xf32, #tpu.memory_space<vmem>>, vector<1x1x40xf32>
    %c0_144 = arith.constant 0 : index
    %c0_145 = arith.constant 0 : index
    %c0_146 = arith.constant 0 : index
    %256 = vector.load %arg29[%c0_144, %c0_145, %c0_146] : memref<1x1x40xf32, #tpu.memory_space<vmem>>, vector<1x1x40xf32>
    %cst_147 = arith.constant 0.000000e+00 : f32
    %257 = vector.broadcast %cst_147 : f32 to vector<1x16x20xf32>
    %258 = vector.extract_strided_slice %252 {offsets = [0, 0, 0], sizes = [1, 16, 20], strides = [1, 1, 1]} : vector<2x16x20xf32> to vector<1x16x20xf32>
    %259 = tpu.concatenate %257, %258 in 0 : vector<1x16x20xf32>, vector<1x16x20xf32> -> vector<2x16x20xf32>
    %260 = vector.extract_strided_slice %252 {offsets = [1, 0, 0], sizes = [1, 16, 20], strides = [1, 1, 1]} : vector<2x16x20xf32> to vector<1x16x20xf32>
    %261 = tpu.concatenate %260, %257 in 0 : vector<1x16x20xf32>, vector<1x16x20xf32> -> vector<2x16x20xf32>
    %262 = tpu.concatenate %259, %252, %261 in 2 : vector<2x16x20xf32>, vector<2x16x20xf32>, vector<2x16x20xf32> -> vector<2x16x60xf32>
    "tpu.trace_start"() <{level = 10 : i32, message = "lmk,ko->lmo"}> : () -> ()
    %cst_148 = arith.constant dense<0.000000e+00> : vector<2x16x40xf32>
    %263 = tpu.matmul %262, %253, %cst_148 {dimension_numbers = #tpu.dot_dimension_numbers<[2], [0], [0, 1], [1], [0, 0, 0, 1, 1, 1], [], []>} : vector<2x16x60xf32>, vector<60x40xf32>, vector<2x16x40xf32> -> vector<2x16x40xf32>
    "tpu.trace_stop"() : () -> ()
    %264 = vector.broadcast %254 : vector<1x1x40xf32> to vector<2x16x40xf32>
    %265 = arith.addf %263, %264 : vector<2x16x40xf32>
    %cst_149 = arith.constant 0.000000e+00 : f32
    %266 = vector.broadcast %cst_149 : f32 to vector<2x16x40xf32>
    %267 = arith.cmpf ogt, %265, %266 : vector<2x16x40xf32>
    %cst_150 = arith.constant 0.00999999977 : f32
    %268 = vector.broadcast %cst_150 : f32 to vector<2x16x40xf32>
    %269 = arith.mulf %268, %265 : vector<2x16x40xf32>
    %270 = arith.select %267, %265, %269 : vector<2x16x40xi1>, vector<2x16x40xf32>
    %cst_151 = arith.constant dense<0.000000e+00> : vector<16x40xf32>
    %271 = vector.multi_reduction <add>, %270, %cst_151 [0] : vector<2x16x40xf32> to vector<16x40xf32>
    %272 = vector.shape_cast %271 : vector<16x40xf32> to vector<1x16x40xf32>
    %cst_152 = arith.constant dense<0.000000e+00> : vector<1x40xf32>
    %273 = vector.multi_reduction <add>, %272, %cst_152 [1] : vector<1x16x40xf32> to vector<1x40xf32>
    %274 = vector.shape_cast %273 : vector<1x40xf32> to vector<1x1x40xf32>
    %cst_153 = arith.constant 3.125000e-02 : f32
    %275 = vector.broadcast %cst_153 : f32 to vector<1x1x40xf32>
    %276 = arith.mulf %274, %275 : vector<1x1x40xf32>
    %277 = vector.broadcast %276 : vector<1x1x40xf32> to vector<2x16x40xf32>
    %278 = arith.subf %270, %277 : vector<2x16x40xf32>
    %279 = arith.mulf %278, %278 : vector<2x16x40xf32>
    %cst_154 = arith.constant dense<0.000000e+00> : vector<16x40xf32>
    %280 = vector.multi_reduction <add>, %279, %cst_154 [0] : vector<2x16x40xf32> to vector<16x40xf32>
    %281 = vector.shape_cast %280 : vector<16x40xf32> to vector<1x16x40xf32>
    %cst_155 = arith.constant dense<0.000000e+00> : vector<1x40xf32>
    %282 = vector.multi_reduction <add>, %281, %cst_155 [1] : vector<1x16x40xf32> to vector<1x40xf32>
    %283 = vector.shape_cast %282 : vector<1x40xf32> to vector<1x1x40xf32>
    %cst_156 = arith.constant 3.125000e-02 : f32
    %284 = vector.broadcast %cst_156 : f32 to vector<1x1x40xf32>
    %285 = arith.mulf %283, %284 : vector<1x1x40xf32>
    %cst_157 = arith.constant 9.99999974E-6 : f32
    %286 = vector.broadcast %cst_157 : f32 to vector<1x1x40xf32>
    %287 = arith.addf %285, %286 : vector<1x1x40xf32>
    %288 = math.sqrt %287 : vector<1x1x40xf32>
    %289 = arith.divf %255, %288 : vector<1x1x40xf32>
    %290 = vector.broadcast %289 : vector<1x1x40xf32> to vector<2x16x40xf32>
    %291 = arith.mulf %278, %290 : vector<2x16x40xf32>
    %292 = vector.broadcast %256 : vector<1x1x40xf32> to vector<2x16x40xf32>
    %293 = arith.addf %291, %292 : vector<2x16x40xf32>
    %c0_158 = arith.constant 0 : index
    %c0_159 = arith.constant 0 : index
    %294 = vector.load %arg30[%c0_158, %c0_159] : memref<120x40xf32, #tpu.memory_space<vmem>>, vector<120x40xf32>
    %c0_160 = arith.constant 0 : index
    %c0_161 = arith.constant 0 : index
    %c0_162 = arith.constant 0 : index
    %295 = vector.load %arg31[%c0_160, %c0_161, %c0_162] : memref<1x1x40xf32, #tpu.memory_space<vmem>>, vector<1x1x40xf32>
    %c0_163 = arith.constant 0 : index
    %c0_164 = arith.constant 0 : index
    %c0_165 = arith.constant 0 : index
    %296 = vector.load %arg32[%c0_163, %c0_164, %c0_165] : memref<1x1x40xf32, #tpu.memory_space<vmem>>, vector<1x1x40xf32>
    %c0_166 = arith.constant 0 : index
    %c0_167 = arith.constant 0 : index
    %c0_168 = arith.constant 0 : index
    %297 = vector.load %arg33[%c0_166, %c0_167, %c0_168] : memref<1x1x40xf32, #tpu.memory_space<vmem>>, vector<1x1x40xf32>
    %cst_169 = arith.constant 0.000000e+00 : f32
    %298 = vector.broadcast %cst_169 : f32 to vector<1x16x40xf32>
    %299 = vector.extract_strided_slice %293 {offsets = [0, 0, 0], sizes = [1, 16, 40], strides = [1, 1, 1]} : vector<2x16x40xf32> to vector<1x16x40xf32>
    %300 = tpu.concatenate %298, %299 in 0 : vector<1x16x40xf32>, vector<1x16x40xf32> -> vector<2x16x40xf32>
    %301 = vector.extract_strided_slice %293 {offsets = [1, 0, 0], sizes = [1, 16, 40], strides = [1, 1, 1]} : vector<2x16x40xf32> to vector<1x16x40xf32>
    %302 = tpu.concatenate %301, %298 in 0 : vector<1x16x40xf32>, vector<1x16x40xf32> -> vector<2x16x40xf32>
    %303 = tpu.concatenate %300, %293, %302 in 2 : vector<2x16x40xf32>, vector<2x16x40xf32>, vector<2x16x40xf32> -> vector<2x16x120xf32>
    "tpu.trace_start"() <{level = 10 : i32, message = "lmk,ko->lmo"}> : () -> ()
    %cst_170 = arith.constant dense<0.000000e+00> : vector<2x16x40xf32>
    %304 = tpu.matmul %303, %294, %cst_170 {dimension_numbers = #tpu.dot_dimension_numbers<[2], [0], [0, 1], [1], [0, 0, 0, 1, 1, 1], [], []>} : vector<2x16x120xf32>, vector<120x40xf32>, vector<2x16x40xf32> -> vector<2x16x40xf32>
    "tpu.trace_stop"() : () -> ()
    %305 = vector.broadcast %295 : vector<1x1x40xf32> to vector<2x16x40xf32>
    %306 = arith.addf %304, %305 : vector<2x16x40xf32>
    %cst_171 = arith.constant 0.000000e+00 : f32
    %307 = vector.broadcast %cst_171 : f32 to vector<2x16x40xf32>
    %308 = arith.cmpf ogt, %306, %307 : vector<2x16x40xf32>
    %cst_172 = arith.constant 0.00999999977 : f32
    %309 = vector.broadcast %cst_172 : f32 to vector<2x16x40xf32>
    %310 = arith.mulf %309, %306 : vector<2x16x40xf32>
    %311 = arith.select %308, %306, %310 : vector<2x16x40xi1>, vector<2x16x40xf32>
    %cst_173 = arith.constant dense<0.000000e+00> : vector<16x40xf32>
    %312 = vector.multi_reduction <add>, %311, %cst_173 [0] : vector<2x16x40xf32> to vector<16x40xf32>
    %313 = vector.shape_cast %312 : vector<16x40xf32> to vector<1x16x40xf32>
    %cst_174 = arith.constant dense<0.000000e+00> : vector<1x40xf32>
    %314 = vector.multi_reduction <add>, %313, %cst_174 [1] : vector<1x16x40xf32> to vector<1x40xf32>
    %315 = vector.shape_cast %314 : vector<1x40xf32> to vector<1x1x40xf32>
    %cst_175 = arith.constant 3.125000e-02 : f32
    %316 = vector.broadcast %cst_175 : f32 to vector<1x1x40xf32>
    %317 = arith.mulf %315, %316 : vector<1x1x40xf32>
    %318 = vector.broadcast %317 : vector<1x1x40xf32> to vector<2x16x40xf32>
    %319 = arith.subf %311, %318 : vector<2x16x40xf32>
    %320 = arith.mulf %319, %319 : vector<2x16x40xf32>
    %cst_176 = arith.constant dense<0.000000e+00> : vector<16x40xf32>
    %321 = vector.multi_reduction <add>, %320, %cst_176 [0] : vector<2x16x40xf32> to vector<16x40xf32>
    %322 = vector.shape_cast %321 : vector<16x40xf32> to vector<1x16x40xf32>
    %cst_177 = arith.constant dense<0.000000e+00> : vector<1x40xf32>
    %323 = vector.multi_reduction <add>, %322, %cst_177 [1] : vector<1x16x40xf32> to vector<1x40xf32>
    %324 = vector.shape_cast %323 : vector<1x40xf32> to vector<1x1x40xf32>
    %cst_178 = arith.constant 3.125000e-02 : f32
    %325 = vector.broadcast %cst_178 : f32 to vector<1x1x40xf32>
    %326 = arith.mulf %324, %325 : vector<1x1x40xf32>
    %cst_179 = arith.constant 9.99999974E-6 : f32
    %327 = vector.broadcast %cst_179 : f32 to vector<1x1x40xf32>
    %328 = arith.addf %326, %327 : vector<1x1x40xf32>
    %329 = math.sqrt %328 : vector<1x1x40xf32>
    %330 = arith.divf %296, %329 : vector<1x1x40xf32>
    %331 = vector.broadcast %330 : vector<1x1x40xf32> to vector<2x16x40xf32>
    %332 = arith.mulf %319, %331 : vector<2x16x40xf32>
    %333 = vector.broadcast %297 : vector<1x1x40xf32> to vector<2x16x40xf32>
    %334 = arith.addf %332, %333 : vector<2x16x40xf32>
    %335 = vector.shape_cast %334 : vector<2x16x40xf32> to vector<1x2x16x40xf32>
    %cst_180 = arith.constant dense<0xFF800000> : vector<1x16x40xf32>
    %336 = vector.multi_reduction <maximumf>, %335, %cst_180 [1] : vector<1x2x16x40xf32> to vector<1x16x40xf32>
    %cst_181 = arith.constant dense<0.000000e+00> : vector<16x40xf32>
    %337 = vector.multi_reduction <add>, %336, %cst_181 [0] : vector<1x16x40xf32> to vector<16x40xf32>
    %cst_182 = arith.constant 1.000000e+00 : f32
    %338 = vector.broadcast %cst_182 : f32 to vector<16x40xf32>
    %339 = arith.divf %337, %338 : vector<16x40xf32>
    %c0_183 = arith.constant 0 : index
    %c0_184 = arith.constant 0 : index
    %340 = vector.load %arg34[%c0_183, %c0_184] : memref<16x40xf32, #tpu.memory_space<vmem>>, vector<16x40xf32>
    tpu.vector_store %arg34[%c0_183, %c0_184], %339 {strides = array<i32>} : memref<16x40xf32, #tpu.memory_space<vmem>>, vector<16x40xf32>,
    return
  }
  func.func @transform_0(%arg0: i32) -> (i32, i32, i32) {
    %c0_i32 = arith.constant 0 : i32
    %c0_i32_0 = arith.constant 0 : i32
    %c0_i32_1 = arith.constant 0 : i32
    %c0_i32_2 = arith.constant 0 : i32
    return %c0_i32, %c0_i32_0, %c0_i32_1 : i32, i32, i32
  }
  func.func @transform_1(%arg0: i32) -> (i32, i32) {
    %c0_i32 = arith.constant 0 : i32
    %c0_i32_0 = arith.constant 0 : i32
    %c0_i32_1 = arith.constant 0 : i32
    return %c0_i32, %c0_i32_0 : i32, i32
  }
  func.func @transform_2(%arg0: i32) -> (i32, i32, i32) {
    %c0_i32 = arith.constant 0 : i32
    %c0_i32_0 = arith.constant 0 : i32
    %c0_i32_1 = arith.constant 0 : i32
    %c0_i32_2 = arith.constant 0 : i32
    return %c0_i32, %c0_i32_0, %c0_i32_1 : i32, i32, i32
  }
  func.func @transform_3(%arg0: i32) -> (i32, i32, i32) {
    %c0_i32 = arith.constant 0 : i32
    %c0_i32_0 = arith.constant 0 : i32
    %c0_i32_1 = arith.constant 0 : i32
    %c0_i32_2 = arith.constant 0 : i32
    return %c0_i32, %c0_i32_0, %c0_i32_1 : i32, i32, i32
  }
  func.func @transform_4(%arg0: i32) -> (i32, i32, i32) {
    %c0_i32 = arith.constant 0 : i32
    %c0_i32_0 = arith.constant 0 : i32
    %c0_i32_1 = arith.constant 0 : i32
    %c0_i32_2 = arith.constant 0 : i32
    return %c0_i32, %c0_i32_0, %c0_i32_1 : i32, i32, i32
  }
  func.func @transform_5(%arg0: i32) -> (i32, i32) {
    %c0_i32 = arith.constant 0 : i32
    %c0_i32_0 = arith.constant 0 : i32
    %c0_i32_1 = arith.constant 0 : i32
    return %c0_i32, %c0_i32_0 : i32, i32
  }
  func.func @transform_6(%arg0: i32) -> (i32, i32, i32) {
    %c0_i32 = arith.constant 0 : i32
    %c0_i32_0 = arith.constant 0 : i32
    %c0_i32_1 = arith.constant 0 : i32
    %c0_i32_2 = arith.constant 0 : i32
    return %c0_i32, %c0_i32_0, %c0_i32_1 : i32, i32, i32
  }
  func.func @transform_7(%arg0: i32) -> (i32, i32, i32) {
    %c0_i32 = arith.constant 0 : i32
    %c0_i32_0 = arith.constant 0 : i32
    %c0_i32_1 = arith.constant 0 : i32
    %c0_i32_2 = arith.constant 0 : i32
    return %c0_i32, %c0_i32_0, %c0_i32_1 : i32, i32, i32
  }
  func.func @transform_8(%arg0: i32) -> (i32, i32, i32) {
    %c0_i32 = arith.constant 0 : i32
    %c0_i32_0 = arith.constant 0 : i32
    %c0_i32_1 = arith.constant 0 : i32
    %c0_i32_2 = arith.constant 0 : i32
    return %c0_i32, %c0_i32_0, %c0_i32_1 : i32, i32, i32
  }
  func.func @transform_9(%arg0: i32) -> (i32, i32) {
    %c0_i32 = arith.constant 0 : i32
    %c0_i32_0 = arith.constant 0 : i32
    %c0_i32_1 = arith.constant 0 : i32
    return %c0_i32, %c0_i32_0 : i32, i32
  }
  func.func @transform_10(%arg0: i32) -> (i32, i32, i32) {
    %c0_i32 = arith.constant 0 : i32
    %c0_i32_0 = arith.constant 0 : i32
    %c0_i32_1 = arith.constant 0 : i32
    %c0_i32_2 = arith.constant 0 : i32
    return %c0_i32, %c0_i32_0, %c0_i32_1 : i32, i32, i32
  }
  func.func @transform_11(%arg0: i32) -> (i32, i32, i32) {
    %c0_i32 = arith.constant 0 : i32
    %c0_i32_0 = arith.constant 0 : i32
    %c0_i32_1 = arith.constant 0 : i32
    %c0_i32_2 = arith.constant 0 : i32
    return %c0_i32, %c0_i32_0, %c0_i32_1 : i32, i32, i32
  }
  func.func @transform_12(%arg0: i32) -> (i32, i32, i32) {
    %c0_i32 = arith.constant 0 : i32
    %c0_i32_0 = arith.constant 0 : i32
    %c0_i32_1 = arith.constant 0 : i32
    %c0_i32_2 = arith.constant 0 : i32
    return %c0_i32, %c0_i32_0, %c0_i32_1 : i32, i32, i32
  }
  func.func @transform_13(%arg0: i32) -> (i32, i32) {
    %c0_i32 = arith.constant 0 : i32
    %c0_i32_0 = arith.constant 0 : i32
    %c0_i32_1 = arith.constant 0 : i32
    return %c0_i32, %c0_i32_0 : i32, i32
  }
  func.func @transform_14(%arg0: i32) -> (i32, i32, i32) {
    %c0_i32 = arith.constant 0 : i32
    %c0_i32_0 = arith.constant 0 : i32
    %c0_i32_1 = arith.constant 0 : i32
    %c0_i32_2 = arith.constant 0 : i32
    return %c0_i32, %c0_i32_0, %c0_i32_1 : i32, i32, i32
  }
  func.func @transform_15(%arg0: i32) -> (i32, i32, i32) {
    %c0_i32 = arith.constant 0 : i32
    %c0_i32_0 = arith.constant 0 : i32
    %c0_i32_1 = arith.constant 0 : i32
    %c0_i32_2 = arith.constant 0 : i32
    return %c0_i32, %c0_i32_0, %c0_i32_1 : i32, i32, i32
  }
  func.func @transform_16(%arg0: i32) -> (i32, i32, i32) {
    %c0_i32 = arith.constant 0 : i32
    %c0_i32_0 = arith.constant 0 : i32
    %c0_i32_1 = arith.constant 0 : i32
    %c0_i32_2 = arith.constant 0 : i32
    return %c0_i32, %c0_i32_0, %c0_i32_1 : i32, i32, i32
  }
  func.func @transform_17(%arg0: i32) -> (i32, i32) {
    %c0_i32 = arith.constant 0 : i32
    %c0_i32_0 = arith.constant 0 : i32
    %c0_i32_1 = arith.constant 0 : i32
    return %c0_i32, %c0_i32_0 : i32, i32
  }
  func.func @transform_18(%arg0: i32) -> (i32, i32, i32) {
    %c0_i32 = arith.constant 0 : i32
    %c0_i32_0 = arith.constant 0 : i32
    %c0_i32_1 = arith.constant 0 : i32
    %c0_i32_2 = arith.constant 0 : i32
    return %c0_i32, %c0_i32_0, %c0_i32_1 : i32, i32, i32
  }
  func.func @transform_19(%arg0: i32) -> (i32, i32, i32) {
    %c0_i32 = arith.constant 0 : i32
    %c0_i32_0 = arith.constant 0 : i32
    %c0_i32_1 = arith.constant 0 : i32
    %c0_i32_2 = arith.constant 0 : i32
    return %c0_i32, %c0_i32_0, %c0_i32_1 : i32, i32, i32
  }
  func.func @transform_20(%arg0: i32) -> (i32, i32, i32) {
    %c0_i32 = arith.constant 0 : i32
    %c0_i32_0 = arith.constant 0 : i32
    %c0_i32_1 = arith.constant 0 : i32
    %c0_i32_2 = arith.constant 0 : i32
    return %c0_i32, %c0_i32_0, %c0_i32_1 : i32, i32, i32
  }
  func.func @transform_21(%arg0: i32) -> (i32, i32) {
    %c0_i32 = arith.constant 0 : i32
    %c0_i32_0 = arith.constant 0 : i32
    %c0_i32_1 = arith.constant 0 : i32
    return %c0_i32, %c0_i32_0 : i32, i32
  }
  func.func @transform_22(%arg0: i32) -> (i32, i32, i32) {
    %c0_i32 = arith.constant 0 : i32
    %c0_i32_0 = arith.constant 0 : i32
    %c0_i32_1 = arith.constant 0 : i32
    %c0_i32_2 = arith.constant 0 : i32
    return %c0_i32, %c0_i32_0, %c0_i32_1 : i32, i32, i32
  }
  func.func @transform_23(%arg0: i32) -> (i32, i32, i32) {
    %c0_i32 = arith.constant 0 : i32
    %c0_i32_0 = arith.constant 0 : i32
    %c0_i32_1 = arith.constant 0 : i32
    %c0_i32_2 = arith.constant 0 : i32
    return %c0_i32, %c0_i32_0, %c0_i32_1 : i32, i32, i32
  }
  func.func @transform_24(%arg0: i32) -> (i32, i32, i32) {
    %c0_i32 = arith.constant 0 : i32
    %c0_i32_0 = arith.constant 0 : i32
    %c0_i32_1 = arith.constant 0 : i32
    %c0_i32_2 = arith.constant 0 : i32
    return %c0_i32, %c0_i32_0, %c0_i32_1 : i32, i32, i32
  }
  func.func @transform_25(%arg0: i32) -> (i32, i32) {
    %c0_i32 = arith.constant 0 : i32
    %c0_i32_0 = arith.constant 0 : i32
    %c0_i32_1 = arith.constant 0 : i32
    return %c0_i32, %c0_i32_0 : i32, i32
  }
  func.func @transform_26(%arg0: i32) -> (i32, i32, i32) {
    %c0_i32 = arith.constant 0 : i32
    %c0_i32_0 = arith.constant 0 : i32
    %c0_i32_1 = arith.constant 0 : i32
    %c0_i32_2 = arith.constant 0 : i32
    return %c0_i32, %c0_i32_0, %c0_i32_1 : i32, i32, i32
  }
  func.func @transform_27(%arg0: i32) -> (i32, i32, i32) {
    %c0_i32 = arith.constant 0 : i32
    %c0_i32_0 = arith.constant 0 : i32
    %c0_i32_1 = arith.constant 0 : i32
    %c0_i32_2 = arith.constant 0 : i32
    return %c0_i32, %c0_i32_0, %c0_i32_1 : i32, i32, i32
  }
  func.func @transform_28(%arg0: i32) -> (i32, i32, i32) {
    %c0_i32 = arith.constant 0 : i32
    %c0_i32_0 = arith.constant 0 : i32
    %c0_i32_1 = arith.constant 0 : i32
    %c0_i32_2 = arith.constant 0 : i32
    return %c0_i32, %c0_i32_0, %c0_i32_1 : i32, i32, i32
  }
  func.func @transform_29(%arg0: i32) -> (i32, i32) {
    %c0_i32 = arith.constant 0 : i32
    %c0_i32_0 = arith.constant 0 : i32
    %c0_i32_1 = arith.constant 0 : i32
    return %c0_i32, %c0_i32_0 : i32, i32
  }
  func.func @transform_30(%arg0: i32) -> (i32, i32, i32) {
    %c0_i32 = arith.constant 0 : i32
    %c0_i32_0 = arith.constant 0 : i32
    %c0_i32_1 = arith.constant 0 : i32
    %c0_i32_2 = arith.constant 0 : i32
    return %c0_i32, %c0_i32_0, %c0_i32_1 : i32, i32, i32
  }
  func.func @transform_31(%arg0: i32) -> (i32, i32, i32) {
    %c0_i32 = arith.constant 0 : i32
    %c0_i32_0 = arith.constant 0 : i32
    %c0_i32_1 = arith.constant 0 : i32
    %c0_i32_2 = arith.constant 0 : i32
    return %c0_i32, %c0_i32_0, %c0_i32_1 : i32, i32, i32
  }
  func.func @transform_32(%arg0: i32) -> (i32, i32, i32) {
    %c0_i32 = arith.constant 0 : i32
    %c0_i32_0 = arith.constant 0 : i32
    %c0_i32_1 = arith.constant 0 : i32
    %c0_i32_2 = arith.constant 0 : i32
    return %c0_i32, %c0_i32_0, %c0_i32_1 : i32, i32, i32
  }
  func.func @transform_33(%arg0: i32) -> (i32, i32) {
    %c0_i32 = arith.constant 0 : i32
    %c0_i32_0 = arith.constant 0 : i32
    %c0_i32_1 = arith.constant 0 : i32
    return %c0_i32, %c0_i32_0 : i32, i32
  }
}

</mosaic_0001>

<bundles_post_ra>
// kernel: cnn_blstm_forward.3
= control target key start
LH: loop header
LB: loop body
LE: loop exit
PB: predicated region body
PF: predicated region fallthrough
CT: control target
= control target key end

     0   :  { %v2797_v3 = vmov 0.0|0.0   ;;  %vm2798_vm0 = vmmov 0   ;;  %v2799_v8 = vmov 0.0   ;;  %vm76_vm1 = vcmask 326656   ;;  %s2802_s23 = smov 40   ;;  %s2803_s24 = smov 68   ;;  %s3318_s1 = inlined_call_operand.vmem [shape: f32[40,80], index: 1, kind: input, shape index: {}]   ;;  %s3319_s2 = inlined_call_operand.vmem [shape: f32[20,80], index: 2, kind: input, shape index: {}]   ;;  %s3320_s0 = inlined_call_operand.vmem [shape: f32[4,4,40], index: 0, kind: input, shape index: {}]   ;;  %s3321_s3 = inlined_call_operand.vmem [shape: f32[1,80], index: 3, kind: input, shape index: {}]   ;;  %s3322_s4 = inlined_call_operand.vmem [shape: f32[40,80], index: 4, kind: input, shape index: {}]   ;;  %s3323_s5 = inlined_call_operand.vmem [shape: f32[20,80], index: 5, kind: input, shape index: {}]   ;;  %s3324_s6 = inlined_call_operand.vmem [shape: f32[1,80], index: 6, kind: input, shape index: {}]   ;;  %s3325_s7 = inlined_call_operand.vmem [shape: f32[40,80], index: 7, kind: input, shape index: {}]   ;;  %s3326_s8 = inlined_call_operand.vmem [shape: f32[20,80], index: 8, kind: input, shape index: {}]   ;;  %s3327_s9 = inlined_call_operand.vmem [shape: f32[1,80], index: 9, kind: input, shape index: {}]   ;;  %s3328_s10 = inlined_call_operand.vmem [shape: f32[40,80], index: 10, kind: input, shape index: {}]   ;;  %s3329_s12 = inlined_call_operand.vmem [shape: f32[1,80], index: 12, kind: input, shape index: {}]   ;;  %s3330_s11 = inlined_call_operand.vmem [shape: f32[20,80], index: 11, kind: input, shape index: {}]   ;;  %s3331_s13 = inlined_call_operand.vmem [shape: f32[40,2], index: 13, kind: input, shape index: {}]   ;;  %s3332_s14 = inlined_call_operand.vmem [shape: f32[1,2], index: 14, kind: input, shape index: {}]   ;;  %s3333_s15 = inlined_call_operand.vmem [shape: f32[4,4,2], index: 15, kind: output, shape index: {}]  }
   0x1   :  { %v54_v0 = vld [vmem:[%s3318_s1] sm:$0xff]  ;;  %v55_v1 = vld [vmem:[%s3318_s1 + $0x8] sm:$0xff]  ;;  %v56_v2 = vld [vmem:[%s3318_s1 + $0x10] sm:$0xff]  ;;  %2580 = vmatprep.subr.bf16.mxu1 %v2797_v3  ;;  %2382 = vmatprep.mubr.msk.f32.mxu1 %vm2798_vm0, %v2799_v8  ;;  %vm166_vm2 = vcmask 1043456   ;;  %vm162_vm3 = vcmask 162816   ;;  %vm2212_vm4 = vcmask 11264  }
   0x2   :  { %v2572_v4 = vpack.c.bf16 %v55_v1, %v54_v0  ;;  %v57_v5 = vld [vmem:[%s3318_s1 + $0x18] sm:$0xff]  ;;  %v59_v6 = vld [vmem:[%s3319_s2] sm:$0xff]  ;;  %v60_v7 = vld [vmem:[%s3319_s2 + $0x8] sm:$0xff] }
   0x3   :  { %v2576_v9 = vpack.c.bf16 %v57_v5, %v56_v2  ;;  %v2905_v10 = vpack.c.bf16 %v60_v7, %v59_v6  ;;  %v2910_v11 = vld [vmem:[%s3320_s0] sm:$0xff]   ;;  %v2918_v12 = vld [vmem:[%s3319_s2 + $0x10] sm:$0xf]  ;;  %v2929_v14 = vld [vmem:[%s3320_s0 + $0x8] sm:$0xff]   ;;  %s2800_s2 = smov 88  }
   0x4   :  { %2573 = vmatprep.subr.bf16.mxu0 %v2572_v4  ;;  %2373 = vmatprep.mubr.msk.f32.mxu0 %vm76_vm1, %v2910_v11  ;;  %v58_v13 = vld [vmem:[%s3318_s1 + $0x20] sm:$0xff] }
   0x5   :  { %2575 = vmatpush3.bf16.msra.mxu0 %v2572_v4  ;;  %2582 = vmatpush3.bf16.msra.mxu1 %v2905_v10  ;;  %v2221_v15 = vld [vmem:[%s3321_s3] ss:$0 sm:$0xff]  ;;  %s2801_s3 = smov 20  }
   0x6   :  { %2577 = vmatprep.subr.bf16.mxu0 %v2576_v9  ;;  %2380 = vmatprep.subr.mxu1 %v2799_v8  ;;  %v74_v17 = vcombine.low %v2221_v15, %v2221_v15  ;;  %v568_v15 = vld [vmem:[%s3322_s4 + $0x18] sm:$0xff] }
   0x9   :  { %2579 = vmatpush3.bf16.msra.mxu0 %v2576_v9  ;;  %2381 = vmatpush3.msk.msra.mxu1 %vm166_vm2, %v2918_v12 }
   0xa   :  { %2371 = vmatprep.subr.mxu0 %v58_v13  ;;  %2383 = vmatmul.mubr.f32.vlgmr.msra.gmra.mrb[0].mxu1 %v2799_v8 }
   0xb   :  { %2583 = vmatprep.subr.bf16.mxu1 %v2797_v3  ;;  %2391 = vmatprep.mubr.msk.f32.mxu1 %vm2798_vm0, %v2799_v8 }
   0xc   :  { %2585 = vmatpush3.bf16.msra.mxu1 %v2905_v10 }
   0xd   :  { %2372 = vmatpush3.msra.mxu0 %v58_v13  ;;  %2389 = vmatprep.subr.mxu1 %v2799_v8 }
   0xe   :  { %2374 = vmatmul.mubr.msk.f32.vlgmr.msra.gmra.mrb[0].mxu0 %vm76_vm1, %v2929_v14  ;;  %2586 = vmatprep.subr.bf16.mxu0 %v2797_v3 }
   0xf   :  { %2588 = vmatpush3.bf16.msra.mxu0 %v2905_v10  ;;  %2400 = vmatprep.mubr.msk.f32.mxu0 %vm2798_vm0, %v2799_v8 }
  0x10   :  { %2390 = vmatpush3.msk.msra.mxu1 %vm166_vm2, %v2918_v12  ;;  %2398 = vmatprep.subr.mxu0 %v2799_v8 }
  0x11   :  { %2589 = vmatprep.subr.bf16.mxu1 %v2797_v3 }
  0x13   :  { %2399 = vmatpush3.msk.msra.mxu0 %vm166_vm2, %v2918_v12 }
  0xdd   :  { %v236_v16 = vpop.f32.mrb[0].mxu1 }
  0xde   :  { %v2384_v18 = vpop.f32.mrb[1].mxu1 }
  0xe1   :  { %v2375_v19 = vpop.f32.mrb[0].mxu0 }
  0xe2   :  { %v2952_v20 = vadd.f32 %v2375_v19, %v74_v17  ;;  %v147_v21 = vpop.f32.mrb[1].mxu0  ;;  %v570_v19 = vld [vmem:[%s3323_s5] sm:$0xff] }
  0xe3   :  { %v148_v22 = vadd.f32 %v147_v21, %v74_v17  ;;  %v569_v17 = vld [vmem:[%s3322_s4 + $0x20] sm:$0xff]  ;;  %v571_v21 = vld [vmem:[%s3323_s5 + $0x8] sm:$0xff] }
  0xe5   :  { %v240_v23 = vadd.f32 %v236_v16, %v148_v22  ;;  %v158_v39 = vcombine.high %v148_v22, %v148_v22  ;;  %v2601_v22 = vpack.c.bf16 %v571_v21, %v570_v19 }
  0xe7   :  { %2669 = vtanh.f32 %v240_v23  ;;  %v241_v25 = vsub.f32 0.0, %v240_v23 }
  0xe9   :  { %v242_v26 = vmul.f32 1.442695, %v241_v25 }
  0xeb   :  { %2671 = vpow2.f32 %v242_v26  ;;  %v2231_v26 = vld [vmem:[%s3324_s6] ss:$0 sm:$0xff] }
  0xf1   :  { %v2670_v24 = vpop.eup %2669 }
  0xf2   :  { %250 = vrot.lane.b32.xlu0 %v2670_v24, %s2800_s2 }
  0xf5   :  { %v2672_v27 = vpop.eup %2671 }
  0xf6   :  { %v244_v28 = vadd.f32 1.0, %v2672_v27  ;;  %v579_v27 = vcombine.low %v2231_v26, %v2231_v26 }
  0xf8   :  { %2673 = vrcp.f32 %v244_v28 }
 0x102   :  { %v2674_v29 = vpop.eup %2673 }
 0x103   :  { %v248_v32 = vmul.f32 0.0, %v2674_v29 }
 0x164   :  { %v251_v30 = vpop.permute.xlu0 %250 }
 0x165   :  { %v253_v31 = vmul.f32 %v2674_v29, %v251_v30 }
 0x167   :  { %255 = vrot.lane.b32.xlu0 %v253_v31, %s2801_s3 }
 0x1d9   :  { %v256_v33 = vpop.permute.xlu0 %255 }
 0x1da   :  { %v258_v34 = vadd.f32 %v256_v33, %v248_v32 }
 0x1dc   :  { %2675 = vtanh.f32 %v258_v34 }
 0x1e6   :  { %v2676_v35 = vpop.eup %2675 }
 0x1e7   :  { %261 = vrot.lane.b32.xlu1 %v2676_v35, %s2802_s23 }
 0x259   :  { %v262_v36 = vpop.permute.xlu1 %261 }
 0x25a   :  { %v264_v37 = vmul.f32 %v2674_v29, %v262_v36 }
 0x25c   :  { %266 = vrot.lane.b32.xlu1 %v264_v37, %s2803_s24 }
 0x2ce   :  { %v2958_v38 = vpop.permute.xlu1 %266 }
 0x2cf   :  { %2392 = vmatmul.mubr.msk.f32.vlgmr.msra.gmra.mrb[2].mxu1 %vm162_vm3, %v2958_v38 }
 0x2d0   :  { %2591 = vmatpush3.bf16.msra.mxu1 %v2905_v10  ;;  %2409 = vmatprep.mubr.msk.f32.mxu1 %vm2798_vm0, %v2799_v8  ;;  %v565_v10 = vld [vmem:[%s3322_s4] sm:$0xff] }
 0x2d1   :  { %2407 = vmatprep.subr.mxu1 %v2799_v8 }
 0x2d4   :  { %2408 = vmatpush3.msk.msra.mxu1 %vm166_vm2, %v2918_v12  ;;  %v567_v12 = vld [vmem:[%s3322_s4 + $0x10] sm:$0xff] }
 0x2d5   :  { %2600 = vmatprep.subr.bf16.mxu1 %v2797_v3  ;;  %v2596_v16 = vpack.c.bf16 %v568_v15, %v567_v12 }
 0x3a2   :  { %v336_v40 = vpop.f32.mrb[2].mxu1 }
 0x3a3   :  { %v340_v41 = vadd.f32 %v336_v40, %v158_v39  ;;  %v2393_v42 = vpop.f32.mrb[3].mxu1 }
 0x3a5   :  { %2677 = vtanh.f32 %v340_v41  ;;  %v341_v44 = vsub.f32 0.0, %v340_v41 }
 0x3a7   :  { %v342_v45 = vmul.f32 1.442695, %v341_v44 }
 0x3a9   :  { %2679 = vpow2.f32 %v342_v45 }
 0x3af   :  { %v2678_v43 = vpop.eup %2677 }
 0x3b0   :  { %350 = vrot.lane.b32.xlu0 %v2678_v43, %s2800_s2 }
 0x3b3   :  { %v2680_v46 = vpop.eup %2679 }
 0x3b4   :  { %v344_v47 = vadd.f32 1.0, %v2680_v46 }
 0x3b6   :  { %2681 = vrcp.f32 %v344_v47 }
 0x3c0   :  { %v2682_v48 = vpop.eup %2681 }
 0x3c1   :  { %v348_v51 = vmul.f32 %v2682_v48, %v258_v34 }
 0x422   :  { %v351_v49 = vpop.permute.xlu0 %350 }
 0x423   :  { %v353_v50 = vmul.f32 %v2682_v48, %v351_v49 }
 0x425   :  { %355 = vrot.lane.b32.xlu1 %v353_v50, %s2801_s3 }
 0x497   :  { %v356_v52 = vpop.permute.xlu1 %355 }
 0x498   :  { %v358_v53 = vadd.f32 %v356_v52, %v348_v51 }
 0x49a   :  { %2683 = vtanh.f32 %v358_v53 }
 0x4a4   :  { %v2684_v54 = vpop.eup %2683 }
 0x4a5   :  { %361 = vrot.lane.b32.xlu0 %v2684_v54, %s2802_s23 }
 0x517   :  { %v362_v55 = vpop.permute.xlu0 %361 }
 0x518   :  { %v364_v56 = vmul.f32 %v2682_v48, %v362_v55 }
 0x51a   :  { %366 = vrot.lane.b32.xlu1 %v364_v56, %s2803_s24 }
 0x58c   :  { %v2973_v57 = vpop.permute.xlu1 %366 }
 0x58d   :  { %2401 = vmatmul.mubr.msk.f32.vlgmr.msra.gmra.mrb[2].mxu0 %vm162_vm3, %v2973_v57 }
 0x58e   :  { %2422 = vmatprep.mubr.msk.f32.mxu0 %vm76_vm1, %v2910_v11  ;;  %v566_v11 = vld [vmem:[%s3322_s4 + $0x8] sm:$0xff] }
 0x58f   :  { %v2592_v13 = vpack.c.bf16 %v566_v11, %v565_v10 }
 0x591   :  { %2593 = vmatprep.subr.bf16.mxu0 %v2592_v13 }
 0x592   :  { %2595 = vmatpush3.bf16.msra.mxu0 %v2592_v13 }
 0x593   :  { %2597 = vmatprep.subr.bf16.mxu0 %v2596_v16 }
 0x596   :  { %2599 = vmatpush3.bf16.msra.mxu0 %v2596_v16 }
 0x597   :  { %2420 = vmatprep.subr.mxu0 %v569_v17 }
 0x59a   :  { %2421 = vmatpush3.msra.mxu0 %v569_v17 }
 0x59b   :  { %2423 = vmatmul.mubr.msk.f32.vlgmr.msra.gmra.mrb[4].mxu0 %vm76_vm1, %v2929_v14  ;;  %2606 = vmatprep.subr.bf16.mxu0 %v2797_v3  ;;  %v572_v14 = vld [vmem:[%s3323_s5 + $0x10] sm:$0xf] }
 0x59c   :  { %2449 = vmatprep.mubr.msk.f32.mxu0 %vm2798_vm0, %v2799_v8  ;;  %2608 = vmatpush3.bf16.msra.mxu0 %v2601_v22 }
 0x59d   :  { %2447 = vmatprep.subr.mxu0 %v2799_v8 }
 0x5a0   :  { %2448 = vmatpush3.msk.msra.mxu0 %vm166_vm2, %v572_v14 }
 0x660   :  { %v436_v58 = vpop.f32.mrb[2].mxu0 }
 0x661   :  { %v440_v59 = vadd.f32 %v436_v58, %v2952_v20  ;;  %v2402_v60 = vpop.f32.mrb[3].mxu0 }
 0x663   :  { %2685 = vtanh.f32 %v440_v59  ;;  %v441_v62 = vsub.f32 0.0, %v440_v59 }
 0x665   :  { %v442_v63 = vmul.f32 1.442695, %v441_v62 }
 0x667   :  { %2687 = vpow2.f32 %v442_v63 }
 0x66d   :  { %v2686_v61 = vpop.eup %2685 }
 0x66e   :  { %450 = vrot.lane.b32.xlu0 %v2686_v61, %s2800_s2  ;;  %v2424_v28 = vpop.f32.mrb[4].mxu0 }
 0x66f   :  { %v647_v29 = vpop.f32.mrb[5].mxu0  ;;  %v653_v31 = vadd.f32 %v2424_v28, %v579_v27 }
 0x670   :  { %v3036_v30 = vadd.f32 %v647_v29, %v579_v27 }
 0x671   :  { %v2688_v0 = vpop.eup %2687  ;;  %v659_v34 = vcombine.high %v653_v31, %v653_v31 }
 0x672   :  { %v444_v1 = vadd.f32 1.0, %v2688_v0  ;;  %v658_v12 = vcombine.high %v3036_v30, %v3036_v30 }
 0x674   :  { %2689 = vrcp.f32 %v444_v1 }
 0x67e   :  { %v2690_v2 = vpop.eup %2689 }
 0x67f   :  { %v448_v6 = vmul.f32 %v2690_v2, %v358_v53 }
 0x6e0   :  { %v451_v4 = vpop.permute.xlu0 %450 }
 0x6e1   :  { %v453_v5 = vmul.f32 %v2690_v2, %v451_v4 }
 0x6e3   :  { %455 = vrot.lane.b32.xlu1 %v453_v5, %s2801_s3 }
 0x755   :  { %v456_v7 = vpop.permute.xlu1 %455 }
 0x756   :  { %v2982_v9 = vadd.f32 %v456_v7, %v448_v6 }
 0x758   :  { %2691 = vtanh.f32 %v2982_v9 }
 0x762   :  { %v2692_v18 = vpop.eup %2691 }
 0x763   :  { %461 = vrot.lane.b32.xlu0 %v2692_v18, %s2802_s23 }
 0x7d5   :  { %v462_v23 = vpop.permute.xlu0 %461 }
 0x7d6   :  { %v464_v24 = vmul.f32 %v2690_v2, %v462_v23 }
 0x7d8   :  { %466 = vrot.lane.b32.xlu1 %v464_v24, %s2803_s24 }
 0x84a   :  { %v3018_v25 = vpop.permute.xlu1 %466 }
 0x84b   :  { %2410 = vmatmul.mubr.msk.f32.vlgmr.msra.gmra.mrb[4].mxu1 %vm162_vm3, %v3018_v25 }
 0x84c   :  { %2602 = vmatpush3.bf16.msra.mxu1 %v2601_v22  ;;  %2431 = vmatprep.mubr.msk.f32.mxu1 %vm2798_vm0, %v2799_v8 }
 0x84d   :  { %2429 = vmatprep.subr.mxu1 %v2799_v8 }
 0x850   :  { %2430 = vmatpush3.msk.msra.mxu1 %vm166_vm2, %v572_v14 }
 0x851   :  { %2432 = vmatmul.mubr.f32.vlgmr.msra.gmra.mrb[6].mxu1 %v2799_v8  ;;  %2603 = vmatprep.subr.bf16.mxu1 %v2797_v3 }
 0x852   :  { %2605 = vmatpush3.bf16.msra.mxu1 %v2601_v22  ;;  %2440 = vmatprep.mubr.msk.f32.mxu1 %vm2798_vm0, %v2799_v8 }
 0x853   :  { %2438 = vmatprep.subr.mxu1 %v2799_v8 }
 0x856   :  { %2439 = vmatpush3.msk.msra.mxu1 %vm166_vm2, %v572_v14 }
 0x857   :  { %2609 = vmatprep.subr.bf16.mxu1 %v2797_v3 }
 0x91e   :  { %v3038_v32 = vpop.f32.mrb[4].mxu1 }
 0x91f   :  { %v2411_v33 = vpop.f32.mrb[5].mxu1 }
 0x924   :  { %v731_v35 = vpop.f32.mrb[6].mxu1 }
 0x925   :  { %v735_v36 = vadd.f32 %v731_v35, %v659_v34  ;;  %v2433_v37 = vpop.f32.mrb[7].mxu1 }
 0x927   :  { %2693 = vtanh.f32 %v735_v36  ;;  %v736_v40 = vsub.f32 0.0, %v735_v36 }
 0x929   :  { %v737_v41 = vmul.f32 1.442695, %v736_v40 }
 0x92b   :  { %2695 = vpow2.f32 %v737_v41 }
 0x931   :  { %v2694_v39 = vpop.eup %2693 }
 0x932   :  { %745 = vrot.lane.b32.xlu0 %v2694_v39, %s2800_s2 }
 0x935   :  { %v2696_v42 = vpop.eup %2695 }
 0x936   :  { %v739_v43 = vadd.f32 1.0, %v2696_v42 }
 0x938   :  { %2697 = vrcp.f32 %v739_v43 }
 0x942   :  { %v2698_v44 = vpop.eup %2697 }
 0x943   :  { %v743_v47 = vmul.f32 0.0, %v2698_v44 }
 0x9a4   :  { %v746_v45 = vpop.permute.xlu0 %745 }
 0x9a5   :  { %v748_v46 = vmul.f32 %v2698_v44, %v746_v45 }
 0x9a7   :  { %750 = vrot.lane.b32.xlu1 %v748_v46, %s2801_s3 }
 0xa19   :  { %v751_v48 = vpop.permute.xlu1 %750 }
 0xa1a   :  { %v753_v49 = vadd.f32 %v751_v48, %v743_v47 }
 0xa1c   :  { %2699 = vtanh.f32 %v753_v49 }
 0xa26   :  { %v2700_v50 = vpop.eup %2699 }
 0xa27   :  { %756 = vrot.lane.b32.xlu0 %v2700_v50, %s2802_s23 }
 0xa99   :  { %v757_v51 = vpop.permute.xlu0 %756 }
 0xa9a   :  { %v3043_v52 = vmul.f32 %v2698_v44, %v757_v51 }
 0xa9c   :  { %761 = vrot.lane.b32.xlu1 %v3043_v52, %s2803_s24 }
 0xb0e   :  { %v762_v53 = vpop.permute.xlu1 %761 }
 0xb0f   :  { %2441 = vmatmul.mubr.msk.f32.vlgmr.msra.gmra.mrb[8].mxu1 %vm162_vm3, %v762_v53 }
 0xb10   :  { %2611 = vmatpush3.bf16.msra.mxu1 %v2601_v22  ;;  %2458 = vmatprep.mubr.msk.f32.mxu1 %vm2798_vm0, %v2799_v8 }
 0xb11   :  { %2456 = vmatprep.subr.mxu1 %v2799_v8 }
 0xb14   :  { %2457 = vmatpush3.msk.msra.mxu1 %vm166_vm2, %v572_v14 }
 0xb15   :  { %2620 = vmatprep.subr.bf16.mxu1 %v2797_v3 }
 0xbe2   :  { %v831_v54 = vpop.f32.mrb[8].mxu1 }
 0xbe3   :  { %v835_v55 = vadd.f32 %v831_v54, %v653_v31  ;;  %v2442_v56 = vpop.f32.mrb[9].mxu1  ;;  %v159_v31 = vcombine.high %v2952_v20, %v2952_v20 }
 0xbe5   :  { %2701 = vtanh.f32 %v835_v55  ;;  %v836_v59 = vsub.f32 0.0, %v835_v55  ;;  %v540_v33 = vadd.f32 %v3038_v32, %v159_v31 }
 0xbe7   :  { %v837_v60 = vmul.f32 1.442695, %v836_v59  ;;  %v541_v37 = vsub.f32 0.0, %v540_v33 }
 0xbe9   :  { %2703 = vpow2.f32 %v837_v60  ;;  %v542_v39 = vmul.f32 1.442695, %v541_v37 }
 0xbef   :  { %v2702_v58 = vpop.eup %2701 }
 0xbf0   :  { %845 = vrot.lane.b32.xlu0 %v2702_v58, %s2800_s2 }
 0xbf3   :  { %v2704_v61 = vpop.eup %2703 }
 0xbf4   :  { %v839_v62 = vadd.f32 1.0, %v2704_v61 }
 0xbf6   :  { %2705 = vrcp.f32 %v839_v62 }
 0xc00   :  { %v2706_v63 = vpop.eup %2705 }
 0xc01   :  { %v843_v2 = vmul.f32 %v2706_v63, %v753_v49 }
 0xc62   :  { %v846_v0 = vpop.permute.xlu0 %845 }
 0xc63   :  { %v848_v1 = vmul.f32 %v2706_v63, %v846_v0 }
 0xc65   :  { %850 = vrot.lane.b32.xlu1 %v848_v1, %s2801_s3 }
 0xcd7   :  { %v851_v4 = vpop.permute.xlu1 %850 }
 0xcd8   :  { %v853_v5 = vadd.f32 %v851_v4, %v843_v2 }
 0xcda   :  { %2707 = vtanh.f32 %v853_v5 }
 0xce4   :  { %v2708_v6 = vpop.eup %2707 }
 0xce5   :  { %856 = vrot.lane.b32.xlu0 %v2708_v6, %s2802_s23  ;;  %v1087_v6 = vld [vmem:[%s3325_s7 + $0x18] sm:$0xff] }
 0xd57   :  { %v857_v7 = vpop.permute.xlu0 %856 }
 0xd58   :  { %v859_v10 = vmul.f32 %v2706_v63, %v857_v7  ;;  %v1085_v63 = vld [vmem:[%s3325_s7 + $0x8] sm:$0xff] }
 0xd5a   :  { %861 = vrot.lane.b32.xlu1 %v859_v10, %s2803_s24 }
 0xdcc   :  { %v862_v11 = vpop.permute.xlu1 %861 }
 0xdcd   :  { %2450 = vmatmul.mubr.msk.f32.vlgmr.msra.gmra.mrb[6].mxu0 %vm162_vm3, %v862_v11  ;;  %v1090_v11 = vld [vmem:[%s3326_s8 + $0x8] sm:$0xff] }
 0xea0   :  { %v931_v13 = vpop.f32.mrb[6].mxu0 }
 0xea1   :  { %v935_v15 = vadd.f32 %v931_v13, %v658_v12  ;;  %v2451_v16 = vpop.f32.mrb[7].mxu0  ;;  %v1088_v13 = vld [vmem:[%s3325_s7 + $0x20] sm:$0xff] }
 0xea3   :  { %2709 = vtanh.f32 %v935_v15  ;;  %v936_v18 = vsub.f32 0.0, %v935_v15  ;;  %v3109_v15 = vld [vmem:[%s3326_s8 + $0x10] sm:$0xf] }
 0xea5   :  { %v937_v19 = vmul.f32 1.442695, %v936_v18 }
 0xea7   :  { %2711 = vpow2.f32 %v937_v19 }
 0xead   :  { %v2710_v17 = vpop.eup %2709 }
 0xeae   :  { %945 = vrot.lane.b32.xlu0 %v2710_v17, %s2800_s2 }
 0xeb1   :  { %v2712_v21 = vpop.eup %2711 }
 0xeb2   :  { %v939_v22 = vadd.f32 1.0, %v2712_v21 }
 0xeb4   :  { %2713 = vrcp.f32 %v939_v22 }
 0xebe   :  { %v2714_v14 = vpop.eup %2713 }
 0xebf   :  { %v943_v26 = vmul.f32 %v2714_v14, %v853_v5  ;;  %v1086_v5 = vld [vmem:[%s3325_s7 + $0x10] sm:$0xff] }
 0xec0   :  { %v2616_v7 = vpack.c.bf16 %v1087_v6, %v1086_v5 }
 0xf20   :  { %v946_v23 = vpop.permute.xlu0 %945 }
 0xf21   :  { %v948_v24 = vmul.f32 %v2714_v14, %v946_v23 }
 0xf23   :  { %950 = vrot.lane.b32.xlu1 %v948_v24, %s2801_s3 }
 0xf95   :  { %v951_v27 = vpop.permute.xlu1 %950 }
 0xf96   :  { %v953_v28 = vadd.f32 %v951_v27, %v943_v26 }
 0xf98   :  { %2715 = vtanh.f32 %v953_v28 }
 0xf99   :  { %2717 = vtanh.f32 %v540_v33 }
 0xf9a   :  { %2719 = vpow2.f32 %v542_v39 }
 0xfa2   :  { %v2716_v29 = vpop.eup %2715 }
 0xfa3   :  { %956 = vrot.lane.b32.xlu0 %v2716_v29, %s2802_s23  ;;  %v2718_v36 = vpop.eup %2717 }
 0xfa4   :  { %v2720_v40 = vpop.eup %2719 }
 0xfa5   :  { %v544_v41 = vadd.f32 1.0, %v2720_v40 }
 0xfa7   :  { %2721 = vrcp.f32 %v544_v41 }
 0xfb1   :  { %v2722_v20 = vpop.eup %2721 }
 0xfb2   :  { %v548_v44 = vmul.f32 %v2722_v20, %v2982_v9 }
0x1015   :  { %v957_v34 = vpop.permute.xlu0 %956 }
0x1016   :  { %v959_v35 = vmul.f32 %v2714_v14, %v957_v34 }
0x1018   :  { %961 = vrot.lane.b32.xlu1 %v959_v35, %s2803_s24 }
0x101c   :  { %550 = vrot.lane.b32.xlu1 %v2718_v36, %s2800_s2 }
0x108a   :  { %v962_v42 = vpop.permute.xlu1 %961 }
0x108b   :  { %2459 = vmatmul.mubr.msk.f32.vlgmr.msra.gmra.mrb[10].mxu1 %vm162_vm3, %v962_v42 }
0x108c   :  { %2480 = vmatprep.mubr.msk.f32.mxu1 %vm2798_vm0, %v2799_v8 }
0x108e   :  { %v551_v32 = vpop.permute.xlu1 %550 }
0x108f   :  { %v553_v43 = vmul.f32 %v2722_v20, %v551_v32 }
0x1091   :  { %555 = vrot.lane.b32.xlu1 %v553_v43, %s2801_s3 }
0x1103   :  { %v556_v45 = vpop.permute.xlu1 %555 }
0x1104   :  { %v558_v46 = vadd.f32 %v556_v45, %v548_v44 }
0x1106   :  { %2723 = vtanh.f32 %v558_v46 }
0x1110   :  { %v2724_v47 = vpop.eup %2723 }
0x1111   :  { %561 = vrot.lane.b32.xlu1 %v2724_v47, %s2802_s23 }
0x1115   :  { %1070 = vrot.lane.b32.xlu1 %v959_v35, %s2800_s2 }
0x1119   :  { %1072 = vrot.lane.b32.xlu1 %v859_v10, %s2800_s2  ;;  %v1089_v10 = vld [vmem:[%s3326_s8] sm:$0xff] }
0x111a   :  { %v3099_v12 = vpack.c.bf16 %v1090_v11, %v1089_v10  ;;  %v1591_v11 = vld [vmem:[%s3328_s10 + $0x10] sm:$0xff] }
0x111c   :  { %2622 = vmatpush3.bf16.msra.mxu1 %v3099_v12 }
0x111d   :  { %2478 = vmatprep.subr.mxu1 %v2799_v8 }
0x1120   :  { %2479 = vmatpush3.msk.msra.mxu1 %vm166_vm2, %v3109_v15 }
0x1121   :  { %2481 = vmatmul.mubr.f32.vlgmr.msra.gmra.mrb[12].mxu1 %v2799_v8  ;;  %2626 = vmatprep.subr.bf16.mxu1 %v2797_v3 }
0x1122   :  { %2628 = vmatpush3.bf16.msra.mxu1 %v3099_v12  ;;  %2498 = vmatprep.mubr.msk.f32.mxu1 %vm2798_vm0, %v2799_v8 }
0x1123   :  { %2496 = vmatprep.subr.mxu1 %v2799_v8 }
0x1126   :  { %2497 = vmatpush3.msk.msra.mxu1 %vm166_vm2, %v3109_v15 }
0x115e   :  { %v1031_v48 = vpop.f32.mrb[10].mxu1 }
0x115f   :  { %v1035_v49 = vadd.f32 %v1031_v48, %v3036_v30  ;;  %v2460_v50 = vpop.f32.mrb[11].mxu1  ;;  %v1084_v30 = vld [vmem:[%s3325_s7] sm:$0xff] }
0x1160   :  { %v2612_v0 = vpack.c.bf16 %v1085_v63, %v1084_v30 }
0x1161   :  { %2725 = vtanh.f32 %v1035_v49  ;;  %v1036_v53 = vsub.f32 0.0, %v1035_v49 }
0x1162   :  { %2613 = vmatprep.subr.bf16.mxu0 %v2612_v0 }
0x1163   :  { %v1037_v9 = vmul.f32 1.442695, %v1036_v53  ;;  %2615 = vmatpush3.bf16.msra.mxu0 %v2612_v0 }
0x1164   :  { %2617 = vmatprep.subr.bf16.mxu0 %v2616_v7 }
0x1165   :  { %2727 = vpow2.f32 %v1037_v9 }
0x1167   :  { %2619 = vmatpush3.bf16.msra.mxu0 %v2616_v7 }
0x1168   :  { %2469 = vmatprep.subr.mxu0 %v1088_v13 }
0x116b   :  { %v2726_v51 = vpop.eup %2725  ;;  %2470 = vmatpush3.msra.mxu0 %v1088_v13 }
0x116c   :  { %1045 = vrot.lane.b32.xlu0 %v2726_v51, %s2800_s2  ;;  %2623 = vmatprep.subr.bf16.mxu0 %v2797_v3 }
0x116f   :  { %v2728_v54 = vpop.eup %2727 }
0x1170   :  { %v1039_v55 = vadd.f32 1.0, %v2728_v54 }
0x1172   :  { %2729 = vrcp.f32 %v1039_v55 }
0x117c   :  { %v2730_v56 = vpop.eup %2729 }
0x117d   :  { %v1043_v60 = vmul.f32 %v2730_v56, %v953_v28 }
0x1183   :  { %v562_v2 = vpop.permute.xlu1 %561 }
0x1184   :  { %v564_v4 = vmul.f32 %v2722_v20, %v562_v2  ;;  %v1589_v2 = vld [vmem:[%s3328_s10] sm:$0xff] }
0x1187   :  { %v1071_v18 = vpop.permute.xlu1 %1070 }
0x1188   :  { %v1081_v22 = vsel %vm162_vm3, %v2973_v57, %v1071_v18 }
0x118b   :  { %v1073_v23 = vpop.permute.xlu1 %1072 }
0x118c   :  { %v1082_v27 = vsel %vm162_vm3, %v3018_v25, %v1073_v23  ;;  %v2241_v25 = vld [vmem:[%s3327_s9] ss:$0 sm:$0xff] }
0x118d   :  { %v1104_v29 = vcombine.low %v2241_v25, %v2241_v25 }
0x11de   :  { %v1046_v58 = vpop.permute.xlu0 %1045 }
0x11df   :  { %v1048_v59 = vmul.f32 %v2730_v56, %v1046_v58 }
0x11e1   :  { %1050 = vrot.lane.b32.xlu0 %v1048_v59, %s2801_s3 }
0x1253   :  { %v1051_v61 = vpop.permute.xlu0 %1050 }
0x1254   :  { %v1053_v62 = vadd.f32 %v1051_v61, %v1043_v60 }
0x1256   :  { %2731 = vtanh.f32 %v1053_v62 }
0x1260   :  { %v2732_v1 = vpop.eup %2731 }
0x1261   :  { %1056 = vrot.lane.b32.xlu0 %v2732_v1, %s2802_s23 }
0x1265   :  { %1061 = vrot.lane.b32.xlu0 %v564_v4, %s2803_s24  ;;  %v1590_v4 = vld [vmem:[%s3328_s10 + $0x8] sm:$0xff] }
0x1266   :  { %v2632_v5 = vpack.c.bf16 %v1590_v4, %v1589_v2 }
0x1268   :  { %2633 = vmatprep.subr.bf16.mxu1 %v2632_v5 }
0x12d3   :  { %v1057_v16 = vpop.permute.xlu0 %1056 }
0x12d4   :  { %v1059_v17 = vmul.f32 %v2730_v56, %v1057_v16  ;;  %v1593_v16 = vld [vmem:[%s3328_s10 + $0x20] sm:$0xff] }
0x12d6   :  { %1068 = vrot.lane.b32.xlu0 %v1059_v17, %s2800_s2 }
0x12d7   :  { %v1062_v19 = vpop.permute.xlu0 %1061 }
0x12da   :  { %1074 = vrot.lane.b32.xlu0 %v3043_v52, %s2800_s2 }
0x1348   :  { %v1069_v21 = vpop.permute.xlu0 %1068 }
0x1349   :  { %v1080_v14 = vsel %vm162_vm3, %v2958_v38, %v1069_v21  ;;  %v1260_v38 = vpop.f32.mrb[12].mxu1  ;;  %v2251_v21 = vld [vmem:[%s3329_s12] ss:$0 sm:$0xff] }
0x134a   :  { %v3129_v24 = vcombine.low %v1080_v14, %v1081_v22  ;;  %v2482_v57 = vpop.f32.mrb[13].mxu1  ;;  %v1603_v22 = vcombine.low %v2251_v21, %v2251_v21 }
0x134c   :  { %v1075_v26 = vpop.permute.xlu0 %1074  ;;  %2471 = vmatprep.mubr.msk.f32.mxu0 %vm76_vm1, %v3129_v24 }
0x134d   :  { %v1083_v52 = vsel %vm162_vm3, %v1062_v19, %v1075_v26 }
0x134e   :  { %v3136_v28 = vcombine.low %v1082_v27, %v1083_v52 }
0x1350   :  { %2472 = vmatmul.mubr.msk.f32.vlgmr.msra.gmra.mrb[8].mxu0 %vm76_vm1, %v3136_v28 }
0x1351   :  { %2625 = vmatpush3.bf16.msra.mxu0 %v3099_v12  ;;  %2489 = vmatprep.mubr.msk.f32.mxu0 %vm2798_vm0, %v2799_v8 }
0x1352   :  { %2487 = vmatprep.subr.mxu0 %v2799_v8 }
0x1355   :  { %2488 = vmatpush3.msk.msra.mxu0 %vm166_vm2, %v3109_v15 }
0x1356   :  { %2629 = vmatprep.subr.bf16.mxu0 %v2797_v3 }
0x1423   :  { %v2473_v31 = vpop.f32.mrb[8].mxu0 }
0x1424   :  { %v3150_v33 = vadd.f32 %v2473_v31, %v1104_v29  ;;  %v1176_v34 = vpop.f32.mrb[9].mxu0 }
0x1425   :  { %v1177_v35 = vadd.f32 %v1176_v34, %v1104_v29 }
0x1427   :  { %v1264_v36 = vadd.f32 %v1260_v38, %v1177_v35  ;;  %v1187_v51 = vcombine.high %v1177_v35, %v1177_v35 }
0x1429   :  { %2733 = vtanh.f32 %v1264_v36  ;;  %v1265_v39 = vsub.f32 0.0, %v1264_v36 }
0x142b   :  { %v1266_v40 = vmul.f32 1.442695, %v1265_v39  ;;  %v1595_v39 = vld [vmem:[%s3330_s11 + $0x8] sm:$0xff] }
0x142d   :  { %2735 = vpow2.f32 %v1266_v40 }
0x1433   :  { %v2734_v37 = vpop.eup %2733 }
0x1434   :  { %1274 = vrot.lane.b32.xlu1 %v2734_v37, %s2800_s2  ;;  %v1594_v37 = vld [vmem:[%s3330_s11] sm:$0xff] }
0x1435   :  { %v2641_v40 = vpack.c.bf16 %v1595_v39, %v1594_v37 }
0x1437   :  { %v2736_v41 = vpop.eup %2735 }
0x1438   :  { %v1268_v42 = vadd.f32 1.0, %v2736_v41  ;;  %v1596_v41 = vld [vmem:[%s3330_s11 + $0x10] sm:$0xf] }
0x143a   :  { %2737 = vrcp.f32 %v1268_v42 }
0x1444   :  { %v2738_v20 = vpop.eup %2737 }
0x1445   :  { %v1272_v44 = vmul.f32 0.0, %v2738_v20 }
0x14a6   :  { %v1275_v32 = vpop.permute.xlu1 %1274 }
0x14a7   :  { %v1277_v43 = vmul.f32 %v2738_v20, %v1275_v32 }
0x14a9   :  { %1279 = vrot.lane.b32.xlu0 %v1277_v43, %s2801_s3 }
0x151b   :  { %v1280_v45 = vpop.permute.xlu0 %1279 }
0x151c   :  { %v1282_v46 = vadd.f32 %v1280_v45, %v1272_v44 }
0x151e   :  { %2739 = vtanh.f32 %v1282_v46 }
0x1528   :  { %v2740_v47 = vpop.eup %2739 }
0x1529   :  { %1285 = vrot.lane.b32.xlu1 %v2740_v47, %s2802_s23 }
0x159b   :  { %v1286_v48 = vpop.permute.xlu1 %1285 }
0x159c   :  { %v1288_v49 = vmul.f32 %v2738_v20, %v1286_v48 }
0x159e   :  { %1290 = vrot.lane.b32.xlu0 %v1288_v49, %s2803_s24 }
0x1610   :  { %v3156_v50 = vpop.permute.xlu0 %1290 }
0x1611   :  { %2490 = vmatmul.mubr.msk.f32.vlgmr.msra.gmra.mrb[10].mxu0 %vm162_vm3, %v3156_v50 }
0x1612   :  { %2631 = vmatpush3.bf16.msra.mxu0 %v3099_v12  ;;  %2507 = vmatprep.mubr.msk.f32.mxu0 %vm2798_vm0, %v2799_v8  ;;  %v1592_v12 = vld [vmem:[%s3328_s10 + $0x18] sm:$0xff] }
0x1613   :  { %2505 = vmatprep.subr.mxu0 %v2799_v8  ;;  %v2636_v13 = vpack.c.bf16 %v1592_v12, %v1591_v11 }
0x1616   :  { %2506 = vmatpush3.msk.msra.mxu0 %vm166_vm2, %v3109_v15 }
0x1617   :  { %2640 = vmatprep.subr.bf16.mxu0 %v2797_v3 }
0x16e4   :  { %v1360_v53 = vpop.f32.mrb[10].mxu0 }
0x16e5   :  { %v1364_v9 = vadd.f32 %v1360_v53, %v1187_v51  ;;  %v2491_v54 = vpop.f32.mrb[11].mxu0 }
0x16e7   :  { %2741 = vtanh.f32 %v1364_v9  ;;  %v1365_v56 = vsub.f32 0.0, %v1364_v9 }
0x16e9   :  { %v1366_v58 = vmul.f32 1.442695, %v1365_v56 }
0x16eb   :  { %2743 = vpow2.f32 %v1366_v58 }
0x16f1   :  { %v2742_v55 = vpop.eup %2741 }
0x16f2   :  { %1374 = vrot.lane.b32.xlu1 %v2742_v55, %s2800_s2 }
0x16f5   :  { %v2744_v59 = vpop.eup %2743 }
0x16f6   :  { %v1368_v60 = vadd.f32 1.0, %v2744_v59 }
0x16f8   :  { %2745 = vrcp.f32 %v1368_v60 }
0x1702   :  { %v2746_v61 = vpop.eup %2745 }
0x1703   :  { %v1372_v63 = vmul.f32 %v2746_v61, %v1282_v46 }
0x1764   :  { %v1375_v62 = vpop.permute.xlu1 %1374 }
0x1765   :  { %v1377_v30 = vmul.f32 %v2746_v61, %v1375_v62 }
0x1767   :  { %1379 = vrot.lane.b32.xlu0 %v1377_v30, %s2801_s3 }
0x17d9   :  { %v1380_v0 = vpop.permute.xlu0 %1379 }
0x17da   :  { %v1382_v1 = vadd.f32 %v1380_v0, %v1372_v63 }
0x17dc   :  { %2747 = vtanh.f32 %v1382_v1 }
0x17e6   :  { %v2748_v6 = vpop.eup %2747 }
0x17e7   :  { %1385 = vrot.lane.b32.xlu1 %v2748_v6, %s2802_s23 }
0x1859   :  { %v1386_v7 = vpop.permute.xlu1 %1385 }
0x185a   :  { %v1388_v10 = vmul.f32 %v2746_v61, %v1386_v7 }
0x185c   :  { %1390 = vrot.lane.b32.xlu0 %v1388_v10, %s2803_s24 }
0x18ce   :  { %v3183_v15 = vpop.permute.xlu0 %1390 }
0x18cf   :  { %2499 = vmatmul.mubr.msk.f32.vlgmr.msra.gmra.mrb[14].mxu1 %vm162_vm3, %v3183_v15 }
0x18d0   :  { %2635 = vmatpush3.bf16.msra.mxu1 %v2632_v5  ;;  %2520 = vmatprep.mubr.msk.f32.mxu1 %vm76_vm1, %v3129_v24 }
0x18d1   :  { %2637 = vmatprep.subr.bf16.mxu1 %v2636_v13 }
0x18d4   :  { %2639 = vmatpush3.bf16.msra.mxu1 %v2636_v13 }
0x18d5   :  { %2518 = vmatprep.subr.mxu1 %v1593_v16 }
0x18d8   :  { %2519 = vmatpush3.msra.mxu1 %v1593_v16 }
0x18d9   :  { %2521 = vmatmul.mubr.msk.f32.vlgmr.msra.gmra.mrb[16].mxu1 %vm76_vm1, %v3136_v28  ;;  %2643 = vmatprep.subr.bf16.mxu1 %v2797_v3 }
0x18da   :  { %2538 = vmatprep.mubr.msk.f32.mxu1 %vm2798_vm0, %v2799_v8  ;;  %2645 = vmatpush3.bf16.msra.mxu1 %v2641_v40 }
0x18db   :  { %2536 = vmatprep.subr.mxu1 %v2799_v8 }
0x18de   :  { %2537 = vmatpush3.msk.msra.mxu1 %vm166_vm2, %v1596_v41 }
0x18df   :  { %2649 = vmatprep.subr.bf16.mxu1 %v2797_v3 }
0x19a2   :  { %v1460_v17 = vpop.f32.mrb[14].mxu1 }
0x19a3   :  { %v1464_v18 = vadd.f32 %v1460_v17, %v3150_v33  ;;  %v2500_v19 = vpop.f32.mrb[15].mxu1 }
0x19a5   :  { %2749 = vtanh.f32 %v1464_v18  ;;  %v1465_v27 = vsub.f32 0.0, %v1464_v18 }
0x19a7   :  { %v1466_v52 = vmul.f32 1.442695, %v1465_v27 }
0x19a9   :  { %2751 = vpow2.f32 %v1466_v52 }
0x19ac   :  { %v2522_v14 = vpop.f32.mrb[16].mxu1 }
0x19ad   :  { %v1671_v23 = vpop.f32.mrb[17].mxu1  ;;  %v1677_v44 = vadd.f32 %v2522_v14, %v1603_v22 }
0x19ae   :  { %v3201_v24 = vadd.f32 %v1671_v23, %v1603_v22 }
0x19af   :  { %v2750_v26 = vpop.eup %2749  ;;  %v1683_v46 = vcombine.high %v1677_v44, %v1677_v44 }
0x19b0   :  { %1474 = vrot.lane.b32.xlu1 %v2750_v26, %s2800_s2  ;;  %v1682_v23 = vcombine.high %v3201_v24, %v3201_v24 }
0x19b3   :  { %v2752_v28 = vpop.eup %2751 }
0x19b4   :  { %v1468_v38 = vadd.f32 1.0, %v2752_v28 }
0x19b6   :  { %2753 = vrcp.f32 %v1468_v38 }
0x19c0   :  { %v2754_v57 = vpop.eup %2753 }
0x19c1   :  { %v1472_v31 = vmul.f32 %v2754_v57, %v1382_v1 }
0x1a22   :  { %v1475_v25 = vpop.permute.xlu1 %1474 }
0x1a23   :  { %v1477_v29 = vmul.f32 %v2754_v57, %v1475_v25 }
0x1a25   :  { %1479 = vrot.lane.b32.xlu0 %v1477_v29, %s2801_s3 }
0x1a97   :  { %v1480_v34 = vpop.permute.xlu0 %1479 }
0x1a98   :  { %v3205_v35 = vadd.f32 %v1480_v34, %v1472_v31 }
0x1a9a   :  { %2755 = vtanh.f32 %v3205_v35 }
0x1aa4   :  { %v2756_v36 = vpop.eup %2755 }
0x1aa5   :  { %1485 = vrot.lane.b32.xlu1 %v2756_v36, %s2802_s23 }
0x1b17   :  { %v1486_v42 = vpop.permute.xlu1 %1485 }
0x1b18   :  { %v1488_v20 = vmul.f32 %v2754_v57, %v1486_v42  ;;  %v1188_v42 = vcombine.high %v3150_v33, %v3150_v33 }
0x1b1a   :  { %1490 = vrot.lane.b32.xlu0 %v1488_v20, %s2803_s24 }
0x1b8c   :  { %v3222_v32 = vpop.permute.xlu0 %1490 }
0x1b8d   :  { %2508 = vmatmul.mubr.msk.f32.vlgmr.msra.gmra.mrb[12].mxu0 %vm162_vm3, %v3222_v32 }
0x1b8e   :  { %2642 = vmatpush3.bf16.msra.mxu0 %v2641_v40  ;;  %2529 = vmatprep.mubr.msk.f32.mxu0 %vm2798_vm0, %v2799_v8 }
0x1b8f   :  { %2527 = vmatprep.subr.mxu0 %v2799_v8 }
0x1b92   :  { %2528 = vmatpush3.msk.msra.mxu0 %vm166_vm2, %v1596_v41 }
0x1b93   :  { %2530 = vmatmul.mubr.f32.vlgmr.msra.gmra.mrb[14].mxu0 %v2799_v8  ;;  %2646 = vmatprep.subr.bf16.mxu0 %v2797_v3 }
0x1b94   :  { %2648 = vmatpush3.bf16.msra.mxu0 %v2641_v40  ;;  %2547 = vmatprep.mubr.msk.f32.mxu0 %vm2798_vm0, %v2799_v8 }
0x1b95   :  { %2545 = vmatprep.subr.mxu0 %v2799_v8 }
0x1b98   :  { %2546 = vmatpush3.msk.msra.mxu0 %vm166_vm2, %v1596_v41 }
0x1c60   :  { %v3236_v43 = vpop.f32.mrb[12].mxu0 }
0x1c61   :  { %v2509_v45 = vpop.f32.mrb[13].mxu0  ;;  %v1564_v20 = vadd.f32 %v3236_v43, %v1188_v42 }
0x1c66   :  { %v1755_v47 = vpop.f32.mrb[14].mxu0 }
0x1c67   :  { %v1759_v48 = vadd.f32 %v1755_v47, %v1683_v46  ;;  %v2531_v49 = vpop.f32.mrb[15].mxu0  ;;  %v1565_v47 = vsub.f32 0.0, %v1564_v20 }
0x1c69   :  { %2757 = vtanh.f32 %v1759_v48  ;;  %v1760_v3 = vsub.f32 0.0, %v1759_v48  ;;  %v1566_v48 = vmul.f32 1.442695, %v1565_v47 }
0x1c6b   :  { %v1761_v53 = vmul.f32 1.442695, %v1760_v3 }
0x1c6d   :  { %2759 = vpow2.f32 %v1761_v53 }
0x1c73   :  { %v2758_v51 = vpop.eup %2757 }
0x1c74   :  { %1769 = vrot.lane.b32.xlu1 %v2758_v51, %s2800_s2 }
0x1c77   :  { %v2760_v9 = vpop.eup %2759 }
0x1c78   :  { %v1763_v54 = vadd.f32 1.0, %v2760_v9 }
0x1c7a   :  { %2761 = vrcp.f32 %v1763_v54 }
0x1c84   :  { %v2762_v55 = vpop.eup %2761 }
0x1c85   :  { %v1767_v59 = vmul.f32 0.0, %v2762_v55 }
0x1ce6   :  { %v1770_v56 = vpop.permute.xlu1 %1769 }
0x1ce7   :  { %v1772_v58 = vmul.f32 %v2762_v55, %v1770_v56 }
0x1ce9   :  { %1774 = vrot.lane.b32.xlu0 %v1772_v58, %s2801_s3 }
0x1d5b   :  { %v1775_v60 = vpop.permute.xlu0 %1774 }
0x1d5c   :  { %v1777_v61 = vadd.f32 %v1775_v60, %v1767_v59 }
0x1d5e   :  { %2763 = vtanh.f32 %v1777_v61 }
0x1d68   :  { %v2764_v62 = vpop.eup %2763 }
0x1d69   :  { %1780 = vrot.lane.b32.xlu1 %v2764_v62, %s2802_s23 }
0x1ddb   :  { %v1781_v30 = vpop.permute.xlu1 %1780 }
0x1ddc   :  { %v3241_v63 = vmul.f32 %v2762_v55, %v1781_v30 }
0x1dde   :  { %1785 = vrot.lane.b32.xlu0 %v3241_v63, %s2803_s24 }
0x1e50   :  { %v1786_v0 = vpop.permute.xlu0 %1785 }
0x1e51   :  { %2539 = vmatmul.mubr.msk.f32.vlgmr.msra.gmra.mrb[18].mxu1 %vm162_vm3, %v1786_v0 }
0x1e52   :  { %2651 = vmatpush3.bf16.msra.mxu1 %v2641_v40  ;;  %2556 = vmatprep.mubr.msk.f32.mxu1 %vm2798_vm0, %v2799_v8 }
0x1e53   :  { %2554 = vmatprep.subr.mxu1 %v2799_v8 }
0x1e56   :  { %2555 = vmatpush3.msk.msra.mxu1 %vm166_vm2, %v1596_v41 }
0x1f24   :  { %v1855_v1 = vpop.f32.mrb[18].mxu1 }
0x1f25   :  { %v1859_v2 = vadd.f32 %v1855_v1, %v1677_v44  ;;  %v2540_v4 = vpop.f32.mrb[19].mxu1 }
0x1f27   :  { %2765 = vtanh.f32 %v1859_v2  ;;  %v1860_v6 = vsub.f32 0.0, %v1859_v2 }
0x1f29   :  { %v1861_v7 = vmul.f32 1.442695, %v1860_v6 }
0x1f2b   :  { %2767 = vpow2.f32 %v1861_v7 }
0x1f31   :  { %v2766_v5 = vpop.eup %2765 }
0x1f32   :  { %1869 = vrot.lane.b32.xlu1 %v2766_v5, %s2800_s2 }
0x1f35   :  { %v2768_v10 = vpop.eup %2767 }
0x1f36   :  { %v1863_v11 = vadd.f32 1.0, %v2768_v10  ;;  %v2109_v10 = vld [vmem:[%s3331_s13 + $0x8] sm:$0xff] }
0x1f38   :  { %2769 = vrcp.f32 %v1863_v11 }
0x1f42   :  { %v2770_v12 = vpop.eup %2769 }
0x1f43   :  { %v1867_v8 = vmul.f32 %v2770_v12, %v1777_v61 }
0x1fa4   :  { %v1870_v13 = vpop.permute.xlu1 %1869 }
0x1fa5   :  { %v1872_v16 = vmul.f32 %v2770_v12, %v1870_v13 }
0x1fa7   :  { %1874 = vrot.lane.b32.xlu0 %v1872_v16, %s2801_s3 }
0x2019   :  { %v1875_v17 = vpop.permute.xlu0 %1874 }
0x201a   :  { %v1877_v18 = vadd.f32 %v1875_v17, %v1867_v8  ;;  %v2110_v8 = vld [vmem:[%s3331_s13 + $0x10] sm:$0xff]  ;;  %v2111_v17 = vld [vmem:[%s3331_s13 + $0x18] sm:$0xff] }
0x201c   :  { %2771 = vtanh.f32 %v1877_v18 }
0x2026   :  { %v2772_v19 = vpop.eup %2771 }
0x2027   :  { %1880 = vrot.lane.b32.xlu1 %v2772_v19, %s2802_s23  ;;  %v2112_v19 = vld [vmem:[%s3331_s13 + $0x20] sm:$0xff] }
0x2099   :  { %v1881_v21 = vpop.permute.xlu1 %1880 }
0x209a   :  { %v1883_v22 = vmul.f32 %v2770_v12, %v1881_v21 }
0x209c   :  { %1885 = vrot.lane.b32.xlu0 %v1883_v22, %s2803_s24 }
0x210e   :  { %v1886_v14 = vpop.permute.xlu0 %1885 }
0x210f   :  { %2548 = vmatmul.mubr.msk.f32.vlgmr.msra.gmra.mrb[16].mxu0 %vm162_vm3, %v1886_v14 }
0x21e2   :  { %v1955_v26 = vpop.f32.mrb[16].mxu0 }
0x21e3   :  { %v1959_v27 = vadd.f32 %v1955_v26, %v1682_v23  ;;  %v2549_v52 = vpop.f32.mrb[17].mxu0 }
0x21e5   :  { %2773 = vtanh.f32 %v1959_v27  ;;  %v1960_v38 = vsub.f32 0.0, %v1959_v27 }
0x21e7   :  { %v1961_v57 = vmul.f32 1.442695, %v1960_v38 }
0x21e9   :  { %2775 = vpow2.f32 %v1961_v57 }
0x21ef   :  { %v2774_v28 = vpop.eup %2773 }
0x21f0   :  { %1969 = vrot.lane.b32.xlu1 %v2774_v28, %s2800_s2 }
0x21f3   :  { %v2776_v25 = vpop.eup %2775 }
0x21f4   :  { %v1963_v29 = vadd.f32 1.0, %v2776_v25 }
0x21f6   :  { %2777 = vrcp.f32 %v1963_v29 }
0x2200   :  { %v2778_v31 = vpop.eup %2777 }
0x2201   :  { %v1967_v37 = vmul.f32 %v2778_v31, %v1877_v18  ;;  %v2656_v18 = vpack.c.bf16 %v2111_v17, %v2110_v8 }
0x2262   :  { %v1970_v34 = vpop.permute.xlu1 %1969 }
0x2263   :  { %v1972_v36 = vmul.f32 %v2778_v31, %v1970_v34 }
0x2265   :  { %1974 = vrot.lane.b32.xlu0 %v1972_v36, %s2801_s3 }
0x22d7   :  { %v1975_v39 = vpop.permute.xlu0 %1974 }
0x22d8   :  { %v1977_v40 = vadd.f32 %v1975_v39, %v1967_v37 }
0x22da   :  { %2779 = vtanh.f32 %v1977_v40 }
0x22db   :  { %2781 = vtanh.f32 %v1564_v20 }
0x22dc   :  { %2783 = vpow2.f32 %v1566_v48 }
0x22e4   :  { %v2780_v41 = vpop.eup %2779 }
0x22e5   :  { %1980 = vrot.lane.b32.xlu1 %v2780_v41, %s2802_s23  ;;  %v2782_v46 = vpop.eup %2781 }
0x22e6   :  { %v2784_v49 = vpop.eup %2783 }
0x22e7   :  { %v1568_v51 = vadd.f32 1.0, %v2784_v49 }
0x22e9   :  { %2785 = vrcp.f32 %v1568_v51 }
0x22f3   :  { %v2786_v33 = vpop.eup %2785 }
0x22f4   :  { %v1572_v9 = vmul.f32 %v2786_v33, %v3205_v35 }
0x2357   :  { %v1981_v44 = vpop.permute.xlu1 %1980 }
0x2358   :  { %v1983_v45 = vmul.f32 %v2778_v31, %v1981_v44 }
0x235a   :  { %1985 = vrot.lane.b32.xlu0 %v1983_v45, %s2803_s24 }
0x235e   :  { %1574 = vrot.lane.b32.xlu0 %v2782_v46, %s2800_s2 }
0x23cc   :  { %v1986_v3 = vpop.permute.xlu0 %1985 }
0x23cd   :  { %2557 = vmatmul.mubr.msk.f32.vlgmr.msra.gmra.mrb[20].mxu1 %vm162_vm3, %v1986_v3 }
0x23d0   :  { %v1575_v53 = vpop.permute.xlu0 %1574 }
0x23d1   :  { %v1577_v43 = vmul.f32 %v2786_v33, %v1575_v53 }
0x23d3   :  { %1579 = vrot.lane.b32.xlu0 %v1577_v43, %s2801_s3 }
0x2445   :  { %v1580_v54 = vpop.permute.xlu0 %1579 }
0x2446   :  { %v1582_v55 = vadd.f32 %v1580_v54, %v1572_v9 }
0x2448   :  { %2787 = vtanh.f32 %v1582_v55 }
0x2452   :  { %v2788_v56 = vpop.eup %2787 }
0x2453   :  { %1585 = vrot.lane.b32.xlu0 %v2788_v56, %s2802_s23 }
0x2457   :  { %2094 = vrot.lane.b32.xlu0 %v1983_v45, %s2800_s2 }
0x245b   :  { %2096 = vrot.lane.b32.xlu0 %v1883_v22, %s2800_s2 }
0x24a0   :  { %v2055_v58 = vpop.f32.mrb[20].mxu1 }
0x24a1   :  { %v2059_v59 = vadd.f32 %v2055_v58, %v3201_v24  ;;  %v2558_v60 = vpop.f32.mrb[21].mxu1  ;;  %v2108_v24 = vld [vmem:[%s3331_s13] sm:$0xff] }
0x24a2   :  { %v2652_v11 = vpack.c.bf16 %v2109_v10, %v2108_v24 }
0x24a3   :  { %2789 = vtanh.f32 %v2059_v59  ;;  %v2060_v62 = vsub.f32 0.0, %v2059_v59 }
0x24a4   :  { %2653 = vmatprep.subr.bf16.mxu0 %v2652_v11 }
0x24a5   :  { %v2061_v35 = vmul.f32 1.442695, %v2060_v62  ;;  %2655 = vmatpush3.bf16.msra.mxu0 %v2652_v11 }
0x24a6   :  { %2657 = vmatprep.subr.bf16.mxu0 %v2656_v18 }
0x24a7   :  { %2791 = vpow2.f32 %v2061_v35 }
0x24a9   :  { %2659 = vmatpush3.bf16.msra.mxu0 %v2656_v18 }
0x24aa   :  { %2567 = vmatprep.subr.mxu0 %v2112_v19 }
0x24ad   :  { %v2790_v61 = vpop.eup %2789  ;;  %2568 = vmatpush3.msra.mxu0 %v2112_v19 }
0x24ae   :  { %2069 = vrot.lane.b32.xlu1 %v2790_v61, %s2800_s2 }
0x24b1   :  { %v2792_v30 = vpop.eup %2791 }
0x24b2   :  { %v2063_v0 = vadd.f32 1.0, %v2792_v30 }
0x24b4   :  { %2793 = vrcp.f32 %v2063_v0 }
0x24be   :  { %v2794_v1 = vpop.eup %2793 }
0x24bf   :  { %v2067_v5 = vmul.f32 %v2794_v1, %v1977_v40 }
0x24c5   :  { %v1586_v13 = vpop.permute.xlu0 %1585 }
0x24c6   :  { %v1588_v16 = vmul.f32 %v2786_v33, %v1586_v13 }
0x24c9   :  { %v2095_v14 = vpop.permute.xlu0 %2094 }
0x24ca   :  { %v2105_v27 = vsel %vm162_vm3, %v3183_v15, %v2095_v14  ;;  %v2261_v15 = vld [vmem:[%s3332_s14] ss:$0 sm:$0xff] }
0x24cb   :  { %v2125_v31 = vcombine.low %v2261_v15, %v2261_v15 }
0x24cd   :  { %v2097_v28 = vpop.permute.xlu0 %2096 }
0x24ce   :  { %v2106_v25 = vsel %vm162_vm3, %v3222_v32, %v2097_v28 }
0x2520   :  { %v2070_v2 = vpop.permute.xlu1 %2069 }
0x2521   :  { %v2072_v4 = vmul.f32 %v2794_v1, %v2070_v2 }
0x2523   :  { %2074 = vrot.lane.b32.xlu1 %v2072_v4, %s2801_s3 }
0x2595   :  { %v2075_v6 = vpop.permute.xlu1 %2074 }
0x2596   :  { %v2077_v7 = vadd.f32 %v2075_v6, %v2067_v5 }
0x2598   :  { %2795 = vtanh.f32 %v2077_v7 }
0x25a2   :  { %v2796_v12 = vpop.eup %2795 }
0x25a3   :  { %2080 = vrot.lane.b32.xlu1 %v2796_v12, %s2802_s23 }
0x25a7   :  { %2085 = vrot.lane.b32.xlu1 %v1588_v16, %s2803_s24 }
0x2615   :  { %v2081_v21 = vpop.permute.xlu1 %2080 }
0x2616   :  { %v2083_v22 = vmul.f32 %v2794_v1, %v2081_v21 }
0x2618   :  { %2092 = vrot.lane.b32.xlu1 %v2083_v22, %s2800_s2 }
0x2619   :  { %v2086_v23 = vpop.permute.xlu1 %2085 }
0x261c   :  { %2098 = vrot.lane.b32.xlu1 %v3241_v63, %s2800_s2 }
0x268a   :  { %v2093_v26 = vpop.permute.xlu1 %2092 }
0x268b   :  { %v2104_v52 = vsel %vm162_vm3, %v3156_v50, %v2093_v26 }
0x268c   :  { %v2123_v38 = vcombine.low %v2104_v52, %v2105_v27 }
0x268e   :  { %v2099_v57 = vpop.permute.xlu1 %2098  ;;  %2569 = vmatprep.mubr.msk.f32.mxu0 %vm76_vm1, %v2123_v38 }
0x268f   :  { %v2107_v29 = vsel %vm162_vm3, %v2086_v23, %v2099_v57 }
0x2690   :  { %v2124_v63 = vcombine.low %v2106_v25, %v2107_v29 }
0x2692   :  { %2570 = vmatmul.mubr.msk.f32.vlgmr.msra.gmra.mrb[18].mxu0 %vm76_vm1, %v2124_v63 }
0x2765   :  { %v2571_v34 = vpop.f32.mrb[18].mxu0 }
0x2766   :  { %v2203_v50 = vadd.f32 %v2571_v34, %v2125_v31  ;;  %v2197_v36 = vpop.f32.mrb[19].mxu0 }
0x2767   :  { %v2198_v37 = vadd.f32 %v2197_v36, %v2125_v31 }
0x2768   :  { %v2209_v39 = vcombine.high %v2203_v50, %v2203_v50  ;;  %2215 = vst.msk [vmem:[%s3333_s15 + $0x8] sm:$0xf] %vm2212_vm4, %v2203_v50 }
0x2769   :  { %v2208_v32 = vcombine.high %v2198_v37, %v2198_v37  ;;  %2213 = vst.msk [vmem:[%s3333_s15] sm:$0xf] %vm2212_vm4, %v2198_v37 }
0x276a   :  { %2216 = vst.msk [vmem:[%s3333_s15 + $0xc] sm:$0xf] %vm2212_vm4, %v2209_v39 }
0x276b   :  { %2214 = vst.msk [vmem:[%s3333_s15 + $0x4] sm:$0xf] %vm2212_vm4, %v2208_v32 }

// kernel: cnn_blstm_forward.2
= control target key start
LH: loop header
LB: loop body
LE: loop exit
PB: predicated region body
PF: predicated region fallthrough
CT: control target
= control target key end

     0   :  { %s5397_s6 = smov 19   ;;  %s5398_s7 = smov 38   ;;  %vm572_vm0 = vcmask 1040384   ;;  %vm5400_vm1 = vmmov 1   ;;  %vm403_vm3 = vcmask 154624   ;;  %vm436_vm4 = vcmask 310272   ;;  %s8189_s0 = inlined_call_operand.smem [shape: u32[34], index: -1, kind: input, shape index: {}] }
   0x1   :  { %s5443_s5 = sld [smem:[%s8189_s0]]   ;;  %s5399_s8 = smov 1   ;;  %vm5222_vm2 = vmpackc.low %vm572_vm0, %vm5400_vm1  ;;  %vm475_vm5 = vcmask 465920   ;;  %v5401_v55 = vmov 0.0   ;;  %vm897_vm8 = vcmask 39936  }
   0x2   :  { %s4580_s11 = sld [smem:[%s8189_s0 + %s5399_s8]]   ;;  %s5402_s12 = smov 2  }
   0x3   :  { %s4581_s15 = sld [smem:[%s8189_s0 + %s5402_s12]]   ;;  %s5403_s16 = smov 3  }
   0x4   :  { %s4582_s19 = sld [smem:[%s8189_s0 + %s5403_s16]]   ;;  %s5404_s20 = smov 4  }
   0x5   :  { %s4583_s23 = sld [smem:[%s8189_s0 + %s5404_s20]]   ;;  %s5405_s24 = smov 5  }
   0x6   :  { %s6165_s27 = sld [smem:[%s8189_s0 + %s5405_s24]]   ;;  %s5406_s28 = smov 10  }
   0x7   :  { %v5446_v0 = vld [vmem:[%s5443_s5] sm:$0xff]  ;;  %v5449_v1 = vld [vmem:[%s5443_s5 + $0x10] sm:$0xff]  ;;  %v5456_v2 = vld [vmem:[%s5443_s5 + $0x8] sm:$0xff]  ;;  %s5407_s29 = smov 6   ;;  %s5408_s3 = smov 9  }
   0x8   :  { %213 = vrot.lane.b32.xlu0 %v5446_v0, %s5397_s6  ;;  %310 = vrot.lane.b32.xlu1 %v5449_v1, %s5398_s7  ;;  %v5459_v3 = vld [vmem:[%s5443_s5 + $0x18] sm:$0xff]  ;;  %v5473_v4 = vld [vmem:[%s5443_s5 + $0x20] sm:$0xff]  ;;  %s4585_s2 = sld [smem:[%s8189_s0 + %s5407_s29]]   ;;  %s5409_s8 = smov 7  }
   0x9   :  { %v5476_v5 = vld [vmem:[%s5443_s5 + $0x28] sm:$0xff]  ;;  %v170_v6 = vld [vmem:[%s4580_s11] sm:$0xff]  ;;  %v172_v9 = vld [vmem:[%s4580_s11 + $0x10] sm:$0xff]  ;;  %s5410_s12 = smov 8   ;;  %s4589_s18 = sld [smem:[%s8189_s0 + %s5406_s28]]  }
   0xa   :  { %v171_v7 = vld [vmem:[%s4580_s11 + $0x8] sm:$0xff]  ;;  %v173_v10 = vld [vmem:[%s4580_s11 + $0x18] sm:$0xff]  ;;  %v174_v12 = vld [vmem:[%s4580_s11 + $0x20] sm:$0xff]  ;;  %s5418_s16 = smov 16   ;;  %s4598_s30 = sld [smem:[%s8189_s0 + %s5397_s6]]  }
   0xb   :  { %v5209_v8 = vpack.c.bf16 %v171_v7, %v170_v6  ;;  %v5213_v11 = vpack.c.bf16 %v173_v10, %v172_v9  ;;  %v175_v13 = vld [vmem:[%s4580_s11 + $0x28] sm:$0xff]  ;;  %v176_v15 = vld [vmem:[%s4580_s11 + $0x30] sm:$0xff]  ;;  %v177_v16 = vld [vmem:[%s4580_s11 + $0x38] sm:$0x1]  ;;  %s4586_s11 = sld [smem:[%s8189_s0 + %s5409_s8]]   ;;  %s5416_s8 = smov 17  }
   0xc   :  { %215 = vrot.lane.b32.xlu0 %v5456_v2, %s5397_s6  ;;  %312 = vrot.lane.b32.xlu1 %v5459_v3, %s5398_s7  ;;  %v5217_v14 = vpack.c.bf16 %v175_v13, %v174_v12  ;;  %v5487_v17 = vld [vmem:[%s5443_s5 + $0x30] sm:$0xff]  ;;  %v5490_v18 = vld [vmem:[%s5443_s5 + $0x38] sm:$0xff]  ;;  %v5221_v19 = vpack.c.bf16 %v177_v16, %v176_v15  ;;  %s5423_s10 = smov 25   ;;  %s5424_s14 = smov 23  }
   0xd   :  { %5210 = vmatprep.subr.bf16.mxu0 %v5209_v8  ;;  %v5502_v20 = vld [vmem:[%s5443_s5 + $0x40] sm:$0xff]  ;;  %v5505_v21 = vld [vmem:[%s5443_s5 + $0x48] sm:$0xff]  ;;  %v5516_v22 = vld [vmem:[%s5443_s5 + $0x50] sm:$0xff]  ;;  %s7995_s13 = sld [smem:[%s8189_s0 + %s5423_s10]]   ;;  %s5428_s29 = smov 27  }
   0xe   :  { %5212 = vmatpush3.bf16.msra.mxu0 %v5209_v8  ;;  %v5519_v23 = vld [vmem:[%s5443_s5 + $0x58] sm:$0xff]  ;;  %v5530_v24 = vld [vmem:[%s5443_s5 + $0x60] sm:$0xff]  ;;  %v5533_v25 = vld [vmem:[%s5443_s5 + $0x68] sm:$0xff]  ;;  %s4602_s17 = sld [smem:[%s8189_s0 + %s5424_s14]]  }
   0xf   :  { %5214 = vmatprep.subr.bf16.mxu0 %v5213_v11  ;;  %v5544_v26 = vld [vmem:[%s5443_s5 + $0x70] sm:$0xff]  ;;  %v5547_v27 = vld [vmem:[%s5443_s5 + $0x78] sm:$0xff]  ;;  %v5558_v28 = vld [vmem:[%s5443_s5 + $0x80] sm:$0xff] }
  0x10   :  { %217 = vrot.lane.b32.xlu0 %v5449_v1, %s5397_s6  ;;  %219 = vrot.lane.b32.xlu1 %v5459_v3, %s5397_s6  ;;  %v5561_v29 = vld [vmem:[%s5443_s5 + $0x88] sm:$0xff]  ;;  %v5572_v30 = vld [vmem:[%s5443_s5 + $0x90] sm:$0xff] }
  0x11   :  { %v5575_v31 = vld [vmem:[%s5443_s5 + $0x98] sm:$0xff]  ;;  %v5586_v32 = vld [vmem:[%s5443_s5 + $0xa0] sm:$0xff]  ;;  %v5589_v33 = vld [vmem:[%s5443_s5 + $0xa8] sm:$0xff] }
  0x12   :  { %5216 = vmatpush3.bf16.msra.mxu0 %v5213_v11  ;;  %v5600_v34 = vld [vmem:[%s5443_s5 + $0xb0] sm:$0xff]  ;;  %v5603_v35 = vld [vmem:[%s5443_s5 + $0xb8] sm:$0xff]  ;;  %v5614_v36 = vld [vmem:[%s5443_s5 + $0xc0] sm:$0xff] }
  0x13   :  { %5218 = vmatprep.subr.bf16.mxu0 %v5217_v14  ;;  %v5617_v37 = vld [vmem:[%s5443_s5 + $0xc8] sm:$0xff]  ;;  %v5628_v38 = vld [vmem:[%s5443_s5 + $0xd0] sm:$0xff]  ;;  %v5631_v39 = vld [vmem:[%s5443_s5 + $0xd8] sm:$0xff] }
  0x14   :  { %314 = vrot.lane.b32.xlu0 %v5473_v4, %s5398_s7  ;;  %316 = vrot.lane.b32.xlu1 %v5476_v5, %s5398_s7  ;;  %v5642_v40 = vld [vmem:[%s5443_s5 + $0xe0] sm:$0xff]  ;;  %v5645_v41 = vld [vmem:[%s5443_s5 + $0xe8] sm:$0xff] }
  0x15   :  { %v168_v42 = vld [vmem:[%s5443_s5 + $0xf0] sm:$0xff]  ;;  %v169_v43 = vld [vmem:[%s5443_s5 + $0xf8] sm:$0xff]  ;;  %s5422_s5 = smov 22  }
  0x16   :  { %5220 = vmatpush3.bf16.msra.mxu0 %v5217_v14  ;;  %s4601_s9 = sld [smem:[%s8189_s0 + %s5422_s5]]  }
  0x17   :  { %5223 = vmatprep.subr.msk.bf16.mxu0 %vm5222_vm2, %v5221_v19 }
  0x18   :  { %221 = vrot.lane.b32.xlu0 %v5473_v4, %s5397_s6  ;;  %223 = vrot.lane.b32.xlu1 %v5476_v5, %s5397_s6 }
  0x1a   :  { %5226 = vmatpush3.bf16.msk.msra.mxu0 %vm5222_vm2, %v5221_v19 }
  0x1c   :  { %318 = vrot.lane.b32.xlu0 %v5487_v17, %s5398_s7  ;;  %320 = vrot.lane.b32.xlu1 %v5490_v18, %s5398_s7 }
  0x20   :  { %225 = vrot.lane.b32.xlu0 %v5487_v17, %s5397_s6  ;;  %227 = vrot.lane.b32.xlu1 %v5490_v18, %s5397_s6 }
  0x24   :  { %322 = vrot.lane.b32.xlu0 %v5502_v20, %s5398_s7  ;;  %324 = vrot.lane.b32.xlu1 %v5505_v21, %s5398_s7 }
  0x28   :  { %229 = vrot.lane.b32.xlu0 %v5502_v20, %s5397_s6  ;;  %231 = vrot.lane.b32.xlu1 %v5505_v21, %s5397_s6 }
  0x2c   :  { %326 = vrot.lane.b32.xlu0 %v5516_v22, %s5398_s7  ;;  %328 = vrot.lane.b32.xlu1 %v5519_v23, %s5398_s7 }
  0x30   :  { %233 = vrot.lane.b32.xlu0 %v5516_v22, %s5397_s6  ;;  %235 = vrot.lane.b32.xlu1 %v5519_v23, %s5397_s6 }
  0x34   :  { %330 = vrot.lane.b32.xlu0 %v5530_v24, %s5398_s7  ;;  %332 = vrot.lane.b32.xlu1 %v5533_v25, %s5398_s7 }
  0x38   :  { %237 = vrot.lane.b32.xlu0 %v5530_v24, %s5397_s6  ;;  %239 = vrot.lane.b32.xlu1 %v5533_v25, %s5397_s6 }
  0x3c   :  { %334 = vrot.lane.b32.xlu0 %v5544_v26, %s5398_s7  ;;  %336 = vrot.lane.b32.xlu1 %v5547_v27, %s5398_s7 }
  0x40   :  { %241 = vrot.lane.b32.xlu0 %v5544_v26, %s5397_s6  ;;  %243 = vrot.lane.b32.xlu1 %v5547_v27, %s5397_s6 }
  0x44   :  { %338 = vrot.lane.b32.xlu0 %v5558_v28, %s5398_s7  ;;  %340 = vrot.lane.b32.xlu1 %v5561_v29, %s5398_s7 }
  0x48   :  { %245 = vrot.lane.b32.xlu0 %v5558_v28, %s5397_s6  ;;  %247 = vrot.lane.b32.xlu1 %v5561_v29, %s5397_s6 }
  0x4c   :  { %342 = vrot.lane.b32.xlu0 %v5572_v30, %s5398_s7  ;;  %344 = vrot.lane.b32.xlu1 %v5575_v31, %s5398_s7 }
  0x50   :  { %249 = vrot.lane.b32.xlu0 %v5572_v30, %s5397_s6  ;;  %251 = vrot.lane.b32.xlu1 %v5575_v31, %s5397_s6 }
  0x54   :  { %346 = vrot.lane.b32.xlu0 %v5586_v32, %s5398_s7  ;;  %348 = vrot.lane.b32.xlu1 %v5589_v33, %s5398_s7 }
  0x58   :  { %253 = vrot.lane.b32.xlu0 %v5586_v32, %s5397_s6  ;;  %255 = vrot.lane.b32.xlu1 %v5589_v33, %s5397_s6 }
  0x5c   :  { %350 = vrot.lane.b32.xlu0 %v5600_v34, %s5398_s7  ;;  %352 = vrot.lane.b32.xlu1 %v5603_v35, %s5398_s7 }
  0x60   :  { %257 = vrot.lane.b32.xlu0 %v5600_v34, %s5397_s6  ;;  %259 = vrot.lane.b32.xlu1 %v5603_v35, %s5397_s6 }
  0x64   :  { %354 = vrot.lane.b32.xlu0 %v5614_v36, %s5398_s7  ;;  %356 = vrot.lane.b32.xlu1 %v5617_v37, %s5398_s7 }
  0x68   :  { %261 = vrot.lane.b32.xlu0 %v5614_v36, %s5397_s6  ;;  %263 = vrot.lane.b32.xlu1 %v5617_v37, %s5397_s6 }
  0x6c   :  { %358 = vrot.lane.b32.xlu0 %v5628_v38, %s5398_s7  ;;  %360 = vrot.lane.b32.xlu1 %v5631_v39, %s5398_s7 }
  0x70   :  { %265 = vrot.lane.b32.xlu0 %v5628_v38, %s5397_s6  ;;  %267 = vrot.lane.b32.xlu1 %v5631_v39, %s5397_s6 }
  0x74   :  { %362 = vrot.lane.b32.xlu0 %v5642_v40, %s5398_s7  ;;  %364 = vrot.lane.b32.xlu1 %v5645_v41, %s5398_s7 }
  0x78   :  { %269 = vrot.lane.b32.xlu0 %v5642_v40, %s5397_s6  ;;  %271 = vrot.lane.b32.xlu1 %v5645_v41, %s5397_s6 }
  0x7a   :  { %v214_v44 = vpop.permute.xlu0 %213  ;;  %v311_v45 = vpop.permute.xlu1 %310 }
  0x7b   :  { %v404_v46 = vsel %vm403_vm3, 0.0, %v214_v44 }
  0x7c   :  { %366 = vrot.lane.b32.xlu0 %v168_v42, %s5398_s7  ;;  %368 = vrot.lane.b32.xlu1 %v169_v43, %s5398_s7  ;;  %v437_v47 = vsel %vm436_vm4, %v404_v46, %v311_v45 }
  0x7d   :  { %4943 = vmatprep.mubr.msk.f32.mxu0 %vm475_vm5, %v437_v47 }
  0x7e   :  { %v216_v48 = vpop.permute.xlu0 %215  ;;  %v313_v49 = vpop.permute.xlu1 %312 }
  0x7f   :  { %v405_v50 = vsel %vm403_vm3, 0.0, %v216_v48 }
  0x80   :  { %v438_v51 = vsel %vm436_vm4, %v405_v50, %v313_v49  ;;  %273 = vrot.lane.b32.xlu0 %v168_v42, %s5397_s6  ;;  %275 = vrot.lane.b32.xlu1 %v169_v43, %s5397_s6  ;;  %s5421_s6 = smov 40  }
  0x81   :  { %4944 = vmatmul.mubr.msk.f32.vlgmr.msra.gmra.mrb[0].mxu0 %vm475_vm5, %v438_v51 }
  0x82   :  { %v218_v52 = vpop.permute.xlu0 %217  ;;  %v220_v53 = vpop.permute.xlu1 %219 }
  0x83   :  { %v407_v54 = vsel %vm403_vm3, %v5456_v2, %v220_v53  ;;  %v406_v56 = vsel %vm403_vm3, %v5446_v0, %v218_v52 }
  0x84   :  { %370 = vrot.lane.b32.xlu0 %v5401_v55, %s5398_s7  ;;  %s4588_s7 = sld [smem:[%s8189_s0 + %s5408_s3]]   ;;  %s5415_s3 = smov 14  }
  0x86   :  { %v315_v57 = vpop.permute.xlu0 %314  ;;  %v317_v58 = vpop.permute.xlu1 %316 }
  0x87   :  { %v439_v59 = vsel %vm436_vm4, %v406_v56, %v315_v57  ;;  %v440_v60 = vsel %vm436_vm4, %v407_v54, %v317_v58 }
  0x88   :  { %4946 = vmatprep.mubr.msk.f32.mxu0 %vm475_vm5, %v439_v59 }
  0x89   :  { %4947 = vmatmul.mubr.msk.f32.gmra.mrb[2].mxu0 %vm475_vm5, %v440_v60 }
  0x8a   :  { %v222_v61 = vpop.permute.xlu0 %221  ;;  %v224_v62 = vpop.permute.xlu1 %223 }
  0x8b   :  { %v409_v63 = vsel %vm403_vm3, %v5459_v3, %v224_v62  ;;  %v408_v2 = vsel %vm403_vm3, %v5449_v1, %v222_v61 }
  0x8e   :  { %v319_v6 = vpop.permute.xlu0 %318  ;;  %v321_v0 = vpop.permute.xlu1 %320 }
  0x8f   :  { %v441_v7 = vsel %vm436_vm4, %v408_v2, %v319_v6  ;;  %v442_v8 = vsel %vm436_vm4, %v409_v63, %v321_v0 }
  0x90   :  { %4949 = vmatprep.mubr.msk.f32.mxu0 %vm475_vm5, %v441_v7 }
  0x91   :  { %4950 = vmatmul.mubr.msk.f32.gmra.mrb[4].mxu0 %vm475_vm5, %v442_v8 }
  0x92   :  { %v226_v9 = vpop.permute.xlu0 %225  ;;  %v228_v10 = vpop.permute.xlu1 %227 }
  0x93   :  { %v411_v11 = vsel %vm403_vm3, %v5476_v5, %v228_v10  ;;  %v410_v3 = vsel %vm403_vm3, %v5473_v4, %v226_v9 }
  0x96   :  { %v323_v12 = vpop.permute.xlu0 %322  ;;  %v325_v1 = vpop.permute.xlu1 %324 }
  0x97   :  { %v443_v13 = vsel %vm436_vm4, %v410_v3, %v323_v12  ;;  %v444_v14 = vsel %vm436_vm4, %v411_v11, %v325_v1 }
  0x98   :  { %4952 = vmatprep.mubr.msk.f32.mxu0 %vm475_vm5, %v443_v13 }
  0x99   :  { %4953 = vmatmul.mubr.msk.f32.gmra.mrb[6].mxu0 %vm475_vm5, %v444_v14 }
  0x9a   :  { %v230_v15 = vpop.permute.xlu0 %229  ;;  %v232_v16 = vpop.permute.xlu1 %231 }
  0x9b   :  { %v413_v19 = vsel %vm403_vm3, %v5490_v18, %v232_v16  ;;  %v412_v5 = vsel %vm403_vm3, %v5487_v17, %v230_v15 }
  0x9e   :  { %v327_v42 = vpop.permute.xlu0 %326  ;;  %v329_v4 = vpop.permute.xlu1 %328 }
  0x9f   :  { %v445_v43 = vsel %vm436_vm4, %v412_v5, %v327_v42  ;;  %v446_v44 = vsel %vm436_vm4, %v413_v19, %v329_v4 }
  0xa0   :  { %4955 = vmatprep.mubr.msk.f32.mxu0 %vm475_vm5, %v445_v43 }
  0xa1   :  { %4956 = vmatmul.mubr.msk.f32.gmra.mrb[8].mxu0 %vm475_vm5, %v446_v44 }
  0xa2   :  { %v234_v45 = vpop.permute.xlu0 %233  ;;  %v236_v46 = vpop.permute.xlu1 %235 }
  0xa3   :  { %v415_v47 = vsel %vm403_vm3, %v5505_v21, %v236_v46  ;;  %v414_v18 = vsel %vm403_vm3, %v5502_v20, %v234_v45 }
  0xa6   :  { %v331_v48 = vpop.permute.xlu0 %330  ;;  %v333_v17 = vpop.permute.xlu1 %332 }
  0xa7   :  { %v447_v49 = vsel %vm436_vm4, %v414_v18, %v331_v48  ;;  %v448_v50 = vsel %vm436_vm4, %v415_v47, %v333_v17 }
  0xa8   :  { %4958 = vmatprep.mubr.msk.f32.mxu0 %vm475_vm5, %v447_v49 }
  0xa9   :  { %4959 = vmatmul.mubr.msk.f32.gmra.mrb[10].mxu0 %vm475_vm5, %v448_v50 }
  0xaa   :  { %v238_v51 = vpop.permute.xlu0 %237  ;;  %v240_v52 = vpop.permute.xlu1 %239 }
  0xab   :  { %v417_v53 = vsel %vm403_vm3, %v5519_v23, %v240_v52  ;;  %v416_v21 = vsel %vm403_vm3, %v5516_v22, %v238_v51 }
  0xae   :  { %v335_v54 = vpop.permute.xlu0 %334  ;;  %v337_v20 = vpop.permute.xlu1 %336 }
  0xaf   :  { %v449_v56 = vsel %vm436_vm4, %v416_v21, %v335_v54  ;;  %v450_v57 = vsel %vm436_vm4, %v417_v53, %v337_v20 }
  0xb0   :  { %4961 = vmatprep.mubr.msk.f32.mxu0 %vm475_vm5, %v449_v56 }
  0xb1   :  { %4962 = vmatmul.mubr.msk.f32.gmra.mrb[12].mxu0 %vm475_vm5, %v450_v57 }
  0xb2   :  { %v242_v58 = vpop.permute.xlu0 %241  ;;  %v244_v59 = vpop.permute.xlu1 %243 }
  0xb3   :  { %v419_v60 = vsel %vm403_vm3, %v5533_v25, %v244_v59  ;;  %v418_v23 = vsel %vm403_vm3, %v5530_v24, %v242_v58 }
  0xb6   :  { %v339_v61 = vpop.permute.xlu0 %338  ;;  %v341_v22 = vpop.permute.xlu1 %340 }
  0xb7   :  { %v451_v62 = vsel %vm436_vm4, %v418_v23, %v339_v61  ;;  %v452_v63 = vsel %vm436_vm4, %v419_v60, %v341_v22 }
  0xb8   :  { %4964 = vmatprep.mubr.msk.f32.mxu0 %vm475_vm5, %v451_v62 }
  0xb9   :  { %4965 = vmatmul.mubr.msk.f32.gmra.mrb[14].mxu0 %vm475_vm5, %v452_v63 }
  0xba   :  { %v246_v2 = vpop.permute.xlu0 %245  ;;  %v248_v6 = vpop.permute.xlu1 %247 }
  0xbb   :  { %v421_v0 = vsel %vm403_vm3, %v5547_v27, %v248_v6  ;;  %v420_v25 = vsel %vm403_vm3, %v5544_v26, %v246_v2 }
  0xbe   :  { %v343_v7 = vpop.permute.xlu0 %342  ;;  %v345_v24 = vpop.permute.xlu1 %344 }
  0xbf   :  { %v453_v8 = vsel %vm436_vm4, %v420_v25, %v343_v7  ;;  %v454_v9 = vsel %vm436_vm4, %v421_v0, %v345_v24  ;;  %v5792_v25 = vld [vmem:[%s4581_s15] ss:$0 sm:$0xff]  ;;  %s4587_s15 = sld [smem:[%s8189_s0 + %s5410_s12]]   ;;  %s5417_s12 = smov 15  }
  0xc0   :  { %4967 = vmatprep.mubr.msk.f32.mxu0 %vm475_vm5, %v453_v8 }
  0xc1   :  { %4968 = vmatmul.mubr.msk.f32.gmra.mrb[16].mxu0 %vm475_vm5, %v454_v9 }
  0xc2   :  { %v250_v10 = vpop.permute.xlu0 %249  ;;  %v252_v11 = vpop.permute.xlu1 %251 }
  0xc3   :  { %v423_v3 = vsel %vm403_vm3, %v5561_v29, %v252_v11  ;;  %v422_v27 = vsel %vm403_vm3, %v5558_v28, %v250_v10 }
  0xc6   :  { %v347_v12 = vpop.permute.xlu0 %346  ;;  %v349_v26 = vpop.permute.xlu1 %348 }
  0xc7   :  { %v455_v1 = vsel %vm436_vm4, %v422_v27, %v347_v12  ;;  %v456_v13 = vsel %vm436_vm4, %v423_v3, %v349_v26 }
  0xc8   :  { %4970 = vmatprep.mubr.msk.f32.mxu0 %vm475_vm5, %v455_v1 }
  0xc9   :  { %4971 = vmatmul.mubr.msk.f32.gmra.mrb[18].mxu0 %vm475_vm5, %v456_v13 }
  0xca   :  { %v254_v14 = vpop.permute.xlu0 %253  ;;  %v256_v15 = vpop.permute.xlu1 %255 }
  0xcb   :  { %v425_v16 = vsel %vm403_vm3, %v5575_v31, %v256_v15  ;;  %v424_v29 = vsel %vm403_vm3, %v5572_v30, %v254_v14 }
  0xce   :  { %v351_v19 = vpop.permute.xlu0 %350  ;;  %v353_v28 = vpop.permute.xlu1 %352 }
  0xcf   :  { %v457_v5 = vsel %vm436_vm4, %v424_v29, %v351_v19  ;;  %v458_v42 = vsel %vm436_vm4, %v425_v16, %v353_v28 }
  0xd0   :  { %4973 = vmatprep.mubr.msk.f32.mxu0 %vm475_vm5, %v457_v5 }
  0xd1   :  { %4974 = vmatmul.mubr.msk.f32.gmra.mrb[20].mxu0 %vm475_vm5, %v458_v42 }
  0xd2   :  { %v258_v4 = vpop.permute.xlu0 %257  ;;  %v260_v43 = vpop.permute.xlu1 %259 }
  0xd3   :  { %v427_v44 = vsel %vm403_vm3, %v5589_v33, %v260_v43  ;;  %v426_v31 = vsel %vm403_vm3, %v5586_v32, %v258_v4 }
  0xd6   :  { %v355_v45 = vpop.permute.xlu0 %354  ;;  %v357_v30 = vpop.permute.xlu1 %356 }
  0xd7   :  { %v459_v46 = vsel %vm436_vm4, %v426_v31, %v355_v45  ;;  %v460_v47 = vsel %vm436_vm4, %v427_v44, %v357_v30 }
  0xd8   :  { %4976 = vmatprep.mubr.msk.f32.mxu0 %vm475_vm5, %v459_v46 }
  0xd9   :  { %4977 = vmatmul.mubr.msk.f32.gmra.mrb[22].mxu0 %vm475_vm5, %v460_v47 }
  0xda   :  { %v262_v18 = vpop.permute.xlu0 %261  ;;  %v264_v48 = vpop.permute.xlu1 %263 }
  0xdb   :  { %v429_v17 = vsel %vm403_vm3, %v5603_v35, %v264_v48  ;;  %v428_v33 = vsel %vm403_vm3, %v5600_v34, %v262_v18 }
  0xde   :  { %v359_v49 = vpop.permute.xlu0 %358  ;;  %v361_v32 = vpop.permute.xlu1 %360 }
  0xdf   :  { %v461_v50 = vsel %vm436_vm4, %v428_v33, %v359_v49  ;;  %v462_v51 = vsel %vm436_vm4, %v429_v17, %v361_v32 }
  0xe0   :  { %4979 = vmatprep.mubr.msk.f32.mxu0 %vm475_vm5, %v461_v50 }
  0xe1   :  { %4980 = vmatmul.mubr.msk.f32.gmra.mrb[24].mxu0 %vm475_vm5, %v462_v51 }
  0xe2   :  { %v266_v52 = vpop.permute.xlu0 %265  ;;  %v268_v53 = vpop.permute.xlu1 %267 }
  0xe3   :  { %v431_v21 = vsel %vm403_vm3, %v5617_v37, %v268_v53  ;;  %v430_v35 = vsel %vm403_vm3, %v5614_v36, %v266_v52 }
  0xe6   :  { %v363_v54 = vpop.permute.xlu0 %362  ;;  %v365_v34 = vpop.permute.xlu1 %364 }
  0xe7   :  { %v463_v20 = vsel %vm436_vm4, %v430_v35, %v363_v54  ;;  %v464_v56 = vsel %vm436_vm4, %v431_v21, %v365_v34 }
  0xe8   :  { %4982 = vmatprep.mubr.msk.f32.mxu0 %vm475_vm5, %v463_v20 }
  0xe9   :  { %4983 = vmatmul.mubr.msk.f32.gmra.mrb[26].mxu0 %vm475_vm5, %v464_v56 }
  0xea   :  { %v270_v57 = vpop.permute.xlu0 %269  ;;  %v272_v58 = vpop.permute.xlu1 %271 }
  0xeb   :  { %v433_v59 = vsel %vm403_vm3, %v5631_v39, %v272_v58  ;;  %v432_v37 = vsel %vm403_vm3, %v5628_v38, %v270_v57 }
  0xee   :  { %v367_v60 = vpop.permute.xlu0 %366  ;;  %v369_v36 = vpop.permute.xlu1 %368 }
  0xef   :  { %v465_v23 = vsel %vm436_vm4, %v432_v37, %v367_v60  ;;  %v466_v61 = vsel %vm436_vm4, %v433_v59, %v369_v36 }
  0xf0   :  { %4985 = vmatprep.mubr.msk.f32.mxu0 %vm475_vm5, %v465_v23 }
  0xf1   :  { %4986 = vmatmul.mubr.msk.f32.gmra.mrb[28].mxu0 %vm475_vm5, %v466_v61 }
  0xf2   :  { %v274_v22 = vpop.permute.xlu0 %273  ;;  %v276_v62 = vpop.permute.xlu1 %275 }
  0xf3   :  { %v435_v63 = vsel %vm403_vm3, %v5645_v41, %v276_v62  ;;  %v434_v39 = vsel %vm403_vm3, %v5642_v40, %v274_v22 }
  0xf6   :  { %v371_v2 = vpop.permute.xlu0 %370 }
  0xf7   :  { %v467_v38 = vsel %vm436_vm4, %v434_v39, %v371_v2  ;;  %v468_v6 = vsel %vm436_vm4, %v435_v63, %v371_v2 }
  0xf8   :  { %4988 = vmatprep.mubr.msk.f32.mxu0 %vm475_vm5, %v467_v38 }
  0xf9   :  { %4989 = vmatmul.mubr.msk.f32.gmra.mrb[30].mxu0 %vm475_vm5, %v468_v6 }
 0x154   :  { %v4945_v0 = vpop.f32.mrb[0].mxu0 }
 0x155   :  { %v642_v41 = vpop.f32.mrb[1].mxu0  ;;  %v648_v40 = vadd.f32 %v4945_v0, %v5792_v25 }
 0x156   :  { %v643_v7 = vadd.f32 %v5792_v25, %v642_v41 }
 0x157   :  { %v834_v24 = vmul.f32 0.01, %v648_v40  ;;  %vm802_vm6 = vcmp.gt.f32.partialorder %v648_v40, 0.0 }
 0x158   :  { %v833_v8 = vmul.f32 0.01, %v643_v7  ;;  %vm801_vm7 = vcmp.gt.f32.partialorder %v643_v7, 0.0 }
 0x159   :  { %v5798_v27 = vsel %vm802_vm6, %v648_v40, %v834_v24 }
 0x15a   :  { %v5800_v26 = vsel %vm801_vm7, %v643_v7, %v833_v8  ;;  %v929_v14 = vsel %vm897_vm8, %v5798_v27, 0.0 }
 0x15b   :  { %v898_v29 = vsel %vm897_vm8, %v5800_v26, 0.0 }
 0x15c   :  { %v4948_v9 = vpop.f32.mrb[2].mxu0 }
 0x15d   :  { %v658_v10 = vadd.f32 %v4948_v9, %v5792_v25  ;;  %v652_v11 = vpop.f32.mrb[3].mxu0 }
 0x15e   :  { %v653_v3 = vadd.f32 %v5792_v25, %v652_v11 }
 0x15f   :  { %vm804_vm9 = vcmp.gt.f32.partialorder %v658_v10, 0.0  ;;  %v836_v12 = vmul.f32 0.01, %v658_v10 }
 0x160   :  { %vm803_vm10 = vcmp.gt.f32.partialorder %v653_v3, 0.0  ;;  %v835_v1 = vmul.f32 0.01, %v653_v3 }
 0x161   :  { %v5802_v13 = vsel %vm804_vm9, %v658_v10, %v836_v12 }
 0x162   :  { %v930_v15 = vsel %vm897_vm8, %v5802_v13, 0.0  ;;  %v5808_v16 = vsel %vm803_vm10, %v653_v3, %v835_v1 }
 0x163   :  { %v931_v19 = vadd.f32 %v930_v15, %v929_v14  ;;  %v899_v28 = vsel %vm897_vm8, %v5808_v16, 0.0 }
 0x164   :  { %v900_v5 = vadd.f32 %v899_v28, %v898_v29  ;;  %v4951_v42 = vpop.f32.mrb[4].mxu0 }
 0x165   :  { %v668_v4 = vadd.f32 %v4951_v42, %v5792_v25  ;;  %v662_v43 = vpop.f32.mrb[5].mxu0 }
 0x166   :  { %v663_v44 = vadd.f32 %v5792_v25, %v662_v43 }
 0x167   :  { %vm806_vm11 = vcmp.gt.f32.partialorder %v668_v4, 0.0  ;;  %v838_v31 = vmul.f32 0.01, %v668_v4 }
 0x168   :  { %vm805_vm12 = vcmp.gt.f32.partialorder %v663_v44, 0.0  ;;  %v837_v45 = vmul.f32 0.01, %v663_v44 }
 0x169   :  { %v5816_v30 = vsel %vm806_vm11, %v668_v4, %v838_v31 }
 0x16a   :  { %v932_v46 = vsel %vm897_vm8, %v5816_v30, 0.0  ;;  %v5820_v47 = vsel %vm805_vm12, %v663_v44, %v837_v45 }
 0x16b   :  { %v933_v18 = vadd.f32 %v932_v46, %v931_v19  ;;  %v901_v48 = vsel %vm897_vm8, %v5820_v47, 0.0 }
 0x16c   :  { %v902_v17 = vadd.f32 %v901_v48, %v900_v5  ;;  %v4954_v33 = vpop.f32.mrb[6].mxu0 }
 0x16d   :  { %v678_v49 = vadd.f32 %v4954_v33, %v5792_v25  ;;  %v672_v32 = vpop.f32.mrb[7].mxu0 }
 0x16e   :  { %v673_v50 = vadd.f32 %v5792_v25, %v672_v32 }
 0x16f   :  { %vm808_vm13 = vcmp.gt.f32.partialorder %v678_v49, 0.0  ;;  %v840_v51 = vmul.f32 0.01, %v678_v49 }
 0x170   :  { %vm807_vm14 = vcmp.gt.f32.partialorder %v673_v50, 0.0  ;;  %v839_v52 = vmul.f32 0.01, %v673_v50 }
 0x171   :  { %v5826_v53 = vsel %vm808_vm13, %v678_v49, %v840_v51 }
 0x172   :  { %v934_v21 = vsel %vm897_vm8, %v5826_v53, 0.0  ;;  %v5830_v35 = vsel %vm807_vm14, %v673_v50, %v839_v52 }
 0x173   :  { %v935_v54 = vadd.f32 %v934_v21, %v933_v18  ;;  %v903_v34 = vsel %vm897_vm8, %v5830_v35, 0.0 }
 0x174   :  { %v904_v20 = vadd.f32 %v903_v34, %v902_v17  ;;  %v4957_v56 = vpop.f32.mrb[8].mxu0 }
 0x175   :  { %v688_v57 = vadd.f32 %v4957_v56, %v5792_v25  ;;  %v682_v58 = vpop.f32.mrb[9].mxu0 }
 0x176   :  { %v683_v59 = vadd.f32 %v5792_v25, %v682_v58 }
 0x177   :  { %vm810_vm15 = vcmp.gt.f32.partialorder %v688_v57, 0.0  ;;  %v842_v37 = vmul.f32 0.01, %v688_v57 }
 0x178   :  { %vm809_vm0 = vcmp.gt.f32.partialorder %v683_v59, 0.0  ;;  %v841_v60 = vmul.f32 0.01, %v683_v59 }
 0x179   :  { %v5836_v36 = vsel %vm810_vm15, %v688_v57, %v842_v37 }
 0x17a   :  { %v936_v23 = vsel %vm897_vm8, %v5836_v36, 0.0  ;;  %v5840_v61 = vsel %vm809_vm0, %v683_v59, %v841_v60 }
 0x17b   :  { %v937_v22 = vadd.f32 %v936_v23, %v935_v54  ;;  %v905_v62 = vsel %vm897_vm8, %v5840_v61, 0.0 }
 0x17c   :  { %v906_v63 = vadd.f32 %v905_v62, %v904_v20  ;;  %v4960_v39 = vpop.f32.mrb[10].mxu0 }
 0x17d   :  { %v698_v2 = vadd.f32 %v4960_v39, %v5792_v25  ;;  %v692_v38 = vpop.f32.mrb[11].mxu0 }
 0x17e   :  { %v693_v6 = vadd.f32 %v5792_v25, %v692_v38 }
 0x17f   :  { %vm812_vm2 = vcmp.gt.f32.partialorder %v698_v2, 0.0  ;;  %v844_v0 = vmul.f32 0.01, %v698_v2 }
 0x180   :  { %vm811_vm3 = vcmp.gt.f32.partialorder %v693_v6, 0.0  ;;  %v843_v41 = vmul.f32 0.01, %v693_v6 }
 0x181   :  { %v5846_v40 = vsel %vm812_vm2, %v698_v2, %v844_v0 }
 0x182   :  { %v938_v7 = vsel %vm897_vm8, %v5846_v40, 0.0  ;;  %v5850_v24 = vsel %vm811_vm3, %v693_v6, %v843_v41 }
 0x183   :  { %v939_v8 = vadd.f32 %v938_v7, %v937_v22  ;;  %v907_v9 = vsel %vm897_vm8, %v5850_v24, 0.0 }
 0x184   :  { %v908_v10 = vadd.f32 %v907_v9, %v906_v63  ;;  %v4963_v11 = vpop.f32.mrb[12].mxu0 }
 0x185   :  { %v708_v3 = vadd.f32 %v4963_v11, %v5792_v25  ;;  %v702_v12 = vpop.f32.mrb[13].mxu0 }
 0x186   :  { %v703_v1 = vadd.f32 %v5792_v25, %v702_v12 }
 0x187   :  { %vm814_vm4 = vcmp.gt.f32.partialorder %v708_v3, 0.0  ;;  %v846_v14 = vmul.f32 0.01, %v708_v3 }
 0x188   :  { %vm813_vm5 = vcmp.gt.f32.partialorder %v703_v1, 0.0  ;;  %v845_v15 = vmul.f32 0.01, %v703_v1 }
 0x189   :  { %v5856_v29 = vsel %vm814_vm4, %v708_v3, %v846_v14 }
 0x18a   :  { %v940_v19 = vsel %vm897_vm8, %v5856_v29, 0.0  ;;  %v5860_v28 = vsel %vm813_vm5, %v703_v1, %v845_v15 }
 0x18b   :  { %v941_v5 = vadd.f32 %v940_v19, %v939_v8  ;;  %v909_v42 = vsel %vm897_vm8, %v5860_v28, 0.0 }
 0x18c   :  { %v910_v4 = vadd.f32 %v909_v42, %v908_v10  ;;  %v4966_v43 = vpop.f32.mrb[14].mxu0 }
 0x18d   :  { %v718_v44 = vadd.f32 %v4966_v43, %v5792_v25  ;;  %v712_v31 = vpop.f32.mrb[15].mxu0 }
 0x18e   :  { %v713_v45 = vadd.f32 %v5792_v25, %v712_v31 }
 0x18f   :  { %vm816_vm6 = vcmp.gt.f32.partialorder %v718_v44, 0.0  ;;  %v848_v46 = vmul.f32 0.01, %v718_v44 }
 0x190   :  { %vm815_vm7 = vcmp.gt.f32.partialorder %v713_v45, 0.0  ;;  %v847_v18 = vmul.f32 0.01, %v713_v45 }
 0x191   :  { %v5866_v48 = vsel %vm816_vm6, %v718_v44, %v848_v46 }
 0x192   :  { %v942_v17 = vsel %vm897_vm8, %v5866_v48, 0.0  ;;  %v5870_v33 = vsel %vm815_vm7, %v713_v45, %v847_v18 }
 0x193   :  { %v943_v49 = vadd.f32 %v942_v17, %v941_v5  ;;  %v911_v32 = vsel %vm897_vm8, %v5870_v33, 0.0 }
 0x194   :  { %v912_v50 = vadd.f32 %v911_v32, %v910_v4  ;;  %v4969_v51 = vpop.f32.mrb[16].mxu0 }
 0x195   :  { %v728_v52 = vadd.f32 %v4969_v51, %v5792_v25  ;;  %v722_v21 = vpop.f32.mrb[17].mxu0 }
 0x196   :  { %v723_v54 = vadd.f32 %v5792_v25, %v722_v21 }
 0x197   :  { %vm818_vm9 = vcmp.gt.f32.partialorder %v728_v52, 0.0  ;;  %v850_v34 = vmul.f32 0.01, %v728_v52 }
 0x198   :  { %vm817_vm10 = vcmp.gt.f32.partialorder %v723_v54, 0.0  ;;  %v849_v20 = vmul.f32 0.01, %v723_v54 }
 0x199   :  { %v5876_v56 = vsel %vm818_vm9, %v728_v52, %v850_v34 }
 0x19a   :  { %v944_v57 = vsel %vm897_vm8, %v5876_v56, 0.0  ;;  %v5880_v58 = vsel %vm817_vm10, %v723_v54, %v849_v20 }
 0x19b   :  { %v945_v59 = vadd.f32 %v944_v57, %v943_v49  ;;  %v913_v37 = vsel %vm897_vm8, %v5880_v58, 0.0 }
 0x19c   :  { %v914_v60 = vadd.f32 %v913_v37, %v912_v50  ;;  %v4972_v23 = vpop.f32.mrb[18].mxu0 }
 0x19d   :  { %v738_v22 = vadd.f32 %v4972_v23, %v5792_v25  ;;  %v732_v62 = vpop.f32.mrb[19].mxu0 }
 0x19e   :  { %v733_v63 = vadd.f32 %v5792_v25, %v732_v62 }
 0x19f   :  { %vm820_vm11 = vcmp.gt.f32.partialorder %v738_v22, 0.0  ;;  %v852_v39 = vmul.f32 0.01, %v738_v22 }
 0x1a0   :  { %vm819_vm12 = vcmp.gt.f32.partialorder %v733_v63, 0.0  ;;  %v851_v2 = vmul.f32 0.01, %v733_v63 }
 0x1a1   :  { %v5886_v38 = vsel %vm820_vm11, %v738_v22, %v852_v39 }
 0x1a2   :  { %v946_v6 = vsel %vm897_vm8, %v5886_v38, 0.0  ;;  %v5890_v0 = vsel %vm819_vm12, %v733_v63, %v851_v2 }
 0x1a3   :  { %v947_v41 = vadd.f32 %v946_v6, %v945_v59  ;;  %v915_v7 = vsel %vm897_vm8, %v5890_v0, 0.0 }
 0x1a4   :  { %v916_v8 = vadd.f32 %v915_v7, %v914_v60  ;;  %v4975_v9 = vpop.f32.mrb[20].mxu0 }
 0x1a5   :  { %v748_v10 = vadd.f32 %v4975_v9, %v5792_v25  ;;  %v742_v11 = vpop.f32.mrb[21].mxu0 }
 0x1a6   :  { %v743_v3 = vadd.f32 %v5792_v25, %v742_v11 }
 0x1a7   :  { %vm822_vm13 = vcmp.gt.f32.partialorder %v748_v10, 0.0  ;;  %v854_v12 = vmul.f32 0.01, %v748_v10 }
 0x1a8   :  { %vm821_vm14 = vcmp.gt.f32.partialorder %v743_v3, 0.0  ;;  %v853_v1 = vmul.f32 0.01, %v743_v3 }
 0x1a9   :  { %v5896_v14 = vsel %vm822_vm13, %v748_v10, %v854_v12  ;;  %vm1586_vm13 = vcmask 1046528  }
 0x1aa   :  { %v948_v15 = vsel %vm897_vm8, %v5896_v14, 0.0  ;;  %v5900_v19 = vsel %vm821_vm14, %v743_v3, %v853_v1  ;;  %vm6254_vm14 = vmpackc.low %vm1586_vm13, %vm5400_vm1 }
 0x1ab   :  { %v949_v5 = vadd.f32 %v948_v15, %v947_v41  ;;  %v917_v42 = vsel %vm897_vm8, %v5900_v19, 0.0 }
 0x1ac   :  { %v918_v4 = vadd.f32 %v917_v42, %v916_v8  ;;  %v4978_v43 = vpop.f32.mrb[22].mxu0 }
 0x1ad   :  { %v758_v44 = vadd.f32 %v4978_v43, %v5792_v25  ;;  %v752_v31 = vpop.f32.mrb[23].mxu0 }
 0x1ae   :  { %v753_v45 = vadd.f32 %v5792_v25, %v752_v31 }
 0x1af   :  { %vm824_vm15 = vcmp.gt.f32.partialorder %v758_v44, 0.0  ;;  %v856_v46 = vmul.f32 0.01, %v758_v44 }
 0x1b0   :  { %vm823_vm0 = vcmp.gt.f32.partialorder %v753_v45, 0.0  ;;  %v855_v18 = vmul.f32 0.01, %v753_v45 }
 0x1b1   :  { %v5906_v17 = vsel %vm824_vm15, %v758_v44, %v856_v46  ;;  %vm1450_vm15 = vcmask 80896  }
 0x1b2   :  { %v950_v49 = vsel %vm897_vm8, %v5906_v17, 0.0  ;;  %v5910_v32 = vsel %vm823_vm0, %v753_v45, %v855_v18  ;;  %vm1489_vm0 = vcmask 121856  }
 0x1b3   :  { %v951_v50 = vadd.f32 %v950_v49, %v949_v5  ;;  %v919_v51 = vsel %vm897_vm8, %v5910_v32, 0.0 }
 0x1b4   :  { %v920_v52 = vadd.f32 %v919_v51, %v918_v4  ;;  %v4981_v21 = vpop.f32.mrb[24].mxu0 }
 0x1b5   :  { %v768_v54 = vadd.f32 %v4981_v21, %v5792_v25  ;;  %v762_v34 = vpop.f32.mrb[25].mxu0 }
 0x1b6   :  { %v763_v20 = vadd.f32 %v5792_v25, %v762_v34 }
 0x1b7   :  { %vm826_vm2 = vcmp.gt.f32.partialorder %v768_v54, 0.0  ;;  %v858_v57 = vmul.f32 0.01, %v768_v54 }
 0x1b8   :  { %vm825_vm3 = vcmp.gt.f32.partialorder %v763_v20, 0.0  ;;  %v857_v59 = vmul.f32 0.01, %v763_v20 }
 0x1b9   :  { %v5916_v37 = vsel %vm826_vm2, %v768_v54, %v858_v57 }
 0x1ba   :  { %v952_v60 = vsel %vm897_vm8, %v5916_v37, 0.0  ;;  %v5920_v23 = vsel %vm825_vm3, %v763_v20, %v857_v59 }
 0x1bb   :  { %v953_v22 = vadd.f32 %v952_v60, %v951_v50  ;;  %v921_v62 = vsel %vm897_vm8, %v5920_v23, 0.0 }
 0x1bc   :  { %v922_v63 = vadd.f32 %v921_v62, %v920_v52  ;;  %v4984_v39 = vpop.f32.mrb[26].mxu0 }
 0x1bd   :  { %v778_v2 = vadd.f32 %v4984_v39, %v5792_v25  ;;  %v772_v6 = vpop.f32.mrb[27].mxu0 }
 0x1be   :  { %v773_v41 = vadd.f32 %v5792_v25, %v772_v6 }
 0x1bf   :  { %vm828_vm4 = vcmp.gt.f32.partialorder %v778_v2, 0.0  ;;  %v860_v7 = vmul.f32 0.01, %v778_v2 }
 0x1c0   :  { %vm827_vm5 = vcmp.gt.f32.partialorder %v773_v41, 0.0  ;;  %v859_v8 = vmul.f32 0.01, %v773_v41 }
 0x1c1   :  { %v5926_v9 = vsel %vm828_vm4, %v778_v2, %v860_v7 }
 0x1c2   :  { %v954_v10 = vsel %vm897_vm8, %v5926_v9, 0.0  ;;  %v5930_v11 = vsel %vm827_vm5, %v773_v41, %v859_v8 }
 0x1c3   :  { %v955_v3 = vadd.f32 %v954_v10, %v953_v22  ;;  %v923_v12 = vsel %vm897_vm8, %v5930_v11, 0.0 }
 0x1c4   :  { %v924_v1 = vadd.f32 %v923_v12, %v922_v63  ;;  %v4987_v15 = vpop.f32.mrb[28].mxu0 }
 0x1c5   :  { %v788_v5 = vadd.f32 %v4987_v15, %v5792_v25  ;;  %v782_v42 = vpop.f32.mrb[29].mxu0 }
 0x1c6   :  { %v783_v4 = vadd.f32 %v5792_v25, %v782_v42 }
 0x1c7   :  { %vm830_vm6 = vcmp.gt.f32.partialorder %v788_v5, 0.0  ;;  %v862_v43 = vmul.f32 0.01, %v788_v5 }
 0x1c8   :  { %vm829_vm7 = vcmp.gt.f32.partialorder %v783_v4, 0.0  ;;  %v861_v44 = vmul.f32 0.01, %v783_v4 }
 0x1c9   :  { %v894_v31 = vsel %vm830_vm6, %v788_v5, %v862_v43 }
 0x1ca   :  { %v956_v45 = vsel %vm897_vm8, %v894_v31, 0.0  ;;  %v893_v46 = vsel %vm829_vm7, %v783_v4, %v861_v44 }
 0x1cb   :  { %v957_v18 = vadd.f32 %v956_v45, %v955_v3  ;;  %v925_v49 = vsel %vm897_vm8, %v893_v46, 0.0 }
 0x1cc   :  { %v926_v50 = vadd.f32 %v925_v49, %v924_v1  ;;  %v4990_v51 = vpop.f32.mrb[30].mxu0 }
 0x1cd   :  { %v798_v52 = vadd.f32 %v4990_v51, %v5792_v25  ;;  %v792_v21 = vpop.f32.mrb[31].mxu0 }
 0x1ce   :  { %v793_v54 = vadd.f32 %v5792_v25, %v792_v21 }
 0x1cf   :  { %vm832_vm9 = vcmp.gt.f32.partialorder %v798_v52, 0.0  ;;  %v864_v34 = vmul.f32 0.01, %v798_v52 }
 0x1d0   :  { %vm831_vm10 = vcmp.gt.f32.partialorder %v793_v54, 0.0  ;;  %v863_v20 = vmul.f32 0.01, %v793_v54 }
 0x1d1   :  { %v896_v57 = vsel %vm832_vm9, %v798_v52, %v864_v34 }
 0x1d2   :  { %v958_v59 = vsel %vm897_vm8, %v896_v57, 0.0  ;;  %v895_v60 = vsel %vm831_vm10, %v793_v54, %v863_v20 }
 0x1d3   :  { %v959_v22 = vadd.f32 %v958_v59, %v957_v18  ;;  %v927_v62 = vsel %vm897_vm8, %v895_v60, 0.0 }
 0x1d4   :  { %v928_v63 = vadd.f32 %v927_v62, %v926_v50 }
 0x1d5   :  { %v961_v39 = vsel %vm897_vm8, %v959_v22, 0.0 }
 0x1d6   :  { %v960_v2 = vsel %vm897_vm8, %v928_v63, 0.0 }
 0x1d7   :  { %v962_v6 = vadd.f32 %v961_v39, %v960_v2 }
 0x1d9   :  { %v963_v41 = vrot.slane %v962_v6, 4 }
 0x1db   :  { %v964_v7 = vadd.f32 %v963_v41, %v962_v6 }
 0x1dd   :  { %v965_v25 = vrot.slane %v964_v7, 2 }
 0x1df   :  { %v966_v8 = vadd.f32 %v965_v25, %v964_v7 }
 0x1e1   :  { %v967_v10 = vrot.slane %v966_v8, 1 }
 0x1e3   :  { %v968_v3 = vadd.f32 %v967_v10, %v966_v8 }
 0x1e5   :  { %v969_v12 = vmul.f32 0.00390625, %v968_v3 }
 0x1e7   :  { %v5945_v1 = vsub.f32 %v5800_v26, %v969_v12  ;;  %v5948_v15 = vsub.f32 %v5798_v27, %v969_v12  ;;  %v5951_v5 = vsub.f32 %v5808_v16, %v969_v12  ;;  %v5954_v42 = vsub.f32 %v5802_v13, %v969_v12 }
 0x1e8   :  { %v5957_v4 = vsub.f32 %v5820_v47, %v969_v12  ;;  %v5960_v43 = vsub.f32 %v5816_v30, %v969_v12  ;;  %v5963_v44 = vsub.f32 %v5830_v35, %v969_v12  ;;  %v5966_v26 = vsub.f32 %v5826_v53, %v969_v12 }
 0x1e9   :  { %v5969_v27 = vsub.f32 %v5840_v61, %v969_v12  ;;  %v5972_v16 = vsub.f32 %v5836_v36, %v969_v12  ;;  %v5975_v13 = vsub.f32 %v5850_v24, %v969_v12  ;;  %v5978_v47 = vsub.f32 %v5846_v40, %v969_v12 }
 0x1ea   :  { %v5981_v30 = vsub.f32 %v5860_v28, %v969_v12  ;;  %v5984_v35 = vsub.f32 %v5856_v29, %v969_v12  ;;  %v5987_v53 = vsub.f32 %v5870_v33, %v969_v12  ;;  %v5990_v61 = vsub.f32 %v5866_v48, %v969_v12 }
 0x1eb   :  { %v5993_v36 = vsub.f32 %v5880_v58, %v969_v12  ;;  %v5996_v24 = vsub.f32 %v5876_v56, %v969_v12  ;;  %v5999_v40 = vsub.f32 %v5890_v0, %v969_v12  ;;  %v6002_v28 = vsub.f32 %v5886_v38, %v969_v12 }
 0x1ec   :  { %v6005_v29 = vsub.f32 %v5900_v19, %v969_v12  ;;  %v6008_v33 = vsub.f32 %v5896_v14, %v969_v12  ;;  %v6011_v48 = vsub.f32 %v5910_v32, %v969_v12  ;;  %v6014_v58 = vsub.f32 %v5906_v17, %v969_v12 }
 0x1ed   :  { %v6017_v56 = vsub.f32 %v5920_v23, %v969_v12  ;;  %v6020_v0 = vsub.f32 %v5916_v37, %v969_v12  ;;  %v6023_v38 = vsub.f32 %v5930_v11, %v969_v12  ;;  %v6026_v19 = vsub.f32 %v5926_v9, %v969_v12 }
 0x1ee   :  { %v6028_v14 = vsub.f32 %v893_v46, %v969_v12  ;;  %v6030_v45 = vsub.f32 %v894_v31, %v969_v12  ;;  %v6032_v32 = vsub.f32 %v895_v60, %v969_v12  ;;  %v6034_v17 = vsub.f32 %v896_v57, %v969_v12 }
 0x1ef   :  { %v1002_v23 = vmul.f32 %v5945_v1, %v5945_v1  ;;  %v1004_v37 = vmul.f32 %v5951_v5, %v5951_v5  ;;  %v1006_v11 = vmul.f32 %v5957_v4, %v5957_v4  ;;  %v1003_v9 = vmul.f32 %v5948_v15, %v5948_v15 }
 0x1f0   :  { %v1005_v31 = vmul.f32 %v5954_v42, %v5954_v42  ;;  %v1008_v46 = vmul.f32 %v5963_v44, %v5963_v44  ;;  %v1007_v51 = vmul.f32 %v5960_v43, %v5960_v43  ;;  %v1010_v52 = vmul.f32 %v5969_v27, %v5969_v27 }
 0x1f1   :  { %v1034_v18 = vsel %vm897_vm8, %v1002_v23, 0.0  ;;  %v1035_v49 = vsel %vm897_vm8, %v1004_v37, 0.0  ;;  %v1037_v21 = vsel %vm897_vm8, %v1006_v11, 0.0  ;;  %v1009_v54 = vmul.f32 %v5966_v26, %v5966_v26 }
 0x1f2   :  { %v1036_v50 = vadd.f32 %v1035_v49, %v1034_v18  ;;  %v1012_v20 = vmul.f32 %v5975_v13, %v5975_v13  ;;  %v1039_v57 = vsel %vm897_vm8, %v1008_v46, 0.0  ;;  %v1065_v59 = vsel %vm897_vm8, %v1003_v9, 0.0 }
 0x1f3   :  { %v1066_v60 = vsel %vm897_vm8, %v1005_v31, 0.0  ;;  %v1011_v63 = vmul.f32 %v5972_v16, %v5972_v16  ;;  %v1014_v39 = vmul.f32 %v5981_v30, %v5981_v30  ;;  %v1041_v2 = vsel %vm897_vm8, %v1010_v52, 0.0 }
 0x1f4   :  { %v1038_v34 = vadd.f32 %v1037_v21, %v1036_v50  ;;  %v1067_v62 = vadd.f32 %v1066_v60, %v1065_v59  ;;  %v1068_v6 = vsel %vm897_vm8, %v1007_v51, 0.0  ;;  %v1013_v25 = vmul.f32 %v5978_v47, %v5978_v47 }
 0x1f5   :  { %v1016_v8 = vmul.f32 %v5987_v53, %v5987_v53  ;;  %v1043_v10 = vsel %vm897_vm8, %v1012_v20, 0.0  ;;  %v1070_v3 = vsel %vm897_vm8, %v1009_v54, 0.0  ;;  %v1015_v37 = vmul.f32 %v5984_v35, %v5984_v35 }
 0x1f6   :  { %v1040_v22 = vadd.f32 %v1039_v57, %v1038_v34  ;;  %v1069_v7 = vadd.f32 %v1068_v6, %v1067_v62  ;;  %v1018_v11 = vmul.f32 %v5993_v36, %v5993_v36  ;;  %v1045_v9 = vsel %vm897_vm8, %v1014_v39, 0.0 }
 0x1f7   :  { %v1072_v31 = vsel %vm897_vm8, %v1011_v63, 0.0  ;;  %v1017_v49 = vmul.f32 %v5990_v61, %v5990_v61  ;;  %v1020_v50 = vmul.f32 %v5999_v40, %v5999_v40  ;;  %v1047_v51 = vsel %vm897_vm8, %v1016_v8, 0.0 }
 0x1f8   :  { %v1042_v41 = vadd.f32 %v1041_v2, %v1040_v22  ;;  %v1071_v23 = vadd.f32 %v1070_v3, %v1069_v7  ;;  %v1074_v52 = vsel %vm897_vm8, %v1013_v25, 0.0  ;;  %v1019_v34 = vmul.f32 %v5996_v24, %v5996_v24 }
 0x1f9   :  { %v1022_v20 = vmul.f32 %v6005_v29, %v6005_v29  ;;  %v1049_v57 = vsel %vm897_vm8, %v1018_v11, 0.0  ;;  %v1076_v59 = vsel %vm897_vm8, %v1015_v37, 0.0  ;;  %v1021_v62 = vmul.f32 %v6002_v28, %v6002_v28 }
 0x1fa   :  { %v1044_v12 = vadd.f32 %v1043_v10, %v1042_v41  ;;  %v1073_v18 = vadd.f32 %v1072_v31, %v1071_v23  ;;  %v1024_v63 = vmul.f32 %v6011_v48, %v6011_v48  ;;  %v1051_v39 = vsel %vm897_vm8, %v1020_v50, 0.0 }
 0x1fb   :  { %v1078_v2 = vsel %vm897_vm8, %v1017_v49, 0.0  ;;  %v1023_v7 = vmul.f32 %v6008_v33, %v6008_v33  ;;  %v1026_v25 = vmul.f32 %v6017_v56, %v6017_v56  ;;  %v1053_v8 = vsel %vm897_vm8, %v1022_v20, 0.0 }
 0x1fc   :  { %v1046_v46 = vadd.f32 %v1045_v9, %v1044_v12  ;;  %v1075_v54 = vadd.f32 %v1074_v52, %v1073_v18  ;;  %v1080_v10 = vsel %vm897_vm8, %v1019_v34, 0.0  ;;  %v1025_v23 = vmul.f32 %v6014_v58, %v6014_v58 }
 0x1fd   :  { %v1028_v37 = vmul.f32 %v6023_v38, %v6023_v38  ;;  %v1055_v11 = vsel %vm897_vm8, %v1024_v63, 0.0  ;;  %v1082_v9 = vsel %vm897_vm8, %v1021_v62, 0.0  ;;  %v1027_v18 = vmul.f32 %v6020_v0, %v6020_v0 }
 0x1fe   :  { %v1048_v21 = vadd.f32 %v1047_v51, %v1046_v46  ;;  %v1077_v22 = vadd.f32 %v1076_v59, %v1075_v54  ;;  %v1030_v49 = vmul.f32 %v6028_v14, %v6028_v14  ;;  %v1057_v50 = vsel %vm897_vm8, %v1026_v25, 0.0 }
 0x1ff   :  { %v1084_v51 = vsel %vm897_vm8, %v1023_v7, 0.0  ;;  %v1029_v54 = vmul.f32 %v6026_v19, %v6026_v19  ;;  %v1032_v34 = vmul.f32 %v6032_v32, %v6032_v32  ;;  %v1059_v20 = vsel %vm897_vm8, %v1028_v37, 0.0 }
 0x200   :  { %v1050_v60 = vadd.f32 %v1049_v57, %v1048_v21  ;;  %v1079_v41 = vadd.f32 %v1078_v2, %v1077_v22  ;;  %v1086_v57 = vsel %vm897_vm8, %v1025_v23, 0.0  ;;  %v1031_v22 = vmul.f32 %v6030_v45, %v6030_v45 }
 0x201   :  { %v1061_v62 = vsel %vm897_vm8, %v1030_v49, 0.0  ;;  %v1088_v63 = vsel %vm897_vm8, %v1027_v18, 0.0  ;;  %v1090_v7 = vsel %vm897_vm8, %v1029_v54, 0.0 }
 0x202   :  { %v1052_v6 = vadd.f32 %v1051_v39, %v1050_v60  ;;  %v1081_v12 = vadd.f32 %v1080_v10, %v1079_v41  ;;  %v1063_v41 = vsel %vm897_vm8, %v1032_v34, 0.0  ;;  %v1092_v10 = vsel %vm897_vm8, %v1031_v22, 0.0 }
 0x204   :  { %v1054_v3 = vadd.f32 %v1053_v8, %v1052_v6  ;;  %v1083_v46 = vadd.f32 %v1082_v9, %v1081_v12  ;;  %v1033_v6 = vmul.f32 %v6034_v17, %v6034_v17 }
 0x206   :  { %v1056_v31 = vadd.f32 %v1055_v11, %v1054_v3  ;;  %v1085_v21 = vadd.f32 %v1084_v51, %v1083_v46  ;;  %v1094_v12 = vsel %vm897_vm8, %v1033_v6, 0.0 }
 0x208   :  { %v1058_v52 = vadd.f32 %v1057_v50, %v1056_v31  ;;  %v1087_v60 = vadd.f32 %v1086_v57, %v1085_v21 }
 0x20a   :  { %v1060_v59 = vadd.f32 %v1059_v20, %v1058_v52  ;;  %v1089_v2 = vadd.f32 %v1088_v63, %v1087_v60  ;;  %v1117_v60 = vlaneseq }
 0x20c   :  { %v1062_v39 = vadd.f32 %v1061_v62, %v1060_v59  ;;  %v1091_v8 = vadd.f32 %v1090_v7, %v1089_v2  ;;  %v1118_v22 = vshrl.u32 %v1117_v60, 7  ;;  %v179_v62 = vld [vmem:[%s4582_s19] sm:$0x1]  ;;  %s5411_s19 = smov 13  }
 0x20d   :  { %s7358_s22 = sld [smem:[%s8189_s0 + %s5411_s19]]  }
 0x20e   :  { %v1064_v25 = vadd.f32 %v1063_v41, %v1062_v39  ;;  %v1093_v3 = vadd.f32 %v1092_v10, %v1091_v8  ;;  %v6140_v39 = vsub.s32 0, %v1118_v22  ;;  %v6145_v41 = vld [vmem:[%s4583_s23] ss:$0 sm:$0xff]  ;;  %s5412_s23 = smov 11   ;;  %s4595_s19 = sld [smem:[%s8189_s0 + %s5418_s16]]  }
 0x20f   :  { %s4590_s26 = sld [smem:[%s8189_s0 + %s5412_s23]]   ;;  %s5420_s23 = smov 21  }
 0x210   :  { %v1095_v23 = vadd.f32 %v1094_v12, %v1093_v3  ;;  %v1096_v37 = vsel %vm897_vm8, %v1064_v25, 0.0 }
 0x212   :  { %v1097_v11 = vsel %vm897_vm8, %v1095_v23, 0.0 }
 0x213   :  { %v1098_v9 = vadd.f32 %v1097_v11, %v1096_v37 }
 0x215   :  { %v1099_v31 = vrot.slane %v1098_v9, 4 }
 0x217   :  { %v1100_v46 = vadd.f32 %v1099_v31, %v1098_v9 }
 0x219   :  { %v1101_v18 = vrot.slane %v1100_v46, 2 }
 0x21b   :  { %v1102_v49 = vadd.f32 %v1101_v18, %v1100_v46  ;;  %v1192_v46 = vld [vmem:[%s6165_s27] sm:$0xff]  ;;  %v1193_v18 = vld [vmem:[%s6165_s27 + $0x8] sm:$0x7f]  ;;  %s5413_s27 = smov 12  }
 0x21c   :  { %s4591_s1 = sld [smem:[%s8189_s0 + %s5413_s27]]  }
 0x21d   :  { %v1103_v50 = vrot.slane %v1102_v49, 1 }
 0x21f   :  { %v1104_v51 = vadd.f32 %v1103_v50, %v1102_v49 }
 0x221   :  { %v1105_v52 = vmul.f32 0.00390625, %v1104_v51 }
 0x223   :  { %v1106_v21 = vadd.f32 1e-05, %v1105_v52 }
 0x225   :  { %5365 = vrsqrt.f32 %v1106_v21  ;;  %vm1109_vm11 = vcmp.eq.f32.partialorder %v1106_v21, inf  ;;  %v1112_v20 = vand.u32 2147483648, %v1106_v21  ;;  %vm1111_vm12 = vcmp.eq.f32.partialorder %v1106_v21, 0.0 }
 0x22f   :  { %v5366_v54 = vpop.eup %5365 }
 0x230   :  { %v1108_v34 = vmul.f32 %v5366_v54, %v1106_v21 }
 0x232   :  { %v1110_v57 = vsel %vm1109_vm11, %v1106_v21, %v1108_v34  ;;  %v1195_v21 = vld [vmem:[%s4586_s11] sm:$0x1]  ;;  %s7651_s11 = sld [smem:[%s8189_s0 + %s5416_s8]]  }
 0x233   :  { %v1113_v59 = vsel %vm1111_vm12, %v1112_v20, %v1110_v57  ;;  %v5227_v57 = vpack.c.bf16 %v1193_v18, %v1192_v46 }
 0x234   :  { %5367 = vrcp.f32 %v1113_v59 }
 0x235   :  { %5229 = vmatprep.subr.msk.bf16.mxu1 %vm6254_vm14, %v5227_v57 }
 0x236   :  { %5232 = vmatpush3.bf16.msk.msra.mxu1 %vm6254_vm14, %v5227_v57 }
 0x23e   :  { %v5368_v63 = vpop.eup %5367 }
 0x23f   :  { %v1115_v2 = vmul.f32 %v5368_v63, %v179_v62 }
 0x241   :  { %v6143_v6 = vrot.slane %v1115_v2, %v6140_v39 }
 0x243   :  { %v1123_v7 = vmul.f32 %v6143_v6, %v5948_v15  ;;  %v1122_v25 = vmul.f32 %v6143_v6, %v5945_v1  ;;  %v1125_v3 = vmul.f32 %v6143_v6, %v5954_v42  ;;  %v1124_v12 = vmul.f32 %v6143_v6, %v5951_v5 }
 0x244   :  { %v1152_v1 = vmul.f32 %v6143_v6, %v6032_v32  ;;  %v1141_v15 = vmul.f32 %v6143_v6, %v6002_v28  ;;  %v1142_v5 = vmul.f32 %v6143_v6, %v6005_v29  ;;  %v1143_v42 = vmul.f32 %v6143_v6, %v6008_v33 }
 0x245   :  { %v6152_v8 = vadd.f32 %v6145_v41, %v1123_v7  ;;  %v6155_v10 = vadd.f32 %v6145_v41, %v1122_v25  ;;  %v1144_v23 = vmul.f32 %v6143_v6, %v6011_v48  ;;  %v1145_v37 = vmul.f32 %v6143_v6, %v6014_v58 }
 0x246   :  { %v6184_v11 = vadd.f32 %v6145_v41, %v1125_v3  ;;  %v6187_v32 = vadd.f32 %v6145_v41, %v1124_v12  ;;  %v1146_v28 = vmul.f32 %v6143_v6, %v6017_v56  ;;  %v1147_v29 = vmul.f32 %v6143_v6, %v6020_v0 }
 0x247   :  { %1231 = vrot.lane.b32.xlu0 %v6152_v8, %s5405_s24  ;;  %1229 = vrot.lane.b32.xlu1 %v6155_v10, %s5405_s24  ;;  %v1148_v33 = vmul.f32 %v6143_v6, %v6023_v38  ;;  %v1149_v48 = vmul.f32 %v6143_v6, %v6026_v19  ;;  %v1150_v58 = vmul.f32 %v6143_v6, %v6028_v14 }
 0x248   :  { %v1151_v9 = vmul.f32 %v6143_v6, %v6030_v45  ;;  %v1153_v56 = vmul.f32 %v6143_v6, %v6034_v17  ;;  %v1127_v0 = vmul.f32 %v6143_v6, %v5960_v43  ;;  %v6210_v38 = vadd.f32 %v6145_v41, %v1141_v15 }
 0x249   :  { %v1140_v19 = vmul.f32 %v6143_v6, %v5999_v40  ;;  %v6215_v14 = vadd.f32 %v6145_v41, %v1143_v42  ;;  %v1126_v45 = vmul.f32 %v6143_v6, %v5957_v4  ;;  %v6220_v17 = vadd.f32 %v6145_v41, %v1142_v5 }
 0x24a   :  { %v6223_v31 = vadd.f32 %v6145_v41, %v1145_v37  ;;  %v6226_v43 = vadd.f32 %v6145_v41, %v1144_v23  ;;  %v6234_v40 = vadd.f32 %v6145_v41, %v1147_v29  ;;  %v6237_v50 = vadd.f32 %v6145_v41, %v1146_v28 }
 0x24b   :  { %1327 = vrot.lane.b32.xlu0 %v6184_v11, %s5406_s28  ;;  %1325 = vrot.lane.b32.xlu1 %v6187_v32, %s5406_s28  ;;  %v6231_v49 = vadd.f32 %v6145_v41, %v1140_v19  ;;  %v6244_v4 = vadd.f32 %v6145_v41, %v1149_v48  ;;  %v6247_v51 = vadd.f32 %v6145_v41, %v1148_v33 }
 0x24c   :  { %v6250_v52 = vadd.f32 %v6145_v41, %v1151_v9  ;;  %v6259_v54 = vadd.f32 %v6145_v41, %v1150_v58  ;;  %v6262_v34 = vadd.f32 %v6145_v41, %v1153_v56  ;;  %v6265_v20 = vadd.f32 %v6145_v41, %v1152_v1 }
 0x24d   :  { %v6268_v59 = vadd.f32 %v6145_v41, %v1127_v0  ;;  %v6271_v60 = vadd.f32 %v6145_v41, %v1126_v45  ;;  %v1129_v22 = vmul.f32 %v6143_v6, %v5966_v26  ;;  %v1128_v62 = vmul.f32 %v6143_v6, %v5963_v44 }
 0x24e   :  { %v1131_v44 = vmul.f32 %v6143_v6, %v5972_v16  ;;  %v1130_v26 = vmul.f32 %v6143_v6, %v5969_v27  ;;  %v1133_v27 = vmul.f32 %v6143_v6, %v5978_v47  ;;  %v1132_v16 = vmul.f32 %v6143_v6, %v5975_v13 }
 0x24f   :  { %1235 = vrot.lane.b32.xlu0 %v6184_v11, %s5405_s24  ;;  %1233 = vrot.lane.b32.xlu1 %v6187_v32, %s5405_s24  ;;  %v6290_v63 = vadd.f32 %v6145_v41, %v1129_v22  ;;  %v6293_v2 = vadd.f32 %v6145_v41, %v1128_v62  ;;  %v1135_v13 = vmul.f32 %v6143_v6, %v5984_v35 }
 0x250   :  { %v6308_v7 = vadd.f32 %v6145_v41, %v1131_v44  ;;  %v6311_v25 = vadd.f32 %v6145_v41, %v1130_v26  ;;  %v6326_v3 = vadd.f32 %v6145_v41, %v1133_v27  ;;  %v6329_v12 = vadd.f32 %v6145_v41, %v1132_v16 }
 0x251   :  { %v1134_v47 = vmul.f32 %v6143_v6, %v5981_v30  ;;  %v6344_v1 = vadd.f32 %v6145_v41, %v1135_v13  ;;  %v1137_v30 = vmul.f32 %v6143_v6, %v5990_v61  ;;  %v1136_v35 = vmul.f32 %v6143_v6, %v5987_v53 }
 0x252   :  { %v1139_v53 = vmul.f32 %v6143_v6, %v5996_v24  ;;  %v1138_v61 = vmul.f32 %v6143_v6, %v5993_v36 }
 0x253   :  { %1331 = vrot.lane.b32.xlu0 %v6268_v59, %s5406_s28  ;;  %1329 = vrot.lane.b32.xlu1 %v6271_v60, %s5406_s28  ;;  %v6347_v15 = vadd.f32 %v6145_v41, %v1134_v47  ;;  %v6362_v5 = vadd.f32 %v6145_v41, %v1137_v30  ;;  %v6365_v42 = vadd.f32 %v6145_v41, %v1136_v35 }
 0x254   :  { %v6380_v23 = vadd.f32 %v6145_v41, %v1139_v53  ;;  %v6383_v37 = vadd.f32 %v6145_v41, %v1138_v61 }
 0x257   :  { %1239 = vrot.lane.b32.xlu0 %v6268_v59, %s5405_s24  ;;  %1237 = vrot.lane.b32.xlu1 %v6271_v60, %s5405_s24 }
 0x25b   :  { %1335 = vrot.lane.b32.xlu0 %v6290_v63, %s5406_s28  ;;  %1333 = vrot.lane.b32.xlu1 %v6293_v2, %s5406_s28 }
 0x25f   :  { %1243 = vrot.lane.b32.xlu0 %v6290_v63, %s5405_s24  ;;  %1241 = vrot.lane.b32.xlu1 %v6293_v2, %s5405_s24 }
 0x263   :  { %1339 = vrot.lane.b32.xlu0 %v6308_v7, %s5406_s28  ;;  %1337 = vrot.lane.b32.xlu1 %v6311_v25, %s5406_s28 }
 0x267   :  { %1247 = vrot.lane.b32.xlu0 %v6308_v7, %s5405_s24  ;;  %1245 = vrot.lane.b32.xlu1 %v6311_v25, %s5405_s24 }
 0x26b   :  { %1343 = vrot.lane.b32.xlu0 %v6326_v3, %s5406_s28  ;;  %1341 = vrot.lane.b32.xlu1 %v6329_v12, %s5406_s28 }
 0x26f   :  { %1251 = vrot.lane.b32.xlu0 %v6326_v3, %s5405_s24  ;;  %1249 = vrot.lane.b32.xlu1 %v6329_v12, %s5405_s24 }
 0x273   :  { %1347 = vrot.lane.b32.xlu0 %v6344_v1, %s5406_s28  ;;  %1345 = vrot.lane.b32.xlu1 %v6347_v15, %s5406_s28 }
 0x277   :  { %1255 = vrot.lane.b32.xlu0 %v6344_v1, %s5405_s24  ;;  %1253 = vrot.lane.b32.xlu1 %v6347_v15, %s5405_s24 }
 0x27b   :  { %1351 = vrot.lane.b32.xlu0 %v6362_v5, %s5406_s28  ;;  %1349 = vrot.lane.b32.xlu1 %v6365_v42, %s5406_s28 }
 0x27f   :  { %1259 = vrot.lane.b32.xlu0 %v6362_v5, %s5405_s24  ;;  %1257 = vrot.lane.b32.xlu1 %v6365_v42, %s5405_s24 }
 0x283   :  { %1355 = vrot.lane.b32.xlu0 %v6380_v23, %s5406_s28  ;;  %1353 = vrot.lane.b32.xlu1 %v6383_v37, %s5406_s28 }
 0x287   :  { %1263 = vrot.lane.b32.xlu0 %v6380_v23, %s5405_s24  ;;  %1261 = vrot.lane.b32.xlu1 %v6383_v37, %s5405_s24 }
 0x28b   :  { %1359 = vrot.lane.b32.xlu0 %v6210_v38, %s5406_s28  ;;  %1357 = vrot.lane.b32.xlu1 %v6231_v49, %s5406_s28 }
 0x28f   :  { %1267 = vrot.lane.b32.xlu0 %v6210_v38, %s5405_s24  ;;  %1265 = vrot.lane.b32.xlu1 %v6231_v49, %s5405_s24 }
 0x293   :  { %1363 = vrot.lane.b32.xlu0 %v6215_v14, %s5406_s28  ;;  %1361 = vrot.lane.b32.xlu1 %v6220_v17, %s5406_s28 }
 0x297   :  { %1271 = vrot.lane.b32.xlu0 %v6215_v14, %s5405_s24  ;;  %1269 = vrot.lane.b32.xlu1 %v6220_v17, %s5405_s24 }
 0x29b   :  { %1367 = vrot.lane.b32.xlu0 %v6223_v31, %s5406_s28  ;;  %1365 = vrot.lane.b32.xlu1 %v6226_v43, %s5406_s28 }
 0x29f   :  { %1275 = vrot.lane.b32.xlu0 %v6223_v31, %s5405_s24  ;;  %1273 = vrot.lane.b32.xlu1 %v6226_v43, %s5405_s24 }
 0x2a3   :  { %1371 = vrot.lane.b32.xlu0 %v6234_v40, %s5406_s28  ;;  %1369 = vrot.lane.b32.xlu1 %v6237_v50, %s5406_s28 }
 0x2a7   :  { %1279 = vrot.lane.b32.xlu0 %v6234_v40, %s5405_s24  ;;  %1277 = vrot.lane.b32.xlu1 %v6237_v50, %s5405_s24 }
 0x2ab   :  { %1375 = vrot.lane.b32.xlu0 %v6244_v4, %s5406_s28  ;;  %1373 = vrot.lane.b32.xlu1 %v6247_v51, %s5406_s28 }
 0x2af   :  { %1283 = vrot.lane.b32.xlu0 %v6244_v4, %s5405_s24  ;;  %1281 = vrot.lane.b32.xlu1 %v6247_v51, %s5405_s24 }
 0x2b3   :  { %1379 = vrot.lane.b32.xlu0 %v6250_v52, %s5406_s28  ;;  %1377 = vrot.lane.b32.xlu1 %v6259_v54, %s5406_s28 }
 0x2b7   :  { %1287 = vrot.lane.b32.xlu0 %v6250_v52, %s5405_s24  ;;  %1285 = vrot.lane.b32.xlu1 %v6259_v54, %s5405_s24 }
 0x2b9   :  { %v1232_v36 = vpop.permute.xlu0 %1231  ;;  %v1230_v24 = vpop.permute.xlu1 %1229 }
 0x2ba   :  { %v1419_v6 = vsel %vm897_vm8, 0.0, %v1232_v36  ;;  %v1418_v41 = vsel %vm897_vm8, 0.0, %v1230_v24 }
 0x2bb   :  { %1383 = vrot.lane.b32.xlu0 %v6262_v34, %s5406_s28  ;;  %1381 = vrot.lane.b32.xlu1 %v6265_v20, %s5406_s28 }
 0x2bd   :  { %v1328_v28 = vpop.permute.xlu0 %1327  ;;  %v1326_v29 = vpop.permute.xlu1 %1325 }
 0x2be   :  { %v1452_v33 = vsel %vm1450_vm15, %v1419_v6, %v1328_v28  ;;  %v1451_v48 = vsel %vm1450_vm15, %v1418_v41, %v1326_v29 }
 0x2bf   :  { %1291 = vrot.lane.b32.xlu0 %v6262_v34, %s5405_s24  ;;  %1289 = vrot.lane.b32.xlu1 %v6265_v20, %s5405_s24 }
 0x2c0   :  { %4995 = vmatprep.mubr.msk.f32.mxu1 %vm1489_vm0, %v1451_v48 }
 0x2c1   :  { %4996 = vmatmul.mubr.msk.f32.vlgmr.msra.gmra.mrb[0].mxu1 %vm1489_vm0, %v1452_v33  ;;  %v1236_v58 = vpop.permute.xlu0 %1235  ;;  %v1234_v9 = vpop.permute.xlu1 %1233 }
 0x2c2   :  { %v1421_v56 = vsel %vm897_vm8, %v6152_v8, %v1236_v58  ;;  %v1420_v0 = vsel %vm897_vm8, %v6155_v10, %v1234_v9 }
 0x2c3   :  { %1385 = vrot.lane.b32.xlu1 %v5401_v55, %s5406_s28 }
 0x2c5   :  { %v1332_v19 = vpop.permute.xlu0 %1331  ;;  %v1330_v45 = vpop.permute.xlu1 %1329 }
 0x2c6   :  { %v1454_v46 = vsel %vm1450_vm15, %v1421_v56, %v1332_v19  ;;  %v1453_v18 = vsel %vm1450_vm15, %v1420_v0, %v1330_v45 }
 0x2c7   :  { %4998 = vmatprep.mubr.msk.f32.mxu1 %vm1489_vm0, %v1453_v18 }
 0x2c8   :  { %4999 = vmatmul.mubr.msk.f32.gmra.mrb[2].mxu1 %vm1489_vm0, %v1454_v46 }
 0x2c9   :  { %v1240_v34 = vpop.permute.xlu0 %1239  ;;  %v1238_v20 = vpop.permute.xlu1 %1237 }
 0x2ca   :  { %v1423_v57 = vsel %vm897_vm8, %v6184_v11, %v1240_v34  ;;  %v1422_v8 = vsel %vm897_vm8, %v6187_v32, %v1238_v20 }
 0x2cd   :  { %v1336_v22 = vpop.permute.xlu0 %1335  ;;  %v1334_v10 = vpop.permute.xlu1 %1333 }
 0x2ce   :  { %v1456_v62 = vsel %vm1450_vm15, %v1423_v57, %v1336_v22  ;;  %v1455_v44 = vsel %vm1450_vm15, %v1422_v8, %v1334_v10 }
 0x2cf   :  { %5001 = vmatprep.mubr.msk.f32.mxu1 %vm1489_vm0, %v1455_v44 }
 0x2d0   :  { %5002 = vmatmul.mubr.msk.f32.gmra.mrb[4].mxu1 %vm1489_vm0, %v1456_v62 }
 0x2d1   :  { %v1244_v26 = vpop.permute.xlu0 %1243  ;;  %v1242_v27 = vpop.permute.xlu1 %1241 }
 0x2d2   :  { %v1425_v16 = vsel %vm897_vm8, %v6268_v59, %v1244_v26  ;;  %v1424_v11 = vsel %vm897_vm8, %v6271_v60, %v1242_v27 }
 0x2d5   :  { %v1340_v13 = vpop.permute.xlu0 %1339  ;;  %v1338_v32 = vpop.permute.xlu1 %1337 }
 0x2d6   :  { %v1458_v47 = vsel %vm1450_vm15, %v1425_v16, %v1340_v13  ;;  %v1457_v30 = vsel %vm1450_vm15, %v1424_v11, %v1338_v32 }
 0x2d7   :  { %5004 = vmatprep.mubr.msk.f32.mxu1 %vm1489_vm0, %v1457_v30 }
 0x2d8   :  { %5005 = vmatmul.mubr.msk.f32.gmra.mrb[6].mxu1 %vm1489_vm0, %v1458_v47 }
 0x2d9   :  { %v1248_v35 = vpop.permute.xlu0 %1247  ;;  %v1246_v53 = vpop.permute.xlu1 %1245 }
 0x2da   :  { %v1427_v61 = vsel %vm897_vm8, %v6290_v63, %v1248_v35  ;;  %v1426_v59 = vsel %vm897_vm8, %v6293_v2, %v1246_v53 }
 0x2dd   :  { %v1344_v36 = vpop.permute.xlu0 %1343  ;;  %v1342_v60 = vpop.permute.xlu1 %1341 }
 0x2de   :  { %v1460_v24 = vsel %vm1450_vm15, %v1427_v61, %v1344_v36  ;;  %v1459_v6 = vsel %vm1450_vm15, %v1426_v59, %v1342_v60 }
 0x2df   :  { %5007 = vmatprep.mubr.msk.f32.mxu1 %vm1489_vm0, %v1459_v6 }
 0x2e0   :  { %5008 = vmatmul.mubr.msk.f32.gmra.mrb[8].mxu1 %vm1489_vm0, %v1460_v24 }
 0x2e1   :  { %v1252_v41 = vpop.permute.xlu0 %1251  ;;  %v1250_v28 = vpop.permute.xlu1 %1249 }
 0x2e2   :  { %v1429_v29 = vsel %vm897_vm8, %v6308_v7, %v1252_v41  ;;  %v1428_v63 = vsel %vm897_vm8, %v6311_v25, %v1250_v28 }
 0x2e5   :  { %v1348_v33 = vpop.permute.xlu0 %1347  ;;  %v1346_v2 = vpop.permute.xlu1 %1345 }
 0x2e6   :  { %v1462_v48 = vsel %vm1450_vm15, %v1429_v29, %v1348_v33  ;;  %v1461_v58 = vsel %vm1450_vm15, %v1428_v63, %v1346_v2 }
 0x2e7   :  { %5010 = vmatprep.mubr.msk.f32.mxu1 %vm1489_vm0, %v1461_v58 }
 0x2e8   :  { %5011 = vmatmul.mubr.msk.f32.gmra.mrb[10].mxu1 %vm1489_vm0, %v1462_v48 }
 0x2e9   :  { %v1256_v9 = vpop.permute.xlu0 %1255  ;;  %v1254_v56 = vpop.permute.xlu1 %1253 }
 0x2ea   :  { %v1431_v0 = vsel %vm897_vm8, %v6326_v3, %v1256_v9  ;;  %v1430_v7 = vsel %vm897_vm8, %v6329_v12, %v1254_v56 }
 0x2ed   :  { %v1352_v19 = vpop.permute.xlu0 %1351  ;;  %v1350_v25 = vpop.permute.xlu1 %1349 }
 0x2ee   :  { %v1464_v45 = vsel %vm1450_vm15, %v1431_v0, %v1352_v19  ;;  %v1463_v46 = vsel %vm1450_vm15, %v1430_v7, %v1350_v25 }
 0x2ef   :  { %5013 = vmatprep.mubr.msk.f32.mxu1 %vm1489_vm0, %v1463_v46 }
 0x2f0   :  { %5014 = vmatmul.mubr.msk.f32.gmra.mrb[12].mxu1 %vm1489_vm0, %v1464_v45 }
 0x2f1   :  { %v1260_v18 = vpop.permute.xlu0 %1259  ;;  %v1258_v34 = vpop.permute.xlu1 %1257 }
 0x2f2   :  { %v1433_v20 = vsel %vm897_vm8, %v6344_v1, %v1260_v18  ;;  %v1432_v3 = vsel %vm897_vm8, %v6347_v15, %v1258_v34 }
 0x2f5   :  { %v1356_v57 = vpop.permute.xlu0 %1355  ;;  %v1354_v12 = vpop.permute.xlu1 %1353 }
 0x2f6   :  { %v1466_v8 = vsel %vm1450_vm15, %v1433_v20, %v1356_v57  ;;  %v1465_v22 = vsel %vm1450_vm15, %v1432_v3, %v1354_v12 }
 0x2f7   :  { %5016 = vmatprep.mubr.msk.f32.mxu1 %vm1489_vm0, %v1465_v22 }
 0x2f8   :  { %5017 = vmatmul.mubr.msk.f32.gmra.mrb[14].mxu1 %vm1489_vm0, %v1466_v8 }
 0x2f9   :  { %v1264_v10 = vpop.permute.xlu0 %1263  ;;  %v1262_v62 = vpop.permute.xlu1 %1261 }
 0x2fa   :  { %v1435_v44 = vsel %vm897_vm8, %v6362_v5, %v1264_v10  ;;  %v1434_v1 = vsel %vm897_vm8, %v6365_v42, %v1262_v62 }
 0x2fd   :  { %v1360_v26 = vpop.permute.xlu0 %1359  ;;  %v1358_v15 = vpop.permute.xlu1 %1357 }
 0x2fe   :  { %v1468_v27 = vsel %vm1450_vm15, %v1435_v44, %v1360_v26  ;;  %v1467_v16 = vsel %vm1450_vm15, %v1434_v1, %v1358_v15 }
 0x2ff   :  { %5019 = vmatprep.mubr.msk.f32.mxu1 %vm1489_vm0, %v1467_v16 }
 0x300   :  { %5020 = vmatmul.mubr.msk.f32.gmra.mrb[16].mxu1 %vm1489_vm0, %v1468_v27 }
 0x301   :  { %v1268_v11 = vpop.permute.xlu0 %1267  ;;  %v1266_v13 = vpop.permute.xlu1 %1265 }
 0x302   :  { %v1437_v32 = vsel %vm897_vm8, %v6380_v23, %v1268_v11  ;;  %v1436_v5 = vsel %vm897_vm8, %v6383_v37, %v1266_v13 }
 0x305   :  { %v1364_v47 = vpop.permute.xlu0 %1363  ;;  %v1362_v42 = vpop.permute.xlu1 %1361 }
 0x306   :  { %v1470_v30 = vsel %vm1450_vm15, %v1437_v32, %v1364_v47  ;;  %v1469_v35 = vsel %vm1450_vm15, %v1436_v5, %v1362_v42 }
 0x307   :  { %5022 = vmatprep.mubr.msk.f32.mxu1 %vm1489_vm0, %v1469_v35 }
 0x308   :  { %5023 = vmatmul.mubr.msk.f32.gmra.mrb[18].mxu1 %vm1489_vm0, %v1470_v30 }
 0x309   :  { %v1272_v53 = vpop.permute.xlu0 %1271  ;;  %v1270_v61 = vpop.permute.xlu1 %1269 }
 0x30a   :  { %v1439_v59 = vsel %vm897_vm8, %v6210_v38, %v1272_v53  ;;  %v1438_v23 = vsel %vm897_vm8, %v6231_v49, %v1270_v61 }
 0x30d   :  { %v1368_v36 = vpop.permute.xlu0 %1367  ;;  %v1366_v37 = vpop.permute.xlu1 %1365 }
 0x30e   :  { %v1472_v60 = vsel %vm1450_vm15, %v1439_v59, %v1368_v36  ;;  %v1471_v24 = vsel %vm1450_vm15, %v1438_v23, %v1366_v37 }
 0x30f   :  { %5025 = vmatprep.mubr.msk.f32.mxu1 %vm1489_vm0, %v1471_v24 }
 0x310   :  { %5026 = vmatmul.mubr.msk.f32.gmra.mrb[20].mxu1 %vm1489_vm0, %v1472_v60 }
 0x311   :  { %v1276_v6 = vpop.permute.xlu0 %1275  ;;  %v1274_v41 = vpop.permute.xlu1 %1273 }
 0x312   :  { %v1441_v28 = vsel %vm897_vm8, %v6215_v14, %v1276_v6  ;;  %v1440_v38 = vsel %vm897_vm8, %v6220_v17, %v1274_v41 }
 0x315   :  { %v1372_v29 = vpop.permute.xlu0 %1371  ;;  %v1370_v49 = vpop.permute.xlu1 %1369 }
 0x316   :  { %v1474_v63 = vsel %vm1450_vm15, %v1441_v28, %v1372_v29  ;;  %v1473_v33 = vsel %vm1450_vm15, %v1440_v38, %v1370_v49 }
 0x317   :  { %5028 = vmatprep.mubr.msk.f32.mxu1 %vm1489_vm0, %v1473_v33 }
 0x318   :  { %5029 = vmatmul.mubr.msk.f32.gmra.mrb[22].mxu1 %vm1489_vm0, %v1474_v63 }
 0x319   :  { %v1280_v2 = vpop.permute.xlu0 %1279  ;;  %v1278_v48 = vpop.permute.xlu1 %1277 }
 0x31a   :  { %v1443_v58 = vsel %vm897_vm8, %v6223_v31, %v1280_v2  ;;  %v1442_v14 = vsel %vm897_vm8, %v6226_v43, %v1278_v48 }
 0x31d   :  { %v1376_v9 = vpop.permute.xlu0 %1375  ;;  %v1374_v17 = vpop.permute.xlu1 %1373 }
 0x31e   :  { %v1476_v56 = vsel %vm1450_vm15, %v1443_v58, %v1376_v9  ;;  %v1475_v0 = vsel %vm1450_vm15, %v1442_v14, %v1374_v17 }
 0x31f   :  { %5031 = vmatprep.mubr.msk.f32.mxu1 %vm1489_vm0, %v1475_v0 }
 0x320   :  { %5032 = vmatmul.mubr.msk.f32.gmra.mrb[24].mxu1 %vm1489_vm0, %v1476_v56 }
 0x321   :  { %v1284_v7 = vpop.permute.xlu0 %1283  ;;  %v1282_v19 = vpop.permute.xlu1 %1281 }
 0x322   :  { %v1445_v25 = vsel %vm897_vm8, %v6234_v40, %v1284_v7  ;;  %v1444_v31 = vsel %vm897_vm8, %v6237_v50, %v1282_v19 }
 0x325   :  { %v1380_v45 = vpop.permute.xlu0 %1379  ;;  %v1378_v43 = vpop.permute.xlu1 %1377 }
 0x326   :  { %v1478_v46 = vsel %vm1450_vm15, %v1445_v25, %v1380_v45  ;;  %v1477_v18 = vsel %vm1450_vm15, %v1444_v31, %v1378_v43 }
 0x327   :  { %5034 = vmatprep.mubr.msk.f32.mxu1 %vm1489_vm0, %v1477_v18 }
 0x328   :  { %5035 = vmatmul.mubr.msk.f32.gmra.mrb[26].mxu1 %vm1489_vm0, %v1478_v46 }
 0x329   :  { %v1288_v34 = vpop.permute.xlu0 %1287  ;;  %v1286_v20 = vpop.permute.xlu1 %1285 }
 0x32a   :  { %v1447_v3 = vsel %vm897_vm8, %v6244_v4, %v1288_v34  ;;  %v1446_v40 = vsel %vm897_vm8, %v6247_v51, %v1286_v20 }
 0x32d   :  { %v1384_v57 = vpop.permute.xlu0 %1383  ;;  %v1382_v50 = vpop.permute.xlu1 %1381 }
 0x32e   :  { %v1480_v12 = vsel %vm1450_vm15, %v1447_v3, %v1384_v57  ;;  %v1479_v8 = vsel %vm1450_vm15, %v1446_v40, %v1382_v50 }
 0x32f   :  { %5037 = vmatprep.mubr.msk.f32.mxu1 %vm1489_vm0, %v1479_v8 }
 0x330   :  { %5038 = vmatmul.mubr.msk.f32.gmra.mrb[28].mxu1 %vm1489_vm0, %v1480_v12 }
 0x331   :  { %v1290_v22 = vpop.permute.xlu1 %1289  ;;  %v1292_v10 = vpop.permute.xlu0 %1291 }
 0x332   :  { %v1449_v62 = vsel %vm897_vm8, %v6250_v52, %v1292_v10  ;;  %v1448_v4 = vsel %vm897_vm8, %v6259_v54, %v1290_v22  ;;  %v6584_v52 = vld [vmem:[%s4585_s2] ss:$0 sm:$0xff]  ;;  %s5414_s2 = smov 20  }
 0x333   :  { %s4599_s4 = sld [smem:[%s8189_s0 + %s5414_s2]]  }
 0x335   :  { %v6573_v44 = vpop.permute.xlu1 %1385 }
 0x336   :  { %v1481_v51 = vsel %vm1450_vm15, %v1448_v4, %v6573_v44  ;;  %v1482_v1 = vsel %vm1450_vm15, %v1449_v62, %v6573_v44 }
 0x337   :  { %5040 = vmatprep.mubr.msk.f32.mxu1 %vm1489_vm0, %v1481_v51 }
 0x338   :  { %5041 = vmatmul.mubr.msk.f32.gmra.mrb[30].mxu1 %vm1489_vm0, %v1482_v1 }
 0x394   :  { %v4997_v54 = vpop.f32.mrb[0].mxu1 }
 0x395   :  { %v1656_v26 = vpop.f32.mrb[1].mxu1  ;;  %v1662_v15 = vadd.f32 %v4997_v54, %v6584_v52 }
 0x396   :  { %v1657_v27 = vadd.f32 %v6584_v52, %v1656_v26 }
 0x397   :  { %v1848_v16 = vmul.f32 0.01, %v1662_v15  ;;  %vm1816_vm2 = vcmp.gt.f32.partialorder %v1662_v15, 0.0 }
 0x398   :  { %v1847_v11 = vmul.f32 0.01, %v1657_v27  ;;  %vm1815_vm3 = vcmp.gt.f32.partialorder %v1657_v27, 0.0 }
 0x399   :  { %v6590_v42 = vsel %vm1816_vm2, %v1662_v15, %v1848_v16 }
 0x39a   :  { %v6592_v35 = vsel %vm1815_vm3, %v1657_v27, %v1847_v11  ;;  %v1942_v59 = vsel %vm897_vm8, %v6590_v42, 0.0 }
 0x39b   :  { %v5000_v13 = vpop.f32.mrb[2].mxu1  ;;  %v1911_v37 = vsel %vm897_vm8, %v6592_v35, 0.0 }
 0x39c   :  { %v1672_v32 = vadd.f32 %v5000_v13, %v6584_v52  ;;  %v1666_v5 = vpop.f32.mrb[3].mxu1 }
 0x39d   :  { %v1667_v47 = vadd.f32 %v6584_v52, %v1666_v5 }
 0x39e   :  { %vm1818_vm4 = vcmp.gt.f32.partialorder %v1672_v32, 0.0  ;;  %v1850_v30 = vmul.f32 0.01, %v1672_v32 }
 0x39f   :  { %vm1817_vm5 = vcmp.gt.f32.partialorder %v1667_v47, 0.0  ;;  %v1849_v53 = vmul.f32 0.01, %v1667_v47 }
 0x3a0   :  { %v6594_v61 = vsel %vm1818_vm4, %v1672_v32, %v1850_v30 }
 0x3a1   :  { %v1943_v23 = vsel %vm897_vm8, %v6594_v61, 0.0  ;;  %v6600_v36 = vsel %vm1817_vm5, %v1667_v47, %v1849_v53 }
 0x3a2   :  { %v1944_v60 = vadd.f32 %v1943_v23, %v1942_v59  ;;  %v1912_v24 = vsel %vm897_vm8, %v6600_v36, 0.0 }
 0x3a3   :  { %v1913_v6 = vadd.f32 %v1912_v24, %v1911_v37  ;;  %v5003_v41 = vpop.f32.mrb[4].mxu1 }
 0x3a4   :  { %v1682_v28 = vadd.f32 %v5003_v41, %v6584_v52  ;;  %v1676_v38 = vpop.f32.mrb[5].mxu1 }
 0x3a5   :  { %v1677_v29 = vadd.f32 %v6584_v52, %v1676_v38 }
 0x3a6   :  { %vm1820_vm6 = vcmp.gt.f32.partialorder %v1682_v28, 0.0  ;;  %v1852_v49 = vmul.f32 0.01, %v1682_v28 }
 0x3a7   :  { %vm1819_vm7 = vcmp.gt.f32.partialorder %v1677_v29, 0.0  ;;  %v1851_v63 = vmul.f32 0.01, %v1677_v29 }
 0x3a8   :  { %v6608_v33 = vsel %vm1820_vm6, %v1682_v28, %v1852_v49 }
 0x3a9   :  { %v1945_v2 = vsel %vm897_vm8, %v6608_v33, 0.0  ;;  %v6612_v48 = vsel %vm1819_vm7, %v1677_v29, %v1851_v63 }
 0x3aa   :  { %v1946_v58 = vadd.f32 %v1945_v2, %v1944_v60  ;;  %v1914_v14 = vsel %vm897_vm8, %v6612_v48, 0.0 }
 0x3ab   :  { %v1915_v9 = vadd.f32 %v1914_v14, %v1913_v6  ;;  %v5006_v17 = vpop.f32.mrb[6].mxu1 }
 0x3ac   :  { %v1692_v56 = vadd.f32 %v5006_v17, %v6584_v52  ;;  %v1686_v0 = vpop.f32.mrb[7].mxu1 }
 0x3ad   :  { %v1687_v7 = vadd.f32 %v6584_v52, %v1686_v0 }
 0x3ae   :  { %vm1822_vm9 = vcmp.gt.f32.partialorder %v1692_v56, 0.0  ;;  %v1854_v19 = vmul.f32 0.01, %v1692_v56 }
 0x3af   :  { %vm1821_vm10 = vcmp.gt.f32.partialorder %v1687_v7, 0.0  ;;  %v1853_v25 = vmul.f32 0.01, %v1687_v7 }
 0x3b0   :  { %v6618_v31 = vsel %vm1822_vm9, %v1692_v56, %v1854_v19 }
 0x3b1   :  { %v1947_v45 = vsel %vm897_vm8, %v6618_v31, 0.0  ;;  %v6622_v43 = vsel %vm1821_vm10, %v1687_v7, %v1853_v25 }
 0x3b2   :  { %v1948_v46 = vadd.f32 %v1947_v45, %v1946_v58  ;;  %v1916_v18 = vsel %vm897_vm8, %v6622_v43, 0.0 }
 0x3b3   :  { %v1917_v34 = vadd.f32 %v1916_v18, %v1915_v9  ;;  %v5009_v20 = vpop.f32.mrb[8].mxu1 }
 0x3b4   :  { %v1702_v3 = vadd.f32 %v5009_v20, %v6584_v52  ;;  %v1696_v40 = vpop.f32.mrb[9].mxu1 }
 0x3b5   :  { %v1697_v57 = vadd.f32 %v6584_v52, %v1696_v40 }
 0x3b6   :  { %vm1824_vm11 = vcmp.gt.f32.partialorder %v1702_v3, 0.0  ;;  %v1856_v50 = vmul.f32 0.01, %v1702_v3 }
 0x3b7   :  { %vm1823_vm12 = vcmp.gt.f32.partialorder %v1697_v57, 0.0  ;;  %v1855_v12 = vmul.f32 0.01, %v1697_v57 }
 0x3b8   :  { %v6628_v8 = vsel %vm1824_vm11, %v1702_v3, %v1856_v50 }
 0x3b9   :  { %v1949_v22 = vsel %vm897_vm8, %v6628_v8, 0.0  ;;  %v6632_v10 = vsel %vm1823_vm12, %v1697_v57, %v1855_v12 }
 0x3ba   :  { %v1950_v62 = vadd.f32 %v1949_v22, %v1948_v46  ;;  %v1918_v4 = vsel %vm897_vm8, %v6632_v10, 0.0 }
 0x3bb   :  { %v1919_v51 = vadd.f32 %v1918_v4, %v1917_v34  ;;  %v5012_v1 = vpop.f32.mrb[10].mxu1 }
 0x3bc   :  { %v1712_v54 = vadd.f32 %v5012_v1, %v6584_v52  ;;  %v1706_v26 = vpop.f32.mrb[11].mxu1 }
 0x3bd   :  { %v1707_v15 = vadd.f32 %v6584_v52, %v1706_v26 }
 0x3be   :  { %vm1826_vm13 = vcmp.gt.f32.partialorder %v1712_v54, 0.0  ;;  %v1858_v27 = vmul.f32 0.01, %v1712_v54 }
 0x3bf   :  { %vm1825_vm2 = vcmp.gt.f32.partialorder %v1707_v15, 0.0  ;;  %v1857_v16 = vmul.f32 0.01, %v1707_v15 }
 0x3c0   :  { %v6638_v11 = vsel %vm1826_vm13, %v1712_v54, %v1858_v27 }
 0x3c1   :  { %v1951_v13 = vsel %vm897_vm8, %v6638_v11, 0.0  ;;  %v6642_v32 = vsel %vm1825_vm2, %v1707_v15, %v1857_v16 }
 0x3c2   :  { %v1952_v5 = vadd.f32 %v1951_v13, %v1950_v62  ;;  %v1920_v47 = vsel %vm897_vm8, %v6642_v32, 0.0 }
 0x3c3   :  { %v1921_v30 = vadd.f32 %v1920_v47, %v1919_v51  ;;  %v5015_v53 = vpop.f32.mrb[12].mxu1 }
 0x3c4   :  { %v1722_v59 = vadd.f32 %v5015_v53, %v6584_v52  ;;  %v1716_v23 = vpop.f32.mrb[13].mxu1 }
 0x3c5   :  { %v1717_v37 = vadd.f32 %v6584_v52, %v1716_v23 }
 0x3c6   :  { %vm1828_vm3 = vcmp.gt.f32.partialorder %v1722_v59, 0.0  ;;  %v1860_v60 = vmul.f32 0.01, %v1722_v59 }
 0x3c7   :  { %vm1827_vm4 = vcmp.gt.f32.partialorder %v1717_v37, 0.0  ;;  %v1859_v24 = vmul.f32 0.01, %v1717_v37 }
 0x3c8   :  { %v6648_v6 = vsel %vm1828_vm3, %v1722_v59, %v1860_v60 }
 0x3c9   :  { %v1953_v41 = vsel %vm897_vm8, %v6648_v6, 0.0  ;;  %v6652_v28 = vsel %vm1827_vm4, %v1717_v37, %v1859_v24 }
 0x3ca   :  { %v1954_v38 = vadd.f32 %v1953_v41, %v1952_v5  ;;  %v1922_v29 = vsel %vm897_vm8, %v6652_v28, 0.0 }
 0x3cb   :  { %v1923_v49 = vadd.f32 %v1922_v29, %v1921_v30  ;;  %v5018_v63 = vpop.f32.mrb[14].mxu1 }
 0x3cc   :  { %v1732_v2 = vadd.f32 %v5018_v63, %v6584_v52  ;;  %v1726_v58 = vpop.f32.mrb[15].mxu1 }
 0x3cd   :  { %v1727_v14 = vadd.f32 %v6584_v52, %v1726_v58 }
 0x3ce   :  { %vm1830_vm5 = vcmp.gt.f32.partialorder %v1732_v2, 0.0  ;;  %v1862_v9 = vmul.f32 0.01, %v1732_v2 }
 0x3cf   :  { %vm1829_vm6 = vcmp.gt.f32.partialorder %v1727_v14, 0.0  ;;  %v1861_v17 = vmul.f32 0.01, %v1727_v14 }
 0x3d0   :  { %v6658_v56 = vsel %vm1830_vm5, %v1732_v2, %v1862_v9 }
 0x3d1   :  { %v1955_v0 = vsel %vm897_vm8, %v6658_v56, 0.0  ;;  %v6662_v7 = vsel %vm1829_vm6, %v1727_v14, %v1861_v17 }
 0x3d2   :  { %v1956_v19 = vadd.f32 %v1955_v0, %v1954_v38  ;;  %v1924_v25 = vsel %vm897_vm8, %v6662_v7, 0.0 }
 0x3d3   :  { %v1925_v45 = vadd.f32 %v1924_v25, %v1923_v49  ;;  %v5021_v46 = vpop.f32.mrb[16].mxu1 }
 0x3d4   :  { %v1742_v18 = vadd.f32 %v5021_v46, %v6584_v52  ;;  %v1736_v34 = vpop.f32.mrb[17].mxu1 }
 0x3d5   :  { %v1737_v20 = vadd.f32 %v6584_v52, %v1736_v34 }
 0x3d6   :  { %vm1832_vm7 = vcmp.gt.f32.partialorder %v1742_v18, 0.0  ;;  %v1864_v3 = vmul.f32 0.01, %v1742_v18 }
 0x3d7   :  { %vm1831_vm9 = vcmp.gt.f32.partialorder %v1737_v20, 0.0  ;;  %v1863_v40 = vmul.f32 0.01, %v1737_v20 }
 0x3d8   :  { %v6668_v57 = vsel %vm1832_vm7, %v1742_v18, %v1864_v3 }
 0x3d9   :  { %v1957_v50 = vsel %vm897_vm8, %v6668_v57, 0.0  ;;  %v6672_v12 = vsel %vm1831_vm9, %v1737_v20, %v1863_v40 }
 0x3da   :  { %v1958_v22 = vadd.f32 %v1957_v50, %v1956_v19  ;;  %v1926_v62 = vsel %vm897_vm8, %v6672_v12, 0.0 }
 0x3db   :  { %v1927_v4 = vadd.f32 %v1926_v62, %v1925_v45  ;;  %v5024_v51 = vpop.f32.mrb[18].mxu1 }
 0x3dc   :  { %v1752_v1 = vadd.f32 %v5024_v51, %v6584_v52  ;;  %v1746_v54 = vpop.f32.mrb[19].mxu1 }
 0x3dd   :  { %v1747_v26 = vadd.f32 %v6584_v52, %v1746_v54 }
 0x3de   :  { %vm1834_vm10 = vcmp.gt.f32.partialorder %v1752_v1, 0.0  ;;  %v1866_v15 = vmul.f32 0.01, %v1752_v1 }
 0x3df   :  { %vm1833_vm11 = vcmp.gt.f32.partialorder %v1747_v26, 0.0  ;;  %v1865_v27 = vmul.f32 0.01, %v1747_v26 }
 0x3e0   :  { %v6678_v16 = vsel %vm1834_vm10, %v1752_v1, %v1866_v15 }
 0x3e1   :  { %v1959_v13 = vsel %vm897_vm8, %v6678_v16, 0.0  ;;  %v6682_v5 = vsel %vm1833_vm11, %v1747_v26, %v1865_v27 }
 0x3e2   :  { %v1960_v47 = vadd.f32 %v1959_v13, %v1958_v22  ;;  %v1928_v30 = vsel %vm897_vm8, %v6682_v5, 0.0 }
 0x3e3   :  { %v1929_v53 = vadd.f32 %v1928_v30, %v1927_v4  ;;  %v5027_v59 = vpop.f32.mrb[20].mxu1 }
 0x3e4   :  { %v1762_v23 = vadd.f32 %v5027_v59, %v6584_v52  ;;  %v1756_v37 = vpop.f32.mrb[21].mxu1 }
 0x3e5   :  { %v1757_v60 = vadd.f32 %v6584_v52, %v1756_v37 }
 0x3e6   :  { %vm1836_vm12 = vcmp.gt.f32.partialorder %v1762_v23, 0.0  ;;  %v1868_v24 = vmul.f32 0.01, %v1762_v23 }
 0x3e7   :  { %vm1835_vm13 = vcmp.gt.f32.partialorder %v1757_v60, 0.0  ;;  %v1867_v41 = vmul.f32 0.01, %v1757_v60 }
 0x3e8   :  { %v6688_v38 = vsel %vm1836_vm12, %v1762_v23, %v1868_v24 }
 0x3e9   :  { %v1961_v29 = vsel %vm897_vm8, %v6688_v38, 0.0  ;;  %v6692_v49 = vsel %vm1835_vm13, %v1757_v60, %v1867_v41 }
 0x3ea   :  { %v1962_v63 = vadd.f32 %v1961_v29, %v1960_v47  ;;  %v1930_v2 = vsel %vm897_vm8, %v6692_v49, 0.0 }
 0x3eb   :  { %v1931_v58 = vadd.f32 %v1930_v2, %v1929_v53  ;;  %v5030_v14 = vpop.f32.mrb[22].mxu1 }
 0x3ec   :  { %v1772_v9 = vadd.f32 %v5030_v14, %v6584_v52  ;;  %v1766_v17 = vpop.f32.mrb[23].mxu1 }
 0x3ed   :  { %v1767_v0 = vadd.f32 %v6584_v52, %v1766_v17 }
 0x3ee   :  { %vm1838_vm2 = vcmp.gt.f32.partialorder %v1772_v9, 0.0  ;;  %v1870_v19 = vmul.f32 0.01, %v1772_v9 }
 0x3ef   :  { %vm1837_vm3 = vcmp.gt.f32.partialorder %v1767_v0, 0.0  ;;  %v1869_v25 = vmul.f32 0.01, %v1767_v0 }
 0x3f0   :  { %v6698_v45 = vsel %vm1838_vm2, %v1772_v9, %v1870_v19 }
 0x3f1   :  { %v1963_v46 = vsel %vm897_vm8, %v6698_v45, 0.0  ;;  %v6702_v18 = vsel %vm1837_vm3, %v1767_v0, %v1869_v25 }
 0x3f2   :  { %v1964_v34 = vadd.f32 %v1963_v46, %v1962_v63  ;;  %v1932_v20 = vsel %vm897_vm8, %v6702_v18, 0.0 }
 0x3f3   :  { %v1933_v3 = vadd.f32 %v1932_v20, %v1931_v58  ;;  %v5033_v40 = vpop.f32.mrb[24].mxu1 }
 0x3f4   :  { %v1782_v50 = vadd.f32 %v5033_v40, %v6584_v52  ;;  %v1776_v22 = vpop.f32.mrb[25].mxu1 }
 0x3f5   :  { %v1777_v62 = vadd.f32 %v6584_v52, %v1776_v22 }
 0x3f6   :  { %vm1840_vm4 = vcmp.gt.f32.partialorder %v1782_v50, 0.0  ;;  %v1872_v4 = vmul.f32 0.01, %v1782_v50 }
 0x3f7   :  { %vm1839_vm5 = vcmp.gt.f32.partialorder %v1777_v62, 0.0  ;;  %v1871_v51 = vmul.f32 0.01, %v1777_v62 }
 0x3f8   :  { %v6708_v1 = vsel %vm1840_vm4, %v1782_v50, %v1872_v4 }
 0x3f9   :  { %v1965_v54 = vsel %vm897_vm8, %v6708_v1, 0.0  ;;  %v6712_v26 = vsel %vm1839_vm5, %v1777_v62, %v1871_v51 }
 0x3fa   :  { %v1966_v15 = vadd.f32 %v1965_v54, %v1964_v34  ;;  %v1934_v27 = vsel %vm897_vm8, %v6712_v26, 0.0 }
 0x3fb   :  { %v1935_v13 = vadd.f32 %v1934_v27, %v1933_v3  ;;  %v5036_v47 = vpop.f32.mrb[26].mxu1 }
 0x3fc   :  { %v1792_v30 = vadd.f32 %v5036_v47, %v6584_v52  ;;  %v1786_v53 = vpop.f32.mrb[27].mxu1 }
 0x3fd   :  { %v1787_v59 = vadd.f32 %v6584_v52, %v1786_v53 }
 0x3fe   :  { %vm1842_vm6 = vcmp.gt.f32.partialorder %v1792_v30, 0.0  ;;  %v1874_v23 = vmul.f32 0.01, %v1792_v30 }
 0x3ff   :  { %vm1841_vm7 = vcmp.gt.f32.partialorder %v1787_v59, 0.0  ;;  %v1873_v37 = vmul.f32 0.01, %v1787_v59 }
 0x400   :  { %v6718_v60 = vsel %vm1842_vm6, %v1792_v30, %v1874_v23 }
 0x401   :  { %v1967_v24 = vsel %vm897_vm8, %v6718_v60, 0.0  ;;  %v6722_v41 = vsel %vm1841_vm7, %v1787_v59, %v1873_v37 }
 0x402   :  { %v1968_v29 = vadd.f32 %v1967_v24, %v1966_v15  ;;  %v1936_v63 = vsel %vm897_vm8, %v6722_v41, 0.0 }
 0x403   :  { %v1937_v2 = vadd.f32 %v1936_v63, %v1935_v13  ;;  %v5039_v58 = vpop.f32.mrb[28].mxu1 }
 0x404   :  { %v1802_v14 = vadd.f32 %v5039_v58, %v6584_v52  ;;  %v1796_v9 = vpop.f32.mrb[29].mxu1 }
 0x405   :  { %v1797_v17 = vadd.f32 %v6584_v52, %v1796_v9 }
 0x406   :  { %vm1844_vm9 = vcmp.gt.f32.partialorder %v1802_v14, 0.0  ;;  %v1876_v0 = vmul.f32 0.01, %v1802_v14 }
 0x407   :  { %vm1843_vm10 = vcmp.gt.f32.partialorder %v1797_v17, 0.0  ;;  %v1875_v19 = vmul.f32 0.01, %v1797_v17 }
 0x408   :  { %v1908_v25 = vsel %vm1844_vm9, %v1802_v14, %v1876_v0 }
 0x409   :  { %v1969_v46 = vsel %vm897_vm8, %v1908_v25, 0.0  ;;  %v1907_v34 = vsel %vm1843_vm10, %v1797_v17, %v1875_v19 }
 0x40a   :  { %v1970_v20 = vadd.f32 %v1969_v46, %v1968_v29  ;;  %v1938_v3 = vsel %vm897_vm8, %v1907_v34, 0.0 }
 0x40b   :  { %v1939_v40 = vadd.f32 %v1938_v3, %v1937_v2  ;;  %v5042_v50 = vpop.f32.mrb[30].mxu1 }
 0x40c   :  { %v1812_v22 = vadd.f32 %v5042_v50, %v6584_v52  ;;  %v1806_v62 = vpop.f32.mrb[31].mxu1 }
 0x40d   :  { %v1807_v4 = vadd.f32 %v6584_v52, %v1806_v62 }
 0x40e   :  { %vm1846_vm11 = vcmp.gt.f32.partialorder %v1812_v22, 0.0  ;;  %v1878_v51 = vmul.f32 0.01, %v1812_v22 }
 0x40f   :  { %vm1845_vm12 = vcmp.gt.f32.partialorder %v1807_v4, 0.0  ;;  %v1877_v54 = vmul.f32 0.01, %v1807_v4 }
 0x410   :  { %v1910_v15 = vsel %vm1846_vm11, %v1812_v22, %v1878_v51 }
 0x411   :  { %v1971_v27 = vsel %vm897_vm8, %v1910_v15, 0.0  ;;  %v1909_v13 = vsel %vm1845_vm12, %v1807_v4, %v1877_v54 }
 0x412   :  { %v1972_v47 = vadd.f32 %v1971_v27, %v1970_v20  ;;  %v1940_v30 = vsel %vm897_vm8, %v1909_v13, 0.0 }
 0x413   :  { %v1941_v53 = vadd.f32 %v1940_v30, %v1939_v40 }
 0x414   :  { %v1974_v59 = vsel %vm897_vm8, %v1972_v47, 0.0 }
 0x415   :  { %v1973_v23 = vsel %vm897_vm8, %v1941_v53, 0.0 }
 0x416   :  { %v1975_v37 = vadd.f32 %v1974_v59, %v1973_v23 }
 0x418   :  { %v1976_v24 = vrot.slane %v1975_v37, 4 }
 0x41a   :  { %v1977_v29 = vadd.f32 %v1976_v24, %v1975_v37 }
 0x41c   :  { %v1978_v52 = vrot.slane %v1977_v29, 2 }
 0x41e   :  { %v1979_v63 = vadd.f32 %v1978_v52, %v1977_v29 }
 0x420   :  { %v1980_v2 = vrot.slane %v1979_v63, 1 }
 0x422   :  { %v1981_v58 = vadd.f32 %v1980_v2, %v1979_v63 }
 0x424   :  { %v1982_v14 = vmul.f32 0.00390625, %v1981_v58 }
 0x426   :  { %v6737_v9 = vsub.f32 %v6592_v35, %v1982_v14  ;;  %v6740_v17 = vsub.f32 %v6590_v42, %v1982_v14  ;;  %v6743_v0 = vsub.f32 %v6600_v36, %v1982_v14  ;;  %v6746_v19 = vsub.f32 %v6594_v61, %v1982_v14 }
 0x427   :  { %v6749_v46 = vsub.f32 %v6612_v48, %v1982_v14  ;;  %v6752_v20 = vsub.f32 %v6608_v33, %v1982_v14  ;;  %v6755_v3 = vsub.f32 %v6622_v43, %v1982_v14  ;;  %v6758_v35 = vsub.f32 %v6618_v31, %v1982_v14 }
 0x428   :  { %v6761_v42 = vsub.f32 %v6632_v10, %v1982_v14  ;;  %v6764_v36 = vsub.f32 %v6628_v8, %v1982_v14  ;;  %v6767_v61 = vsub.f32 %v6642_v32, %v1982_v14  ;;  %v6770_v48 = vsub.f32 %v6638_v11, %v1982_v14 }
 0x429   :  { %v6773_v33 = vsub.f32 %v6652_v28, %v1982_v14  ;;  %v6776_v43 = vsub.f32 %v6648_v6, %v1982_v14  ;;  %v6779_v31 = vsub.f32 %v6662_v7, %v1982_v14  ;;  %v6782_v10 = vsub.f32 %v6658_v56, %v1982_v14 }
 0x42a   :  { %v6785_v8 = vsub.f32 %v6672_v12, %v1982_v14  ;;  %v6788_v32 = vsub.f32 %v6668_v57, %v1982_v14  ;;  %v6791_v11 = vsub.f32 %v6682_v5, %v1982_v14  ;;  %v6794_v28 = vsub.f32 %v6678_v16, %v1982_v14 }
 0x42b   :  { %v6797_v6 = vsub.f32 %v6692_v49, %v1982_v14  ;;  %v6800_v7 = vsub.f32 %v6688_v38, %v1982_v14  ;;  %v6803_v56 = vsub.f32 %v6702_v18, %v1982_v14  ;;  %v6806_v12 = vsub.f32 %v6698_v45, %v1982_v14 }
 0x42c   :  { %v6809_v57 = vsub.f32 %v6712_v26, %v1982_v14  ;;  %v6812_v5 = vsub.f32 %v6708_v1, %v1982_v14  ;;  %v6815_v16 = vsub.f32 %v6722_v41, %v1982_v14  ;;  %v6818_v49 = vsub.f32 %v6718_v60, %v1982_v14 }
 0x42d   :  { %v6820_v38 = vsub.f32 %v1907_v34, %v1982_v14  ;;  %v6822_v40 = vsub.f32 %v1908_v25, %v1982_v14  ;;  %v6824_v18 = vsub.f32 %v1909_v13, %v1982_v14  ;;  %v6826_v45 = vsub.f32 %v1910_v15, %v1982_v14 }
 0x42e   :  { %v2015_v26 = vmul.f32 %v6737_v9, %v6737_v9  ;;  %v2017_v1 = vmul.f32 %v6743_v0, %v6743_v0  ;;  %v2019_v41 = vmul.f32 %v6749_v46, %v6749_v46  ;;  %v2016_v60 = vmul.f32 %v6740_v17, %v6740_v17 }
 0x42f   :  { %v2018_v25 = vmul.f32 %v6746_v19, %v6746_v19  ;;  %v2021_v34 = vmul.f32 %v6755_v3, %v6755_v3  ;;  %v2020_v4 = vmul.f32 %v6752_v20, %v6752_v20  ;;  %v2023_v51 = vmul.f32 %v6761_v42, %v6761_v42 }
 0x430   :  { %v2047_v50 = vsel %vm897_vm8, %v2015_v26, 0.0  ;;  %v2048_v22 = vsel %vm897_vm8, %v2017_v1, 0.0  ;;  %v2050_v54 = vsel %vm897_vm8, %v2019_v41, 0.0  ;;  %v2022_v15 = vmul.f32 %v6758_v35, %v6758_v35 }
 0x431   :  { %v2049_v62 = vadd.f32 %v2048_v22, %v2047_v50  ;;  %v2025_v13 = vmul.f32 %v6767_v61, %v6767_v61  ;;  %v2052_v47 = vsel %vm897_vm8, %v2021_v34, 0.0  ;;  %v2078_v30 = vsel %vm897_vm8, %v2016_v60, 0.0 }
 0x432   :  { %v2079_v53 = vsel %vm897_vm8, %v2018_v25, 0.0  ;;  %v2024_v37 = vmul.f32 %v6764_v36, %v6764_v36  ;;  %v2027_v24 = vmul.f32 %v6773_v33, %v6773_v33  ;;  %v2054_v29 = vsel %vm897_vm8, %v2023_v51, 0.0 }
 0x433   :  { %v2051_v27 = vadd.f32 %v2050_v54, %v2049_v62  ;;  %v2080_v23 = vadd.f32 %v2079_v53, %v2078_v30  ;;  %v2081_v52 = vsel %vm897_vm8, %v2020_v4, 0.0  ;;  %v2026_v58 = vmul.f32 %v6770_v48, %v6770_v48 }
 0x434   :  { %v2029_v14 = vmul.f32 %v6779_v31, %v6779_v31  ;;  %v2056_v26 = vsel %vm897_vm8, %v2025_v13, 0.0  ;;  %v2083_v1 = vsel %vm897_vm8, %v2022_v15, 0.0  ;;  %v2028_v25 = vmul.f32 %v6776_v43, %v6776_v43 }
 0x435   :  { %v2053_v59 = vadd.f32 %v2052_v47, %v2051_v27  ;;  %v2082_v2 = vadd.f32 %v2081_v52, %v2080_v23  ;;  %v2031_v34 = vmul.f32 %v6785_v8, %v6785_v8  ;;  %v2058_v50 = vsel %vm897_vm8, %v2027_v24, 0.0 }
 0x436   :  { %v2085_v22 = vsel %vm897_vm8, %v2024_v37, 0.0  ;;  %v2030_v51 = vmul.f32 %v6782_v10, %v6782_v10  ;;  %v2033_v54 = vmul.f32 %v6791_v11, %v6791_v11  ;;  %v2060_v15 = vsel %vm897_vm8, %v2029_v14, 0.0 }
 0x437   :  { %v2055_v63 = vadd.f32 %v2054_v29, %v2053_v59  ;;  %v2084_v60 = vadd.f32 %v2083_v1, %v2082_v2  ;;  %v2087_v27 = vsel %vm897_vm8, %v2026_v58, 0.0  ;;  %v2032_v30 = vmul.f32 %v6788_v32, %v6788_v32 }
 0x438   :  { %v2035_v53 = vmul.f32 %v6797_v6, %v6797_v6  ;;  %v2062_v59 = vsel %vm897_vm8, %v2031_v34, 0.0  ;;  %v2089_v23 = vsel %vm897_vm8, %v2028_v25, 0.0  ;;  %v2034_v29 = vmul.f32 %v6794_v28, %v6794_v28 }
 0x439   :  { %v2057_v41 = vadd.f32 %v2056_v26, %v2055_v63  ;;  %v2086_v4 = vadd.f32 %v2085_v22, %v2084_v60  ;;  %v2037_v52 = vmul.f32 %v6803_v56, %v6803_v56  ;;  %v2064_v63 = vsel %vm897_vm8, %v2033_v54, 0.0 }
 0x43a   :  { %v2091_v2 = vsel %vm897_vm8, %v2030_v51, 0.0  ;;  %v2036_v26 = vmul.f32 %v6800_v7, %v6800_v7  ;;  %v2039_v1 = vmul.f32 %v6809_v57, %v6809_v57  ;;  %v2093_v60 = vsel %vm897_vm8, %v2032_v30, 0.0 }
 0x43b   :  { %v2059_v62 = vadd.f32 %v2058_v50, %v2057_v41  ;;  %v2088_v47 = vadd.f32 %v2087_v27, %v2086_v4  ;;  %v2066_v41 = vsel %vm897_vm8, %v2035_v53, 0.0  ;;  %v2038_v50 = vmul.f32 %v6806_v12, %v6806_v12 }
 0x43c   :  { %v2041_v22 = vmul.f32 %v6815_v16, %v6815_v16  ;;  %v2095_v4 = vsel %vm897_vm8, %v2034_v29, 0.0  ;;  %v2043_v27 = vmul.f32 %v6820_v38, %v6820_v38 }
 0x43d   :  { %v2061_v13 = vadd.f32 %v2060_v15, %v2059_v62  ;;  %v2090_v24 = vadd.f32 %v2089_v23, %v2088_v47  ;;  %v2068_v62 = vsel %vm897_vm8, %v2037_v52, 0.0  ;;  %v2040_v15 = vmul.f32 %v6812_v5, %v6812_v5 }
 0x43e   :  { %v2097_v47 = vsel %vm897_vm8, %v2036_v26, 0.0  ;;  %v2045_v23 = vmul.f32 %v6824_v18, %v6824_v18 }
 0x43f   :  { %v2063_v37 = vadd.f32 %v2062_v59, %v2061_v13  ;;  %v2092_v14 = vadd.f32 %v2091_v2, %v2090_v24  ;;  %v2070_v13 = vsel %vm897_vm8, %v2039_v1, 0.0  ;;  %v2042_v59 = vmul.f32 %v6818_v49, %v6818_v49 }
 0x440   :  { %v2099_v24 = vsel %vm897_vm8, %v2038_v50, 0.0  ;;  %v2074_v2 = vsel %vm897_vm8, %v2043_v27, 0.0  ;;  %v2046_v1 = vmul.f32 %v6826_v45, %v6826_v45 }
 0x441   :  { %v2065_v58 = vadd.f32 %v2064_v63, %v2063_v37  ;;  %v2094_v34 = vadd.f32 %v2093_v60, %v2092_v14  ;;  %v2072_v37 = vsel %vm897_vm8, %v2041_v22, 0.0  ;;  %v2044_v63 = vmul.f32 %v6822_v40, %v6822_v40 }
 0x442   :  { %v2103_v60 = vsel %vm897_vm8, %v2042_v59, 0.0 }
 0x443   :  { %v2067_v25 = vadd.f32 %v2066_v41, %v2065_v58  ;;  %v2096_v54 = vadd.f32 %v2095_v4, %v2094_v34  ;;  %v2101_v58 = vsel %vm897_vm8, %v2040_v15, 0.0  ;;  %v2076_v41 = vsel %vm897_vm8, %v2045_v23, 0.0 }
 0x444   :  { %v2105_v50 = vsel %vm897_vm8, %v2044_v63, 0.0 }
 0x445   :  { %v2069_v51 = vadd.f32 %v2068_v62, %v2067_v25  ;;  %v2098_v53 = vadd.f32 %v2097_v47, %v2096_v54  ;;  %v2107_v62 = vsel %vm897_vm8, %v2046_v1, 0.0  ;;  %v2254_v47 = vld [vmem:[%s4588_s7 + $0x8] sm:$0x7f] }
 0x447   :  { %v2071_v30 = vadd.f32 %v2070_v13, %v2069_v51  ;;  %v2100_v52 = vadd.f32 %v2099_v24, %v2098_v53  ;;  %v2253_v13 = vld [vmem:[%s4588_s7] sm:$0xff]  ;;  %s4593_s7 = sld [smem:[%s8189_s0 + %s5415_s3]]  }
 0x448   :  { %v5233_v53 = vpack.c.bf16 %v2254_v47, %v2253_v13  ;;  %s4606_s3 = sld [smem:[%s8189_s0 + %s5428_s29]]  }
 0x449   :  { %v2073_v29 = vadd.f32 %v2072_v37, %v2071_v30  ;;  %v2102_v26 = vadd.f32 %v2101_v58, %v2100_v52 }
 0x44a   :  { %5235 = vmatprep.subr.msk.bf16.mxu1 %vm6254_vm14, %v5233_v53 }
 0x44b   :  { %v2075_v14 = vadd.f32 %v2074_v2, %v2073_v29  ;;  %v2104_v34 = vadd.f32 %v2103_v60, %v2102_v26  ;;  %5238 = vmatpush3.bf16.msk.msra.mxu1 %vm6254_vm14, %v5233_v53 }
 0x44d   :  { %v2077_v25 = vadd.f32 %v2076_v41, %v2075_v14  ;;  %v2106_v22 = vadd.f32 %v2105_v50, %v2104_v34  ;;  %v6946_v50 = vld [vmem:[%s4587_s15] ss:$0 sm:$0xff]  ;;  %s4594_s15 = sld [smem:[%s8189_s0 + %s5417_s12]]  }
 0x44f   :  { %v2108_v4 = vadd.f32 %v2107_v62, %v2106_v22  ;;  %v2109_v51 = vsel %vm897_vm8, %v2077_v25, 0.0 }
 0x451   :  { %v2110_v54 = vsel %vm897_vm8, %v2108_v4, 0.0 }
 0x452   :  { %v2111_v15 = vadd.f32 %v2110_v54, %v2109_v51 }
 0x454   :  { %v2112_v27 = vrot.slane %v2111_v15, 4 }
 0x456   :  { %v2113_v30 = vadd.f32 %v2112_v27, %v2111_v15 }
 0x458   :  { %v2114_v59 = vrot.slane %v2113_v30, 2 }
 0x45a   :  { %v2115_v23 = vadd.f32 %v2114_v59, %v2113_v30 }
 0x45c   :  { %v2116_v37 = vrot.slane %v2115_v23, 1 }
 0x45e   :  { %v2117_v24 = vadd.f32 %v2116_v37, %v2115_v23 }
 0x460   :  { %v2118_v29 = vmul.f32 0.00390625, %v2117_v24 }
 0x462   :  { %v2119_v52 = vadd.f32 1e-05, %v2118_v29 }
 0x464   :  { %5369 = vrsqrt.f32 %v2119_v52  ;;  %vm2122_vm13 = vcmp.eq.f32.partialorder %v2119_v52, inf  ;;  %v2125_v58 = vand.u32 2147483648, %v2119_v52  ;;  %vm2124_vm2 = vcmp.eq.f32.partialorder %v2119_v52, 0.0 }
 0x46e   :  { %v5370_v63 = vpop.eup %5369 }
 0x46f   :  { %v2121_v2 = vmul.f32 %v5370_v63, %v2119_v52 }
 0x471   :  { %v2123_v14 = vsel %vm2122_vm13, %v2119_v52, %v2121_v2 }
 0x472   :  { %v2126_v26 = vsel %vm2124_vm2, %v2125_v58, %v2123_v14 }
 0x473   :  { %5371 = vrcp.f32 %v2126_v26 }
 0x47d   :  { %v5372_v1 = vpop.eup %5371 }
 0x47e   :  { %v2128_v41 = vmul.f32 %v5372_v1, %v1195_v21 }
 0x480   :  { %v6940_v60 = vrot.slane %v2128_v41, %v6140_v39 }
 0x482   :  { %v2136_v25 = vmul.f32 %v6940_v60, %v6740_v17  ;;  %v2138_v34 = vmul.f32 %v6940_v60, %v6746_v19  ;;  %v2135_v22 = vmul.f32 %v6940_v60, %v6737_v9  ;;  %v2137_v51 = vmul.f32 %v6940_v60, %v6743_v0 }
 0x483   :  { %v2140_v54 = vmul.f32 %v6940_v60, %v6752_v20  ;;  %v2142_v17 = vmul.f32 %v6940_v60, %v6758_v35  ;;  %v2139_v9 = vmul.f32 %v6940_v60, %v6749_v46  ;;  %v2141_v27 = vmul.f32 %v6940_v60, %v6755_v3 }
 0x484   :  { %v2174_v62 = vadd.f32 %v6946_v50, %v2136_v25  ;;  %v2176_v4 = vadd.f32 %v6946_v50, %v2138_v34  ;;  %v2173_v0 = vadd.f32 %v6946_v50, %v2135_v22  ;;  %v2175_v20 = vadd.f32 %v6946_v50, %v2137_v51 }
 0x485   :  { %v2178_v35 = vadd.f32 %v6946_v50, %v2140_v54  ;;  %v2180_v47 = vadd.f32 %v6946_v50, %v2142_v17  ;;  %v2144_v30 = vmul.f32 %v6940_v60, %v6764_v36  ;;  %v2146_v46 = vmul.f32 %v6940_v60, %v6770_v48 }
 0x486   :  { %v2208_v19 = vsel %vm897_vm8, %v2174_v62, -inf  ;;  %v2209_v15 = vsel %vm897_vm8, %v2176_v4, -inf  ;;  %v2177_v3 = vadd.f32 %v6946_v50, %v2139_v9  ;;  %v2179_v53 = vadd.f32 %v6946_v50, %v2141_v27 }
 0x487   :  { %v6964_v13 = vmax.f32 %v2208_v19, %v2209_v15  ;;  %v2205_v59 = vsel %vm897_vm8, %v2173_v0, -inf  ;;  %v2206_v23 = vsel %vm897_vm8, %v2175_v20, -inf  ;;  %v2214_v37 = vsel %vm897_vm8, %v2178_v35, -inf }
 0x488   :  { %v2215_v24 = vsel %vm897_vm8, %v2180_v47, -inf  ;;  %v2143_v29 = vmul.f32 %v6940_v60, %v6761_v42  ;;  %v2145_v36 = vmul.f32 %v6940_v60, %v6767_v61  ;;  %v6986_v52 = vmax.f32 %v2205_v59, %v2206_v23 }
 0x489   :  { %2276 = vrot.lane.b32.xlu1 %v6964_v13, %s5405_s24  ;;  %v6988_v48 = vmax.f32 %v2214_v37, %v2215_v24  ;;  %v2182_v63 = vadd.f32 %v6946_v50, %v2144_v30  ;;  %v2184_v2 = vadd.f32 %v6946_v50, %v2146_v46  ;;  %v2211_v58 = vsel %vm897_vm8, %v2177_v3, -inf }
 0x48a   :  { %v2212_v14 = vsel %vm897_vm8, %v2179_v53, -inf  ;;  %2274 = vrot.lane.b32.xlu0 %v6986_v52, %s5405_s24  ;;  %v2148_v42 = vmul.f32 %v6940_v60, %v6776_v43  ;;  %v2150_v61 = vmul.f32 %v6940_v60, %v6782_v10  ;;  %v2181_v21 = vadd.f32 %v6946_v50, %v2143_v29 }
 0x48b   :  { %v7002_v26 = vmax.f32 %v2211_v58, %v2212_v14  ;;  %v2183_v1 = vadd.f32 %v6946_v50, %v2145_v36  ;;  %v2220_v41 = vsel %vm897_vm8, %v2182_v63, -inf  ;;  %v2221_v25 = vsel %vm897_vm8, %v2184_v2, -inf }
 0x48c   :  { %v2147_v43 = vmul.f32 %v6940_v60, %v6773_v33  ;;  %v2149_v10 = vmul.f32 %v6940_v60, %v6779_v31  ;;  %v7016_v34 = vmax.f32 %v2220_v41, %v2221_v25  ;;  %v2186_v22 = vadd.f32 %v6946_v50, %v2148_v42 }
 0x48d   :  { %2324 = vrot.lane.b32.xlu1 %v6988_v48, %s5406_s28  ;;  %v2188_v62 = vadd.f32 %v6946_v50, %v2150_v61  ;;  %v2217_v4 = vsel %vm897_vm8, %v2181_v21, -inf  ;;  %v2218_v51 = vsel %vm897_vm8, %v2183_v1, -inf  ;;  %v2152_v33 = vmul.f32 %v6940_v60, %v6788_v32 }
 0x48e   :  { %2322 = vrot.lane.b32.xlu0 %v7002_v26, %s5406_s28  ;;  %v2154_v31 = vmul.f32 %v6940_v60, %v6794_v28  ;;  %v7030_v54 = vmax.f32 %v2217_v4, %v2218_v51  ;;  %v2185_v17 = vadd.f32 %v6946_v50, %v2147_v43  ;;  %v2187_v19 = vadd.f32 %v6946_v50, %v2149_v10 }
 0x48f   :  { %v2226_v15 = vsel %vm897_vm8, %v2186_v22, -inf  ;;  %v2227_v9 = vsel %vm897_vm8, %v2188_v62, -inf  ;;  %v2151_v32 = vmul.f32 %v6940_v60, %v6785_v8  ;;  %v2153_v28 = vmul.f32 %v6940_v60, %v6791_v11 }
 0x490   :  { %v7044_v27 = vmax.f32 %v2226_v15, %v2227_v9  ;;  %v2190_v0 = vadd.f32 %v6946_v50, %v2152_v33  ;;  %v2192_v20 = vadd.f32 %v6946_v50, %v2154_v31  ;;  %v2223_v35 = vsel %vm897_vm8, %v2185_v17, -inf }
 0x491   :  { %2280 = vrot.lane.b32.xlu1 %v6988_v48, %s5405_s24  ;;  %v2224_v47 = vsel %vm897_vm8, %v2187_v19, -inf  ;;  %v2156_v8 = vmul.f32 %v6940_v60, %v6800_v7  ;;  %v2158_v11 = vmul.f32 %v6940_v60, %v6806_v12  ;;  %v2189_v46 = vadd.f32 %v6946_v50, %v2151_v32 }
 0x492   :  { %2278 = vrot.lane.b32.xlu0 %v7002_v26, %s5405_s24  ;;  %v7058_v30 = vmax.f32 %v2223_v35, %v2224_v47  ;;  %v2191_v3 = vadd.f32 %v6946_v50, %v2153_v28  ;;  %v2232_v53 = vsel %vm897_vm8, %v2190_v0, -inf  ;;  %v2233_v59 = vsel %vm897_vm8, %v2192_v20, -inf }
 0x493   :  { %v2155_v7 = vmul.f32 %v6940_v60, %v6797_v6  ;;  %v2157_v12 = vmul.f32 %v6940_v60, %v6803_v56  ;;  %v7072_v23 = vmax.f32 %v2232_v53, %v2233_v59  ;;  %v2194_v37 = vadd.f32 %v6946_v50, %v2156_v8 }
 0x494   :  { %v2196_v24 = vadd.f32 %v6946_v50, %v2158_v11  ;;  %v2229_v29 = vsel %vm897_vm8, %v2189_v46, -inf  ;;  %v2230_v36 = vsel %vm897_vm8, %v2191_v3, -inf  ;;  %v2160_v6 = vmul.f32 %v6940_v60, %v6812_v5 }
 0x495   :  { %2328 = vrot.lane.b32.xlu1 %v7016_v34, %s5406_s28  ;;  %v2162_v56 = vmul.f32 %v6940_v60, %v6818_v49  ;;  %v7086_v63 = vmax.f32 %v2229_v29, %v2230_v36  ;;  %v2193_v2 = vadd.f32 %v6946_v50, %v2155_v7  ;;  %v2195_v58 = vadd.f32 %v6946_v50, %v2157_v12 }
 0x496   :  { %2326 = vrot.lane.b32.xlu0 %v7030_v54, %s5406_s28  ;;  %v2238_v14 = vsel %vm897_vm8, %v2194_v37, -inf  ;;  %v2239_v42 = vsel %vm897_vm8, %v2196_v24, -inf  ;;  %v2159_v5 = vmul.f32 %v6940_v60, %v6809_v57  ;;  %v2161_v49 = vmul.f32 %v6940_v60, %v6815_v16 }
 0x497   :  { %v7100_v61 = vmax.f32 %v2238_v14, %v2239_v42  ;;  %v2198_v21 = vadd.f32 %v6946_v50, %v2160_v6  ;;  %v2200_v1 = vadd.f32 %v6946_v50, %v2162_v56  ;;  %v2235_v41 = vsel %vm897_vm8, %v2193_v2, -inf }
 0x498   :  { %v2236_v25 = vsel %vm897_vm8, %v2195_v58, -inf  ;;  %v2164_v57 = vmul.f32 %v6940_v60, %v6822_v40  ;;  %v2166_v16 = vmul.f32 %v6940_v60, %v6826_v45  ;;  %v2197_v10 = vadd.f32 %v6946_v50, %v2159_v5 }
 0x499   :  { %2284 = vrot.lane.b32.xlu1 %v7016_v34, %s5405_s24  ;;  %v7114_v43 = vmax.f32 %v2235_v41, %v2236_v25  ;;  %v2199_v22 = vadd.f32 %v6946_v50, %v2161_v49  ;;  %v2244_v62 = vsel %vm897_vm8, %v2198_v21, -inf  ;;  %v2245_v4 = vsel %vm897_vm8, %v2200_v1, -inf }
 0x49a   :  { %2282 = vrot.lane.b32.xlu0 %v7030_v54, %s5405_s24  ;;  %v2165_v40 = vmul.f32 %v6940_v60, %v6824_v18  ;;  %v2163_v45 = vmul.f32 %v6940_v60, %v6820_v38  ;;  %v7128_v51 = vmax.f32 %v2244_v62, %v2245_v4  ;;  %v2202_v33 = vadd.f32 %v6946_v50, %v2164_v57 }
 0x49b   :  { %v2204_v31 = vadd.f32 %v6946_v50, %v2166_v16  ;;  %v2241_v17 = vsel %vm897_vm8, %v2197_v10, -inf  ;;  %v2242_v19 = vsel %vm897_vm8, %v2199_v22, -inf }
 0x49c   :  { %v7138_v18 = vmax.f32 %v2241_v17, %v2242_v19  ;;  %v2203_v38 = vadd.f32 %v6946_v50, %v2165_v40  ;;  %v2201_v60 = vadd.f32 %v6946_v50, %v2163_v45  ;;  %v2250_v15 = vsel %vm897_vm8, %v2202_v33, -inf }
 0x49d   :  { %2332 = vrot.lane.b32.xlu1 %v7044_v27, %s5406_s28  ;;  %v2251_v9 = vsel %vm897_vm8, %v2204_v31, -inf }
 0x49e   :  { %2330 = vrot.lane.b32.xlu0 %v7058_v30, %s5406_s28  ;;  %v2252_v32 = vmax.f32 %v2250_v15, %v2251_v9  ;;  %v2247_v28 = vsel %vm897_vm8, %v2201_v60, -inf  ;;  %v2248_v0 = vsel %vm897_vm8, %v2203_v38, -inf }
 0x49f   :  { %v2249_v50 = vmax.f32 %v2247_v28, %v2248_v0 }
 0x4a1   :  { %2288 = vrot.lane.b32.xlu1 %v7044_v27, %s5405_s24 }
 0x4a2   :  { %2286 = vrot.lane.b32.xlu0 %v7058_v30, %s5405_s24 }
 0x4a5   :  { %2336 = vrot.lane.b32.xlu1 %v7072_v23, %s5406_s28 }
 0x4a6   :  { %2334 = vrot.lane.b32.xlu0 %v7086_v63, %s5406_s28 }
 0x4a9   :  { %2292 = vrot.lane.b32.xlu1 %v7072_v23, %s5405_s24 }
 0x4aa   :  { %2290 = vrot.lane.b32.xlu0 %v7086_v63, %s5405_s24 }
 0x4ad   :  { %2340 = vrot.lane.b32.xlu1 %v7100_v61, %s5406_s28 }
 0x4ae   :  { %2338 = vrot.lane.b32.xlu0 %v7114_v43, %s5406_s28 }
 0x4b1   :  { %2296 = vrot.lane.b32.xlu1 %v7100_v61, %s5405_s24 }
 0x4b2   :  { %2294 = vrot.lane.b32.xlu0 %v7114_v43, %s5405_s24 }
 0x4b5   :  { %2344 = vrot.lane.b32.xlu1 %v7128_v51, %s5406_s28 }
 0x4b6   :  { %2342 = vrot.lane.b32.xlu0 %v7138_v18, %s5406_s28 }
 0x4b9   :  { %2300 = vrot.lane.b32.xlu1 %v7128_v51, %s5405_s24 }
 0x4ba   :  { %2298 = vrot.lane.b32.xlu0 %v7138_v18, %s5405_s24 }
 0x4bd   :  { %2348 = vrot.lane.b32.xlu1 %v2252_v32, %s5406_s28 }
 0x4be   :  { %2346 = vrot.lane.b32.xlu0 %v2249_v50, %s5406_s28 }
 0x4c1   :  { %2304 = vrot.lane.b32.xlu1 %v2252_v32, %s5405_s24 }
 0x4c2   :  { %2302 = vrot.lane.b32.xlu0 %v2249_v50, %s5405_s24  ;;  %s5427_s24 = smov 26  }
 0x4c3   :  { %s4605_s27 = sld [smem:[%s8189_s0 + %s5427_s24]]  }
 0x4fb   :  { %v2277_v20 = vpop.permute.xlu1 %2276 }
 0x4fc   :  { %v2275_v35 = vpop.permute.xlu0 %2274  ;;  %v2365_v8 = vsel %vm897_vm8, 0.0, %v2277_v20 }
 0x4fd   :  { %v2364_v11 = vsel %vm897_vm8, 0.0, %v2275_v35 }
 0x4ff   :  { %v2325_v47 = vpop.permute.xlu1 %2324 }
 0x500   :  { %v2381_v46 = vsel %vm1450_vm15, %v2365_v8, %v2325_v47  ;;  %v2323_v3 = vpop.permute.xlu0 %2322  ;;  %v7224_v8 = vld [vmem:[%s4589_s18] ss:$0 sm:$0xff]  ;;  %s5425_s18 = smov 24  }
 0x501   :  { %v2380_v59 = vsel %vm1450_vm15, %v2364_v11, %v2323_v3  ;;  %s4603_s20 = sld [smem:[%s8189_s0 + %s5425_s18]]  }
 0x502   :  { %5047 = vmatprep.mubr.msk.f32.mxu1 %vm1489_vm0, %v2380_v59 }
 0x503   :  { %v2281_v53 = vpop.permute.xlu1 %2280  ;;  %5048 = vmatmul.mubr.msk.f32.vlgmr.msra.gmra.mrb[32].mxu1 %vm1489_vm0, %v2381_v46 }
 0x504   :  { %v2279_v7 = vpop.permute.xlu0 %2278  ;;  %v2367_v37 = vsel %vm897_vm8, %v6964_v13, %v2281_v53 }
 0x505   :  { %v2366_v24 = vsel %vm897_vm8, %v6986_v52, %v2279_v7 }
 0x507   :  { %v2329_v12 = vpop.permute.xlu1 %2328 }
 0x508   :  { %v2383_v29 = vsel %vm1450_vm15, %v2367_v37, %v2329_v12  ;;  %v2327_v36 = vpop.permute.xlu0 %2326 }
 0x509   :  { %v2382_v56 = vsel %vm1450_vm15, %v2366_v24, %v2327_v36 }
 0x50a   :  { %5050 = vmatprep.mubr.msk.f32.mxu1 %vm1489_vm0, %v2382_v56 }
 0x50b   :  { %v2285_v6 = vpop.permute.xlu1 %2284  ;;  %5051 = vmatmul.mubr.msk.f32.gmra.mrb[34].mxu1 %vm1489_vm0, %v2383_v29 }
 0x50c   :  { %v2283_v2 = vpop.permute.xlu0 %2282  ;;  %v2369_v14 = vsel %vm897_vm8, %v6988_v48, %v2285_v6 }
 0x50d   :  { %v2368_v13 = vsel %vm897_vm8, %v7002_v26, %v2283_v2 }
 0x50f   :  { %v2333_v58 = vpop.permute.xlu1 %2332 }
 0x510   :  { %v2385_v52 = vsel %vm1450_vm15, %v2369_v14, %v2333_v58  ;;  %v2331_v42 = vpop.permute.xlu0 %2330 }
 0x511   :  { %v2384_v49 = vsel %vm1450_vm15, %v2368_v13, %v2331_v42 }
 0x512   :  { %5053 = vmatprep.mubr.msk.f32.mxu1 %vm1489_vm0, %v2384_v49 }
 0x513   :  { %v2289_v5 = vpop.permute.xlu1 %2288  ;;  %5054 = vmatmul.mubr.msk.f32.gmra.mrb[36].mxu1 %vm1489_vm0, %v2385_v52 }
 0x514   :  { %v2287_v21 = vpop.permute.xlu0 %2286  ;;  %v2371_v41 = vsel %vm897_vm8, %v7016_v34, %v2289_v5 }
 0x515   :  { %v2370_v48 = vsel %vm897_vm8, %v7030_v54, %v2287_v21 }
 0x517   :  { %v2337_v1 = vpop.permute.xlu1 %2336 }
 0x518   :  { %v2387_v26 = vsel %vm1450_vm15, %v2371_v41, %v2337_v1  ;;  %v2335_v25 = vpop.permute.xlu0 %2334 }
 0x519   :  { %v2386_v16 = vsel %vm1450_vm15, %v2370_v48, %v2335_v25 }
 0x51a   :  { %5056 = vmatprep.mubr.msk.f32.mxu1 %vm1489_vm0, %v2386_v16 }
 0x51b   :  { %v2293_v57 = vpop.permute.xlu1 %2292  ;;  %5057 = vmatmul.mubr.msk.f32.gmra.mrb[38].mxu1 %vm1489_vm0, %v2387_v26 }
 0x51c   :  { %v2291_v10 = vpop.permute.xlu0 %2290  ;;  %v2373_v62 = vsel %vm897_vm8, %v7044_v27, %v2293_v57 }
 0x51d   :  { %v2372_v34 = vsel %vm897_vm8, %v7058_v30, %v2291_v10 }
 0x51f   :  { %v2341_v22 = vpop.permute.xlu1 %2340 }
 0x520   :  { %v2389_v54 = vsel %vm1450_vm15, %v2373_v62, %v2341_v22  ;;  %v2339_v4 = vpop.permute.xlu0 %2338 }
 0x521   :  { %v2388_v45 = vsel %vm1450_vm15, %v2372_v34, %v2339_v4 }
 0x522   :  { %5059 = vmatprep.mubr.msk.f32.mxu1 %vm1489_vm0, %v2388_v45 }
 0x523   :  { %v2297_v40 = vpop.permute.xlu1 %2296  ;;  %5060 = vmatmul.mubr.msk.f32.gmra.mrb[40].mxu1 %vm1489_vm0, %v2389_v54 }
 0x524   :  { %v2295_v33 = vpop.permute.xlu0 %2294  ;;  %v2375_v17 = vsel %vm897_vm8, %v7072_v23, %v2297_v40 }
 0x525   :  { %v2374_v27 = vsel %vm897_vm8, %v7086_v63, %v2295_v33 }
 0x527   :  { %v2345_v31 = vpop.permute.xlu1 %2344 }
 0x528   :  { %v2391_v30 = vsel %vm1450_vm15, %v2375_v17, %v2345_v31  ;;  %v2343_v19 = vpop.permute.xlu0 %2342 }
 0x529   :  { %v2390_v60 = vsel %vm1450_vm15, %v2374_v27, %v2343_v19 }
 0x52a   :  { %5062 = vmatprep.mubr.msk.f32.mxu1 %vm1489_vm0, %v2390_v60 }
 0x52b   :  { %v2301_v38 = vpop.permute.xlu1 %2300  ;;  %5063 = vmatmul.mubr.msk.f32.gmra.mrb[42].mxu1 %vm1489_vm0, %v2391_v30 }
 0x52c   :  { %v2299_v15 = vpop.permute.xlu0 %2298  ;;  %v2377_v32 = vsel %vm897_vm8, %v7100_v61, %v2301_v38 }
 0x52d   :  { %v2376_v23 = vsel %vm897_vm8, %v7114_v43, %v2299_v15 }
 0x52f   :  { %v2349_v9 = vpop.permute.xlu1 %2348 }
 0x530   :  { %v2393_v63 = vsel %vm1450_vm15, %v2377_v32, %v2349_v9  ;;  %v2347_v28 = vpop.permute.xlu0 %2346 }
 0x531   :  { %v2392_v50 = vsel %vm1450_vm15, %v2376_v23, %v2347_v28 }
 0x532   :  { %5065 = vmatprep.mubr.msk.f32.mxu1 %vm1489_vm0, %v2392_v50 }
 0x533   :  { %v2305_v0 = vpop.permute.xlu1 %2304  ;;  %5066 = vmatmul.mubr.msk.f32.gmra.mrb[44].mxu1 %vm1489_vm0, %v2393_v63 }
 0x534   :  { %v2379_v20 = vsel %vm897_vm8, %v7128_v51, %v2305_v0  ;;  %v2303_v35 = vpop.permute.xlu0 %2302 }
 0x535   :  { %v2378_v61 = vsel %vm897_vm8, %v7138_v18, %v2303_v35  ;;  %v2395_v43 = vsel %vm1450_vm15, %v2379_v20, %v6573_v44 }
 0x536   :  { %v2394_v47 = vsel %vm1450_vm15, %v2378_v61, %v6573_v44 }
 0x537   :  { %5068 = vmatprep.mubr.msk.f32.mxu1 %vm1489_vm0, %v2394_v47 }
 0x538   :  { %5069 = vmatmul.mubr.msk.f32.gmra.mrb[46].mxu1 %vm1489_vm0, %v2395_v43 }
 0x5d6   :  { %v5049_v51 = vpop.f32.mrb[32].mxu1 }
 0x5d7   :  { %v2519_v11 = vpop.f32.mrb[33].mxu1  ;;  %v2525_v18 = vadd.f32 %v5049_v51, %v7224_v8 }
 0x5d8   :  { %v2520_v46 = vadd.f32 %v7224_v8, %v2519_v11 }
 0x5d9   :  { %v2615_v3 = vmul.f32 0.01, %v2525_v18  ;;  %vm2599_vm8 = vcmp.gt.f32.partialorder %v2525_v18, 0.0 }
 0x5da   :  { %v2614_v44 = vmul.f32 0.01, %v2520_v46  ;;  %vm2598_vm14 = vcmp.gt.f32.partialorder %v2520_v46, 0.0 }
 0x5db   :  { %v7230_v37 = vsel %vm2599_vm8, %v2525_v18, %v2615_v3 }
 0x5dc   :  { %v7232_v29 = vsel %vm2598_vm14, %v2520_v46, %v2614_v44  ;;  %v2661_v56 = vsel %vm1450_vm15, %v7230_v37, 0.0 }
 0x5dd   :  { %v2646_v14 = vsel %vm1450_vm15, %v7232_v29, 0.0 }
 0x5de   :  { %v5052_v53 = vpop.f32.mrb[34].mxu1 }
 0x5df   :  { %v2535_v59 = vadd.f32 %v5052_v53, %v7224_v8  ;;  %v2529_v7 = vpop.f32.mrb[35].mxu1 }
 0x5e0   :  { %v2530_v12 = vadd.f32 %v7224_v8, %v2529_v7 }
 0x5e1   :  { %vm2601_vm0 = vcmp.gt.f32.partialorder %v2535_v59, 0.0  ;;  %v2617_v24 = vmul.f32 0.01, %v2535_v59 }
 0x5e2   :  { %vm2600_vm3 = vcmp.gt.f32.partialorder %v2530_v12, 0.0  ;;  %v2616_v36 = vmul.f32 0.01, %v2530_v12 }
 0x5e3   :  { %v7234_v6 = vsel %vm2601_vm0, %v2535_v59, %v2617_v24 }
 0x5e4   :  { %v2662_v2 = vsel %vm1450_vm15, %v7234_v6, 0.0  ;;  %v7240_v58 = vsel %vm2600_vm3, %v2530_v12, %v2616_v36 }
 0x5e5   :  { %v2663_v13 = vadd.f32 %v2662_v2, %v2661_v56  ;;  %v2647_v52 = vsel %vm1450_vm15, %v7240_v58, 0.0 }
 0x5e6   :  { %v2648_v42 = vadd.f32 %v2647_v52, %v2646_v14  ;;  %v5055_v5 = vpop.f32.mrb[36].mxu1 }
 0x5e7   :  { %v2545_v49 = vadd.f32 %v5055_v5, %v7224_v8  ;;  %v2539_v21 = vpop.f32.mrb[37].mxu1 }
 0x5e8   :  { %v2540_v1 = vadd.f32 %v7224_v8, %v2539_v21 }
 0x5e9   :  { %vm2603_vm4 = vcmp.gt.f32.partialorder %v2545_v49, 0.0  ;;  %v2619_v41 = vmul.f32 0.01, %v2545_v49 }
 0x5ea   :  { %vm2602_vm5 = vcmp.gt.f32.partialorder %v2540_v1, 0.0  ;;  %v2618_v48 = vmul.f32 0.01, %v2540_v1 }
 0x5eb   :  { %v7248_v26 = vsel %vm2603_vm4, %v2545_v49, %v2619_v41  ;;  %vm3016_vm4 = vcmask 1045504  }
 0x5ec   :  { %v2664_v25 = vsel %vm1450_vm15, %v7248_v26, 0.0  ;;  %v7252_v57 = vsel %vm2602_vm5, %v2540_v1, %v2618_v48  ;;  %vm7398_vm5 = vmpackc.low %vm3016_vm4, %vm5400_vm1 }
 0x5ed   :  { %v2665_v16 = vadd.f32 %v2664_v25, %v2663_v13  ;;  %v2649_v10 = vsel %vm1450_vm15, %v7252_v57, 0.0 }
 0x5ee   :  { %v2650_v22 = vadd.f32 %v2649_v10, %v2648_v42  ;;  %v5058_v62 = vpop.f32.mrb[38].mxu1 }
 0x5ef   :  { %v2555_v34 = vadd.f32 %v5058_v62, %v7224_v8  ;;  %v2549_v54 = vpop.f32.mrb[39].mxu1 }
 0x5f0   :  { %v2550_v4 = vadd.f32 %v7224_v8, %v2549_v54 }
 0x5f1   :  { %vm2605_vm6 = vcmp.gt.f32.partialorder %v2555_v34, 0.0  ;;  %v2621_v40 = vmul.f32 0.01, %v2555_v34 }
 0x5f2   :  { %vm2604_vm7 = vcmp.gt.f32.partialorder %v2550_v4, 0.0  ;;  %v2620_v45 = vmul.f32 0.01, %v2550_v4 }
 0x5f3   :  { %v7258_v33 = vsel %vm2605_vm6, %v2555_v34, %v2621_v40  ;;  %vm2944_vm6 = vcmask 162816  }
 0x5f4   :  { %v2666_v31 = vsel %vm1450_vm15, %v7258_v33, 0.0  ;;  %v7262_v17 = vsel %vm2604_vm7, %v2550_v4, %v2620_v45  ;;  %vm2967_vm7 = vcmask 244736  }
 0x5f5   :  { %v2667_v27 = vadd.f32 %v2666_v31, %v2665_v16  ;;  %v2651_v30 = vsel %vm1450_vm15, %v7262_v17, 0.0 }
 0x5f6   :  { %v2652_v19 = vadd.f32 %v2651_v30, %v2650_v22  ;;  %v5061_v38 = vpop.f32.mrb[40].mxu1 }
 0x5f7   :  { %v2565_v60 = vadd.f32 %v5061_v38, %v7224_v8  ;;  %v2559_v15 = vpop.f32.mrb[41].mxu1 }
 0x5f8   :  { %v2560_v9 = vadd.f32 %v7224_v8, %v2559_v15 }
 0x5f9   :  { %vm2607_vm9 = vcmp.gt.f32.partialorder %v2565_v60, 0.0  ;;  %v2623_v32 = vmul.f32 0.01, %v2565_v60 }
 0x5fa   :  { %vm2606_vm10 = vcmp.gt.f32.partialorder %v2560_v9, 0.0  ;;  %v2622_v23 = vmul.f32 0.01, %v2560_v9 }
 0x5fb   :  { %v7268_v63 = vsel %vm2607_vm9, %v2565_v60, %v2623_v32 }
 0x5fc   :  { %v2668_v28 = vsel %vm1450_vm15, %v7268_v63, 0.0  ;;  %v7272_v0 = vsel %vm2606_vm10, %v2560_v9, %v2622_v23 }
 0x5fd   :  { %v2669_v50 = vadd.f32 %v2668_v28, %v2667_v27  ;;  %v2653_v20 = vsel %vm1450_vm15, %v7272_v0, 0.0 }
 0x5fe   :  { %v2654_v35 = vadd.f32 %v2653_v20, %v2652_v19  ;;  %v5064_v61 = vpop.f32.mrb[42].mxu1 }
 0x5ff   :  { %v2575_v43 = vadd.f32 %v5064_v61, %v7224_v8  ;;  %v2569_v47 = vpop.f32.mrb[43].mxu1 }
 0x600   :  { %v2570_v51 = vadd.f32 %v7224_v8, %v2569_v47 }
 0x601   :  { %vm2609_vm11 = vcmp.gt.f32.partialorder %v2575_v43, 0.0  ;;  %v2625_v11 = vmul.f32 0.01, %v2575_v43 }
 0x602   :  { %vm2608_vm12 = vcmp.gt.f32.partialorder %v2570_v51, 0.0  ;;  %v2624_v18 = vmul.f32 0.01, %v2570_v51 }
 0x603   :  { %v2641_v46 = vsel %vm2609_vm11, %v2575_v43, %v2625_v11 }
 0x604   :  { %v2670_v3 = vsel %vm1450_vm15, %v2641_v46, 0.0  ;;  %v2640_v44 = vsel %vm2608_vm12, %v2570_v51, %v2624_v18 }
 0x605   :  { %v2671_v53 = vadd.f32 %v2670_v3, %v2669_v50  ;;  %v2655_v59 = vsel %vm1450_vm15, %v2640_v44, 0.0 }
 0x606   :  { %v2656_v7 = vadd.f32 %v2655_v59, %v2654_v35  ;;  %v5067_v12 = vpop.f32.mrb[44].mxu1 }
 0x607   :  { %v2585_v24 = vadd.f32 %v5067_v12, %v7224_v8  ;;  %v2579_v36 = vpop.f32.mrb[45].mxu1 }
 0x608   :  { %v2580_v56 = vadd.f32 %v7224_v8, %v2579_v36 }
 0x609   :  { %vm2611_vm13 = vcmp.gt.f32.partialorder %v2585_v24, 0.0  ;;  %v2627_v2 = vmul.f32 0.01, %v2585_v24 }
 0x60a   :  { %vm2610_vm2 = vcmp.gt.f32.partialorder %v2580_v56, 0.0  ;;  %v2626_v14 = vmul.f32 0.01, %v2580_v56 }
 0x60b   :  { %v2643_v13 = vsel %vm2611_vm13, %v2585_v24, %v2627_v2  ;;  %v5070_v52 = vpop.f32.mrb[46].mxu1 }
 0x60c   :  { %v2672_v42 = vsel %vm1450_vm15, %v2643_v13, 0.0  ;;  %v2642_v5 = vsel %vm2610_vm2, %v2580_v56, %v2626_v14  ;;  %v2595_v49 = vadd.f32 %v5070_v52, %v7224_v8  ;;  %v2589_v21 = vpop.f32.mrb[47].mxu1 }
 0x60d   :  { %v2673_v1 = vadd.f32 %v2672_v42, %v2671_v53  ;;  %v2657_v41 = vsel %vm1450_vm15, %v2642_v5, 0.0  ;;  %v2590_v48 = vadd.f32 %v7224_v8, %v2589_v21 }
 0x60e   :  { %v2658_v25 = vadd.f32 %v2657_v41, %v2656_v7  ;;  %vm2613_vm8 = vcmp.gt.f32.partialorder %v2595_v49, 0.0  ;;  %v2629_v16 = vmul.f32 0.01, %v2595_v49 }
 0x60f   :  { %vm2612_vm14 = vcmp.gt.f32.partialorder %v2590_v48, 0.0  ;;  %v2628_v10 = vmul.f32 0.01, %v2590_v48 }
 0x610   :  { %v2645_v22 = vsel %vm2613_vm8, %v2595_v49, %v2629_v16 }
 0x611   :  { %v2674_v62 = vsel %vm1450_vm15, %v2645_v22, 0.0  ;;  %v2644_v34 = vsel %vm2612_vm14, %v2590_v48, %v2628_v10 }
 0x612   :  { %v2675_v54 = vadd.f32 %v2674_v62, %v2673_v1  ;;  %v2659_v4 = vsel %vm1450_vm15, %v2644_v34, 0.0 }
 0x613   :  { %v2660_v40 = vadd.f32 %v2659_v4, %v2658_v25 }
 0x614   :  { %v2677_v45 = vsel %vm1450_vm15, %v2675_v54, 0.0 }
 0x615   :  { %v2676_v31 = vsel %vm1450_vm15, %v2660_v40, 0.0  ;;  %v2812_v40 = vld [vmem:[%s7358_s22] sm:$0xff] }
 0x616   :  { %v2678_v27 = vadd.f32 %v2677_v45, %v2676_v31  ;;  %v2813_v45 = vld [vmem:[%s7358_s22 + $0x8] sm:$0xff] }
 0x618   :  { %v2679_v30 = vrot.slane %v2678_v27, 4 }
 0x61a   :  { %v2680_v8 = vadd.f32 %v2679_v30, %v2678_v27 }
 0x61c   :  { %v2681_v19 = vrot.slane %v2680_v8, 2 }
 0x61e   :  { %v2682_v38 = vadd.f32 %v2681_v19, %v2680_v8  ;;  %v5239_v8 = vpack.c.bf16 %v2813_v45, %v2812_v40 }
 0x620   :  { %v2683_v60 = vrot.slane %v2682_v38, 1  ;;  %5240 = vmatprep.subr.bf16.mxu0 %v5239_v8  ;;  %5323 = vmatprep.subr.bf16.mxu1 %v5239_v8 }
 0x621   :  { %5242 = vmatpush3.bf16.msra.mxu0 %v5239_v8  ;;  %5325 = vmatpush3.bf16.msra.mxu1 %v5239_v8 }
 0x622   :  { %v2684_v15 = vadd.f32 %v2683_v60, %v2682_v38 }
 0x624   :  { %v2685_v9 = vmul.f32 0.0078125, %v2684_v15 }
 0x626   :  { %v7291_v32 = vsub.f32 %v7232_v29, %v2685_v9  ;;  %v7294_v23 = vsub.f32 %v7230_v37, %v2685_v9  ;;  %v7297_v28 = vsub.f32 %v7240_v58, %v2685_v9  ;;  %v7300_v50 = vsub.f32 %v7234_v6, %v2685_v9 }
 0x627   :  { %v7303_v20 = vsub.f32 %v7252_v57, %v2685_v9  ;;  %v7306_v35 = vsub.f32 %v7248_v26, %v2685_v9  ;;  %v7309_v61 = vsub.f32 %v7262_v17, %v2685_v9  ;;  %v7312_v29 = vsub.f32 %v7258_v33, %v2685_v9 }
 0x628   :  { %v7315_v37 = vsub.f32 %v7272_v0, %v2685_v9  ;;  %v7318_v58 = vsub.f32 %v7268_v63, %v2685_v9  ;;  %v7320_v6 = vsub.f32 %v2640_v44, %v2685_v9  ;;  %v7322_v43 = vsub.f32 %v2641_v46, %v2685_v9 }
 0x629   :  { %v7324_v57 = vsub.f32 %v2642_v5, %v2685_v9  ;;  %v7326_v26 = vsub.f32 %v2643_v13, %v2685_v9  ;;  %v7328_v47 = vsub.f32 %v2644_v34, %v2685_v9  ;;  %v7330_v17 = vsub.f32 %v2645_v22, %v2685_v9 }
 0x62a   :  { %v2702_v33 = vmul.f32 %v7291_v32, %v7291_v32  ;;  %v2704_v0 = vmul.f32 %v7297_v28, %v7297_v28  ;;  %v2703_v63 = vmul.f32 %v7294_v23, %v7294_v23  ;;  %v2705_v51 = vmul.f32 %v7300_v50, %v7300_v50 }
 0x62b   :  { %v2706_v11 = vmul.f32 %v7303_v20, %v7303_v20  ;;  %v2707_v18 = vmul.f32 %v7306_v35, %v7306_v35  ;;  %v2708_v46 = vmul.f32 %v7309_v61, %v7309_v61  ;;  %v2709_v53 = vmul.f32 %v7312_v29, %v7312_v29 }
 0x62c   :  { %v2718_v3 = vsel %vm1450_vm15, %v2702_v33, 0.0  ;;  %v2719_v44 = vsel %vm1450_vm15, %v2704_v0, 0.0  ;;  %v2710_v7 = vmul.f32 %v7315_v37, %v7315_v37  ;;  %v2733_v24 = vsel %vm1450_vm15, %v2703_v63, 0.0 }
 0x62d   :  { %v2720_v59 = vadd.f32 %v2719_v44, %v2718_v3  ;;  %v2721_v12 = vsel %vm1450_vm15, %v2706_v11, 0.0  ;;  %v2734_v36 = vsel %vm1450_vm15, %v2705_v51, 0.0  ;;  %v2711_v14 = vmul.f32 %v7318_v58, %v7318_v58 }
 0x62e   :  { %v2735_v2 = vadd.f32 %v2734_v36, %v2733_v24  ;;  %v2712_v13 = vmul.f32 %v7320_v6, %v7320_v6  ;;  %v2723_v52 = vsel %vm1450_vm15, %v2708_v46, 0.0  ;;  %v2736_v42 = vsel %vm1450_vm15, %v2707_v18, 0.0 }
 0x62f   :  { %v2722_v56 = vadd.f32 %v2721_v12, %v2720_v59  ;;  %v2713_v21 = vmul.f32 %v7322_v43, %v7322_v43  ;;  %v2714_v1 = vmul.f32 %v7324_v57, %v7324_v57  ;;  %v2725_v41 = vsel %vm1450_vm15, %v2710_v7, 0.0 }
 0x630   :  { %v2737_v49 = vadd.f32 %v2736_v42, %v2735_v2  ;;  %v2738_v48 = vsel %vm1450_vm15, %v2709_v53, 0.0  ;;  %v2715_v10 = vmul.f32 %v7326_v26, %v7326_v26  ;;  %v2716_v22 = vmul.f32 %v7328_v47, %v7328_v47  ;;  %v2815_v42 = vld [vmem:[%s7358_s22 + $0x18] sm:$0x3f] }
 0x631   :  { %v2724_v5 = vadd.f32 %v2723_v52, %v2722_v56  ;;  %v2727_v62 = vsel %vm1450_vm15, %v2712_v13, 0.0  ;;  %v2740_v34 = vsel %vm1450_vm15, %v2711_v14, 0.0  ;;  %v2717_v31 = vmul.f32 %v7330_v17, %v7330_v17  ;;  %v2814_v52 = vld [vmem:[%s7358_s22 + $0x10] sm:$0xff] }
 0x632   :  { %v2739_v16 = vadd.f32 %v2738_v48, %v2737_v49  ;;  %v2729_v27 = vsel %vm1450_vm15, %v2714_v1, 0.0  ;;  %v2742_v30 = vsel %vm1450_vm15, %v2713_v21, 0.0  ;;  %v2731_v60 = vsel %vm1450_vm15, %v2716_v22, 0.0  ;;  %v2256_v21 = vld [vmem:[%s4590_s26] sm:$0x1]  ;;  %s7856_s26 = sld [smem:[%s8189_s0 + %s5420_s23]]  }
 0x633   :  { %v2726_v25 = vadd.f32 %v2725_v41, %v2724_v5  ;;  %v2744_v15 = vsel %vm1450_vm15, %v2715_v10, 0.0  ;;  %v2746_v0 = vsel %vm1450_vm15, %v2717_v31, 0.0  ;;  %v5243_v5 = vpack.c.bf16 %v2815_v42, %v2814_v52 }
 0x634   :  { %v2741_v4 = vadd.f32 %v2740_v34, %v2739_v16 }
 0x635   :  { %v2728_v54 = vadd.f32 %v2727_v62, %v2726_v25  ;;  %5245 = vmatprep.subr.msk.bf16.mxu0 %vm7398_vm5, %v5243_v5  ;;  %5324 = vmatprep.subr.msk.bf16.mxu1 %vm7398_vm5, %v5243_v5  ;;  %v4701_v25 = vld [vmem:[%s4591_s1] ss:$0 sm:$0xff] }
 0x636   :  { %v2743_v38 = vadd.f32 %v2742_v30, %v2741_v4  ;;  %5248 = vmatpush3.bf16.msk.msra.mxu0 %vm7398_vm5, %v5243_v5  ;;  %5326 = vmatpush3.bf16.msk.msra.mxu1 %vm7398_vm5, %v5243_v5 }
 0x637   :  { %v2730_v19 = vadd.f32 %v2729_v27, %v2728_v54 }
 0x638   :  { %v2745_v33 = vadd.f32 %v2744_v15, %v2743_v38 }
 0x639   :  { %v2732_v9 = vadd.f32 %v2731_v60, %v2730_v19 }
 0x63a   :  { %v2747_v63 = vadd.f32 %v2746_v0, %v2745_v33 }
 0x63b   :  { %v2748_v51 = vsel %vm1450_vm15, %v2732_v9, 0.0 }
 0x63c   :  { %v2749_v11 = vsel %vm1450_vm15, %v2747_v63, 0.0 }
 0x63d   :  { %v2750_v18 = vadd.f32 %v2749_v11, %v2748_v51 }
 0x63f   :  { %v2751_v46 = vrot.slane %v2750_v18, 4 }
 0x641   :  { %v2752_v3 = vadd.f32 %v2751_v46, %v2750_v18 }
 0x643   :  { %v2753_v44 = vrot.slane %v2752_v3, 2 }
 0x645   :  { %v2754_v53 = vadd.f32 %v2753_v44, %v2752_v3 }
 0x647   :  { %v2755_v59 = vrot.slane %v2754_v53, 1 }
 0x649   :  { %v2756_v7 = vadd.f32 %v2755_v59, %v2754_v53 }
 0x64b   :  { %v2757_v12 = vmul.f32 0.0078125, %v2756_v7 }
 0x64d   :  { %v2758_v24 = vadd.f32 1e-05, %v2757_v12 }
 0x64f   :  { %5373 = vrsqrt.f32 %v2758_v24  ;;  %vm2761_vm0 = vcmp.eq.f32.partialorder %v2758_v24, inf  ;;  %v2764_v2 = vand.u32 2147483648, %v2758_v24  ;;  %vm2763_vm3 = vcmp.eq.f32.partialorder %v2758_v24, 0.0 }
 0x659   :  { %v5374_v36 = vpop.eup %5373 }
 0x65a   :  { %v2760_v56 = vmul.f32 %v5374_v36, %v2758_v24 }
 0x65c   :  { %v2762_v14 = vsel %vm2761_vm0, %v2758_v24, %v2760_v56 }
 0x65d   :  { %v2765_v13 = vsel %vm2763_vm3, %v2764_v2, %v2762_v14 }
 0x65e   :  { %5375 = vrcp.f32 %v2765_v13 }
 0x668   :  { %v5376_v1 = vpop.eup %5375 }
 0x669   :  { %v2767_v41 = vmul.f32 %v5376_v1, %v2256_v21 }
 0x66b   :  { %v2772_v48 = vrot.slane %v2767_v41, %v6140_v39 }
 0x66d   :  { %v2775_v16 = vmul.f32 %v2772_v48, %v7294_v23  ;;  %v2774_v10 = vmul.f32 %v2772_v48, %v7291_v32  ;;  %v2777_v34 = vmul.f32 %v2772_v48, %v7300_v50  ;;  %v2776_v54 = vmul.f32 %v2772_v48, %v7297_v28 }
 0x66e   :  { %v2779_v32 = vmul.f32 %v2772_v48, %v7306_v35  ;;  %v2778_v23 = vmul.f32 %v2772_v48, %v7303_v20  ;;  %v2781_v35 = vmul.f32 %v2772_v48, %v7312_v29  ;;  %v2780_v20 = vmul.f32 %v2772_v48, %v7309_v61 }
 0x66f   :  { %v7413_v22 = vadd.f32 %v4701_v25, %v2775_v16  ;;  %v7415_v62 = vadd.f32 %v4701_v25, %v2774_v10  ;;  %v7423_v4 = vadd.f32 %v4701_v25, %v2777_v34  ;;  %v7425_v40 = vadd.f32 %v4701_v25, %v2776_v54 }
 0x670   :  { %v7437_v28 = vadd.f32 %v4701_v25, %v2779_v32  ;;  %v7439_v50 = vadd.f32 %v4701_v25, %v2778_v23  ;;  %v7451_v45 = vadd.f32 %v4701_v25, %v2781_v35  ;;  %v7453_v31 = vadd.f32 %v4701_v25, %v2780_v20 }
 0x671   :  { %2837 = vrot.lane.b32.xlu1 %v7413_v22, %s5406_s28  ;;  %2835 = vrot.lane.b32.xlu0 %v7415_v62, %s5406_s28  ;;  %v2784_v29 = vmul.f32 %v2772_v48, %v7320_v6  ;;  %v2782_v61 = vmul.f32 %v2772_v48, %v7315_v37  ;;  %v2785_v8 = vmul.f32 %v2772_v48, %v7322_v43 }
 0x672   :  { %v2783_v19 = vmul.f32 %v2772_v48, %v7318_v58  ;;  %v2786_v38 = vmul.f32 %v2772_v48, %v7324_v57  ;;  %v2787_v58 = vmul.f32 %v2772_v48, %v7326_v26  ;;  %v2788_v57 = vmul.f32 %v2772_v48, %v7328_v47 }
 0x673   :  { %v7465_v27 = vadd.f32 %v4701_v25, %v2784_v29  ;;  %v7467_v30 = vadd.f32 %v4701_v25, %v2782_v61  ;;  %v7475_v37 = vadd.f32 %v4701_v25, %v2785_v8  ;;  %v2789_v26 = vmul.f32 %v2772_v48, %v7330_v17 }
 0x674   :  { %v7477_v6 = vadd.f32 %v4701_v25, %v2783_v19  ;;  %v7484_v43 = vadd.f32 %v4701_v25, %v2786_v38  ;;  %v7491_v60 = vadd.f32 %v4701_v25, %v2787_v58  ;;  %v2810_v9 = vadd.f32 %v4701_v25, %v2788_v57 }
 0x675   :  { %2885 = vrot.lane.b32.xlu1 %v7423_v4, %s5414_s2  ;;  %2883 = vrot.lane.b32.xlu0 %v7425_v40, %s5414_s2  ;;  %v2811_v15 = vadd.f32 %v4701_v25, %v2789_v26 }
 0x679   :  { %2841 = vrot.lane.b32.xlu1 %v7423_v4, %s5406_s28  ;;  %2839 = vrot.lane.b32.xlu0 %v7425_v40, %s5406_s28 }
 0x67d   :  { %2889 = vrot.lane.b32.xlu1 %v7437_v28, %s5414_s2  ;;  %2887 = vrot.lane.b32.xlu0 %v7439_v50, %s5414_s2 }
 0x681   :  { %2845 = vrot.lane.b32.xlu1 %v7437_v28, %s5406_s28  ;;  %2843 = vrot.lane.b32.xlu0 %v7439_v50, %s5406_s28 }
 0x685   :  { %2893 = vrot.lane.b32.xlu1 %v7451_v45, %s5414_s2  ;;  %2891 = vrot.lane.b32.xlu0 %v7453_v31, %s5414_s2 }
 0x689   :  { %2849 = vrot.lane.b32.xlu1 %v7451_v45, %s5406_s28  ;;  %2847 = vrot.lane.b32.xlu0 %v7453_v31, %s5406_s28 }
 0x68d   :  { %2855 = vrot.lane.b32.xlu1 %v7465_v27, %s5406_s28  ;;  %2895 = vrot.lane.b32.xlu0 %v7467_v30, %s5414_s2 }
 0x691   :  { %2857 = vrot.lane.b32.xlu1 %v7475_v37, %s5406_s28  ;;  %2897 = vrot.lane.b32.xlu0 %v7477_v6, %s5414_s2 }
 0x695   :  { %2851 = vrot.lane.b32.xlu1 %v7467_v30, %s5406_s28  ;;  %2903 = vrot.lane.b32.xlu0 %v7484_v43, %s5414_s2 }
 0x699   :  { %2853 = vrot.lane.b32.xlu1 %v7477_v6, %s5406_s28  ;;  %2905 = vrot.lane.b32.xlu0 %v7491_v60, %s5414_s2 }
 0x69d   :  { %2859 = vrot.lane.b32.xlu1 %v7484_v43, %s5406_s28  ;;  %2899 = vrot.lane.b32.xlu0 %v7465_v27, %s5414_s2 }
 0x6a1   :  { %2861 = vrot.lane.b32.xlu1 %v7491_v60, %s5406_s28  ;;  %2901 = vrot.lane.b32.xlu0 %v7475_v37, %s5414_s2 }
 0x6a5   :  { %2909 = vrot.lane.b32.xlu1 %v2811_v15, %s5414_s2  ;;  %2907 = vrot.lane.b32.xlu0 %v2810_v9, %s5414_s2 }
 0x6a9   :  { %2865 = vrot.lane.b32.xlu1 %v2811_v15, %s5406_s28  ;;  %2863 = vrot.lane.b32.xlu0 %v2810_v9, %s5406_s28 }
 0x6ad   :  { %2911 = vrot.lane.b32.xlu0 %v5401_v55, %s5414_s2 }
 0x6e3   :  { %v2838_v47 = vpop.permute.xlu1 %2837  ;;  %v2836_v17 = vpop.permute.xlu0 %2835 }
 0x6e4   :  { %v2929_v33 = vsel %vm1450_vm15, 0.0, %v2838_v47  ;;  %v2928_v0 = vsel %vm1450_vm15, 0.0, %v2836_v17 }
 0x6e7   :  { %v2886_v63 = vpop.permute.xlu1 %2885  ;;  %v2884_v51 = vpop.permute.xlu0 %2883 }
 0x6e8   :  { %v2946_v11 = vsel %vm2944_vm6, %v2929_v33, %v2886_v63  ;;  %v2945_v18 = vsel %vm2944_vm6, %v2928_v0, %v2884_v51  ;;  %v7582_v63 = vld [vmem:[%s4593_s7] ss:$0 sm:$0xff] }
 0x6e9   :  { %5079 = vmatprep.mubr.msk.f32.mxu0 %vm2967_vm7, %v2945_v18 }
 0x6ea   :  { %5080 = vmatmul.mubr.msk.f32.vlgmr.msra.gmra.mrb[32].mxu0 %vm2967_vm7, %v2946_v11 }
 0x6eb   :  { %v2842_v46 = vpop.permute.xlu1 %2841  ;;  %v2840_v3 = vpop.permute.xlu0 %2839 }
 0x6ec   :  { %v2931_v44 = vsel %vm1450_vm15, %v7413_v22, %v2842_v46  ;;  %v2930_v53 = vsel %vm1450_vm15, %v7415_v62, %v2840_v3 }
 0x6ef   :  { %v2890_v59 = vpop.permute.xlu1 %2889  ;;  %v2888_v7 = vpop.permute.xlu0 %2887 }
 0x6f0   :  { %v2948_v12 = vsel %vm2944_vm6, %v2931_v44, %v2890_v59  ;;  %v2947_v24 = vsel %vm2944_vm6, %v2930_v53, %v2888_v7 }
 0x6f1   :  { %5082 = vmatprep.mubr.msk.f32.mxu0 %vm2967_vm7, %v2947_v24 }
 0x6f2   :  { %5083 = vmatmul.mubr.msk.f32.gmra.mrb[34].mxu0 %vm2967_vm7, %v2948_v12 }
 0x6f3   :  { %v2846_v36 = vpop.permute.xlu1 %2845  ;;  %v2844_v56 = vpop.permute.xlu0 %2843 }
 0x6f4   :  { %v2933_v2 = vsel %vm1450_vm15, %v7423_v4, %v2846_v36  ;;  %v2932_v14 = vsel %vm1450_vm15, %v7425_v40, %v2844_v56 }
 0x6f7   :  { %v2894_v13 = vpop.permute.xlu1 %2893  ;;  %v2892_v52 = vpop.permute.xlu0 %2891 }
 0x6f8   :  { %v2950_v42 = vsel %vm2944_vm6, %v2933_v2, %v2894_v13  ;;  %v2949_v5 = vsel %vm2944_vm6, %v2932_v14, %v2892_v52 }
 0x6f9   :  { %5085 = vmatprep.mubr.msk.f32.mxu0 %vm2967_vm7, %v2949_v5 }
 0x6fa   :  { %5086 = vmatmul.mubr.msk.f32.gmra.mrb[36].mxu0 %vm2967_vm7, %v2950_v42 }
 0x6fb   :  { %v2850_v21 = vpop.permute.xlu1 %2849  ;;  %v2848_v1 = vpop.permute.xlu0 %2847 }
 0x6fc   :  { %v2934_v41 = vsel %vm1450_vm15, %v7439_v50, %v2848_v1  ;;  %v2935_v10 = vsel %vm1450_vm15, %v7437_v28, %v2850_v21 }
 0x6ff   :  { %v2856_v48 = vpop.permute.xlu1 %2855  ;;  %v2896_v25 = vpop.permute.xlu0 %2895 }
 0x700   :  { %v2951_v16 = vsel %vm2944_vm6, %v2934_v41, %v2896_v25  ;;  %v2938_v54 = vsel %vm1450_vm15, %v7467_v30, %v2856_v48 }
 0x701   :  { %5088 = vmatprep.mubr.msk.f32.mxu0 %vm2967_vm7, %v2951_v16 }
 0x703   :  { %v2858_v22 = vpop.permute.xlu1 %2857  ;;  %v2898_v62 = vpop.permute.xlu0 %2897 }
 0x704   :  { %v2952_v34 = vsel %vm2944_vm6, %v2935_v10, %v2898_v62  ;;  %v2939_v23 = vsel %vm1450_vm15, %v7477_v6, %v2858_v22 }
 0x705   :  { %5089 = vmatmul.mubr.msk.f32.gmra.mrb[38].mxu0 %vm2967_vm7, %v2952_v34 }
 0x707   :  { %v2852_v4 = vpop.permute.xlu1 %2851  ;;  %v2904_v40 = vpop.permute.xlu0 %2903 }
 0x708   :  { %v2955_v32 = vsel %vm2944_vm6, %v2938_v54, %v2904_v40  ;;  %v2936_v20 = vsel %vm1450_vm15, %v7453_v31, %v2852_v4 }
 0x709   :  { %5094 = vmatprep.mubr.msk.f32.mxu1 %vm2967_vm7, %v2955_v32 }
 0x70b   :  { %v2854_v50 = vpop.permute.xlu1 %2853  ;;  %v2906_v28 = vpop.permute.xlu0 %2905 }
 0x70c   :  { %v2956_v35 = vsel %vm2944_vm6, %v2939_v23, %v2906_v28  ;;  %v2937_v8 = vsel %vm1450_vm15, %v7451_v45, %v2854_v50 }
 0x70d   :  { %5095 = vmatmul.mubr.msk.f32.vlgmr.msra.gmra.mrb[48].mxu1 %vm2967_vm7, %v2956_v35 }
 0x70f   :  { %v2860_v29 = vpop.permute.xlu1 %2859  ;;  %v2900_v61 = vpop.permute.xlu0 %2899 }
 0x710   :  { %v2953_v30 = vsel %vm2944_vm6, %v2936_v20, %v2900_v61  ;;  %v2940_v58 = vsel %vm1450_vm15, %v7465_v27, %v2860_v29 }
 0x711   :  { %5091 = vmatprep.mubr.msk.f32.mxu0 %vm2967_vm7, %v2953_v30 }
 0x713   :  { %v2862_v19 = vpop.permute.xlu1 %2861  ;;  %v2902_v6 = vpop.permute.xlu0 %2901 }
 0x714   :  { %v2954_v38 = vsel %vm2944_vm6, %v2937_v8, %v2902_v6  ;;  %v2941_v31 = vsel %vm1450_vm15, %v7475_v37, %v2862_v19 }
 0x715   :  { %5092 = vmatmul.mubr.msk.f32.gmra.mrb[40].mxu0 %vm2967_vm7, %v2954_v38 }
 0x717   :  { %v2910_v57 = vpop.permute.xlu1 %2909  ;;  %v2908_v26 = vpop.permute.xlu0 %2907 }
 0x718   :  { %v2958_v15 = vsel %vm2944_vm6, %v2941_v31, %v2910_v57  ;;  %v2957_v9 = vsel %vm2944_vm6, %v2940_v58, %v2908_v26 }
 0x719   :  { %5097 = vmatprep.mubr.msk.f32.mxu1 %vm2967_vm7, %v2957_v9 }
 0x71a   :  { %5098 = vmatmul.mubr.msk.f32.gmra.mrb[50].mxu1 %vm2967_vm7, %v2958_v15 }
 0x71b   :  { %v2864_v45 = vpop.permute.xlu0 %2863  ;;  %v2866_v47 = vpop.permute.xlu1 %2865 }
 0x71c   :  { %v2943_v17 = vsel %vm1450_vm15, %v7491_v60, %v2866_v47  ;;  %v2942_v27 = vsel %vm1450_vm15, %v7484_v43, %v2864_v45 }
 0x71f   :  { %v7571_v33 = vpop.permute.xlu0 %2911 }
 0x720   :  { %v2959_v37 = vsel %vm2944_vm6, %v2942_v27, %v7571_v33  ;;  %v2960_v0 = vsel %vm2944_vm6, %v2943_v17, %v7571_v33 }
 0x721   :  { %5100 = vmatprep.mubr.msk.f32.mxu1 %vm2967_vm7, %v2959_v37 }
 0x722   :  { %5101 = vmatmul.mubr.msk.f32.gmra.mrb[52].mxu1 %vm2967_vm7, %v2960_v0 }
 0x7bd   :  { %v5081_v60 = vpop.f32.mrb[32].mxu0 }
 0x7be   :  { %v3086_v43 = vpop.f32.mrb[33].mxu0  ;;  %v3092_v51 = vadd.f32 %v5081_v60, %v7582_v63 }
 0x7bf   :  { %v3087_v11 = vadd.f32 %v7582_v63, %v3086_v43 }
 0x7c0   :  { %v3182_v18 = vmul.f32 0.01, %v3092_v51  ;;  %vm3166_vm9 = vcmp.gt.f32.partialorder %v3092_v51, 0.0 }
 0x7c1   :  { %v3181_v46 = vmul.f32 0.01, %v3087_v11  ;;  %vm3165_vm10 = vcmp.gt.f32.partialorder %v3087_v11, 0.0 }
 0x7c2   :  { %v7588_v7 = vsel %vm3166_vm9, %v3092_v51, %v3182_v18 }
 0x7c3   :  { %v7590_v24 = vsel %vm3165_vm10, %v3087_v11, %v3181_v46  ;;  %v3228_v2 = vsel %vm1450_vm15, %v7588_v7, 0.0 }
 0x7c4   :  { %v3213_v52 = vsel %vm1450_vm15, %v7590_v24, 0.0 }
 0x7c5   :  { %v5084_v3 = vpop.f32.mrb[34].mxu0 }
 0x7c6   :  { %v3102_v44 = vadd.f32 %v5084_v3, %v7582_v63  ;;  %v3096_v53 = vpop.f32.mrb[35].mxu0 }
 0x7c7   :  { %v3097_v59 = vadd.f32 %v7582_v63, %v3096_v53 }
 0x7c8   :  { %vm3168_vm11 = vcmp.gt.f32.partialorder %v3102_v44, 0.0  ;;  %v3184_v12 = vmul.f32 0.01, %v3102_v44 }
 0x7c9   :  { %vm3167_vm12 = vcmp.gt.f32.partialorder %v3097_v59, 0.0  ;;  %v3183_v36 = vmul.f32 0.01, %v3097_v59 }
 0x7ca   :  { %v7592_v56 = vsel %vm3168_vm11, %v3102_v44, %v3184_v12 }
 0x7cb   :  { %v3229_v14 = vsel %vm1450_vm15, %v7592_v56, 0.0  ;;  %v7598_v13 = vsel %vm3167_vm12, %v3097_v59, %v3183_v36 }
 0x7cc   :  { %v3230_v42 = vadd.f32 %v3229_v14, %v3228_v2  ;;  %v3214_v5 = vsel %vm1450_vm15, %v7598_v13, 0.0 }
 0x7cd   :  { %v3215_v21 = vadd.f32 %v3214_v5, %v3213_v52  ;;  %v5087_v1 = vpop.f32.mrb[36].mxu0 }
 0x7ce   :  { %v3112_v41 = vadd.f32 %v5087_v1, %v7582_v63  ;;  %v3106_v48 = vpop.f32.mrb[37].mxu0 }
 0x7cf   :  { %v3107_v25 = vadd.f32 %v7582_v63, %v3106_v48 }
 0x7d0   :  { %vm3170_vm13 = vcmp.gt.f32.partialorder %v3112_v41, 0.0  ;;  %v3186_v16 = vmul.f32 0.01, %v3112_v41 }
 0x7d1   :  { %vm3169_vm2 = vcmp.gt.f32.partialorder %v3107_v25, 0.0  ;;  %v3185_v10 = vmul.f32 0.01, %v3107_v25 }
 0x7d2   :  { %v7606_v22 = vsel %vm3170_vm13, %v3112_v41, %v3186_v16 }
 0x7d3   :  { %v3231_v62 = vsel %vm1450_vm15, %v7606_v22, 0.0  ;;  %v7610_v34 = vsel %vm3169_vm2, %v3107_v25, %v3185_v10 }
 0x7d4   :  { %v3232_v54 = vadd.f32 %v3231_v62, %v3230_v42  ;;  %v3216_v4 = vsel %vm1450_vm15, %v7610_v34, 0.0 }
 0x7d5   :  { %v3217_v40 = vadd.f32 %v3216_v4, %v3215_v21 }
 0x7d8   :  { %v5090_v32 = vpop.f32.mrb[38].mxu0 }
 0x7d9   :  { %v3122_v23 = vadd.f32 %v5090_v32, %v7582_v63  ;;  %v3116_v50 = vpop.f32.mrb[39].mxu0 }
 0x7da   :  { %v3117_v28 = vadd.f32 %v7582_v63, %v3116_v50 }
 0x7db   :  { %vm3172_vm8 = vcmp.gt.f32.partialorder %v3122_v23, 0.0  ;;  %v3188_v35 = vmul.f32 0.01, %v3122_v23 }
 0x7dc   :  { %vm3171_vm14 = vcmp.gt.f32.partialorder %v3117_v28, 0.0  ;;  %v3187_v20 = vmul.f32 0.01, %v3117_v28 }
 0x7dd   :  { %v7616_v29 = vsel %vm3172_vm8, %v3122_v23, %v3188_v35 }
 0x7de   :  { %v3233_v61 = vsel %vm1450_vm15, %v7616_v29, 0.0  ;;  %v7620_v30 = vsel %vm3171_vm14, %v3117_v28, %v3187_v20 }
 0x7df   :  { %v3234_v8 = vadd.f32 %v3233_v61, %v3232_v54  ;;  %v3218_v19 = vsel %vm1450_vm15, %v7620_v30, 0.0 }
 0x7e0   :  { %v3219_v6 = vadd.f32 %v3218_v19, %v3217_v40  ;;  %v5096_v38 = vpop.f32.mrb[48].mxu1 }
 0x7e1   :  { %v3136_v58 = vpop.f32.mrb[49].mxu1  ;;  %v3142_v31 = vadd.f32 %v5096_v38, %v7582_v63  ;;  %v3404_v38 = vld [vmem:[%s7651_s11 + $0x8] sm:$0xff] }
 0x7e2   :  { %v3137_v57 = vadd.f32 %v7582_v63, %v3136_v58 }
 0x7e3   :  { %v3192_v15 = vmul.f32 0.01, %v3142_v31  ;;  %vm3176_vm0 = vcmp.gt.f32.partialorder %v3142_v31, 0.0 }
 0x7e4   :  { %v3191_v47 = vmul.f32 0.01, %v3137_v57  ;;  %vm3175_vm3 = vcmp.gt.f32.partialorder %v3137_v57, 0.0 }
 0x7e5   :  { %v7628_v0 = vsel %vm3176_vm0, %v3142_v31, %v3192_v15 }
 0x7e6   :  { %v7632_v51 = vsel %vm3175_vm3, %v3137_v57, %v3191_v47  ;;  %v3237_v12 = vsel %vm1450_vm15, %v7628_v0, 0.0 }
 0x7e7   :  { %v3222_v14 = vsel %vm1450_vm15, %v7632_v51, 0.0 }
 0x7e8   :  { %v5093_v26 = vpop.f32.mrb[40].mxu0 }
 0x7e9   :  { %v3132_v9 = vadd.f32 %v5093_v26, %v7582_v63  ;;  %v3126_v45 = vpop.f32.mrb[41].mxu0 }
 0x7ea   :  { %v3127_v17 = vadd.f32 %v7582_v63, %v3126_v45 }
 0x7eb   :  { %vm3174_vm4 = vcmp.gt.f32.partialorder %v3132_v9, 0.0  ;;  %v3190_v27 = vmul.f32 0.01, %v3132_v9 }
 0x7ec   :  { %vm3173_vm9 = vcmp.gt.f32.partialorder %v3127_v17, 0.0  ;;  %v3189_v37 = vmul.f32 0.01, %v3127_v17 }
 0x7ed   :  { %v7630_v60 = vsel %vm3174_vm4, %v3132_v9, %v3190_v27  ;;  %v5099_v43 = vpop.f32.mrb[50].mxu1 }
 0x7ee   :  { %v3235_v11 = vsel %vm1450_vm15, %v7630_v60, 0.0  ;;  %v3205_v18 = vsel %vm3173_vm9, %v3127_v17, %v3189_v37  ;;  %v3152_v46 = vadd.f32 %v5099_v43, %v7582_v63  ;;  %v3146_v3 = vpop.f32.mrb[51].mxu1 }
 0x7ef   :  { %v3236_v44 = vadd.f32 %v3235_v11, %v3234_v8  ;;  %v3220_v53 = vsel %vm1450_vm15, %v3205_v18, 0.0  ;;  %v3147_v59 = vadd.f32 %v7582_v63, %v3146_v3 }
 0x7f0   :  { %v3221_v36 = vadd.f32 %v3220_v53, %v3219_v6  ;;  %vm3178_vm10 = vcmp.gt.f32.partialorder %v3152_v46, 0.0  ;;  %v3194_v2 = vmul.f32 0.01, %v3152_v46  ;;  %v3403_v6 = vld [vmem:[%s7651_s11] sm:$0xff] }
 0x7f1   :  { %v3238_v52 = vadd.f32 %v3237_v12, %v3236_v44  ;;  %vm3177_vm11 = vcmp.gt.f32.partialorder %v3147_v59, 0.0  ;;  %v3193_v42 = vmul.f32 0.01, %v3147_v59  ;;  %v5249_v31 = vpack.c.bf16 %v3404_v38, %v3403_v6 }
 0x7f2   :  { %v3210_v5 = vsel %vm3178_vm10, %v3152_v46, %v3194_v2  ;;  %v3223_v21 = vadd.f32 %v3222_v14, %v3221_v36 }
 0x7f3   :  { %v3239_v1 = vsel %vm1450_vm15, %v3210_v5, 0.0  ;;  %v3209_v41 = vsel %vm3177_vm11, %v3147_v59, %v3193_v42  ;;  %5250 = vmatprep.subr.bf16.mxu1 %v5249_v31 }
 0x7f4   :  { %v3240_v48 = vadd.f32 %v3239_v1, %v3238_v52  ;;  %v3224_v25 = vsel %vm1450_vm15, %v3209_v41, 0.0  ;;  %5252 = vmatpush3.bf16.msra.mxu1 %v5249_v31 }
 0x7f5   :  { %v3225_v16 = vadd.f32 %v3224_v25, %v3223_v21  ;;  %v5102_v10 = vpop.f32.mrb[52].mxu1 }
 0x7f6   :  { %v3162_v62 = vadd.f32 %v5102_v10, %v7582_v63  ;;  %v3156_v54 = vpop.f32.mrb[53].mxu1 }
 0x7f7   :  { %v3157_v4 = vadd.f32 %v7582_v63, %v3156_v54 }
 0x7f8   :  { %vm3180_vm12 = vcmp.gt.f32.partialorder %v3162_v62, 0.0  ;;  %v3196_v40 = vmul.f32 0.01, %v3162_v62 }
 0x7f9   :  { %vm3179_vm13 = vcmp.gt.f32.partialorder %v3157_v4, 0.0  ;;  %v3195_v32 = vmul.f32 0.01, %v3157_v4 }
 0x7fa   :  { %v3212_v23 = vsel %vm3180_vm12, %v3162_v62, %v3196_v40  ;;  %vm3852_vm12 = vcmask 1043456  }
 0x7fb   :  { %v3241_v50 = vsel %vm1450_vm15, %v3212_v23, 0.0  ;;  %v3211_v28 = vsel %vm3179_vm13, %v3157_v4, %v3195_v32  ;;  %vm7929_vm13 = vmpackc.low %vm3852_vm12, %vm5400_vm1  ;;  %vm3812_vm1 = vcmask 326656  }
 0x7fc   :  { %v3242_v35 = vadd.f32 %v3241_v50, %v3240_v48  ;;  %v3226_v20 = vsel %vm1450_vm15, %v3211_v28, 0.0 }
 0x7fd   :  { %v3227_v63 = vadd.f32 %v3226_v20, %v3225_v16 }
 0x7fe   :  { %v3244_v61 = vsel %vm1450_vm15, %v3242_v35, 0.0 }
 0x7ff   :  { %v3243_v8 = vsel %vm1450_vm15, %v3227_v63, 0.0 }
 0x800   :  { %v3245_v19 = vadd.f32 %v3244_v61, %v3243_v8 }
 0x802   :  { %v3246_v58 = vrot.slane %v3245_v19, 4 }
 0x804   :  { %v3247_v57 = vadd.f32 %v3246_v58, %v3245_v19 }
 0x806   :  { %v3248_v26 = vrot.slane %v3247_v57, 2 }
 0x808   :  { %v3249_v15 = vadd.f32 %v3248_v26, %v3247_v57 }
 0x80a   :  { %v3250_v9 = vrot.slane %v3249_v15, 1 }
 0x80c   :  { %v3251_v45 = vadd.f32 %v3250_v9, %v3249_v15 }
 0x80e   :  { %v3252_v47 = vmul.f32 0.0078125, %v3251_v45 }
 0x810   :  { %v7659_v17 = vsub.f32 %v7590_v24, %v3252_v47  ;;  %v7662_v27 = vsub.f32 %v7588_v7, %v3252_v47  ;;  %v7665_v37 = vsub.f32 %v7598_v13, %v3252_v47  ;;  %v7668_v43 = vsub.f32 %v7592_v56, %v3252_v47 }
 0x811   :  { %v7671_v11 = vsub.f32 %v7610_v34, %v3252_v47  ;;  %v7674_v46 = vsub.f32 %v7606_v22, %v3252_v47  ;;  %v7677_v3 = vsub.f32 %v7620_v30, %v3252_v47  ;;  %v7680_v24 = vsub.f32 %v7616_v29, %v3252_v47 }
 0x812   :  { %v7682_v7 = vsub.f32 %v3205_v18, %v3252_v47  ;;  %v7685_v13 = vsub.f32 %v7630_v60, %v3252_v47  ;;  %v7688_v56 = vsub.f32 %v7632_v51, %v3252_v47  ;;  %v7691_v34 = vsub.f32 %v7628_v0, %v3252_v47 }
 0x813   :  { %v7693_v44 = vsub.f32 %v3209_v41, %v3252_v47  ;;  %v7695_v22 = vsub.f32 %v3210_v5, %v3252_v47  ;;  %v7697_v30 = vsub.f32 %v3211_v28, %v3252_v47  ;;  %v7699_v53 = vsub.f32 %v3212_v23, %v3252_v47 }
 0x814   :  { %v3269_v29 = vmul.f32 %v7659_v17, %v7659_v17  ;;  %v3271_v60 = vmul.f32 %v7665_v37, %v7665_v37  ;;  %v3270_v51 = vmul.f32 %v7662_v27, %v7662_v27  ;;  %v3272_v0 = vmul.f32 %v7668_v43, %v7668_v43 }
 0x815   :  { %v3273_v18 = vmul.f32 %v7671_v11, %v7671_v11  ;;  %v3274_v59 = vmul.f32 %v7674_v46, %v7674_v46  ;;  %v3275_v12 = vmul.f32 %v7677_v3, %v7677_v3  ;;  %v3276_v14 = vmul.f32 %v7680_v24, %v7680_v24 }
 0x816   :  { %v3285_v36 = vsel %vm1450_vm15, %v3269_v29, 0.0  ;;  %v3286_v2 = vsel %vm1450_vm15, %v3271_v60, 0.0  ;;  %v3277_v42 = vmul.f32 %v7682_v7, %v7682_v7  ;;  %v3300_v21 = vsel %vm1450_vm15, %v3270_v51, 0.0 }
 0x817   :  { %v3287_v52 = vadd.f32 %v3286_v2, %v3285_v36  ;;  %v3288_v5 = vsel %vm1450_vm15, %v3273_v18, 0.0  ;;  %v3301_v1 = vsel %vm1450_vm15, %v3272_v0, 0.0  ;;  %v3278_v25 = vmul.f32 %v7685_v13, %v7685_v13 }
 0x818   :  { %v3302_v48 = vadd.f32 %v3301_v1, %v3300_v21  ;;  %v3279_v16 = vmul.f32 %v7688_v56, %v7688_v56  ;;  %v3290_v10 = vsel %vm1450_vm15, %v3275_v12, 0.0  ;;  %v3303_v62 = vsel %vm1450_vm15, %v3274_v59, 0.0 }
 0x819   :  { %v3289_v41 = vadd.f32 %v3288_v5, %v3287_v52  ;;  %v3280_v40 = vmul.f32 %v7691_v34, %v7691_v34  ;;  %v3281_v32 = vmul.f32 %v7693_v44, %v7693_v44  ;;  %v3292_v23 = vsel %vm1450_vm15, %v3277_v42, 0.0 }
 0x81a   :  { %v3304_v4 = vadd.f32 %v3303_v62, %v3302_v48  ;;  %v3305_v50 = vsel %vm1450_vm15, %v3276_v14, 0.0  ;;  %v3282_v20 = vmul.f32 %v7695_v22, %v7695_v22  ;;  %v3283_v63 = vmul.f32 %v7697_v30, %v7697_v30  ;;  %v3405_v62 = vld [vmem:[%s7651_s11 + $0x10] sm:$0xff] }
 0x81b   :  { %v3291_v54 = vadd.f32 %v3290_v10, %v3289_v41  ;;  %v3294_v61 = vsel %vm1450_vm15, %v3279_v16, 0.0  ;;  %v3307_v8 = vsel %vm1450_vm15, %v3278_v25, 0.0  ;;  %v3284_v38 = vmul.f32 %v7699_v53, %v7699_v53  ;;  %v2817_v16 = vld [vmem:[%s4594_s15] sm:$0x1] }
 0x81c   :  { %v3306_v35 = vadd.f32 %v3305_v50, %v3304_v4  ;;  %v3296_v58 = vsel %vm1450_vm15, %v3281_v32, 0.0  ;;  %v3309_v31 = vsel %vm1450_vm15, %v3280_v40, 0.0  ;;  %v3298_v15 = vsel %vm1450_vm15, %v3283_v63, 0.0 }
 0x81d   :  { %v3293_v28 = vadd.f32 %v3292_v23, %v3291_v54  ;;  %v3311_v9 = vsel %vm1450_vm15, %v3282_v20, 0.0  ;;  %v3313_v29 = vsel %vm1450_vm15, %v3284_v38, 0.0  ;;  %v3406_v54 = vld [vmem:[%s7651_s11 + $0x18] sm:$0x3f]  ;;  %v4720_v23 = vld [vmem:[%s4595_s19] ss:$0 sm:$0xff] }
 0x81e   :  { %v3308_v6 = vadd.f32 %v3307_v8, %v3306_v35  ;;  %v5253_v40 = vpack.c.bf16 %v3406_v54, %v3405_v62 }
 0x81f   :  { %v3295_v19 = vadd.f32 %v3294_v61, %v3293_v28 }
 0x820   :  { %v3310_v26 = vadd.f32 %v3309_v31, %v3308_v6  ;;  %5255 = vmatprep.subr.msk.bf16.mxu1 %vm7398_vm5, %v5253_v40 }
 0x821   :  { %v3297_v57 = vadd.f32 %v3296_v58, %v3295_v19  ;;  %5258 = vmatpush3.bf16.msk.msra.mxu1 %vm7398_vm5, %v5253_v40 }
 0x822   :  { %v3312_v47 = vadd.f32 %v3311_v9, %v3310_v26 }
 0x823   :  { %v3299_v45 = vadd.f32 %v3298_v15, %v3297_v57 }
 0x824   :  { %v3314_v60 = vadd.f32 %v3313_v29, %v3312_v47 }
 0x825   :  { %v3315_v51 = vsel %vm1450_vm15, %v3299_v45, 0.0 }
 0x826   :  { %v3316_v0 = vsel %vm1450_vm15, %v3314_v60, 0.0 }
 0x827   :  { %v3317_v18 = vadd.f32 %v3316_v0, %v3315_v51 }
 0x829   :  { %v3318_v59 = vrot.slane %v3317_v18, 4 }
 0x82b   :  { %v3319_v12 = vadd.f32 %v3318_v59, %v3317_v18 }
 0x82d   :  { %v3320_v36 = vrot.slane %v3319_v12, 2 }
 0x82f   :  { %v3321_v2 = vadd.f32 %v3320_v36, %v3319_v12 }
 0x831   :  { %v3322_v14 = vrot.slane %v3321_v2, 1 }
 0x833   :  { %v3323_v52 = vadd.f32 %v3322_v14, %v3321_v2 }
 0x835   :  { %v3324_v42 = vmul.f32 0.0078125, %v3323_v52 }
 0x837   :  { %v3325_v5 = vadd.f32 1e-05, %v3324_v42 }
 0x839   :  { %5377 = vrsqrt.f32 %v3325_v5  ;;  %vm3328_vm2 = vcmp.eq.f32.partialorder %v3325_v5, inf  ;;  %v3331_v41 = vand.u32 2147483648, %v3325_v5  ;;  %vm3330_vm8 = vcmp.eq.f32.partialorder %v3325_v5, 0.0 }
 0x843   :  { %v5378_v21 = vpop.eup %5377 }
 0x844   :  { %v3327_v1 = vmul.f32 %v5378_v21, %v3325_v5 }
 0x846   :  { %v3329_v48 = vsel %vm3328_vm2, %v3325_v5, %v3327_v1  ;;  %vm3827_vm2 = vcmask 490496  }
 0x847   :  { %v3332_v25 = vsel %vm3330_vm8, %v3331_v41, %v3329_v48 }
 0x848   :  { %5379 = vrcp.f32 %v3332_v25 }
 0x852   :  { %v5380_v10 = vpop.eup %5379 }
 0x853   :  { %v3334_v4 = vmul.f32 %v5380_v10, %v2817_v16 }
 0x855   :  { %v3339_v32 = vrot.slane %v3334_v4, %v6140_v39 }
 0x857   :  { %v3342_v50 = vmul.f32 %v3339_v32, %v7662_v27  ;;  %v3344_v28 = vmul.f32 %v3339_v32, %v7668_v43  ;;  %v3341_v35 = vmul.f32 %v3339_v32, %v7659_v17  ;;  %v3343_v20 = vmul.f32 %v3339_v32, %v7665_v37 }
 0x858   :  { %v3346_v63 = vmul.f32 %v3339_v32, %v7674_v46  ;;  %v3348_v61 = vmul.f32 %v3339_v32, %v7680_v24  ;;  %v3345_v8 = vmul.f32 %v3339_v32, %v7671_v11  ;;  %v3347_v27 = vmul.f32 %v3339_v32, %v7677_v3 }
 0x859   :  { %v3364_v19 = vadd.f32 %v4720_v23, %v3342_v50  ;;  %v3366_v6 = vadd.f32 %v4720_v23, %v3344_v28  ;;  %v3363_v38 = vadd.f32 %v4720_v23, %v3341_v35  ;;  %v3365_v58 = vadd.f32 %v4720_v23, %v3343_v20 }
 0x85a   :  { %v3368_v49 = vadd.f32 %v4720_v23, %v3346_v63  ;;  %v3370_v31 = vadd.f32 %v4720_v23, %v3348_v61  ;;  %v3367_v57 = vadd.f32 %v4720_v23, %v3345_v8  ;;  %v3369_v9 = vadd.f32 %v4720_v23, %v3347_v27 }
 0x85b   :  { %v3382_v43 = vsel %vm1450_vm15, %v3364_v19, -inf  ;;  %v3383_v17 = vsel %vm1450_vm15, %v3366_v6, -inf  ;;  %v3379_v37 = vsel %vm1450_vm15, %v3363_v38, -inf  ;;  %v3380_v24 = vsel %vm1450_vm15, %v3365_v58, -inf }
 0x85c   :  { %v7775_v46 = vmax.f32 %v3382_v43, %v3383_v17  ;;  %v3388_v11 = vsel %vm1450_vm15, %v3368_v49, -inf  ;;  %v7779_v26 = vmax.f32 %v3379_v37, %v3380_v24  ;;  %v3389_v15 = vsel %vm1450_vm15, %v3370_v31, -inf }
 0x85d   :  { %v3385_v3 = vsel %vm1450_vm15, %v3367_v57, -inf  ;;  %v3350_v45 = vmul.f32 %v3339_v32, %v7685_v13  ;;  %v3352_v47 = vmul.f32 %v3339_v32, %v7691_v34  ;;  %v3349_v29 = vmul.f32 %v3339_v32, %v7682_v7 }
 0x85e   :  { %3420 = vrot.lane.b32.xlu0 %v7775_v46, %s5406_s28  ;;  %v3351_v60 = vmul.f32 %v3339_v32, %v7688_v56  ;;  %3418 = vrot.lane.b32.xlu1 %v7779_v26, %s5406_s28  ;;  %v3386_v51 = vsel %vm1450_vm15, %v3369_v9, -inf  ;;  %v3390_v0 = vmax.f32 %v3388_v11, %v3389_v15  ;;  %v3354_v56 = vmul.f32 %v3339_v32, %v7695_v22 }
 0x85f   :  { %v3387_v18 = vmax.f32 %v3385_v3, %v3386_v51  ;;  %v3372_v59 = vadd.f32 %v4720_v23, %v3350_v45  ;;  %v3374_v12 = vadd.f32 %v4720_v23, %v3352_v47  ;;  %v3371_v36 = vadd.f32 %v4720_v23, %v3349_v29 }
 0x860   :  { %v3373_v2 = vadd.f32 %v4720_v23, %v3351_v60  ;;  %v3356_v34 = vmul.f32 %v3339_v32, %v7699_v53  ;;  %v3355_v14 = vmul.f32 %v3339_v32, %v7697_v30  ;;  %v3353_v5 = vmul.f32 %v3339_v32, %v7693_v44 }
 0x861   :  { %v3394_v13 = vsel %vm1450_vm15, %v3372_v59, -inf  ;;  %v3395_v7 = vsel %vm1450_vm15, %v3374_v12, -inf  ;;  %v3391_v52 = vsel %vm1450_vm15, %v3371_v36, -inf  ;;  %v3376_v41 = vadd.f32 %v4720_v23, %v3354_v56 }
 0x862   :  { %3444 = vrot.lane.b32.xlu0 %v3390_v0, %s5414_s2  ;;  %3442 = vrot.lane.b32.xlu1 %v3387_v18, %s5414_s2  ;;  %v3392_v42 = vsel %vm1450_vm15, %v3373_v2, -inf  ;;  %v3396_v21 = vmax.f32 %v3394_v13, %v3395_v7  ;;  %v3378_v48 = vadd.f32 %v4720_v23, %v3356_v34  ;;  %v3377_v25 = vadd.f32 %v4720_v23, %v3355_v14 }
 0x863   :  { %v3393_v1 = vmax.f32 %v3391_v52, %v3392_v42  ;;  %v3375_v22 = vadd.f32 %v4720_v23, %v3353_v5  ;;  %v3400_v30 = vsel %vm1450_vm15, %v3376_v41, -inf }
 0x864   :  { %v3401_v53 = vsel %vm1450_vm15, %v3378_v48, -inf  ;;  %v3398_v16 = vsel %vm1450_vm15, %v3377_v25, -inf }
 0x865   :  { %v3397_v44 = vsel %vm1450_vm15, %v3375_v22, -inf  ;;  %v3402_v10 = vmax.f32 %v3400_v30, %v3401_v53 }
 0x866   :  { %3424 = vrot.lane.b32.xlu0 %v3390_v0, %s5406_s28  ;;  %3422 = vrot.lane.b32.xlu1 %v3387_v18, %s5406_s28  ;;  %v3399_v62 = vmax.f32 %v3397_v44, %v3398_v16  ;;  %v3740_v44 = vld [vmem:[%s7856_s26] sm:$0xff]  ;;  %v3741_v16 = vld [vmem:[%s7856_s26 + $0x8] sm:$0xff] }
 0x86a   :  { %3448 = vrot.lane.b32.xlu0 %v3396_v21, %s5414_s2  ;;  %3446 = vrot.lane.b32.xlu1 %v3393_v1, %s5414_s2 }
 0x86e   :  { %3428 = vrot.lane.b32.xlu0 %v3396_v21, %s5406_s28  ;;  %3426 = vrot.lane.b32.xlu1 %v3393_v1, %s5406_s28 }
 0x872   :  { %3452 = vrot.lane.b32.xlu0 %v3402_v10, %s5414_s2  ;;  %3450 = vrot.lane.b32.xlu1 %v3399_v62, %s5414_s2 }
 0x876   :  { %3432 = vrot.lane.b32.xlu0 %v3402_v10, %s5406_s28  ;;  %3430 = vrot.lane.b32.xlu1 %v3399_v62, %s5406_s28  ;;  %s5419_s28 = smov 18   ;;  %v3742_v10 = vld [vmem:[%s7856_s26 + $0x10] sm:$0xff] }
 0x877   :  { %s4597_s22 = sld [smem:[%s8189_s0 + %s5419_s28]]  }
 0x87d   :  { %v4721_v47 = vld [vmem:[%s4597_s22] ss:$0 sm:$0xff] }
 0x8d0   :  { %v3421_v54 = vpop.permute.xlu0 %3420  ;;  %v3419_v4 = vpop.permute.xlu1 %3418 }
 0x8d1   :  { %v3461_v40 = vsel %vm1450_vm15, 0.0, %v3421_v54  ;;  %v3460_v23 = vsel %vm1450_vm15, 0.0, %v3419_v4  ;;  %v5259_v54 = vpack.c.bf16 %v3741_v16, %v3740_v44  ;;  %v3743_v4 = vld [vmem:[%s7856_s26 + $0x18] sm:$0xff] }
 0x8d3   :  { %5260 = vmatprep.subr.bf16.mxu0 %v5259_v54 }
 0x8d4   :  { %v3445_v32 = vpop.permute.xlu0 %3444  ;;  %v3443_v28 = vpop.permute.xlu1 %3442  ;;  %5262 = vmatpush3.bf16.msra.mxu0 %v5259_v54 }
 0x8d5   :  { %v3469_v50 = vsel %vm2944_vm6, %v3461_v40, %v3445_v32  ;;  %v3468_v35 = vsel %vm2944_vm6, %v3460_v23, %v3443_v28  ;;  %v5263_v23 = vpack.c.bf16 %v3743_v4, %v3742_v10  ;;  %v3745_v28 = vld [vmem:[%s7856_s26 + $0x28] sm:$0xff] }
 0x8d6   :  { %5111 = vmatprep.mubr.msk.f32.mxu1 %vm2967_vm7, %v3468_v35 }
 0x8d7   :  { %5112 = vmatmul.mubr.msk.f32.vlgmr.msra.gmra.mrb[54].mxu1 %vm2967_vm7, %v3469_v50  ;;  %v3744_v50 = vld [vmem:[%s7856_s26 + $0x20] sm:$0xff]  ;;  %5264 = vmatprep.subr.bf16.mxu0 %v5263_v23 }
 0x8d8   :  { %v3425_v20 = vpop.permute.xlu0 %3424  ;;  %v3423_v63 = vpop.permute.xlu1 %3422  ;;  %5266 = vmatpush3.bf16.msra.mxu0 %v5263_v23 }
 0x8d9   :  { %v3463_v61 = vsel %vm1450_vm15, %v7775_v46, %v3425_v20  ;;  %v3462_v19 = vsel %vm1450_vm15, %v7779_v26, %v3423_v63 }
 0x8dc   :  { %v3449_v8 = vpop.permute.xlu0 %3448  ;;  %v3447_v38 = vpop.permute.xlu1 %3446 }
 0x8dd   :  { %v3471_v6 = vsel %vm2944_vm6, %v3463_v61, %v3449_v8  ;;  %v3470_v58 = vsel %vm2944_vm6, %v3462_v19, %v3447_v38 }
 0x8de   :  { %5114 = vmatprep.mubr.msk.f32.mxu1 %vm2967_vm7, %v3470_v58 }
 0x8df   :  { %5115 = vmatmul.mubr.msk.f32.gmra.mrb[56].mxu1 %vm2967_vm7, %v3471_v6 }
 0x8e0   :  { %v3429_v49 = vpop.permute.xlu0 %3428  ;;  %v3427_v31 = vpop.permute.xlu1 %3426 }
 0x8e1   :  { %v3465_v27 = vsel %vm1450_vm15, %v3390_v0, %v3429_v49  ;;  %v3464_v17 = vsel %vm1450_vm15, %v3387_v18, %v3427_v31  ;;  %v5267_v49 = vpack.c.bf16 %v3745_v28, %v3744_v50 }
 0x8e3   :  { %5268 = vmatprep.subr.bf16.mxu0 %v5267_v49 }
 0x8e4   :  { %v3453_v43 = vpop.permute.xlu0 %3452  ;;  %v3451_v57 = vpop.permute.xlu1 %3450  ;;  %5270 = vmatpush3.bf16.msra.mxu0 %v5267_v49 }
 0x8e5   :  { %v3473_v37 = vsel %vm2944_vm6, %v3465_v27, %v3453_v43  ;;  %v3472_v46 = vsel %vm2944_vm6, %v3464_v17, %v3451_v57 }
 0x8e6   :  { %5117 = vmatprep.mubr.msk.f32.mxu1 %vm2967_vm7, %v3472_v46 }
 0x8e7   :  { %5118 = vmatmul.mubr.msk.f32.gmra.mrb[58].mxu1 %vm2967_vm7, %v3473_v37 }
 0x8e8   :  { %v3433_v24 = vpop.permute.xlu0 %3432  ;;  %v3431_v26 = vpop.permute.xlu1 %3430 }
 0x8e9   :  { %v3467_v11 = vsel %vm1450_vm15, %v3396_v21, %v3433_v24  ;;  %v3466_v15 = vsel %vm1450_vm15, %v3393_v1, %v3431_v26 }
 0x8ea   :  { %v3475_v9 = vsel %vm2944_vm6, %v3467_v11, %v7571_v33  ;;  %v3474_v3 = vsel %vm2944_vm6, %v3466_v15, %v7571_v33 }
 0x8eb   :  { %5120 = vmatprep.mubr.msk.f32.mxu1 %vm2967_vm7, %v3474_v3 }
 0x8ec   :  { %5121 = vmatmul.mubr.msk.f32.gmra.mrb[60].mxu1 %vm2967_vm7, %v3475_v9 }
 0x9aa   :  { %v5113_v45 = vpop.f32.mrb[54].mxu1 }
 0x9ab   :  { %v3575_v29 = vpop.f32.mrb[55].mxu1  ;;  %v3581_v60 = vadd.f32 %v5113_v45, %v4721_v47 }
 0x9ac   :  { %v3576_v51 = vadd.f32 %v4721_v47, %v3575_v29 }
 0x9ad   :  { %v3623_v0 = vmul.f32 0.01, %v3581_v60  ;;  %vm3615_vm15 = vcmp.gt.f32.partialorder %v3581_v60, 0.0 }
 0x9ae   :  { %v3622_v18 = vmul.f32 0.01, %v3576_v51  ;;  %vm3614_vm5 = vcmp.gt.f32.partialorder %v3576_v51, 0.0 }
 0x9af   :  { %v7847_v2 = vsel %vm3615_vm15, %v3581_v60, %v3623_v0 }
 0x9b0   :  { %v7849_v7 = vsel %vm3614_vm5, %v3576_v51, %v3622_v18  ;;  %v3645_v14 = vsel %vm2944_vm6, %v7847_v2, 0.0 }
 0x9b1   :  { %v3638_v5 = vsel %vm2944_vm6, %v7849_v7, 0.0 }
 0x9b2   :  { %v5116_v59 = vpop.f32.mrb[56].mxu1 }
 0x9b3   :  { %v3591_v33 = vadd.f32 %v5116_v59, %v4721_v47  ;;  %v3585_v12 = vpop.f32.mrb[57].mxu1 }
 0x9b4   :  { %v3586_v36 = vadd.f32 %v4721_v47, %v3585_v12 }
 0x9b5   :  { %vm3617_vm7 = vcmp.gt.f32.partialorder %v3591_v33, 0.0  ;;  %v3625_v13 = vmul.f32 0.01, %v3591_v33 }
 0x9b6   :  { %vm3616_vm14 = vcmp.gt.f32.partialorder %v3586_v36, 0.0  ;;  %v3624_v56 = vmul.f32 0.01, %v3586_v36 }
 0x9b7   :  { %v7851_v34 = vsel %vm3617_vm7, %v3591_v33, %v3625_v13 }
 0x9b8   :  { %v3646_v52 = vsel %vm2944_vm6, %v7851_v34, 0.0  ;;  %v3632_v42 = vsel %vm3616_vm14, %v3586_v36, %v3624_v56 }
 0x9b9   :  { %v3647_v21 = vadd.f32 %v3646_v52, %v3645_v14  ;;  %v3639_v1 = vsel %vm2944_vm6, %v3632_v42, 0.0 }
 0x9ba   :  { %v3640_v41 = vadd.f32 %v3639_v1, %v3638_v5  ;;  %v5119_v48 = vpop.f32.mrb[58].mxu1 }
 0x9bb   :  { %v3601_v25 = vadd.f32 %v5119_v48, %v4721_v47  ;;  %v3595_v22 = vpop.f32.mrb[59].mxu1 }
 0x9bc   :  { %v3596_v30 = vadd.f32 %v4721_v47, %v3595_v22 }
 0x9bd   :  { %vm3619_vm0 = vcmp.gt.f32.partialorder %v3601_v25, 0.0  ;;  %v3627_v53 = vmul.f32 0.01, %v3601_v25 }
 0x9be   :  { %vm3618_vm3 = vcmp.gt.f32.partialorder %v3596_v30, 0.0  ;;  %v3626_v62 = vmul.f32 0.01, %v3596_v30 }
 0x9bf   :  { %v3635_v40 = vsel %vm3619_vm0, %v3601_v25, %v3627_v53  ;;  %v5122_v32 = vpop.f32.mrb[60].mxu1 }
 0x9c0   :  { %v3648_v35 = vsel %vm2944_vm6, %v3635_v40, 0.0  ;;  %v3634_v20 = vsel %vm3618_vm3, %v3596_v30, %v3626_v62  ;;  %v3611_v63 = vadd.f32 %v5122_v32, %v4721_v47  ;;  %v3605_v61 = vpop.f32.mrb[61].mxu1 }
 0x9c1   :  { %v3649_v8 = vadd.f32 %v3648_v35, %v3647_v21  ;;  %v3641_v19 = vsel %vm2944_vm6, %v3634_v20, 0.0  ;;  %v3606_v6 = vadd.f32 %v4721_v47, %v3605_v61 }
 0x9c2   :  { %v3642_v38 = vadd.f32 %v3641_v19, %v3640_v41  ;;  %vm3621_vm4 = vcmp.gt.f32.partialorder %v3611_v63, 0.0  ;;  %v3629_v58 = vmul.f32 0.01, %v3611_v63 }
 0x9c3   :  { %vm3620_vm9 = vcmp.gt.f32.partialorder %v3606_v6, 0.0  ;;  %v3628_v31 = vmul.f32 0.01, %v3606_v6 }
 0x9c4   :  { %v3637_v27 = vsel %vm3621_vm4, %v3611_v63, %v3629_v58 }
 0x9c5   :  { %v3650_v43 = vsel %vm2944_vm6, %v3637_v27, 0.0  ;;  %v3636_v17 = vsel %vm3620_vm9, %v3606_v6, %v3628_v31 }
 0x9c6   :  { %v3651_v37 = vadd.f32 %v3650_v43, %v3649_v8  ;;  %v3643_v57 = vsel %vm2944_vm6, %v3636_v17, 0.0  ;;  %v3747_v43 = vld [vmem:[%s7856_s26 + $0x38] sm:$0xf] }
 0x9c7   :  { %v3644_v46 = vadd.f32 %v3643_v57, %v3642_v38  ;;  %v3408_v57 = vld [vmem:[%s4598_s30] sm:$0x1] }
 0x9c8   :  { %v3653_v24 = vsel %vm2944_vm6, %v3651_v37, 0.0 }
 0x9c9   :  { %v3652_v11 = vsel %vm2944_vm6, %v3644_v46, 0.0 }
 0x9ca   :  { %v3654_v26 = vadd.f32 %v3653_v24, %v3652_v11 }
 0x9cc   :  { %v3655_v15 = vrot.slane %v3654_v26, 4 }
 0x9ce   :  { %v3656_v9 = vadd.f32 %v3655_v15, %v3654_v26  ;;  %v4731_v26 = vld [vmem:[%s4599_s4] ss:$0 sm:$0xff]  ;;  %s5429_s4 = smov 28  }
 0x9cf   :  { %s4607_s8 = sld [smem:[%s8189_s0 + %s5429_s4]]  }
 0x9d0   :  { %v3657_v3 = vrot.slane %v3656_v9, 2 }
 0x9d2   :  { %v3658_v45 = vadd.f32 %v3657_v3, %v3656_v9 }
 0x9d4   :  { %v3659_v47 = vrot.slane %v3658_v45, 1 }
 0x9d6   :  { %v3660_v29 = vadd.f32 %v3659_v47, %v3658_v45 }
 0x9d8   :  { %v3661_v60 = vmul.f32 0.015625, %v3660_v29 }
 0x9da   :  { %v7878_v51 = vsub.f32 %v7849_v7, %v3661_v60  ;;  %v7881_v0 = vsub.f32 %v7847_v2, %v3661_v60  ;;  %v7883_v18 = vsub.f32 %v3632_v42, %v3661_v60  ;;  %v7886_v59 = vsub.f32 %v7851_v34, %v3661_v60 }
 0x9db   :  { %v7888_v33 = vsub.f32 %v3634_v20, %v3661_v60  ;;  %v7890_v12 = vsub.f32 %v3635_v40, %v3661_v60  ;;  %v3668_v36 = vsub.f32 %v3636_v17, %v3661_v60  ;;  %v7892_v13 = vsub.f32 %v3637_v27, %v3661_v60  ;;  %v3746_v27 = vld [vmem:[%s7856_s26 + $0x30] sm:$0xff] }
 0x9dc   :  { %v3670_v56 = vmul.f32 %v7878_v51, %v7878_v51  ;;  %v3671_v7 = vmul.f32 %v7881_v0, %v7881_v0  ;;  %v3672_v2 = vmul.f32 %v7883_v18, %v7883_v18  ;;  %v3673_v34 = vmul.f32 %v7886_v59, %v7886_v59 }
 0x9dd   :  { %v3674_v14 = vmul.f32 %v7888_v33, %v7888_v33  ;;  %v3675_v52 = vmul.f32 %v7890_v12, %v7890_v12  ;;  %v3676_v42 = vmul.f32 %v3668_v36, %v3668_v36  ;;  %v3677_v5 = vmul.f32 %v7892_v13, %v7892_v13 }
 0x9de   :  { %v3678_v21 = vsel %vm2944_vm6, %v3670_v56, 0.0  ;;  %v3679_v1 = vsel %vm2944_vm6, %v3672_v2, 0.0  ;;  %v3685_v41 = vsel %vm2944_vm6, %v3671_v7, 0.0  ;;  %v3686_v48 = vsel %vm2944_vm6, %v3673_v34, 0.0 }
 0x9df   :  { %v3680_v25 = vadd.f32 %v3679_v1, %v3678_v21  ;;  %v3687_v22 = vadd.f32 %v3686_v48, %v3685_v41  ;;  %v3681_v30 = vsel %vm2944_vm6, %v3674_v14, 0.0  ;;  %v3688_v53 = vsel %vm2944_vm6, %v3675_v52, 0.0 }
 0x9e0   :  { %v3683_v10 = vsel %vm2944_vm6, %v3676_v42, 0.0  ;;  %v3690_v62 = vsel %vm2944_vm6, %v3677_v5, 0.0  ;;  %v5271_v17 = vpack.c.bf16 %v3747_v43, %v3746_v27  ;;  %v4100_v27 = vld [vmem:[%s7995_s13 + $0x8] sm:$0xff]  ;;  %v4101_v43 = vld [vmem:[%s7995_s13 + $0x10] sm:$0xff] }
 0x9e1   :  { %v3682_v44 = vadd.f32 %v3681_v30, %v3680_v25  ;;  %v3689_v16 = vadd.f32 %v3688_v53, %v3687_v22 }
 0x9e2   :  { %5273 = vmatprep.subr.msk.bf16.mxu0 %vm7929_vm13, %v5271_v17 }
 0x9e3   :  { %v3684_v54 = vadd.f32 %v3683_v10, %v3682_v44  ;;  %v3691_v4 = vadd.f32 %v3690_v62, %v3689_v16  ;;  %5276 = vmatpush3.bf16.msk.msra.mxu0 %vm7929_vm13, %v5271_v17 }
 0x9e5   :  { %v3692_v40 = vsel %vm2944_vm6, %v3684_v54, 0.0  ;;  %v3693_v32 = vsel %vm2944_vm6, %v3691_v4, 0.0 }
 0x9e6   :  { %v3694_v23 = vadd.f32 %v3693_v32, %v3692_v40 }
 0x9e8   :  { %v3695_v50 = vrot.slane %v3694_v23, 4 }
 0x9ea   :  { %v3696_v28 = vadd.f32 %v3695_v50, %v3694_v23 }
 0x9ec   :  { %v3697_v35 = vrot.slane %v3696_v28, 2 }
 0x9ee   :  { %v3698_v20 = vadd.f32 %v3697_v35, %v3696_v28 }
 0x9f0   :  { %v3699_v63 = vrot.slane %v3698_v20, 1 }
 0x9f2   :  { %v3700_v61 = vadd.f32 %v3699_v63, %v3698_v20 }
 0x9f4   :  { %v3701_v8 = vmul.f32 0.015625, %v3700_v61 }
 0x9f6   :  { %v3702_v19 = vadd.f32 1e-05, %v3701_v8 }
 0x9f8   :  { %5381 = vrsqrt.f32 %v3702_v19  ;;  %vm3705_vm10 = vcmp.eq.f32.partialorder %v3702_v19, inf  ;;  %v3708_v58 = vand.u32 2147483648, %v3702_v19  ;;  %vm3707_vm11 = vcmp.eq.f32.partialorder %v3702_v19, 0.0 }
 0xa02   :  { %v5382_v6 = vpop.eup %5381 }
 0xa03   :  { %v3704_v38 = vmul.f32 %v5382_v6, %v3702_v19  ;;  %v4732_v6 = vld [vmem:[%s4601_s9] ss:$0 sm:$0xff]  ;;  %s5430_s9 = smov 80  }
 0xa05   :  { %v3706_v49 = vsel %vm3705_vm10, %v3702_v19, %v3704_v38 }
 0xa06   :  { %v3709_v31 = vsel %vm3707_vm11, %v3708_v58, %v3706_v49 }
 0xa07   :  { %5383 = vrcp.f32 %v3709_v31  ;;  %v4099_v31 = vld [vmem:[%s7995_s13] sm:$0xff] }
 0xa11   :  { %v5384_v46 = vpop.eup %5383 }
 0xa12   :  { %v3711_v24 = vmul.f32 %v5384_v46, %v3408_v57  ;;  %v5277_v57 = vpack.c.bf16 %v4100_v27, %v4099_v31  ;;  %v4102_v46 = vld [vmem:[%s7995_s13 + $0x18] sm:$0xff] }
 0xa14   :  { %v3716_v11 = vrot.slane %v3711_v24, %v6140_v39  ;;  %5278 = vmatprep.subr.bf16.mxu1 %v5277_v57 }
 0xa15   :  { %5280 = vmatpush3.bf16.msra.mxu1 %v5277_v57 }
 0xa16   :  { %v3724_v15 = vmul.f32 %v3716_v11, %v3668_v36  ;;  %v3719_v9 = vmul.f32 %v3716_v11, %v7881_v0  ;;  %v3718_v3 = vmul.f32 %v3716_v11, %v7878_v51  ;;  %v3721_v45 = vmul.f32 %v3716_v11, %v7886_v59 }
 0xa17   :  { %v3720_v47 = vmul.f32 %v3716_v11, %v7883_v18  ;;  %v3723_v29 = vmul.f32 %v3716_v11, %v7890_v12  ;;  %v3722_v60 = vmul.f32 %v3716_v11, %v7888_v33  ;;  %v3725_v56 = vmul.f32 %v3716_v11, %v7892_v13 }
 0xa18   :  { %v3733_v7 = vadd.f32 %v4731_v26, %v3719_v9  ;;  %v3732_v2 = vadd.f32 %v4731_v26, %v3718_v3  ;;  %v3735_v36 = vadd.f32 %v4731_v26, %v3721_v45  ;;  %v3738_v33 = vadd.f32 %v4731_v26, %v3724_v15  ;;  %v4103_v15 = vld [vmem:[%s7995_s13 + $0x20] sm:$0xff]  ;;  %v4104_v9 = vld [vmem:[%s7995_s13 + $0x28] sm:$0xff] }
 0xa19   :  { %v3734_v0 = vadd.f32 %v4731_v26, %v3720_v47  ;;  %v3737_v51 = vadd.f32 %v4731_v26, %v3723_v29  ;;  %v3736_v18 = vadd.f32 %v4731_v26, %v3722_v60  ;;  %v3739_v59 = vadd.f32 %v4731_v26, %v3725_v56 }
 0xa1a   :  { %3761 = vrot.lane.b32.xlu0 %v3733_v7, %s5414_s2  ;;  %3759 = vrot.lane.b32.xlu1 %v3732_v2, %s5414_s2  ;;  %v5281_v26 = vpack.c.bf16 %v4102_v46, %v4101_v43  ;;  %v5285_v56 = vpack.c.bf16 %v4104_v9, %v4103_v15 }
 0xa1c   :  { %5282 = vmatprep.subr.bf16.mxu1 %v5281_v26 }
 0xa1d   :  { %5284 = vmatpush3.bf16.msra.mxu1 %v5281_v26 }
 0xa1e   :  { %3785 = vrot.lane.b32.xlu0 %v3735_v36, %s5421_s6  ;;  %3783 = vrot.lane.b32.xlu1 %v3734_v0, %s5421_s6 }
 0xa1f   :  { %5286 = vmatprep.subr.bf16.mxu1 %v5285_v56 }
 0xa21   :  { %5288 = vmatpush3.bf16.msra.mxu1 %v5285_v56 }
 0xa22   :  { %3765 = vrot.lane.b32.xlu0 %v3735_v36, %s5414_s2  ;;  %3763 = vrot.lane.b32.xlu1 %v3734_v0, %s5414_s2 }
 0xa26   :  { %3789 = vrot.lane.b32.xlu0 %v3737_v51, %s5421_s6  ;;  %3787 = vrot.lane.b32.xlu1 %v3736_v18, %s5421_s6 }
 0xa2a   :  { %3769 = vrot.lane.b32.xlu0 %v3737_v51, %s5414_s2  ;;  %3767 = vrot.lane.b32.xlu1 %v3736_v18, %s5414_s2 }
 0xa2e   :  { %3793 = vrot.lane.b32.xlu0 %v3739_v59, %s5421_s6  ;;  %3791 = vrot.lane.b32.xlu1 %v3738_v33, %s5421_s6 }
 0xa32   :  { %3773 = vrot.lane.b32.xlu0 %v3739_v59, %s5414_s2  ;;  %3771 = vrot.lane.b32.xlu1 %v3738_v33, %s5414_s2 }
 0xa36   :  { %3795 = vrot.lane.b32.xlu1 %v5401_v55, %s5421_s6 }
 0xa8c   :  { %v3762_v12 = vpop.permute.xlu0 %3761  ;;  %v3760_v13 = vpop.permute.xlu1 %3759 }
 0xa8d   :  { %v3805_v34 = vsel %vm2944_vm6, 0.0, %v3762_v12  ;;  %v3804_v14 = vsel %vm2944_vm6, 0.0, %v3760_v13 }
 0xa90   :  { %v3786_v52 = vpop.permute.xlu0 %3785  ;;  %v3784_v42 = vpop.permute.xlu1 %3783 }
 0xa91   :  { %v3814_v5 = vsel %vm3812_vm1, %v3805_v34, %v3786_v52  ;;  %v3813_v21 = vsel %vm3812_vm1, %v3804_v14, %v3784_v42 }
 0xa92   :  { %5139 = vmatprep.mubr.msk.f32.mxu0 %vm3827_vm2, %v3813_v21 }
 0xa93   :  { %5140 = vmatmul.mubr.msk.f32.vlgmr.msra.gmra.mrb[42].mxu0 %vm3827_vm2, %v3814_v5 }
 0xa94   :  { %v3766_v1 = vpop.permute.xlu0 %3765  ;;  %v3764_v41 = vpop.permute.xlu1 %3763 }
 0xa95   :  { %v3807_v48 = vsel %vm2944_vm6, %v3733_v7, %v3766_v1  ;;  %v3806_v25 = vsel %vm2944_vm6, %v3732_v2, %v3764_v41 }
 0xa98   :  { %v3790_v22 = vpop.permute.xlu0 %3789  ;;  %v3788_v30 = vpop.permute.xlu1 %3787 }
 0xa99   :  { %v3816_v53 = vsel %vm3812_vm1, %v3807_v48, %v3790_v22  ;;  %v3815_v44 = vsel %vm3812_vm1, %v3806_v25, %v3788_v30 }
 0xa9a   :  { %5142 = vmatprep.mubr.msk.f32.mxu0 %vm3827_vm2, %v3815_v44 }
 0xa9b   :  { %5143 = vmatmul.mubr.msk.f32.gmra.mrb[44].mxu0 %vm3827_vm2, %v3816_v53 }
 0xa9c   :  { %v3770_v16 = vpop.permute.xlu0 %3769  ;;  %v3768_v10 = vpop.permute.xlu1 %3767 }
 0xa9d   :  { %v3809_v62 = vsel %vm2944_vm6, %v3735_v36, %v3770_v16  ;;  %v3808_v54 = vsel %vm2944_vm6, %v3734_v0, %v3768_v10 }
 0xaa0   :  { %v3794_v4 = vpop.permute.xlu0 %3793  ;;  %v3792_v40 = vpop.permute.xlu1 %3791 }
 0xaa1   :  { %v3818_v32 = vsel %vm3812_vm1, %v3809_v62, %v3794_v4  ;;  %v3817_v23 = vsel %vm3812_vm1, %v3808_v54, %v3792_v40 }
 0xaa2   :  { %5145 = vmatprep.mubr.msk.f32.mxu0 %vm3827_vm2, %v3817_v23 }
 0xaa3   :  { %5146 = vmatmul.mubr.msk.f32.gmra.mrb[46].mxu0 %vm3827_vm2, %v3818_v32 }
 0xaa4   :  { %v3772_v50 = vpop.permute.xlu1 %3771  ;;  %v3774_v28 = vpop.permute.xlu0 %3773 }
 0xaa5   :  { %v3811_v35 = vsel %vm2944_vm6, %v3737_v51, %v3774_v28  ;;  %v3810_v20 = vsel %vm2944_vm6, %v3736_v18, %v3772_v50 }
 0xaa8   :  { %v7981_v63 = vpop.permute.xlu1 %3795 }
 0xaa9   :  { %v3819_v61 = vsel %vm3812_vm1, %v3810_v20, %v7981_v63  ;;  %v3820_v8 = vsel %vm3812_vm1, %v3811_v35, %v7981_v63 }
 0xaaa   :  { %5148 = vmatprep.mubr.msk.f32.mxu0 %vm3827_vm2, %v3819_v61 }
 0xaab   :  { %5149 = vmatmul.mubr.msk.f32.gmra.mrb[48].mxu0 %vm3827_vm2, %v3820_v8 }
 0xb66   :  { %v5141_v19 = vpop.f32.mrb[42].mxu0 }
 0xb67   :  { %v3922_v38 = vpop.f32.mrb[43].mxu0  ;;  %v3928_v58 = vadd.f32 %v5141_v19, %v4732_v6 }
 0xb68   :  { %v3923_v49 = vadd.f32 %v4732_v6, %v3922_v38 }
 0xb69   :  { %v3970_v17 = vmul.f32 0.01, %v3928_v58  ;;  %vm3962_vm8 = vcmp.gt.f32.partialorder %v3928_v58, 0.0 }
 0xb6a   :  { %v3969_v24 = vmul.f32 0.01, %v3923_v49  ;;  %vm3961_vm15 = vcmp.gt.f32.partialorder %v3923_v49, 0.0 }
 0xb6b   :  { %v3978_v29 = vsel %vm3962_vm8, %v3928_v58, %v3970_v17 }
 0xb6c   :  { %v3977_v7 = vsel %vm3961_vm15, %v3923_v49, %v3969_v24  ;;  %v3992_v0 = vsel %vm2944_vm6, %v3978_v29, 0.0  ;;  %vm4375_vm15 = vcmask 654336  }
 0xb6d   :  { %v3985_v59 = vsel %vm2944_vm6, %v3977_v7, 0.0 }
 0xb6e   :  { %v5144_v11 = vpop.f32.mrb[44].mxu0 }
 0xb6f   :  { %v3938_v3 = vadd.f32 %v5144_v11, %v4732_v6  ;;  %v3932_v45 = vpop.f32.mrb[45].mxu0 }
 0xb70   :  { %v3933_v47 = vadd.f32 %v4732_v6, %v3932_v45 }
 0xb71   :  { %vm3964_vm5 = vcmp.gt.f32.partialorder %v3938_v3, 0.0  ;;  %v3972_v60 = vmul.f32 0.01, %v3938_v3 }
 0xb72   :  { %vm3963_vm7 = vcmp.gt.f32.partialorder %v3933_v47, 0.0  ;;  %v3971_v2 = vmul.f32 0.01, %v3933_v47 }
 0xb73   :  { %v3980_v36 = vsel %vm3964_vm5, %v3938_v3, %v3972_v60  ;;  %vm4386_vm5 = vcmask 982016  }
 0xb74   :  { %v3993_v51 = vsel %vm2944_vm6, %v3980_v36, 0.0  ;;  %v3979_v18 = vsel %vm3963_vm7, %v3933_v47, %v3971_v2 }
 0xb75   :  { %v3994_v33 = vadd.f32 %v3993_v51, %v3992_v0  ;;  %v3986_v12 = vsel %vm2944_vm6, %v3979_v18, 0.0 }
 0xb76   :  { %v3987_v13 = vadd.f32 %v3986_v12, %v3985_v59  ;;  %v5147_v34 = vpop.f32.mrb[46].mxu0 }
 0xb77   :  { %v3948_v14 = vadd.f32 %v5147_v34, %v4732_v6  ;;  %v3942_v52 = vpop.f32.mrb[47].mxu0 }
 0xb78   :  { %v3943_v42 = vadd.f32 %v4732_v6, %v3942_v52 }
 0xb79   :  { %vm3966_vm14 = vcmp.gt.f32.partialorder %v3948_v14, 0.0  ;;  %v3974_v5 = vmul.f32 0.01, %v3948_v14 }
 0xb7a   :  { %vm3965_vm0 = vcmp.gt.f32.partialorder %v3943_v42, 0.0  ;;  %v3973_v21 = vmul.f32 0.01, %v3943_v42 }
 0xb7b   :  { %v3982_v1 = vsel %vm3966_vm14, %v3948_v14, %v3974_v5 }
 0xb7c   :  { %v3995_v41 = vsel %vm2944_vm6, %v3982_v1, 0.0  ;;  %v3981_v48 = vsel %vm3965_vm0, %v3943_v42, %v3973_v21 }
 0xb7d   :  { %v3996_v25 = vadd.f32 %v3995_v41, %v3994_v33  ;;  %v3988_v22 = vsel %vm2944_vm6, %v3981_v48, 0.0 }
 0xb7e   :  { %v3989_v30 = vadd.f32 %v3988_v22, %v3987_v13  ;;  %v5150_v53 = vpop.f32.mrb[48].mxu0 }
 0xb7f   :  { %v3958_v44 = vadd.f32 %v5150_v53, %v4732_v6  ;;  %v3952_v16 = vpop.f32.mrb[49].mxu0 }
 0xb80   :  { %v3953_v10 = vadd.f32 %v4732_v6, %v3952_v16 }
 0xb81   :  { %vm3968_vm3 = vcmp.gt.f32.partialorder %v3958_v44, 0.0  ;;  %v3976_v62 = vmul.f32 0.01, %v3958_v44 }
 0xb82   :  { %vm3967_vm4 = vcmp.gt.f32.partialorder %v3953_v10, 0.0  ;;  %v3975_v54 = vmul.f32 0.01, %v3953_v10 }
 0xb83   :  { %v3984_v4 = vsel %vm3968_vm3, %v3958_v44, %v3976_v62 }
 0xb84   :  { %v3997_v40 = vsel %vm2944_vm6, %v3984_v4, 0.0  ;;  %v3983_v32 = vsel %vm3967_vm4, %v3953_v10, %v3975_v54 }
 0xb85   :  { %v3998_v23 = vadd.f32 %v3997_v40, %v3996_v25  ;;  %v3990_v50 = vsel %vm2944_vm6, %v3983_v32, 0.0 }
 0xb86   :  { %v3991_v28 = vadd.f32 %v3990_v50, %v3989_v30  ;;  %v4105_v50 = vld [vmem:[%s7995_s13 + $0x30] sm:$0xff] }
 0xb87   :  { %v4000_v35 = vsel %vm2944_vm6, %v3998_v23, 0.0 }
 0xb88   :  { %v3999_v20 = vsel %vm2944_vm6, %v3991_v28, 0.0  ;;  %v4106_v28 = vld [vmem:[%s7995_s13 + $0x38] sm:$0xf]  ;;  %s5432_s13 = smov 31  }
 0xb89   :  { %v4001_v61 = vadd.f32 %v4000_v35, %v3999_v20  ;;  %v5289_v20 = vpack.c.bf16 %v4106_v28, %v4105_v50  ;;  %s4610_s16 = sld [smem:[%s8189_s0 + %s5432_s13]]  }
 0xb8b   :  { %v4002_v8 = vrot.slane %v4001_v61, 4  ;;  %5291 = vmatprep.subr.msk.bf16.mxu1 %vm7929_vm13, %v5289_v20 }
 0xb8c   :  { %5294 = vmatpush3.bf16.msk.msra.mxu1 %vm7929_vm13, %v5289_v20  ;;  %v4743_v20 = vld [vmem:[%s4605_s27] ss:$0 sm:$0xff] }
 0xb8d   :  { %v4003_v19 = vadd.f32 %v4002_v8, %v4001_v61  ;;  %v4742_v8 = vld [vmem:[%s4603_s20] ss:$0 sm:$0xff]  ;;  %s5434_s20 = smov 33  }
 0xb8e   :  { %s4612_s22 = sld [smem:[%s8189_s0 + %s5434_s20]]  }
 0xb8f   :  { %v4004_v6 = vrot.slane %v4003_v19, 2 }
 0xb91   :  { %v4005_v38 = vadd.f32 %v4004_v6, %v4003_v19 }
 0xb93   :  { %v4006_v58 = vrot.slane %v4005_v38, 1 }
 0xb95   :  { %v4007_v49 = vadd.f32 %v4006_v58, %v4005_v38 }
 0xb97   :  { %v4008_v31 = vmul.f32 0.015625, %v4007_v49 }
 0xb99   :  { %v8013_v27 = vsub.f32 %v3977_v7, %v4008_v31  ;;  %v8015_v43 = vsub.f32 %v3978_v29, %v4008_v31  ;;  %v8017_v17 = vsub.f32 %v3979_v18, %v4008_v31  ;;  %v8019_v57 = vsub.f32 %v3980_v36, %v4008_v31 }
 0xb9a   :  { %v8021_v46 = vsub.f32 %v3981_v48, %v4008_v31  ;;  %v8023_v24 = vsub.f32 %v3982_v1, %v4008_v31  ;;  %v4015_v11 = vsub.f32 %v3983_v32, %v4008_v31  ;;  %v8025_v26 = vsub.f32 %v3984_v4, %v4008_v31  ;;  %v3749_v32 = vld [vmem:[%s4602_s17] sm:$0x1]  ;;  %s5433_s17 = smov 32  }
 0xb9b   :  { %v4017_v15 = vmul.f32 %v8013_v27, %v8013_v27  ;;  %v4018_v9 = vmul.f32 %v8015_v43, %v8015_v43  ;;  %v4019_v3 = vmul.f32 %v8017_v17, %v8017_v17  ;;  %v4020_v45 = vmul.f32 %v8019_v57, %v8019_v57  ;;  %s4611_s28 = sld [smem:[%s8189_s0 + %s5433_s17]]  }
 0xb9c   :  { %v4021_v47 = vmul.f32 %v8021_v46, %v8021_v46  ;;  %v4022_v29 = vmul.f32 %v8023_v24, %v8023_v24  ;;  %v4023_v60 = vmul.f32 %v4015_v11, %v4015_v11  ;;  %v4024_v56 = vmul.f32 %v8025_v26, %v8025_v26 }
 0xb9d   :  { %v4025_v7 = vsel %vm2944_vm6, %v4017_v15, 0.0  ;;  %v4026_v2 = vsel %vm2944_vm6, %v4019_v3, 0.0  ;;  %v4032_v36 = vsel %vm2944_vm6, %v4018_v9, 0.0  ;;  %v4033_v0 = vsel %vm2944_vm6, %v4020_v45, 0.0 }
 0xb9e   :  { %v4027_v51 = vadd.f32 %v4026_v2, %v4025_v7  ;;  %v4034_v18 = vadd.f32 %v4033_v0, %v4032_v36  ;;  %v4028_v59 = vsel %vm2944_vm6, %v4021_v47, 0.0  ;;  %v4035_v33 = vsel %vm2944_vm6, %v4022_v29, 0.0 }
 0xb9f   :  { %v4030_v34 = vsel %vm2944_vm6, %v4023_v60, 0.0  ;;  %v4037_v14 = vsel %vm2944_vm6, %v4024_v56, 0.0 }
 0xba0   :  { %v4029_v12 = vadd.f32 %v4028_v59, %v4027_v51  ;;  %v4036_v13 = vadd.f32 %v4035_v33, %v4034_v18 }
 0xba2   :  { %v4031_v52 = vadd.f32 %v4030_v34, %v4029_v12  ;;  %v4038_v42 = vadd.f32 %v4037_v14, %v4036_v13 }
 0xba4   :  { %v4039_v5 = vsel %vm2944_vm6, %v4031_v52, 0.0  ;;  %v4040_v21 = vsel %vm2944_vm6, %v4038_v42, 0.0 }
 0xba5   :  { %v4041_v1 = vadd.f32 %v4040_v21, %v4039_v5 }
 0xba7   :  { %v4042_v41 = vrot.slane %v4041_v1, 4 }
 0xba9   :  { %v4043_v48 = vadd.f32 %v4042_v41, %v4041_v1 }
 0xbab   :  { %v4044_v25 = vrot.slane %v4043_v48, 2 }
 0xbad   :  { %v4045_v22 = vadd.f32 %v4044_v25, %v4043_v48 }
 0xbaf   :  { %v4046_v30 = vrot.slane %v4045_v22, 1 }
 0xbb1   :  { %v4047_v53 = vadd.f32 %v4046_v30, %v4045_v22 }
 0xbb3   :  { %v4048_v44 = vmul.f32 0.015625, %v4047_v53 }
 0xbb5   :  { %v4049_v16 = vadd.f32 1e-05, %v4048_v44 }
 0xbb7   :  { %5385 = vrsqrt.f32 %v4049_v16  ;;  %vm4052_vm9 = vcmp.eq.f32.partialorder %v4049_v16, inf  ;;  %v4055_v54 = vand.u32 2147483648, %v4049_v16  ;;  %vm4054_vm10 = vcmp.eq.f32.partialorder %v4049_v16, 0.0 }
 0xbc1   :  { %v5386_v10 = vpop.eup %5385 }
 0xbc2   :  { %v4051_v62 = vmul.f32 %v5386_v10, %v4049_v16 }
 0xbc4   :  { %v4053_v4 = vsel %vm4052_vm9, %v4049_v16, %v4051_v62 }
 0xbc5   :  { %v4056_v40 = vsel %vm4054_vm10, %v4055_v54, %v4053_v4 }
 0xbc6   :  { %5387 = vrcp.f32 %v4056_v40 }
 0xbd0   :  { %v5388_v23 = vpop.eup %5387 }
 0xbd1   :  { %v4058_v35 = vmul.f32 %v5388_v23, %v3749_v32 }
 0xbd3   :  { %v4063_v61 = vrot.slane %v4058_v35, %v6140_v39 }
 0xbd5   :  { %v4071_v19 = vmul.f32 %v4063_v61, %v4015_v11  ;;  %v4066_v6 = vmul.f32 %v4063_v61, %v8015_v43  ;;  %v4068_v38 = vmul.f32 %v4063_v61, %v8019_v57  ;;  %v4065_v58 = vmul.f32 %v4063_v61, %v8013_v27 }
 0xbd6   :  { %v4067_v49 = vmul.f32 %v4063_v61, %v8017_v17  ;;  %v4070_v31 = vmul.f32 %v4063_v61, %v8023_v24  ;;  %v4072_v15 = vmul.f32 %v4063_v61, %v8025_v26  ;;  %v4069_v9 = vmul.f32 %v4063_v61, %v8021_v46 }
 0xbd7   :  { %v4085_v3 = vadd.f32 %v4742_v8, %v4071_v19  ;;  %v4080_v45 = vadd.f32 %v4742_v8, %v4066_v6  ;;  %v4082_v47 = vadd.f32 %v4742_v8, %v4068_v38  ;;  %v4079_v37 = vadd.f32 %v4742_v8, %v4065_v58 }
 0xbd8   :  { %v4081_v29 = vadd.f32 %v4742_v8, %v4067_v49  ;;  %v4084_v11 = vadd.f32 %v4742_v8, %v4070_v31  ;;  %v4086_v60 = vadd.f32 %v4742_v8, %v4072_v15  ;;  %v4083_v43 = vadd.f32 %v4742_v8, %v4069_v9 }
 0xbd9   :  { %v4090_v57 = vsel %vm2944_vm6, %v4080_v45, -inf  ;;  %v4091_v27 = vsel %vm2944_vm6, %v4082_v47, -inf  ;;  %v4087_v17 = vsel %vm2944_vm6, %v4079_v37, -inf  ;;  %v4094_v24 = vsel %vm2944_vm6, %v4085_v3, -inf }
 0xbda   :  { %v4092_v56 = vmax.f32 %v4090_v57, %v4091_v27  ;;  %v4088_v26 = vsel %vm2944_vm6, %v4081_v29, -inf  ;;  %v4096_v46 = vsel %vm2944_vm6, %v4084_v11, -inf  ;;  %v4097_v7 = vsel %vm2944_vm6, %v4086_v60, -inf }
 0xbdb   :  { %v4089_v2 = vmax.f32 %v4087_v17, %v4088_v26  ;;  %v4098_v36 = vmax.f32 %v4096_v46, %v4097_v7  ;;  %v4093_v0 = vsel %vm2944_vm6, %v4083_v43, -inf }
 0xbdc   :  { %4116 = vrot.lane.b32.xlu1 %v4092_v56, %s5414_s2  ;;  %v4095_v51 = vmax.f32 %v4093_v0, %v4094_v24 }
 0xbdd   :  { %4114 = vrot.lane.b32.xlu0 %v4089_v2, %s5414_s2 }
 0xbe0   :  { %4128 = vrot.lane.b32.xlu1 %v4098_v36, %s5421_s6 }
 0xbe1   :  { %4126 = vrot.lane.b32.xlu0 %v4095_v51, %s5421_s6 }
 0xbe4   :  { %4120 = vrot.lane.b32.xlu1 %v4098_v36, %s5414_s2 }
 0xbe5   :  { %4118 = vrot.lane.b32.xlu0 %v4095_v51, %s5414_s2  ;;  %s5426_s2 = smov 29  }
 0xbe6   :  { %s8102_s23 = sld [smem:[%s8189_s0 + %s5426_s2]]  }
 0xbec   :  { %v4328_v25 = vld [vmem:[%s8102_s23] sm:$0xff]  ;;  %v4330_v22 = vld [vmem:[%s8102_s23 + $0x10] sm:$0xff]  ;;  %v4331_v53 = vld [vmem:[%s8102_s23 + $0x18] sm:$0xff] }
 0xbed   :  { %v5299_v44 = vpack.c.bf16 %v4331_v53, %v4330_v22  ;;  %v4332_v16 = vld [vmem:[%s8102_s23 + $0x20] sm:$0xff]  ;;  %v4333_v10 = vld [vmem:[%s8102_s23 + $0x28] sm:$0xff]  ;;  %v4334_v54 = vld [vmem:[%s8102_s23 + $0x30] sm:$0xff] }
 0xbee   :  { %v5303_v62 = vpack.c.bf16 %v4333_v10, %v4332_v16  ;;  %v4335_v4 = vld [vmem:[%s8102_s23 + $0x38] sm:$0xff]  ;;  %v4336_v32 = vld [vmem:[%s8102_s23 + $0x40] sm:$0xff]  ;;  %v4337_v23 = vld [vmem:[%s8102_s23 + $0x48] sm:$0xff] }
 0xbef   :  { %v5307_v40 = vpack.c.bf16 %v4335_v4, %v4334_v54  ;;  %v5311_v50 = vpack.c.bf16 %v4337_v23, %v4336_v32  ;;  %v4338_v28 = vld [vmem:[%s8102_s23 + $0x50] sm:$0xff]  ;;  %v4339_v35 = vld [vmem:[%s8102_s23 + $0x58] sm:$0xff] }
 0xbf0   :  { %v5315_v8 = vpack.c.bf16 %v4339_v35, %v4338_v28 }
 0xc4e   :  { %v4117_v18 = vpop.permute.xlu1 %4116 }
 0xc4f   :  { %v4115_v59 = vpop.permute.xlu0 %4114  ;;  %v4133_v33 = vsel %vm2944_vm6, 0.0, %v4117_v18 }
 0xc50   :  { %v4132_v13 = vsel %vm2944_vm6, 0.0, %v4115_v59 }
 0xc52   :  { %v4129_v12 = vpop.permute.xlu1 %4128 }
 0xc53   :  { %v4137_v34 = vsel %vm3812_vm1, %v4133_v33, %v4129_v12  ;;  %v4127_v14 = vpop.permute.xlu0 %4126 }
 0xc54   :  { %v4136_v52 = vsel %vm3812_vm1, %v4132_v13, %v4127_v14 }
 0xc55   :  { %5167 = vmatprep.mubr.msk.f32.mxu1 %vm3827_vm2, %v4136_v52 }
 0xc56   :  { %5168 = vmatmul.mubr.msk.f32.vlgmr.msra.gmra.mrb[62].mxu1 %vm3827_vm2, %v4137_v34  ;;  %v4121_v42 = vpop.permute.xlu1 %4120 }
 0xc57   :  { %v4135_v5 = vsel %vm2944_vm6, %v4092_v56, %v4121_v42  ;;  %v4119_v21 = vpop.permute.xlu0 %4118 }
 0xc58   :  { %v4134_v1 = vsel %vm2944_vm6, %v4089_v2, %v4119_v21  ;;  %v4139_v41 = vsel %vm3812_vm1, %v4135_v5, %v7981_v63 }
 0xc59   :  { %v4138_v48 = vsel %vm3812_vm1, %v4134_v1, %v7981_v63  ;;  %v4329_v63 = vld [vmem:[%s8102_s23 + $0x8] sm:$0xff] }
 0xc5a   :  { %5170 = vmatprep.mubr.msk.f32.mxu1 %vm3827_vm2, %v4138_v48  ;;  %v5295_v30 = vpack.c.bf16 %v4329_v63, %v4328_v25 }
 0xc5b   :  { %5171 = vmatmul.mubr.msk.f32.gmra.mrb[64].mxu1 %vm3827_vm2, %v4139_v41 }
 0xc5c   :  { %5296 = vmatprep.subr.bf16.mxu0 %v5295_v30 }
 0xc5d   :  { %5298 = vmatpush3.bf16.msra.mxu0 %v5295_v30 }
 0xc5e   :  { %5300 = vmatprep.subr.bf16.mxu0 %v5299_v44 }
 0xc61   :  { %5302 = vmatpush3.bf16.msra.mxu0 %v5299_v44 }
 0xc62   :  { %5304 = vmatprep.subr.bf16.mxu0 %v5303_v62 }
 0xc65   :  { %5306 = vmatpush3.bf16.msra.mxu0 %v5303_v62 }
 0xc66   :  { %5308 = vmatprep.subr.bf16.mxu0 %v5307_v40 }
 0xc69   :  { %5310 = vmatpush3.bf16.msra.mxu0 %v5307_v40 }
 0xc6a   :  { %5312 = vmatprep.subr.bf16.mxu0 %v5311_v50 }
 0xc6d   :  { %5314 = vmatpush3.bf16.msra.mxu0 %v5311_v50 }
 0xc6e   :  { %5316 = vmatprep.subr.bf16.mxu0 %v5315_v8 }
 0xc71   :  { %5318 = vmatpush3.bf16.msra.mxu0 %v5315_v8  ;;  %v4340_v8 = vld [vmem:[%s8102_s23 + $0x60] sm:$0xff] }
 0xd29   :  { %v5169_v61 = vpop.f32.mrb[62].mxu1 }
 0xd2a   :  { %v4233_v19 = vadd.f32 %v5169_v61, %v4743_v20  ;;  %v4227_v6 = vpop.f32.mrb[63].mxu1 }
 0xd2b   :  { %v4228_v38 = vadd.f32 %v4743_v20, %v4227_v6 }
 0xd2c   :  { %v4251_v58 = vmul.f32 0.01, %v4233_v19  ;;  %vm4247_vm6 = vcmp.gt.f32.partialorder %v4233_v19, 0.0 }
 0xd2d   :  { %v4250_v49 = vmul.f32 0.01, %v4228_v38  ;;  %vm4246_vm11 = vcmp.gt.f32.partialorder %v4228_v38, 0.0 }
 0xd2e   :  { %v5172_v31 = vpop.f32.mrb[64].mxu1  ;;  %v4255_v45 = vsel %vm4247_vm6, %v4233_v19, %v4251_v58  ;;  %v4341_v19 = vld [vmem:[%s8102_s23 + $0x68] sm:$0xff] }
 0xd2f   :  { %v4243_v15 = vadd.f32 %v5172_v31, %v4743_v20  ;;  %v4237_v9 = vpop.f32.mrb[65].mxu1  ;;  %v4254_v37 = vsel %vm4246_vm11, %v4228_v38, %v4250_v49  ;;  %v4261_v60 = vsel %vm3812_vm1, %v4255_v45, 0.0  ;;  %v5319_v6 = vpack.c.bf16 %v4341_v19, %v4340_v8  ;;  %v4108_v38 = vld [vmem:[%s4606_s3] sm:$0x1]  ;;  %v4342_v49 = vld [vmem:[%s8102_s23 + $0x70] sm:$0xff] }
 0xd30   :  { %v4238_v3 = vadd.f32 %v4743_v20, %v4237_v9  ;;  %v4258_v27 = vsel %vm3812_vm1, %v4254_v37, 0.0  ;;  %v4749_v9 = vld [vmem:[%s4607_s8] ss:$0 sm:$0xff] }
 0xd31   :  { %vm4249_vm12 = vcmp.gt.f32.partialorder %v4243_v15, 0.0  ;;  %v4253_v47 = vmul.f32 0.01, %v4243_v15  ;;  %5320 = vmatprep.subr.bf16.mxu0 %v5319_v6 }
 0xd32   :  { %vm4248_vm13 = vcmp.gt.f32.partialorder %v4238_v3, 0.0  ;;  %v4252_v29 = vmul.f32 0.01, %v4238_v3  ;;  %5322 = vmatpush3.bf16.msra.mxu0 %v5319_v6 }
 0xd33   :  { %v4257_v11 = vsel %vm4249_vm12, %v4243_v15, %v4253_v47  ;;  %5201 = vmatprep.subr.mxu0 %v4342_v49 }
 0xd34   :  { %v4262_v43 = vsel %vm3812_vm1, %v4257_v11, 0.0  ;;  %v4256_v57 = vsel %vm4248_vm13, %v4238_v3, %v4252_v29 }
 0xd35   :  { %v4263_v17 = vadd.f32 %v4262_v43, %v4261_v60  ;;  %v4259_v24 = vsel %vm3812_vm1, %v4256_v57, 0.0 }
 0xd36   :  { %v4260_v56 = vadd.f32 %v4259_v24, %v4258_v27  ;;  %5202 = vmatpush3.msra.mxu0 %v4342_v49 }
 0xd37   :  { %v4265_v26 = vsel %vm3812_vm1, %v4263_v17, 0.0 }
 0xd38   :  { %v4264_v46 = vsel %vm3812_vm1, %v4260_v56, 0.0 }
 0xd39   :  { %v4266_v7 = vadd.f32 %v4265_v26, %v4264_v46 }
 0xd3b   :  { %v4267_v2 = vrot.slane %v4266_v7, 4 }
 0xd3d   :  { %v4268_v36 = vadd.f32 %v4267_v2, %v4266_v7 }
 0xd3f   :  { %v4269_v0 = vrot.slane %v4268_v36, 2 }
 0xd41   :  { %v4270_v51 = vadd.f32 %v4269_v0, %v4268_v36 }
 0xd43   :  { %v4271_v18 = vrot.slane %v4270_v51, 1 }
 0xd45   :  { %v4272_v59 = vadd.f32 %v4271_v18, %v4270_v51 }
 0xd47   :  { %v4273_v33 = vmul.f32 0.03125, %v4272_v59 }
 0xd49   :  { %v4274_v12 = vsub.f32 %v4254_v37, %v4273_v33  ;;  %v4275_v13 = vsub.f32 %v4255_v45, %v4273_v33  ;;  %v4276_v34 = vsub.f32 %v4256_v57, %v4273_v33  ;;  %v4277_v14 = vsub.f32 %v4257_v11, %v4273_v33 }
 0xd4b   :  { %v4278_v52 = vmul.f32 %v4274_v12, %v4274_v12  ;;  %v4279_v42 = vmul.f32 %v4275_v13, %v4275_v13  ;;  %v4280_v5 = vmul.f32 %v4276_v34, %v4276_v34  ;;  %v4281_v21 = vmul.f32 %v4277_v14, %v4277_v14 }
 0xd4d   :  { %v4282_v1 = vsel %vm3812_vm1, %v4278_v52, 0.0  ;;  %v4283_v41 = vsel %vm3812_vm1, %v4280_v5, 0.0  ;;  %v4285_v48 = vsel %vm3812_vm1, %v4279_v42, 0.0  ;;  %v4286_v25 = vsel %vm3812_vm1, %v4281_v21, 0.0 }
 0xd4e   :  { %v4284_v63 = vadd.f32 %v4283_v41, %v4282_v1  ;;  %v4287_v22 = vadd.f32 %v4286_v25, %v4285_v48 }
 0xd50   :  { %v4288_v30 = vsel %vm3812_vm1, %v4284_v63, 0.0  ;;  %v4289_v53 = vsel %vm3812_vm1, %v4287_v22, 0.0 }
 0xd51   :  { %v4290_v44 = vadd.f32 %v4289_v53, %v4288_v30 }
 0xd53   :  { %v4291_v16 = vrot.slane %v4290_v44, 4 }
 0xd55   :  { %v4292_v10 = vadd.f32 %v4291_v16, %v4290_v44 }
 0xd57   :  { %v4293_v62 = vrot.slane %v4292_v10, 2 }
 0xd59   :  { %v4294_v54 = vadd.f32 %v4293_v62, %v4292_v10 }
 0xd5b   :  { %v4295_v4 = vrot.slane %v4294_v54, 1 }
 0xd5d   :  { %v4296_v40 = vadd.f32 %v4295_v4, %v4294_v54 }
 0xd5f   :  { %v4297_v32 = vmul.f32 0.03125, %v4296_v40 }
 0xd61   :  { %v4298_v23 = vadd.f32 1e-05, %v4297_v32 }
 0xd63   :  { %5389 = vrsqrt.f32 %v4298_v23  ;;  %vm4301_vm2 = vcmp.eq.f32.partialorder %v4298_v23, inf  ;;  %v4304_v35 = vand.u32 2147483648, %v4298_v23  ;;  %vm4303_vm8 = vcmp.eq.f32.partialorder %v4298_v23, 0.0 }
 0xd6d   :  { %v5390_v50 = vpop.eup %5389 }
 0xd6e   :  { %v4300_v28 = vmul.f32 %v5390_v50, %v4298_v23 }
 0xd70   :  { %v4302_v20 = vsel %vm4301_vm2, %v4298_v23, %v4300_v28 }
 0xd71   :  { %v4305_v61 = vsel %vm4303_vm8, %v4304_v35, %v4302_v20 }
 0xd72   :  { %5391 = vrcp.f32 %v4305_v61 }
 0xd7c   :  { %v5392_v58 = vpop.eup %5391 }
 0xd7d   :  { %v4307_v31 = vmul.f32 %v5392_v58, %v4108_v38 }
 0xd7f   :  { %v4312_v15 = vrot.slane %v4307_v31, %v6140_v39 }
 0xd81   :  { %v4316_v3 = vmul.f32 %v4312_v15, %v4276_v34  ;;  %v4315_v45 = vmul.f32 %v4312_v15, %v4275_v13  ;;  %v4314_v47 = vmul.f32 %v4312_v15, %v4274_v12  ;;  %v4317_v37 = vmul.f32 %v4312_v15, %v4277_v14 }
 0xd83   :  { %v4325_v29 = vadd.f32 %v4749_v9, %v4315_v45  ;;  %v4324_v11 = vadd.f32 %v4749_v9, %v4314_v47  ;;  %v4327_v60 = vadd.f32 %v4749_v9, %v4317_v37  ;;  %v4326_v43 = vadd.f32 %v4749_v9, %v4316_v3 }
 0xd85   :  { %4352 = vrot.lane.b32.xlu1 %v4325_v29, %s5421_s6  ;;  %4350 = vrot.lane.b32.xlu0 %v4324_v11, %s5421_s6 }
 0xd89   :  { %4364 = vrot.lane.b32.xlu1 %v4327_v60, %s5430_s9  ;;  %4362 = vrot.lane.b32.xlu0 %v4326_v43, %s5430_s9 }
 0xd8d   :  { %4356 = vrot.lane.b32.xlu1 %v4327_v60, %s5421_s6  ;;  %4354 = vrot.lane.b32.xlu0 %v4326_v43, %s5421_s6  ;;  %s5431_s6 = smov 30  }
 0xd8e   :  { %s4609_s12 = sld [smem:[%s8189_s0 + %s5431_s6]]  }
 0xd91   :  { %4366 = vrot.lane.b32.xlu0 %v5401_v55, %s5430_s9 }
 0xd94   :  { %v4750_v12 = vld [vmem:[%s4609_s12] ss:$0 sm:$0xff] }
 0xdf7   :  { %v4353_v57 = vpop.permute.xlu1 %4352  ;;  %v4351_v27 = vpop.permute.xlu0 %4350 }
 0xdf8   :  { %v4372_v17 = vsel %vm3812_vm1, 0.0, %v4353_v57  ;;  %v4371_v24 = vsel %vm3812_vm1, 0.0, %v4351_v27 }
 0xdfb   :  { %v4365_v56 = vpop.permute.xlu1 %4364  ;;  %v4363_v26 = vpop.permute.xlu0 %4362 }
 0xdfc   :  { %v4377_v46 = vsel %vm4375_vm15, %v4372_v17, %v4365_v56  ;;  %v4376_v7 = vsel %vm4375_vm15, %v4371_v24, %v4363_v26 }
 0xdfd   :  { %5203 = vmatprep.mubr.msk.f32.mxu0 %vm4386_vm5, %v4376_v7 }
 0xdfe   :  { %5204 = vmatmul.mubr.msk.f32.vlgmr.msra.gmra.mrb[50].mxu0 %vm4386_vm5, %v4377_v46 }
 0xdff   :  { %v4355_v2 = vpop.permute.xlu0 %4354  ;;  %v4357_v55 = vpop.permute.xlu1 %4356 }
 0xe00   :  { %v4374_v36 = vsel %vm3812_vm1, %v4325_v29, %v4357_v55  ;;  %v4373_v0 = vsel %vm3812_vm1, %v4324_v11, %v4355_v2 }
 0xe03   :  { %v4367_v51 = vpop.permute.xlu0 %4366 }
 0xe04   :  { %v4378_v18 = vsel %vm4375_vm15, %v4373_v0, %v4367_v51  ;;  %v4379_v59 = vsel %vm4375_vm15, %v4374_v36, %v4367_v51 }
 0xe05   :  { %5206 = vmatprep.mubr.msk.f32.mxu0 %vm4386_vm5, %v4378_v18 }
 0xe06   :  { %5207 = vmatmul.mubr.msk.f32.gmra.mrb[52].mxu0 %vm4386_vm5, %v4379_v59 }
 0xed1   :  { %v5205_v33 = vpop.f32.mrb[50].mxu0 }
 0xed2   :  { %v4465_v13 = vpop.f32.mrb[51].mxu0  ;;  %v4471_v34 = vadd.f32 %v5205_v33, %v4750_v12  ;;  %v4344_v33 = vld [vmem:[%s4610_s16] sm:$0x1] }
 0xed3   :  { %v4466_v14 = vadd.f32 %v4750_v12, %v4465_v13 }
 0xed4   :  { %v4489_v52 = vmul.f32 0.01, %v4471_v34  ;;  %vm4485_vm7 = vcmp.gt.f32.partialorder %v4471_v34, 0.0 }
 0xed5   :  { %v4488_v42 = vmul.f32 0.01, %v4466_v14  ;;  %vm4484_vm14 = vcmp.gt.f32.partialorder %v4466_v14, 0.0 }
 0xed6   :  { %v4493_v48 = vsel %vm4485_vm7, %v4471_v34, %v4489_v52 }
 0xed7   :  { %v4492_v63 = vsel %vm4484_vm14, %v4466_v14, %v4488_v42  ;;  %v4499_v53 = vsel %vm3812_vm1, %v4493_v48, 0.0  ;;  %v4755_v14 = vld [vmem:[%s4611_s28] ss:$0 sm:$0xff] }
 0xed8   :  { %v4496_v10 = vsel %vm3812_vm1, %v4492_v63, 0.0 }
 0xed9   :  { %v5208_v5 = vpop.f32.mrb[52].mxu0 }
 0xeda   :  { %v4481_v21 = vadd.f32 %v5208_v5, %v4750_v12  ;;  %v4475_v1 = vpop.f32.mrb[53].mxu0 }
 0xedb   :  { %v4476_v41 = vadd.f32 %v4750_v12, %v4475_v1 }
 0xedc   :  { %vm4487_vm0 = vcmp.gt.f32.partialorder %v4481_v21, 0.0  ;;  %v4491_v25 = vmul.f32 0.01, %v4481_v21 }
 0xedd   :  { %vm4486_vm3 = vcmp.gt.f32.partialorder %v4476_v41, 0.0  ;;  %v4490_v22 = vmul.f32 0.01, %v4476_v41 }
 0xede   :  { %v4495_v30 = vsel %vm4487_vm0, %v4481_v21, %v4491_v25 }
 0xedf   :  { %v4500_v44 = vsel %vm3812_vm1, %v4495_v30, 0.0  ;;  %v4494_v16 = vsel %vm4486_vm3, %v4476_v41, %v4490_v22 }
 0xee0   :  { %v4501_v62 = vadd.f32 %v4500_v44, %v4499_v53  ;;  %v4497_v54 = vsel %vm3812_vm1, %v4494_v16, 0.0 }
 0xee1   :  { %v4498_v4 = vadd.f32 %v4497_v54, %v4496_v10 }
 0xee2   :  { %v4503_v40 = vsel %vm3812_vm1, %v4501_v62, 0.0 }
 0xee3   :  { %v4502_v32 = vsel %vm3812_vm1, %v4498_v4, 0.0 }
 0xee4   :  { %v4504_v23 = vadd.f32 %v4503_v40, %v4502_v32 }
 0xee6   :  { %v4505_v50 = vrot.slane %v4504_v23, 4 }
 0xee8   :  { %v4506_v28 = vadd.f32 %v4505_v50, %v4504_v23 }
 0xeea   :  { %v4507_v35 = vrot.slane %v4506_v28, 2 }
 0xeec   :  { %v4508_v20 = vadd.f32 %v4507_v35, %v4506_v28 }
 0xeee   :  { %v4509_v61 = vrot.slane %v4508_v20, 1 }
 0xef0   :  { %v4510_v8 = vadd.f32 %v4509_v61, %v4508_v20 }
 0xef2   :  { %v4511_v19 = vmul.f32 0.03125, %v4510_v8 }
 0xef4   :  { %v4512_v6 = vsub.f32 %v4492_v63, %v4511_v19  ;;  %v4513_v38 = vsub.f32 %v4493_v48, %v4511_v19  ;;  %v4514_v58 = vsub.f32 %v4494_v16, %v4511_v19  ;;  %v4515_v49 = vsub.f32 %v4495_v30, %v4511_v19 }
 0xef6   :  { %v4516_v31 = vmul.f32 %v4512_v6, %v4512_v6  ;;  %v4517_v15 = vmul.f32 %v4513_v38, %v4513_v38  ;;  %v4518_v9 = vmul.f32 %v4514_v58, %v4514_v58  ;;  %v4519_v3 = vmul.f32 %v4515_v49, %v4515_v49 }
 0xef8   :  { %v4520_v45 = vsel %vm3812_vm1, %v4516_v31, 0.0  ;;  %v4521_v47 = vsel %vm3812_vm1, %v4518_v9, 0.0  ;;  %v4523_v37 = vsel %vm3812_vm1, %v4517_v15, 0.0  ;;  %v4524_v29 = vsel %vm3812_vm1, %v4519_v3, 0.0 }
 0xef9   :  { %v4522_v11 = vadd.f32 %v4521_v47, %v4520_v45  ;;  %v4525_v60 = vadd.f32 %v4524_v29, %v4523_v37 }
 0xefb   :  { %v4526_v43 = vsel %vm3812_vm1, %v4522_v11, 0.0  ;;  %v4527_v57 = vsel %vm3812_vm1, %v4525_v60, 0.0 }
 0xefc   :  { %v4528_v27 = vadd.f32 %v4527_v57, %v4526_v43 }
 0xefe   :  { %v4529_v17 = vrot.slane %v4528_v27, 4 }
 0xf00   :  { %v4530_v24 = vadd.f32 %v4529_v17, %v4528_v27 }
 0xf02   :  { %v4531_v56 = vrot.slane %v4530_v24, 2 }
 0xf04   :  { %v4532_v26 = vadd.f32 %v4531_v56, %v4530_v24 }
 0xf06   :  { %v4533_v46 = vrot.slane %v4532_v26, 1 }
 0xf08   :  { %v4534_v7 = vadd.f32 %v4533_v46, %v4532_v26 }
 0xf0a   :  { %v4535_v2 = vmul.f32 0.03125, %v4534_v7 }
 0xf0c   :  { %v4536_v55 = vadd.f32 1e-05, %v4535_v2 }
 0xf0e   :  { %5393 = vrsqrt.f32 %v4536_v55  ;;  %vm4539_vm4 = vcmp.eq.f32.partialorder %v4536_v55, inf  ;;  %v4542_v51 = vand.u32 2147483648, %v4536_v55  ;;  %vm4541_vm9 = vcmp.eq.f32.partialorder %v4536_v55, 0.0 }
 0xf18   :  { %v5394_v36 = vpop.eup %5393 }
 0xf19   :  { %v4538_v0 = vmul.f32 %v5394_v36, %v4536_v55 }
 0xf1b   :  { %v4540_v18 = vsel %vm4539_vm4, %v4536_v55, %v4538_v0 }
 0xf1c   :  { %v4543_v59 = vsel %vm4541_vm9, %v4542_v51, %v4540_v18 }
 0xf1d   :  { %5395 = vrcp.f32 %v4543_v59 }
 0xf27   :  { %v5396_v12 = vpop.eup %5395 }
 0xf28   :  { %v4545_v13 = vmul.f32 %v5396_v12, %v4344_v33 }
 0xf2a   :  { %v4550_v34 = vrot.slane %v4545_v13, %v6140_v39 }
 0xf2c   :  { %v4552_v52 = vmul.f32 %v4550_v34, %v4512_v6  ;;  %v4553_v42 = vmul.f32 %v4550_v34, %v4513_v38  ;;  %v4554_v5 = vmul.f32 %v4550_v34, %v4514_v58  ;;  %v4555_v21 = vmul.f32 %v4550_v34, %v4515_v49 }
 0xf2e   :  { %v4562_v1 = vadd.f32 %v4755_v14, %v4552_v52  ;;  %v4563_v41 = vadd.f32 %v4755_v14, %v4553_v42  ;;  %v4564_v48 = vadd.f32 %v4755_v14, %v4554_v5  ;;  %v4565_v25 = vadd.f32 %v4755_v14, %v4555_v21 }
 0xf30   :  { %v4566_v63 = vsel %vm3812_vm1, %v4562_v1, -inf  ;;  %v4567_v22 = vsel %vm3812_vm1, %v4564_v48, -inf  ;;  %v4569_v39 = vsel %vm3812_vm1, %v4563_v41, -inf  ;;  %v4570_v30 = vsel %vm3812_vm1, %v4565_v25, -inf }
 0xf31   :  { %v4568_v53 = vmax.f32 %v4566_v63, %v4567_v22  ;;  %v4571_v44 = vmax.f32 %v4569_v39, %v4570_v30 }
 0xf33   :  { %4574 = vst.msk [vmem:[%s4612_s22] sm:$0xff] %vm3812_vm1, %v4568_v53  ;;  %4575 = vst.msk [vmem:[%s4612_s22 + $0x8] sm:$0xff] %vm3812_vm1, %v4571_v44 }

</bundles_post_ra>
